<compile_context>
chip_gen: v5e
topology: v5e:2x2
jax: 0.10.0
libtpu: 0.0.40
codegen_flags: <defaults>
</compile_context>

<pallas_src>
import functools

import jax
import jax.numpy as jnp
from jax.experimental import pallas as pl
from jax.experimental.pallas import tpu as pltpu


def _round_up(n, m):
    return ((n + m - 1) // m) * m


# ---------------------------------------------------------------------------
# Fused iRev bottleneck kernel
# ---------------------------------------------------------------------------
#
# Flattened "canvas" layout: for each image, the zero-padded (Ho+2, RW=Wo+2)
# spatial map is flattened row-major; images are stacked along rows.  With
# this layout every 3x3 tap is a single contiguous slab of Mo rows, so each
# conv is one (Mo, 9*C) x (9*C, Cout) MXU matmul, and the conv output at flat
# row m is exactly the padded-interior position m + RW + 1 of the next conv's
# canvas -> one contiguous slab store per intermediate.  Junk rows/cols
# (padding positions) are zeroed with a precomputed mask so they serve as the
# next conv's zero padding.

def _bottleneck_kernel(x_ref, w1_ref, s2_ref, b2_ref, w2_ref, s3_ref, b3_ref,
                       w3_ref, mask_ref, o_ref, c2_ref, c3_ref,
                       *, stride, RW, Mo):
    mask = mask_ref[...]                                      # (Mo, 1)

    # ---- conv1 (stride 1: padded canvas, stride 2: phase planes) ----------
    if stride == 1:
        def tap1(kh, kw):
            return x_ref[pl.ds(kh * RW + kw, Mo), :]
    else:
        def tap1(kh, kw):
            ph = (kh % 2) * 2 + (kw % 2)
            return x_ref[ph, pl.ds((kh // 2) * RW + (kw // 2), Mo), :]

    p1 = jnp.concatenate([tap1(kh, kw) for kh in range(3) for kw in range(3)],
                         axis=-1)
    a1 = jnp.dot(p1, w1_ref[...], preferred_element_type=jnp.float32)

    # zero both canvases once: borders / junk stay zero (= conv zero padding),
    # the interior is overwritten by the slab stores below.
    c2_ref[...] = jnp.zeros_like(c2_ref)
    c3_ref[...] = jnp.zeros_like(c3_ref)

    # BN2 + ReLU, kill junk rows/cols, place at padded-interior offset RW+1
    y1 = jnp.maximum(a1 * s2_ref[...] + b2_ref[...], 0.0) * mask
    c2_ref[pl.ds(RW + 1, Mo), :] = y1

    def tapc(ref, kh, kw):
        return ref[pl.ds(kh * RW + kw, Mo), :]

    # ---- conv2 -------------------------------------------------------------
    p2 = jnp.concatenate([tapc(c2_ref, kh, kw)
                          for kh in range(3) for kw in range(3)], axis=-1)
    a2 = jnp.dot(p2, w2_ref[...], preferred_element_type=jnp.float32)

    y2 = jnp.maximum(a2 * s3_ref[...] + b3_ref[...], 0.0) * mask
    c3_ref[pl.ds(RW + 1, Mo), :] = y2

    # ---- conv3 -------------------------------------------------------------
    p3 = jnp.concatenate([tapc(c3_ref, kh, kw)
                          for kh in range(3) for kw in range(3)], axis=-1)
    a3 = jnp.dot(p3, w3_ref[...], preferred_element_type=jnp.float32)

    # one lane-dense contiguous store; junk rows/cols stripped in glue
    o_ref[...] = a3.astype(o_ref.dtype)


def irev_bottleneck(x2, wts, *, stride, preactivate):
    """Fused bottleneck F(x2): [BN1+ReLU] -> conv1(s) -> BN2+ReLU -> conv2 ->
    BN3+ReLU -> conv3.  NHWC in, (B, H//s, W//s, Cout) NHWC out."""
    B, H, W, Cin = x2.shape
    mid = wts["w2"].shape[-1]
    Cout = wts["w3"].shape[-1]
    assert wts["w1"].shape == (3, 3, Cin, mid)
    Ho, Wo = H // stride, W // stride
    RW = Wo + 2                       # canvas row width at output resolution
    Mo = B * (Ho + 2) * RW            # rows of the folded-batch canvas
    rows_pad = _round_up(Mo + 2 * RW + 2, 8)   # read slack for the 3x3 taps

    y = x2
    if preactivate:
        # pre-activation BN+ReLU of conv1, applied BEFORE the zero padding
        # (order matters: pad zeros must stay zeros), fused by XLA here.
        y = jnp.maximum(y * wts["bn1_scale"].reshape(1, 1, 1, Cin)
                        + wts["bn1_bias"].reshape(1, 1, 1, Cin), 0.0)

    if stride == 1:
        yp = jnp.pad(y, ((0, 0), (1, 1), (1, 1), (0, 0)))    # (B, Ho+2, RW, Cin)
        x_in = yp.reshape(Mo, Cin)
        x_in = jnp.pad(x_in, ((0, rows_pad - Mo), (0, 0)))
    else:
        assert stride == 2 and H % 2 == 0 and W % 2 == 0
        Hq, Wq = Ho + 1, Wo + 1
        yp = jnp.pad(y, ((0, 0), (1, 1), (1, 1), (0, 0)))    # (B, 2Hq, 2Wq, Cin)
        ph = yp.reshape(B, Hq, 2, Wq, 2, Cin).transpose(0, 2, 4, 1, 3, 5)
        ph = ph.reshape(B, 4, Hq, Wq, Cin)
        ph = jnp.pad(ph, ((0, 0), (0, 0), (0, (Ho + 2) - Hq),
                          (0, RW - Wq), (0, 0)))             # (B,4,Ho+2,RW,Cin)
        ph = ph.transpose(1, 0, 2, 3, 4).reshape(4, Mo, Cin)
        x_in = jnp.pad(ph, ((0, 0), (0, rows_pad - Mo), (0, 0)))

    # 1.0 at valid output positions, 0.0 at junk (padding) rows/cols; compile-
    # time constant, folded by XLA.
    mask = jnp.pad(jnp.ones((B, Ho, Wo, 1), x2.dtype),
                   ((0, 0), (0, 2), (0, 2), (0, 0))).reshape(Mo, 1)

    w1 = wts["w1"].reshape(9 * Cin, mid)
    w2 = wts["w2"].reshape(9 * mid, mid)
    w3 = wts["w3"].reshape(9 * mid, Cout)

    vmem = pl.BlockSpec(memory_space=pltpu.MemorySpace.VMEM)
    kernel = functools.partial(_bottleneck_kernel, stride=stride, RW=RW, Mo=Mo)
    out_flat = pl.pallas_call(
        kernel,
        out_shape=jax.ShapeDtypeStruct((Mo, Cout), x2.dtype),
        in_specs=[vmem] * 9,
        out_specs=vmem,
        scratch_shapes=[pltpu.VMEM((rows_pad, mid), jnp.float32),
                        pltpu.VMEM((rows_pad, mid), jnp.float32)],
    )(x_in, w1,
      wts["bn2_scale"].reshape(1, mid), wts["bn2_bias"].reshape(1, mid), w2,
      wts["bn3_scale"].reshape(1, mid), wts["bn3_bias"].reshape(1, mid), w3,
      mask)

    # strip junk rows/cols; XLA fuses this slice with the residual add in glue
    return out_flat.reshape(B, Ho + 2, RW, Cout)[:, :Ho, :Wo, :]


# ---------------------------------------------------------------------------
# Fused head: final BN+ReLU + global AvgPool (sublane reduce) + Linear
# ---------------------------------------------------------------------------

def _head_kernel(x_ref, s_ref, b_ref, w_ref, fb_ref, o_ref, *, inv_hw):
    y = jnp.maximum(x_ref[...] * s_ref[...] + b_ref[...], 0.0)   # (B, HW, C)
    pooled = jnp.sum(y, axis=1) * inv_hw                         # (B, C)
    logits = jnp.dot(pooled, w_ref[...],
                     preferred_element_type=jnp.float32) + fb_ref[...]
    o_ref[...] = logits.astype(o_ref.dtype)


def head(x_nhwc, bn_scale, bn_bias, fc_w, fc_b):
    B, H, W, C = x_nhwc.shape
    assert H == 7 and W == 7, "final AvgPool2d(7, 1) expects 7x7 features"
    HW = H * W
    N = fc_w.shape[1]
    vmem = pl.BlockSpec(memory_space=pltpu.MemorySpace.VMEM)
    kernel = functools.partial(_head_kernel, inv_hw=1.0 / HW)
    return pl.pallas_call(
        kernel,
        out_shape=jax.ShapeDtypeStruct((B, N), x_nhwc.dtype),
        in_specs=[vmem] * 5,
        out_specs=vmem,
    )(x_nhwc.reshape(B, HW, C), bn_scale.reshape(1, 1, C),
      bn_bias.reshape(1, 1, C), fc_w, fc_b.reshape(1, N))


# ---------------------------------------------------------------------------
# Model glue (pure data rearrangement) — plain JAX, NHWC end-to-end
# ---------------------------------------------------------------------------

def irev_downscale_nhwc(x, s):
    """IRevDownscale (psi) on NHWC tensors; channel-for-channel identical to
    the PyTorch NCHW op (out channel = (dh*s + dw)*C + c)."""
    B, H, W, C = x.shape
    yh, yw = H // s, W // s
    y = x.reshape(B, yh, s, yw, s, C)
    y = jnp.transpose(y, (0, 1, 3, 2, 4, 5))
    return y.reshape(B, yh, yw, s * s * C)


def irev_unit(x1, x2, cfg, wts):
    stride = cfg["stride"]
    if cfg["do_padding"]:
        # IRevInjectivePad: zero channels appended to cat(x1, x2).
        x = jnp.concatenate([x1, x2], axis=-1)
        x = jnp.pad(x, ((0, 0), (0, 0), (0, 0), (0, cfg["pad"])))
        x1, x2 = jnp.split(x, 2, axis=-1)
    fx2 = irev_bottleneck(x2, wts, stride=stride,
                          preactivate=cfg["preactivate"])
    if stride != 1:
        x1 = irev_downscale_nhwc(x1, stride)
        x2_new = irev_downscale_nhwc(x2, stride)
    else:
        x2_new = x2
    y1 = fx2 + x1          # residual add (fused by XLA with the de-junk slice)
    return x2_new, y1


def irevnet_forward(x, params, config, return_out_bij=False):
    y = jnp.transpose(x, (0, 2, 3, 1))             # NCHW -> NHWC once at entry
    y = irev_downscale_nhwc(y, 2)                  # init_block (ordinal)
    x1, x2 = jnp.split(y, 2, axis=-1)              # init_split (dual)
    for stage_cfg, stage_wts in zip(config["stages"], params["stages"]):
        for cfg, wts in zip(stage_cfg, stage_wts):
            x1, x2 = irev_unit(x1, x2, cfg, wts)   # stages (dual)
    xm = jnp.concatenate([x1, x2], axis=-1)        # final_merge
    logits = head(xm, params["final_bn_scale"], params["final_bn_bias"],
                  params["fc_w"], params["fc_b"])  # postactiv + pool + fc fused
    if return_out_bij:
        return logits, jnp.transpose(xm, (0, 3, 1, 2))   # NCHW out_bij
    return logits


# ---------------------------------------------------------------------------
# Deterministic parameter construction
# ---------------------------------------------------------------------------

def _make_bn(c):
    gamma = jnp.ones((c,), jnp.float32)
    beta = jnp.zeros((c,), jnp.float32)
    mean = jnp.zeros((c,), jnp.float32)
    var = jnp.ones((c,), jnp.float32)
    eps = 1e-5
    scale = gamma / jnp.sqrt(var + eps)
    bias = beta - mean * scale
    return scale, bias


def _make_conv(key, cin, cout):
    # kaiming_uniform_: bound = sqrt(6 / fan_in), fan_in = cin * 3 * 3
    bound = (6.0 / (cin * 9)) ** 0.5
    return jax.random.uniform(key, (3, 3, cin, cout), jnp.float32, -bound, bound)


def init_model(key, channels, init_block_channels, final_block_channels,
               num_classes):
    config = {"stages": []}
    params = {"stages": []}
    in_ch = init_block_channels
    for i, stage_channels in enumerate(channels):
        stage_cfg, stage_wts = [], []
        for j, out_ch in enumerate(stage_channels):
            stride = 2 if j == 0 else 1
            preactivate = not (i == 0 and j == 0)
            unit_in = in_ch if preactivate else in_ch // 2
            padding = 2 * (out_ch - unit_in)
            do_padding = (padding != 0) and (stride == 1)
            mid = out_ch // 4
            key, k1, k2, k3 = jax.random.split(key, 4)
            wts = {}
            if preactivate:
                wts["bn1_scale"], wts["bn1_bias"] = _make_bn(unit_in)
            wts["w1"] = _make_conv(k1, unit_in, mid)
            wts["bn2_scale"], wts["bn2_bias"] = _make_bn(mid)
            wts["w2"] = _make_conv(k2, mid, mid)
            wts["bn3_scale"], wts["bn3_bias"] = _make_bn(mid)
            wts["w3"] = _make_conv(k3, mid, out_ch)
            stage_cfg.append({"stride": stride, "preactivate": preactivate,
                              "do_padding": do_padding, "pad": padding})
            stage_wts.append(wts)
            in_ch = out_ch
        config["stages"].append(stage_cfg)
        params["stages"].append(stage_wts)
    params["final_bn_scale"], params["final_bn_bias"] = _make_bn(final_block_channels)
    key, kw, kb = jax.random.split(key, 3)
    bound = 1.0 / (final_block_channels ** 0.5)
    params["fc_w"] = jax.random.uniform(kw, (final_block_channels, num_classes),
                                        jnp.float32, -bound, bound)
    params["fc_b"] = jax.random.uniform(kb, (num_classes,), jnp.float32,
                                        -bound, bound)
    return config, params


# ---------------------------------------------------------------------------
# Main
# ---------------------------------------------------------------------------

if __name__ == "__main__":
    # Small IRevNet: input 3x28x28 -> init psi(2) -> 12ch@14x14 -> split ->
    # one stage [24, 24] (stride 2 then 1) -> two 24ch@7x7 branches ->
    # merge 48ch@7x7 -> BN+ReLU -> AvgPool2d(7,1) -> Linear(48 -> 10).
    channels = [[24, 24]]
    init_block_channels = 12       # 3 * 2 * 2
    final_block_channels = 48      # 2 * 24
    in_channels = 3
    in_size = (28, 28)
    num_classes = 10
    batch = 2

    key = jax.random.PRNGKey(0)
    key, kx = jax.random.split(key)
    x = jax.random.normal(kx, (batch, in_channels) + in_size, jnp.float32)

    config, params = init_model(key, channels, init_block_channels,
                                final_block_channels, num_classes)

    fwd = jax.jit(functools.partial(irevnet_forward, config=config))
    logits = fwd(x, params)
    jax.block_until_ready(logits)

    assert logits.shape == (batch, num_classes), logits.shape
    assert logits.dtype == jnp.float32
    print("KERNEL_OK")
</pallas_src>

<mosaic_0001>
module attributes {stable_mosaic.version = 11 : i64} {
  func.func @_bottleneck_kernel(%arg0: memref<4x184x6xf32, #tpu.memory_space<vmem>>, %arg1: memref<54x6xf32, #tpu.memory_space<vmem>>, %arg2: memref<1x6xf32, #tpu.memory_space<vmem>>, %arg3: memref<1x6xf32, #tpu.memory_space<vmem>>, %arg4: memref<54x6xf32, #tpu.memory_space<vmem>>, %arg5: memref<1x6xf32, #tpu.memory_space<vmem>>, %arg6: memref<1x6xf32, #tpu.memory_space<vmem>>, %arg7: memref<54x24xf32, #tpu.memory_space<vmem>>, %arg8: memref<162x1xf32, #tpu.memory_space<vmem>>, %arg9: memref<162x24xf32, #tpu.memory_space<vmem>>, %arg10: memref<184x6xf32, #tpu.memory_space<vmem>>, %arg11: memref<184x6xf32, #tpu.memory_space<vmem>>) attributes {dimension_semantics = [], scalar_prefetch = 0 : i64, scratch_operands = 2 : i64, tpu.core_type = #tpu.core_type<tc>} {
    %c0 = arith.constant 0 : index
    %c0_0 = arith.constant 0 : index
    %0 = vector.load %arg8[%c0, %c0_0] : memref<162x1xf32, #tpu.memory_space<vmem>>, vector<162x1xf32>
    %c0_1 = arith.constant 0 : index
    %c0_2 = arith.constant 0 : index
    %c0_3 = arith.constant 0 : index
    %1 = vector.load %arg0[%c0_1, %c0_2, %c0_3] : memref<4x184x6xf32, #tpu.memory_space<vmem>>, vector<1x162x6xf32>
    %2 = vector.shape_cast %1 : vector<1x162x6xf32> to vector<162x6xf32>
    %c1 = arith.constant 1 : index
    %c0_4 = arith.constant 0 : index
    %c0_5 = arith.constant 0 : index
    %3 = vector.load %arg0[%c1, %c0_4, %c0_5] : memref<4x184x6xf32, #tpu.memory_space<vmem>>, vector<1x162x6xf32>
    %4 = vector.shape_cast %3 : vector<1x162x6xf32> to vector<162x6xf32>
    %c0_6 = arith.constant 0 : index
    %c1_7 = arith.constant 1 : index
    %c0_8 = arith.constant 0 : index
    %5 = vector.load %arg0[%c0_6, %c1_7, %c0_8] : memref<4x184x6xf32, #tpu.memory_space<vmem>>, vector<1x162x6xf32>
    %6 = vector.shape_cast %5 : vector<1x162x6xf32> to vector<162x6xf32>
    %c2 = arith.constant 2 : index
    %c0_9 = arith.constant 0 : index
    %c0_10 = arith.constant 0 : index
    %7 = vector.load %arg0[%c2, %c0_9, %c0_10] : memref<4x184x6xf32, #tpu.memory_space<vmem>>, vector<1x162x6xf32>
    %8 = vector.shape_cast %7 : vector<1x162x6xf32> to vector<162x6xf32>
    %c3 = arith.constant 3 : index
    %c0_11 = arith.constant 0 : index
    %c0_12 = arith.constant 0 : index
    %9 = vector.load %arg0[%c3, %c0_11, %c0_12] : memref<4x184x6xf32, #tpu.memory_space<vmem>>, vector<1x162x6xf32>
    %10 = vector.shape_cast %9 : vector<1x162x6xf32> to vector<162x6xf32>
    %c2_13 = arith.constant 2 : index
    %c1_14 = arith.constant 1 : index
    %c0_15 = arith.constant 0 : index
    %11 = vector.load %arg0[%c2_13, %c1_14, %c0_15] : memref<4x184x6xf32, #tpu.memory_space<vmem>>, vector<1x162x6xf32>
    %12 = vector.shape_cast %11 : vector<1x162x6xf32> to vector<162x6xf32>
    %c0_16 = arith.constant 0 : index
    %c9 = arith.constant 9 : index
    %c0_17 = arith.constant 0 : index
    %13 = vector.load %arg0[%c0_16, %c9, %c0_17] : memref<4x184x6xf32, #tpu.memory_space<vmem>>, vector<1x162x6xf32>
    %14 = vector.shape_cast %13 : vector<1x162x6xf32> to vector<162x6xf32>
    %c1_18 = arith.constant 1 : index
    %c9_19 = arith.constant 9 : index
    %c0_20 = arith.constant 0 : index
    %15 = vector.load %arg0[%c1_18, %c9_19, %c0_20] : memref<4x184x6xf32, #tpu.memory_space<vmem>>, vector<1x162x6xf32>
    %16 = vector.shape_cast %15 : vector<1x162x6xf32> to vector<162x6xf32>
    %c0_21 = arith.constant 0 : index
    %c10 = arith.constant 10 : index
    %c0_22 = arith.constant 0 : index
    %17 = vector.load %arg0[%c0_21, %c10, %c0_22] : memref<4x184x6xf32, #tpu.memory_space<vmem>>, vector<1x162x6xf32>
    %18 = vector.shape_cast %17 : vector<1x162x6xf32> to vector<162x6xf32>
    %19 = tpu.concatenate %2, %4, %6, %8, %10, %12, %14, %16, %18 in 1 : vector<162x6xf32>, vector<162x6xf32>, vector<162x6xf32>, vector<162x6xf32>, vector<162x6xf32>, vector<162x6xf32>, vector<162x6xf32>, vector<162x6xf32>, vector<162x6xf32> -> vector<162x54xf32>
    %c0_23 = arith.constant 0 : index
    %c0_24 = arith.constant 0 : index
    %20 = vector.load %arg1[%c0_23, %c0_24] : memref<54x6xf32, #tpu.memory_space<vmem>>, vector<54x6xf32>
    %cst = arith.constant dense<0.000000e+00> : vector<162x6xf32>
    %21 = tpu.matmul %19, %20, %cst {dimension_numbers = #tpu.dot_dimension_numbers<[1], [0], [0], [1], [0, 0, 1, 1], [], []>} : vector<162x54xf32>, vector<54x6xf32>, vector<162x6xf32> -> vector<162x6xf32>
    %cst_25 = arith.constant 0.000000e+00 : f32
    %22 = vector.broadcast %cst_25 : f32 to vector<184x6xf32>
    %c0_26 = arith.constant 0 : index
    %c0_27 = arith.constant 0 : index
    %23 = vector.load %arg10[%c0_26, %c0_27] : memref<184x6xf32, #tpu.memory_space<vmem>>, vector<184x6xf32>
    tpu.vector_store %arg10[%c0_26, %c0_27], %22 {strides = array<i32>} : memref<184x6xf32, #tpu.memory_space<vmem>>, vector<184x6xf32>,
    %cst_28 = arith.constant 0.000000e+00 : f32
    %24 = vector.broadcast %cst_28 : f32 to vector<184x6xf32>
    %c0_29 = arith.constant 0 : index
    %c0_30 = arith.constant 0 : index
    %25 = vector.load %arg11[%c0_29, %c0_30] : memref<184x6xf32, #tpu.memory_space<vmem>>, vector<184x6xf32>
    tpu.vector_store %arg11[%c0_29, %c0_30], %24 {strides = array<i32>} : memref<184x6xf32, #tpu.memory_space<vmem>>, vector<184x6xf32>,
    %c0_31 = arith.constant 0 : index
    %c0_32 = arith.constant 0 : index
    %26 = vector.load %arg2[%c0_31, %c0_32] : memref<1x6xf32, #tpu.memory_space<vmem>>, vector<1x6xf32>
    %27 = vector.broadcast %26 : vector<1x6xf32> to vector<162x6xf32>
    %28 = arith.mulf %21, %27 : vector<162x6xf32>
    %c0_33 = arith.constant 0 : index
    %c0_34 = arith.constant 0 : index
    %29 = vector.load %arg3[%c0_33, %c0_34] : memref<1x6xf32, #tpu.memory_space<vmem>>, vector<1x6xf32>
    %30 = vector.broadcast %29 : vector<1x6xf32> to vector<162x6xf32>
    %31 = arith.addf %28, %30 : vector<162x6xf32>
    %cst_35 = arith.constant 0.000000e+00 : f32
    %32 = vector.broadcast %cst_35 : f32 to vector<162x6xf32>
    %33 = arith.maximumf %31, %32 : vector<162x6xf32>
    %34 = vector.broadcast %0 : vector<162x1xf32> to vector<162x6xf32>
    %35 = arith.mulf %33, %34 : vector<162x6xf32>
    %c10_36 = arith.constant 10 : index
    %c0_37 = arith.constant 0 : index
    %36 = vector.load %arg10[%c10_36, %c0_37] : memref<184x6xf32, #tpu.memory_space<vmem>>, vector<162x6xf32>
    tpu.vector_store %arg10[%c10_36, %c0_37], %35 {strides = array<i32>} : memref<184x6xf32, #tpu.memory_space<vmem>>, vector<162x6xf32>,
    %c0_38 = arith.constant 0 : index
    %c0_39 = arith.constant 0 : index
    %37 = vector.load %arg10[%c0_38, %c0_39] : memref<184x6xf32, #tpu.memory_space<vmem>>, vector<162x6xf32>
    %c1_40 = arith.constant 1 : index
    %c0_41 = arith.constant 0 : index
    %38 = vector.load %arg10[%c1_40, %c0_41] : memref<184x6xf32, #tpu.memory_space<vmem>>, vector<162x6xf32>
    %c2_42 = arith.constant 2 : index
    %c0_43 = arith.constant 0 : index
    %39 = vector.load %arg10[%c2_42, %c0_43] : memref<184x6xf32, #tpu.memory_space<vmem>>, vector<162x6xf32>
    %c9_44 = arith.constant 9 : index
    %c0_45 = arith.constant 0 : index
    %40 = vector.load %arg10[%c9_44, %c0_45] : memref<184x6xf32, #tpu.memory_space<vmem>>, vector<162x6xf32>
    %c10_46 = arith.constant 10 : index
    %c0_47 = arith.constant 0 : index
    %41 = vector.load %arg10[%c10_46, %c0_47] : memref<184x6xf32, #tpu.memory_space<vmem>>, vector<162x6xf32>
    %c11 = arith.constant 11 : index
    %c0_48 = arith.constant 0 : index
    %42 = vector.load %arg10[%c11, %c0_48] : memref<184x6xf32, #tpu.memory_space<vmem>>, vector<162x6xf32>
    %c18 = arith.constant 18 : index
    %c0_49 = arith.constant 0 : index
    %43 = vector.load %arg10[%c18, %c0_49] : memref<184x6xf32, #tpu.memory_space<vmem>>, vector<162x6xf32>
    %c19 = arith.constant 19 : index
    %c0_50 = arith.constant 0 : index
    %44 = vector.load %arg10[%c19, %c0_50] : memref<184x6xf32, #tpu.memory_space<vmem>>, vector<162x6xf32>
    %c20 = arith.constant 20 : index
    %c0_51 = arith.constant 0 : index
    %45 = vector.load %arg10[%c20, %c0_51] : memref<184x6xf32, #tpu.memory_space<vmem>>, vector<162x6xf32>
    %46 = tpu.concatenate %37, %38, %39, %40, %41, %42, %43, %44, %45 in 1 : vector<162x6xf32>, vector<162x6xf32>, vector<162x6xf32>, vector<162x6xf32>, vector<162x6xf32>, vector<162x6xf32>, vector<162x6xf32>, vector<162x6xf32>, vector<162x6xf32> -> vector<162x54xf32>
    %c0_52 = arith.constant 0 : index
    %c0_53 = arith.constant 0 : index
    %47 = vector.load %arg4[%c0_52, %c0_53] : memref<54x6xf32, #tpu.memory_space<vmem>>, vector<54x6xf32>
    %cst_54 = arith.constant dense<0.000000e+00> : vector<162x6xf32>
    %48 = tpu.matmul %46, %47, %cst_54 {dimension_numbers = #tpu.dot_dimension_numbers<[1], [0], [0], [1], [0, 0, 1, 1], [], []>} : vector<162x54xf32>, vector<54x6xf32>, vector<162x6xf32> -> vector<162x6xf32>
    %c0_55 = arith.constant 0 : index
    %c0_56 = arith.constant 0 : index
    %49 = vector.load %arg5[%c0_55, %c0_56] : memref<1x6xf32, #tpu.memory_space<vmem>>, vector<1x6xf32>
    %50 = vector.broadcast %49 : vector<1x6xf32> to vector<162x6xf32>
    %51 = arith.mulf %48, %50 : vector<162x6xf32>
    %c0_57 = arith.constant 0 : index
    %c0_58 = arith.constant 0 : index
    %52 = vector.load %arg6[%c0_57, %c0_58] : memref<1x6xf32, #tpu.memory_space<vmem>>, vector<1x6xf32>
    %53 = vector.broadcast %52 : vector<1x6xf32> to vector<162x6xf32>
    %54 = arith.addf %51, %53 : vector<162x6xf32>
    %cst_59 = arith.constant 0.000000e+00 : f32
    %55 = vector.broadcast %cst_59 : f32 to vector<162x6xf32>
    %56 = arith.maximumf %54, %55 : vector<162x6xf32>
    %57 = vector.broadcast %0 : vector<162x1xf32> to vector<162x6xf32>
    %58 = arith.mulf %56, %57 : vector<162x6xf32>
    %c10_60 = arith.constant 10 : index
    %c0_61 = arith.constant 0 : index
    %59 = vector.load %arg11[%c10_60, %c0_61] : memref<184x6xf32, #tpu.memory_space<vmem>>, vector<162x6xf32>
    tpu.vector_store %arg11[%c10_60, %c0_61], %58 {strides = array<i32>} : memref<184x6xf32, #tpu.memory_space<vmem>>, vector<162x6xf32>,
    %c0_62 = arith.constant 0 : index
    %c0_63 = arith.constant 0 : index
    %60 = vector.load %arg11[%c0_62, %c0_63] : memref<184x6xf32, #tpu.memory_space<vmem>>, vector<162x6xf32>
    %c1_64 = arith.constant 1 : index
    %c0_65 = arith.constant 0 : index
    %61 = vector.load %arg11[%c1_64, %c0_65] : memref<184x6xf32, #tpu.memory_space<vmem>>, vector<162x6xf32>
    %c2_66 = arith.constant 2 : index
    %c0_67 = arith.constant 0 : index
    %62 = vector.load %arg11[%c2_66, %c0_67] : memref<184x6xf32, #tpu.memory_space<vmem>>, vector<162x6xf32>
    %c9_68 = arith.constant 9 : index
    %c0_69 = arith.constant 0 : index
    %63 = vector.load %arg11[%c9_68, %c0_69] : memref<184x6xf32, #tpu.memory_space<vmem>>, vector<162x6xf32>
    %c10_70 = arith.constant 10 : index
    %c0_71 = arith.constant 0 : index
    %64 = vector.load %arg11[%c10_70, %c0_71] : memref<184x6xf32, #tpu.memory_space<vmem>>, vector<162x6xf32>
    %c11_72 = arith.constant 11 : index
    %c0_73 = arith.constant 0 : index
    %65 = vector.load %arg11[%c11_72, %c0_73] : memref<184x6xf32, #tpu.memory_space<vmem>>, vector<162x6xf32>
    %c18_74 = arith.constant 18 : index
    %c0_75 = arith.constant 0 : index
    %66 = vector.load %arg11[%c18_74, %c0_75] : memref<184x6xf32, #tpu.memory_space<vmem>>, vector<162x6xf32>
    %c19_76 = arith.constant 19 : index
    %c0_77 = arith.constant 0 : index
    %67 = vector.load %arg11[%c19_76, %c0_77] : memref<184x6xf32, #tpu.memory_space<vmem>>, vector<162x6xf32>
    %c20_78 = arith.constant 20 : index
    %c0_79 = arith.constant 0 : index
    %68 = vector.load %arg11[%c20_78, %c0_79] : memref<184x6xf32, #tpu.memory_space<vmem>>, vector<162x6xf32>
    %69 = tpu.concatenate %60, %61, %62, %63, %64, %65, %66, %67, %68 in 1 : vector<162x6xf32>, vector<162x6xf32>, vector<162x6xf32>, vector<162x6xf32>, vector<162x6xf32>, vector<162x6xf32>, vector<162x6xf32>, vector<162x6xf32>, vector<162x6xf32> -> vector<162x54xf32>
    %c0_80 = arith.constant 0 : index
    %c0_81 = arith.constant 0 : index
    %70 = vector.load %arg7[%c0_80, %c0_81] : memref<54x24xf32, #tpu.memory_space<vmem>>, vector<54x24xf32>
    %cst_82 = arith.constant dense<0.000000e+00> : vector<162x24xf32>
    %71 = tpu.matmul %69, %70, %cst_82 {dimension_numbers = #tpu.dot_dimension_numbers<[1], [0], [0], [1], [0, 0, 1, 1], [], []>} : vector<162x54xf32>, vector<54x24xf32>, vector<162x24xf32> -> vector<162x24xf32>
    %c0_83 = arith.constant 0 : index
    %c0_84 = arith.constant 0 : index
    %72 = vector.load %arg9[%c0_83, %c0_84] : memref<162x24xf32, #tpu.memory_space<vmem>>, vector<162x24xf32>
    tpu.vector_store %arg9[%c0_83, %c0_84], %71 {strides = array<i32>} : memref<162x24xf32, #tpu.memory_space<vmem>>, vector<162x24xf32>,
    return
  }
}

module attributes {stable_mosaic.version = 11 : i64} {
  func.func @_bottleneck_kernel(%arg0: memref<184x24xf32, #tpu.memory_space<vmem>>, %arg1: memref<216x6xf32, #tpu.memory_space<vmem>>, %arg2: memref<1x6xf32, #tpu.memory_space<vmem>>, %arg3: memref<1x6xf32, #tpu.memory_space<vmem>>, %arg4: memref<54x6xf32, #tpu.memory_space<vmem>>, %arg5: memref<1x6xf32, #tpu.memory_space<vmem>>, %arg6: memref<1x6xf32, #tpu.memory_space<vmem>>, %arg7: memref<54x24xf32, #tpu.memory_space<vmem>>, %arg8: memref<162x1xf32, #tpu.memory_space<vmem>>, %arg9: memref<162x24xf32, #tpu.memory_space<vmem>>, %arg10: memref<184x6xf32, #tpu.memory_space<vmem>>, %arg11: memref<184x6xf32, #tpu.memory_space<vmem>>) attributes {dimension_semantics = [], scalar_prefetch = 0 : i64, scratch_operands = 2 : i64, tpu.core_type = #tpu.core_type<tc>} {
    %c0 = arith.constant 0 : index
    %c0_0 = arith.constant 0 : index
    %0 = vector.load %arg8[%c0, %c0_0] : memref<162x1xf32, #tpu.memory_space<vmem>>, vector<162x1xf32>
    %c0_1 = arith.constant 0 : index
    %c0_2 = arith.constant 0 : index
    %1 = vector.load %arg0[%c0_1, %c0_2] : memref<184x24xf32, #tpu.memory_space<vmem>>, vector<162x24xf32>
    %c1 = arith.constant 1 : index
    %c0_3 = arith.constant 0 : index
    %2 = vector.load %arg0[%c1, %c0_3] : memref<184x24xf32, #tpu.memory_space<vmem>>, vector<162x24xf32>
    %c2 = arith.constant 2 : index
    %c0_4 = arith.constant 0 : index
    %3 = vector.load %arg0[%c2, %c0_4] : memref<184x24xf32, #tpu.memory_space<vmem>>, vector<162x24xf32>
    %c9 = arith.constant 9 : index
    %c0_5 = arith.constant 0 : index
    %4 = vector.load %arg0[%c9, %c0_5] : memref<184x24xf32, #tpu.memory_space<vmem>>, vector<162x24xf32>
    %c10 = arith.constant 10 : index
    %c0_6 = arith.constant 0 : index
    %5 = vector.load %arg0[%c10, %c0_6] : memref<184x24xf32, #tpu.memory_space<vmem>>, vector<162x24xf32>
    %c11 = arith.constant 11 : index
    %c0_7 = arith.constant 0 : index
    %6 = vector.load %arg0[%c11, %c0_7] : memref<184x24xf32, #tpu.memory_space<vmem>>, vector<162x24xf32>
    %c18 = arith.constant 18 : index
    %c0_8 = arith.constant 0 : index
    %7 = vector.load %arg0[%c18, %c0_8] : memref<184x24xf32, #tpu.memory_space<vmem>>, vector<162x24xf32>
    %c19 = arith.constant 19 : index
    %c0_9 = arith.constant 0 : index
    %8 = vector.load %arg0[%c19, %c0_9] : memref<184x24xf32, #tpu.memory_space<vmem>>, vector<162x24xf32>
    %c20 = arith.constant 20 : index
    %c0_10 = arith.constant 0 : index
    %9 = vector.load %arg0[%c20, %c0_10] : memref<184x24xf32, #tpu.memory_space<vmem>>, vector<162x24xf32>
    %10 = tpu.concatenate %1, %2, %3, %4, %5, %6, %7, %8, %9 in 1 : vector<162x24xf32>, vector<162x24xf32>, vector<162x24xf32>, vector<162x24xf32>, vector<162x24xf32>, vector<162x24xf32>, vector<162x24xf32>, vector<162x24xf32>, vector<162x24xf32> -> vector<162x216xf32>
    %c0_11 = arith.constant 0 : index
    %c0_12 = arith.constant 0 : index
    %11 = vector.load %arg1[%c0_11, %c0_12] : memref<216x6xf32, #tpu.memory_space<vmem>>, vector<216x6xf32>
    %cst = arith.constant dense<0.000000e+00> : vector<162x6xf32>
    %12 = tpu.matmul %10, %11, %cst {dimension_numbers = #tpu.dot_dimension_numbers<[1], [0], [0], [1], [0, 0, 1, 1], [], []>} : vector<162x216xf32>, vector<216x6xf32>, vector<162x6xf32> -> vector<162x6xf32>
    %cst_13 = arith.constant 0.000000e+00 : f32
    %13 = vector.broadcast %cst_13 : f32 to vector<184x6xf32>
    %c0_14 = arith.constant 0 : index
    %c0_15 = arith.constant 0 : index
    %14 = vector.load %arg10[%c0_14, %c0_15] : memref<184x6xf32, #tpu.memory_space<vmem>>, vector<184x6xf32>
    tpu.vector_store %arg10[%c0_14, %c0_15], %13 {strides = array<i32>} : memref<184x6xf32, #tpu.memory_space<vmem>>, vector<184x6xf32>,
    %cst_16 = arith.constant 0.000000e+00 : f32
    %15 = vector.broadcast %cst_16 : f32 to vector<184x6xf32>
    %c0_17 = arith.constant 0 : index
    %c0_18 = arith.constant 0 : index
    %16 = vector.load %arg11[%c0_17, %c0_18] : memref<184x6xf32, #tpu.memory_space<vmem>>, vector<184x6xf32>
    tpu.vector_store %arg11[%c0_17, %c0_18], %15 {strides = array<i32>} : memref<184x6xf32, #tpu.memory_space<vmem>>, vector<184x6xf32>,
    %c0_19 = arith.constant 0 : index
    %c0_20 = arith.constant 0 : index
    %17 = vector.load %arg2[%c0_19, %c0_20] : memref<1x6xf32, #tpu.memory_space<vmem>>, vector<1x6xf32>
    %18 = vector.broadcast %17 : vector<1x6xf32> to vector<162x6xf32>
    %19 = arith.mulf %12, %18 : vector<162x6xf32>
    %c0_21 = arith.constant 0 : index
    %c0_22 = arith.constant 0 : index
    %20 = vector.load %arg3[%c0_21, %c0_22] : memref<1x6xf32, #tpu.memory_space<vmem>>, vector<1x6xf32>
    %21 = vector.broadcast %20 : vector<1x6xf32> to vector<162x6xf32>
    %22 = arith.addf %19, %21 : vector<162x6xf32>
    %cst_23 = arith.constant 0.000000e+00 : f32
    %23 = vector.broadcast %cst_23 : f32 to vector<162x6xf32>
    %24 = arith.maximumf %22, %23 : vector<162x6xf32>
    %25 = vector.broadcast %0 : vector<162x1xf32> to vector<162x6xf32>
    %26 = arith.mulf %24, %25 : vector<162x6xf32>
    %c10_24 = arith.constant 10 : index
    %c0_25 = arith.constant 0 : index
    %27 = vector.load %arg10[%c10_24, %c0_25] : memref<184x6xf32, #tpu.memory_space<vmem>>, vector<162x6xf32>
    tpu.vector_store %arg10[%c10_24, %c0_25], %26 {strides = array<i32>} : memref<184x6xf32, #tpu.memory_space<vmem>>, vector<162x6xf32>,
    %c0_26 = arith.constant 0 : index
    %c0_27 = arith.constant 0 : index
    %28 = vector.load %arg10[%c0_26, %c0_27] : memref<184x6xf32, #tpu.memory_space<vmem>>, vector<162x6xf32>
    %c1_28 = arith.constant 1 : index
    %c0_29 = arith.constant 0 : index
    %29 = vector.load %arg10[%c1_28, %c0_29] : memref<184x6xf32, #tpu.memory_space<vmem>>, vector<162x6xf32>
    %c2_30 = arith.constant 2 : index
    %c0_31 = arith.constant 0 : index
    %30 = vector.load %arg10[%c2_30, %c0_31] : memref<184x6xf32, #tpu.memory_space<vmem>>, vector<162x6xf32>
    %c9_32 = arith.constant 9 : index
    %c0_33 = arith.constant 0 : index
    %31 = vector.load %arg10[%c9_32, %c0_33] : memref<184x6xf32, #tpu.memory_space<vmem>>, vector<162x6xf32>
    %c10_34 = arith.constant 10 : index
    %c0_35 = arith.constant 0 : index
    %32 = vector.load %arg10[%c10_34, %c0_35] : memref<184x6xf32, #tpu.memory_space<vmem>>, vector<162x6xf32>
    %c11_36 = arith.constant 11 : index
    %c0_37 = arith.constant 0 : index
    %33 = vector.load %arg10[%c11_36, %c0_37] : memref<184x6xf32, #tpu.memory_space<vmem>>, vector<162x6xf32>
    %c18_38 = arith.constant 18 : index
    %c0_39 = arith.constant 0 : index
    %34 = vector.load %arg10[%c18_38, %c0_39] : memref<184x6xf32, #tpu.memory_space<vmem>>, vector<162x6xf32>
    %c19_40 = arith.constant 19 : index
    %c0_41 = arith.constant 0 : index
    %35 = vector.load %arg10[%c19_40, %c0_41] : memref<184x6xf32, #tpu.memory_space<vmem>>, vector<162x6xf32>
    %c20_42 = arith.constant 20 : index
    %c0_43 = arith.constant 0 : index
    %36 = vector.load %arg10[%c20_42, %c0_43] : memref<184x6xf32, #tpu.memory_space<vmem>>, vector<162x6xf32>
    %37 = tpu.concatenate %28, %29, %30, %31, %32, %33, %34, %35, %36 in 1 : vector<162x6xf32>, vector<162x6xf32>, vector<162x6xf32>, vector<162x6xf32>, vector<162x6xf32>, vector<162x6xf32>, vector<162x6xf32>, vector<162x6xf32>, vector<162x6xf32> -> vector<162x54xf32>
    %c0_44 = arith.constant 0 : index
    %c0_45 = arith.constant 0 : index
    %38 = vector.load %arg4[%c0_44, %c0_45] : memref<54x6xf32, #tpu.memory_space<vmem>>, vector<54x6xf32>
    %cst_46 = arith.constant dense<0.000000e+00> : vector<162x6xf32>
    %39 = tpu.matmul %37, %38, %cst_46 {dimension_numbers = #tpu.dot_dimension_numbers<[1], [0], [0], [1], [0, 0, 1, 1], [], []>} : vector<162x54xf32>, vector<54x6xf32>, vector<162x6xf32> -> vector<162x6xf32>
    %c0_47 = arith.constant 0 : index
    %c0_48 = arith.constant 0 : index
    %40 = vector.load %arg5[%c0_47, %c0_48] : memref<1x6xf32, #tpu.memory_space<vmem>>, vector<1x6xf32>
    %41 = vector.broadcast %40 : vector<1x6xf32> to vector<162x6xf32>
    %42 = arith.mulf %39, %41 : vector<162x6xf32>
    %c0_49 = arith.constant 0 : index
    %c0_50 = arith.constant 0 : index
    %43 = vector.load %arg6[%c0_49, %c0_50] : memref<1x6xf32, #tpu.memory_space<vmem>>, vector<1x6xf32>
    %44 = vector.broadcast %43 : vector<1x6xf32> to vector<162x6xf32>
    %45 = arith.addf %42, %44 : vector<162x6xf32>
    %cst_51 = arith.constant 0.000000e+00 : f32
    %46 = vector.broadcast %cst_51 : f32 to vector<162x6xf32>
    %47 = arith.maximumf %45, %46 : vector<162x6xf32>
    %48 = vector.broadcast %0 : vector<162x1xf32> to vector<162x6xf32>
    %49 = arith.mulf %47, %48 : vector<162x6xf32>
    %c10_52 = arith.constant 10 : index
    %c0_53 = arith.constant 0 : index
    %50 = vector.load %arg11[%c10_52, %c0_53] : memref<184x6xf32, #tpu.memory_space<vmem>>, vector<162x6xf32>
    tpu.vector_store %arg11[%c10_52, %c0_53], %49 {strides = array<i32>} : memref<184x6xf32, #tpu.memory_space<vmem>>, vector<162x6xf32>,
    %c0_54 = arith.constant 0 : index
    %c0_55 = arith.constant 0 : index
    %51 = vector.load %arg11[%c0_54, %c0_55] : memref<184x6xf32, #tpu.memory_space<vmem>>, vector<162x6xf32>
    %c1_56 = arith.constant 1 : index
    %c0_57 = arith.constant 0 : index
    %52 = vector.load %arg11[%c1_56, %c0_57] : memref<184x6xf32, #tpu.memory_space<vmem>>, vector<162x6xf32>
    %c2_58 = arith.constant 2 : index
    %c0_59 = arith.constant 0 : index
    %53 = vector.load %arg11[%c2_58, %c0_59] : memref<184x6xf32, #tpu.memory_space<vmem>>, vector<162x6xf32>
    %c9_60 = arith.constant 9 : index
    %c0_61 = arith.constant 0 : index
    %54 = vector.load %arg11[%c9_60, %c0_61] : memref<184x6xf32, #tpu.memory_space<vmem>>, vector<162x6xf32>
    %c10_62 = arith.constant 10 : index
    %c0_63 = arith.constant 0 : index
    %55 = vector.load %arg11[%c10_62, %c0_63] : memref<184x6xf32, #tpu.memory_space<vmem>>, vector<162x6xf32>
    %c11_64 = arith.constant 11 : index
    %c0_65 = arith.constant 0 : index
    %56 = vector.load %arg11[%c11_64, %c0_65] : memref<184x6xf32, #tpu.memory_space<vmem>>, vector<162x6xf32>
    %c18_66 = arith.constant 18 : index
    %c0_67 = arith.constant 0 : index
    %57 = vector.load %arg11[%c18_66, %c0_67] : memref<184x6xf32, #tpu.memory_space<vmem>>, vector<162x6xf32>
    %c19_68 = arith.constant 19 : index
    %c0_69 = arith.constant 0 : index
    %58 = vector.load %arg11[%c19_68, %c0_69] : memref<184x6xf32, #tpu.memory_space<vmem>>, vector<162x6xf32>
    %c20_70 = arith.constant 20 : index
    %c0_71 = arith.constant 0 : index
    %59 = vector.load %arg11[%c20_70, %c0_71] : memref<184x6xf32, #tpu.memory_space<vmem>>, vector<162x6xf32>
    %60 = tpu.concatenate %51, %52, %53, %54, %55, %56, %57, %58, %59 in 1 : vector<162x6xf32>, vector<162x6xf32>, vector<162x6xf32>, vector<162x6xf32>, vector<162x6xf32>, vector<162x6xf32>, vector<162x6xf32>, vector<162x6xf32>, vector<162x6xf32> -> vector<162x54xf32>
    %c0_72 = arith.constant 0 : index
    %c0_73 = arith.constant 0 : index
    %61 = vector.load %arg7[%c0_72, %c0_73] : memref<54x24xf32, #tpu.memory_space<vmem>>, vector<54x24xf32>
    %cst_74 = arith.constant dense<0.000000e+00> : vector<162x24xf32>
    %62 = tpu.matmul %60, %61, %cst_74 {dimension_numbers = #tpu.dot_dimension_numbers<[1], [0], [0], [1], [0, 0, 1, 1], [], []>} : vector<162x54xf32>, vector<54x24xf32>, vector<162x24xf32> -> vector<162x24xf32>
    %c0_75 = arith.constant 0 : index
    %c0_76 = arith.constant 0 : index
    %63 = vector.load %arg9[%c0_75, %c0_76] : memref<162x24xf32, #tpu.memory_space<vmem>>, vector<162x24xf32>
    tpu.vector_store %arg9[%c0_75, %c0_76], %62 {strides = array<i32>} : memref<162x24xf32, #tpu.memory_space<vmem>>, vector<162x24xf32>,
    return
  }
}

module attributes {stable_mosaic.version = 11 : i64} {
  func.func @_head_kernel(%arg0: memref<2x49x48xf32, #tpu.memory_space<vmem>>, %arg1: memref<1x1x48xf32, #tpu.memory_space<vmem>>, %arg2: memref<1x1x48xf32, #tpu.memory_space<vmem>>, %arg3: memref<48x10xf32, #tpu.memory_space<vmem>>, %arg4: memref<1x10xf32, #tpu.memory_space<vmem>>, %arg5: memref<2x10xf32, #tpu.memory_space<vmem>>) attributes {dimension_semantics = [], scalar_prefetch = 0 : i64, scratch_operands = 0 : i64, tpu.core_type = #tpu.core_type<tc>} {
    %c0 = arith.constant 0 : index
    %c0_0 = arith.constant 0 : index
    %c0_1 = arith.constant 0 : index
    %0 = vector.load %arg0[%c0, %c0_0, %c0_1] : memref<2x49x48xf32, #tpu.memory_space<vmem>>, vector<2x49x48xf32>
    %c0_2 = arith.constant 0 : index
    %c0_3 = arith.constant 0 : index
    %c0_4 = arith.constant 0 : index
    %1 = vector.load %arg1[%c0_2, %c0_3, %c0_4] : memref<1x1x48xf32, #tpu.memory_space<vmem>>, vector<1x1x48xf32>
    %2 = vector.broadcast %1 : vector<1x1x48xf32> to vector<2x49x48xf32>
    %3 = arith.mulf %0, %2 : vector<2x49x48xf32>
    %c0_5 = arith.constant 0 : index
    %c0_6 = arith.constant 0 : index
    %c0_7 = arith.constant 0 : index
    %4 = vector.load %arg2[%c0_5, %c0_6, %c0_7] : memref<1x1x48xf32, #tpu.memory_space<vmem>>, vector<1x1x48xf32>
    %5 = vector.broadcast %4 : vector<1x1x48xf32> to vector<2x49x48xf32>
    %6 = arith.addf %3, %5 : vector<2x49x48xf32>
    %cst = arith.constant 0.000000e+00 : f32
    %7 = vector.broadcast %cst : f32 to vector<2x49x48xf32>
    %8 = arith.maximumf %6, %7 : vector<2x49x48xf32>
    %cst_8 = arith.constant dense<0.000000e+00> : vector<2x48xf32>
    %9 = vector.multi_reduction <add>, %8, %cst_8 [1] : vector<2x49x48xf32> to vector<2x48xf32>
    %cst_9 = arith.constant 0.0204081628 : f32
    %10 = vector.broadcast %cst_9 : f32 to vector<2x48xf32>
    %11 = arith.mulf %9, %10 : vector<2x48xf32>
    %c0_10 = arith.constant 0 : index
    %c0_11 = arith.constant 0 : index
    %12 = vector.load %arg3[%c0_10, %c0_11] : memref<48x10xf32, #tpu.memory_space<vmem>>, vector<48x10xf32>
    %cst_12 = arith.constant dense<0.000000e+00> : vector<2x10xf32>
    %13 = tpu.matmul %11, %12, %cst_12 {dimension_numbers = #tpu.dot_dimension_numbers<[1], [0], [0], [1], [0, 0, 1, 1], [], []>} : vector<2x48xf32>, vector<48x10xf32>, vector<2x10xf32> -> vector<2x10xf32>
    %c0_13 = arith.constant 0 : index
    %c0_14 = arith.constant 0 : index
    %14 = vector.load %arg4[%c0_13, %c0_14] : memref<1x10xf32, #tpu.memory_space<vmem>>, vector<1x10xf32>
    %15 = vector.broadcast %14 : vector<1x10xf32> to vector<2x10xf32>
    %16 = arith.addf %13, %15 : vector<2x10xf32>
    %c0_15 = arith.constant 0 : index
    %c0_16 = arith.constant 0 : index
    %17 = vector.load %arg5[%c0_15, %c0_16] : memref<2x10xf32, #tpu.memory_space<vmem>>, vector<2x10xf32>
    tpu.vector_store %arg5[%c0_15, %c0_16], %16 {strides = array<i32>} : memref<2x10xf32, #tpu.memory_space<vmem>>, vector<2x10xf32>,
    return
  }
}

</mosaic_0001>

<bundles_post_ra>
// kernel: irevnet_forward.5
= control target key start
LH: loop header
LB: loop body
LE: loop exit
PB: predicated region body
PF: predicated region fallthrough
CT: control target
= control target key end

     0   :  { %s328_s0 = inlined_call_operand.vmem [shape: f32[2,49,48], index: 0, kind: input, shape index: {}]   ;;  %s329_s1 = inlined_call_operand.vmem [shape: f32[1,1,48], index: 1, kind: input, shape index: {}]   ;;  %s330_s2 = inlined_call_operand.vmem [shape: f32[1,1,48], index: 2, kind: input, shape index: {}]   ;;  %s331_s3 = inlined_call_operand.vmem [shape: f32[48,10], index: 3, kind: input, shape index: {}]   ;;  %s332_s4 = inlined_call_operand.vmem [shape: f32[1,10], index: 4, kind: input, shape index: {}]   ;;  %s333_s5 = inlined_call_operand.hbm [shape: f32[2,10], index: 5, kind: output, shape index: {}]  }
   0x1   :  { %v132_v0 = vld [vmem:[%s331_s3 + $0x28] sm:$0xff]  ;;  %v131_v1 = vld [vmem:[%s331_s3 + $0x20] sm:$0xff]  ;;  %v130_v2 = vld [vmem:[%s331_s3 + $0x18] sm:$0xff] }
   0x2   :  { %153 = vmatpush.msra.mxu0 %v132_v0  ;;  %v129_v3 = vld [vmem:[%s331_s3 + $0x10] sm:$0xff]  ;;  %v128_v4 = vld [vmem:[%s331_s3 + $0x8] sm:$0xff]  ;;  %v21_v5 = vld [vmem:[%s328_s0] sm:$0xff] }
   0x3   :  { %v22_v6 = vld [vmem:[%s328_s0 + $0x8] sm:$0xff]  ;;  %v23_v7 = vld [vmem:[%s328_s0 + $0x10] sm:$0xff]  ;;  %v24_v8 = vld [vmem:[%s328_s0 + $0x18] sm:$0xff] }
   0x4   :  { %154 = vmatpush.msra.mxu0 %v131_v1  ;;  %v28_v9 = vld [vmem:[%s328_s0 + $0x38] sm:$0xff]  ;;  %v127_v10 = vld [vmem:[%s331_s3] sm:$0xff]  ;;  %v30_v13 = vld [vmem:[%s328_s0 + $0x48] sm:$0xff] }
   0x5   :  { %v25_v11 = vld [vmem:[%s328_s0 + $0x20] sm:$0xff]  ;;  %v31_v14 = vld [vmem:[%s328_s0 + $0x50] sm:$0xff] }
   0x6   :  { %155 = vmatpush.msra.mxu0 %v130_v2  ;;  %v29_v12 = vld [vmem:[%s328_s0 + $0x40] sm:$0xff] }
   0x7   :  { %v183_v15 = vld [vmem:[%s329_s1] ss:$0 sm:$0xff] }
   0x8   :  { %156 = vmatpush.msra.mxu0 %v129_v3  ;;  %v184_v16 = vld [vmem:[%s330_s2] ss:$0 sm:$0xff] }
   0x9   :  { %10 = vsyncpa [#allocation3], 0  ;;  %v26_v17 = vld [vmem:[%s328_s0 + $0x28] sm:$0xff]  ;;  %v39_v18 = vmul.f32 %v183_v15, %v21_v5  ;;  %v40_v19 = vmul.f32 %v183_v15, %v22_v6  ;;  %v41_v20 = vmul.f32 %v183_v15, %v23_v7  ;;  %v42_v21 = vmul.f32 %v183_v15, %v24_v8  ;;  %v27_v22 = vld [vmem:[%s328_s0 + $0x30] sm:$0x1]  ;;  %s212_s10 = smov [#allocation2]  }
   0xa   :  { %157 = vmatpush.msra.mxu0 %v128_v4  ;;  %v32_v23 = vld [vmem:[%s328_s0 + $0x58] sm:$0xff]  ;;  %v46_v24 = vmul.f32 %v183_v15, %v28_v9  ;;  %v33_v25 = vld [vmem:[%s328_s0 + $0x60] sm:$0xff]  ;;  %v43_v26 = vmul.f32 %v183_v15, %v25_v11  ;;  %v47_v27 = vmul.f32 %v183_v15, %v29_v12  ;;  %v48_v28 = vmul.f32 %v183_v15, %v30_v13  ;;  %v34_v30 = vld [vmem:[%s328_s0 + $0x68] sm:$0x1]  ;;  %s170_s11 = sshll.u32 %s212_s10, 4  ;;  %s172_s14 = sshll.u32 %s333_s5, 4  ;;  %s171_s11 = int_to_ptr.vmem [resolvable:$true] %s170_s11  ;;  %s173_s14 = int_to_ptr.hbm [resolvable:$true] %s172_s14 }
   0xb   :  { %v49_v29 = vmul.f32 %v183_v15, %v31_v14  ;;  %v44_v31 = vmul.f32 %v183_v15, %v26_v17  ;;  %v57_v32 = vadd.f32 %v184_v16, %v39_v18  ;;  %v58_v33 = vadd.f32 %v184_v16, %v40_v19 }
   0xc   :  { %158 = vmatpush.msra.mxu0 %v127_v10  ;;  %v45_v34 = vmul.f32 %v183_v15, %v27_v22  ;;  %v50_v35 = vmul.f32 %v183_v15, %v32_v23  ;;  %v59_v36 = vadd.f32 %v184_v16, %v41_v20  ;;  %v60_v37 = vadd.f32 %v184_v16, %v42_v21 }
   0xd   :  { %v51_v38 = vmul.f32 %v183_v15, %v33_v25  ;;  %v64_v39 = vadd.f32 %v184_v16, %v46_v24  ;;  %v65_v40 = vadd.f32 %v184_v16, %v47_v27  ;;  %v66_v41 = vadd.f32 %v184_v16, %v48_v28 }
   0xe   :  { %v52_v42 = vmul.f32 %v183_v15, %v34_v30  ;;  %v61_v43 = vadd.f32 %v184_v16, %v43_v26  ;;  %v67_v44 = vadd.f32 %v184_v16, %v49_v29  ;;  %vm85_vm0 = vcmask 392192  }
   0xf   :  { %v62_v45 = vadd.f32 %v184_v16, %v44_v31  ;;  %v71_v46 = vmax.f32 %v57_v32, 0.0  ;;  %v72_v47 = vmax.f32 %v58_v33, 0.0  ;;  %v73_v48 = vmax.f32 %v59_v36, 0.0 }
  0x10   :  { %v68_v49 = vadd.f32 %v184_v16, %v50_v35  ;;  %v74_v50 = vmax.f32 %v60_v37, 0.0  ;;  %v78_v51 = vmax.f32 %v64_v39, 0.0  ;;  %v63_v52 = vadd.f32 %v184_v16, %v45_v34 }
  0x11   :  { %v69_v53 = vadd.f32 %v184_v16, %v51_v38  ;;  %v79_v54 = vmax.f32 %v65_v40, 0.0  ;;  %v80_v55 = vmax.f32 %v66_v41, 0.0  ;;  %v75_v56 = vmax.f32 %v61_v43, 0.0  ;;  %v185_v41 = vld [vmem:[%s332_s4] ss:$0 sm:$0xff] }
  0x12   :  { %v81_v57 = vmax.f32 %v67_v44, 0.0  ;;  %v86_v58 = vsel %vm85_vm0, %v71_v46, 0.0  ;;  %v87_v59 = vsel %vm85_vm0, %v72_v47, 0.0  ;;  %v70_v60 = vadd.f32 %v184_v16, %v52_v42 }
  0x13   :  { %v76_v61 = vmax.f32 %v62_v45, 0.0  ;;  %v88_v62 = vadd.f32 %v87_v59, %v86_v58  ;;  %v89_v63 = vsel %vm85_vm0, %v73_v48, 0.0  ;;  %v82_v0 = vmax.f32 %v68_v49, 0.0 }
  0x14   :  { %v91_v1 = vsel %vm85_vm0, %v74_v50, 0.0  ;;  %v106_v2 = vsel %vm85_vm0, %v78_v51, 0.0  ;;  %v107_v3 = vsel %vm85_vm0, %v79_v54, 0.0  ;;  %v109_v6 = vsel %vm85_vm0, %v80_v55, 0.0 }
  0x15   :  { %v90_v4 = vadd.f32 %v89_v63, %v88_v62  ;;  %v108_v5 = vadd.f32 %v107_v3, %v106_v2  ;;  %v77_v7 = vmax.f32 %v63_v52, 0.0  ;;  %v83_v8 = vmax.f32 %v69_v53, 0.0 }
  0x16   :  { %v93_v9 = vsel %vm85_vm0, %v75_v56, 0.0  ;;  %v111_v10 = vsel %vm85_vm0, %v81_v57, 0.0  ;;  %vm97_vm1 = vcmask 385024   ;;  %v84_v13 = vmax.f32 %v70_v60, 0.0 }
  0x17   :  { %v92_v11 = vadd.f32 %v91_v1, %v90_v4  ;;  %v110_v12 = vadd.f32 %v109_v6, %v108_v5  ;;  %v95_v14 = vsel %vm85_vm0, %v76_v61, 0.0  ;;  %v113_v15 = vsel %vm85_vm0, %v82_v0, 0.0 }
  0x18   :  { %v98_v18 = vsel %vm97_vm1, %v77_v7, 0.0  ;;  %v115_v19 = vsel %vm85_vm0, %v83_v8, 0.0  ;;  %v117_v22 = vsel %vm97_vm1, %v84_v13, 0.0  ;;  %vm139_vm2 = vcmask 1041409  }
  0x19   :  { %v94_v16 = vadd.f32 %v93_v9, %v92_v11  ;;  %v112_v17 = vadd.f32 %v111_v10, %v110_v12  ;;  %vm163_vm3 = vcmask 74752  }
  0x1b   :  { %v96_v20 = vadd.f32 %v95_v14, %v94_v16  ;;  %v114_v21 = vadd.f32 %v113_v15, %v112_v17 }
  0x1d   :  { %v99_v23 = vadd.f32 %v98_v18, %v96_v20  ;;  %v116_v24 = vadd.f32 %v115_v19, %v114_v21 }
  0x1f   :  { %v100_v25 = vrot.slane %v99_v23, 4  ;;  %v118_v26 = vadd.f32 %v117_v22, %v116_v24 }
  0x21   :  { %v101_v27 = vadd.f32 %v100_v25, %v99_v23  ;;  %v119_v28 = vrot.slane %v118_v26, 4 }
  0x23   :  { %v102_v29 = vrot.slane %v101_v27, 2  ;;  %v120_v30 = vadd.f32 %v119_v28, %v118_v26 }
  0x25   :  { %v103_v31 = vadd.f32 %v102_v29, %v101_v27  ;;  %v121_v32 = vrot.slane %v120_v30, 2 }
  0x27   :  { %v104_v33 = vrot.slane %v103_v31, 1  ;;  %v122_v34 = vadd.f32 %v121_v32, %v120_v30 }
  0x29   :  { %v105_v35 = vadd.f32 %v104_v33, %v103_v31  ;;  %v123_v36 = vrot.slane %v122_v34, 1 }
  0x2b   :  { %v124_v37 = vadd.f32 %v123_v36, %v122_v34  ;;  %v125_v38 = vmul.f32 0.020408163, %v105_v35 }
  0x2d   :  { %v126_v39 = vmul.f32 0.020408163, %v124_v37 }
  0x2f   :  { %v140_v40 = vsel %vm139_vm2, %v126_v39, %v125_v38 }
  0x30   :  { %181 = vmatmul.msk.f32.vlgmr.msra.gmra.mxu0 %vm85_vm0, %v140_v40 }
  0xad   :  { %v160_v42 = vpop.f32.mrf.mxu0 }
  0xae   :  { %v161_v43 = vadd.f32 %v185_v41, %v160_v42 }
  0xb0   :  { %164 = vst.msk [vmem:[#allocation2] sm:$0x3] %vm163_vm3, %v161_v43 }
  0xb1   :  { %175 = dma.vmem_to_hbm [thread:$0]  %s171_s11, 32, %s173_s14, [#allocation3]  }
  0xb2   :  { %210 = dma.done.wait [#allocation3], 32  }
  0xb3   :  { %211 = vsyncadd [#allocation3], 4294967264 }
  0xb4   :  { %180 = vsyncpa [#allocation3], 1 }

// kernel: irevnet_forward.3
= control target key start
LH: loop header
LB: loop body
LE: loop exit
PB: predicated region body
PF: predicated region fallthrough
CT: control target
= control target key end

     0   :  { %s3883_s15 = smov 6   ;;  %s3884_s18 = smov 12   ;;  %vm1126_vm0 = vcmask 1045504   ;;  %vm879_vm1 = vcmask 48128   ;;  %vm901_vm2 = vcmask 97280   ;;  %vm923_vm3 = vcmask 146432   ;;  %s7704_s0 = inlined_call_operand.vmem [shape: f32[4,184,6], index: 0, kind: input, shape index: {}]   ;;  %s7705_s1 = inlined_call_operand.vmem [shape: f32[54,6], index: 1, kind: input, shape index: {}]   ;;  %s7706_s8 = inlined_call_operand.vmem [shape: f32[162,1], index: 8, kind: input, shape index: {}]   ;;  %s7707_s2 = inlined_call_operand.vmem [shape: f32[1,6], index: 2, kind: input, shape index: {}]   ;;  %s7708_s3 = inlined_call_operand.vmem [shape: f32[1,6], index: 3, kind: input, shape index: {}]   ;;  %s7709_s4 = inlined_call_operand.vmem [shape: f32[54,6], index: 4, kind: input, shape index: {}]   ;;  %s7710_s5 = inlined_call_operand.vmem [shape: f32[1,6], index: 5, kind: input, shape index: {}]   ;;  %s7711_s6 = inlined_call_operand.vmem [shape: f32[1,6], index: 6, kind: input, shape index: {}]   ;;  %s7712_s7 = inlined_call_operand.vmem [shape: f32[54,24], index: 7, kind: input, shape index: {}]   ;;  %s7713_s9 = inlined_call_operand.vmem [shape: f32[162,24], index: 9, kind: output, shape index: {}]  }
   0x1   :  { %v3678_v0 = vld [vmem:[%s7704_s0 + $0xd8] sm:$0xff]  ;;  %v3676_v1 = vld [vmem:[%s7704_s0 + $0xc8] sm:$0xff]  ;;  %v3679_v3 = vld [vmem:[%s7704_s0 + $0xe0] sm:$0xff]  ;;  %s3885_s23 = smov 18   ;;  %s3886_s30 = smov 24   ;;  %vm945_vm4 = vcmask 195584  }
   0x2   :  { %v3674_v2 = vld [vmem:[%s7704_s0 + $0xb8] sm:$0xff]  ;;  %255 = vrot.lane.b32.xlu2 %v3678_v0, %s3883_s15  ;;  %251 = vrot.lane.b32.xlu1 %v3676_v1, %s3883_s15  ;;  %v3677_v4 = vld [vmem:[%s7704_s0 + $0xd0] sm:$0xff]  ;;  %s3887_s20 = smov 30   ;;  %s3888_s26 = smov 36   ;;  %vm967_vm5 = vcmask 244736   ;;  %vm989_vm6 = vcmask 293888  }
   0x3   :  { %247 = vrot.lane.b32.xlu0 %v3674_v2, %s3883_s15  ;;  %v3675_v5 = vld [vmem:[%s7704_s0 + $0xc0] sm:$0xff]  ;;  %v3682_v6 = vld [vmem:[%s7704_s0 + $0xf8] sm:$0xff]  ;;  %v3681_v7 = vld [vmem:[%s7704_s0 + $0xf0] sm:$0xff]  ;;  %s3889_s19 = smov 42   ;;  %s3890_s21 = smov 48   ;;  %vm1011_vm7 = vcmask 343040  }
   0x4   :  { %v3680_v8 = vld [vmem:[%s7704_s0 + $0xe8] sm:$0xff]  ;;  %v3685_v9 = vld [vmem:[%s7704_s0 + $0x110] sm:$0xff]  ;;  %v3683_v11 = vld [vmem:[%s7704_s0 + $0x100] sm:$0xff]  ;;  %vm1062_vm8 = vcmask 441344   ;;  %vm1033_vm9 = vcmask 392192   ;;  %vm1473_vm10 = vcmask 41984  }
   0x5   :  { %v3684_v10 = vld [vmem:[%s7704_s0 + $0x108] sm:$0xff]  ;;  %v3687_v13 = vld [vmem:[%s7704_s0 + $0x120] sm:$0xff]  ;;  %v3686_v14 = vld [vmem:[%s7704_s0 + $0x118] sm:$0xff]  ;;  %vm3668_vm11 = vcmask 189440  }
   0x6   :  { %v3688_v12 = vld [vmem:[%s7704_s0 + $0x128] sm:$0xff]  ;;  %v3691_v15 = vld [vmem:[%s7704_s0 + $0x140] sm:$0xff]  ;;  %v3690_v16 = vld [vmem:[%s7704_s0 + $0x138] sm:$0xff] }
   0x7   :  { %v3689_v17 = vld [vmem:[%s7704_s0 + $0x130] sm:$0xff]  ;;  %v3694_v18 = vld [vmem:[%s7704_s0 + $0x158] sm:$0x3]  ;;  %v3692_v20 = vld [vmem:[%s7704_s0 + $0x148] sm:$0xff] }
   0x8   :  { %v3693_v19 = vld [vmem:[%s7704_s0 + $0x150] sm:$0xff]  ;;  %v96_v23 = vld [vmem:[%s7704_s0 + $0x1] sm:$0xff]  ;;  %v4058_v26 = vld [vmem:[%s7704_s0 + $0x19] sm:$0xff] }
   0x9   :  { %v4030_v21 = vld [vmem:[%s7704_s0 + $0x11] sm:$0xff]  ;;  %v4035_v22 = vld [vmem:[%s7704_s0 + $0x9] sm:$0xff]  ;;  %v4053_v25 = vld [vmem:[%s7704_s0 + $0x21] sm:$0xff] }
   0xa   :  { %257 = vrot.lane.b32.xlu2 %v3679_v3, %s3883_s15  ;;  %253 = vrot.lane.b32.xlu1 %v3677_v4, %s3883_s15  ;;  %v4048_v24 = vld [vmem:[%s7704_s0 + $0x29] sm:$0xff]  ;;  %v4069_v27 = vld [vmem:[%s7704_s0 + $0x41] sm:$0xff] }
   0xb   :  { %249 = vrot.lane.b32.xlu0 %v3675_v5, %s3883_s15  ;;  %v4074_v28 = vld [vmem:[%s7704_s0 + $0x39] sm:$0xff]  ;;  %v4079_v29 = vld [vmem:[%s7704_s0 + $0x31] sm:$0xff]  ;;  %v4100_v32 = vld [vmem:[%s7704_s0 + $0x49] sm:$0xff] }
   0xc   :  { %v4090_v30 = vld [vmem:[%s7704_s0 + $0x59] sm:$0xff]  ;;  %v4095_v31 = vld [vmem:[%s7704_s0 + $0x51] sm:$0xff]  ;;  %v4116_v34 = vld [vmem:[%s7704_s0 + $0x69] sm:$0xff] }
   0xd   :  { %v4111_v33 = vld [vmem:[%s7704_s0 + $0x71] sm:$0xff]  ;;  %v4121_v35 = vld [vmem:[%s7704_s0 + $0x61] sm:$0xff]  ;;  %v4134_v37 = vld [vmem:[%s7704_s0 + $0x89] sm:$0xff] }
   0xe   :  { %v4139_v38 = vld [vmem:[%s7704_s0 + $0x81] sm:$0xff]  ;;  %v4144_v39 = vld [vmem:[%s7704_s0 + $0x79] sm:$0xff]  ;;  %v4165_v43 = vld [vmem:[%s7704_s0 + $0x91] sm:$0xff] }
   0xf   :  { %v116_v41 = vld [vmem:[%s7704_s0 + $0xa1] sm:$0x3]  ;;  %v4160_v42 = vld [vmem:[%s7704_s0 + $0x99] sm:$0xff]  ;;  %v3695_v47 = vld [vmem:[%s7704_s0 + $0x170] sm:$0xff] }
  0x10   :  { %v3697_v45 = vld [vmem:[%s7704_s0 + $0x180] sm:$0xff]  ;;  %v3696_v46 = vld [vmem:[%s7704_s0 + $0x178] sm:$0xff]  ;;  %v3699_v52 = vld [vmem:[%s7704_s0 + $0x190] sm:$0xff] }
  0x11   :  { %v3700_v51 = vld [vmem:[%s7704_s0 + $0x198] sm:$0xff]  ;;  %v3698_v53 = vld [vmem:[%s7704_s0 + $0x188] sm:$0xff]  ;;  %v3703_v57 = vld [vmem:[%s7704_s0 + $0x1b0] sm:$0xff] }
  0x12   :  { %263 = vrot.lane.b32.xlu2 %v3682_v6, %s3883_s15  ;;  %261 = vrot.lane.b32.xlu1 %v3681_v7, %s3883_s15  ;;  %v3702_v58 = vld [vmem:[%s7704_s0 + $0x1a8] sm:$0xff]  ;;  %v3701_v59 = vld [vmem:[%s7704_s0 + $0x1a0] sm:$0xff] }
  0x13   :  { %259 = vrot.lane.b32.xlu0 %v3680_v8, %s3883_s15  ;;  %v3706_v63 = vld [vmem:[%s7704_s0 + $0x1c8] sm:$0xff]  ;;  %v3705_v0 = vld [vmem:[%s7704_s0 + $0x1c0] sm:$0xff]  ;;  %v3704_v1 = vld [vmem:[%s7704_s0 + $0x1b8] sm:$0xff] }
  0x14   :  { %v3709_v5 = vld [vmem:[%s7704_s0 + $0x1e0] sm:$0xff]  ;;  %v3708_v6 = vld [vmem:[%s7704_s0 + $0x1d8] sm:$0xff]  ;;  %v3707_v7 = vld [vmem:[%s7704_s0 + $0x1d0] sm:$0xff] }
  0x1a   :  { %269 = vrot.lane.b32.xlu2 %v3685_v9, %s3883_s15  ;;  %267 = vrot.lane.b32.xlu1 %v3684_v10, %s3883_s15 }
  0x1b   :  { %265 = vrot.lane.b32.xlu0 %v3683_v11, %s3883_s15  ;;  %v3712_v11 = vld [vmem:[%s7704_s0 + $0x1f8] sm:$0xff] }
  0x22   :  { %275 = vrot.lane.b32.xlu2 %v3688_v12, %s3883_s15  ;;  %273 = vrot.lane.b32.xlu1 %v3687_v13, %s3883_s15  ;;  %v3711_v12 = vld [vmem:[%s7704_s0 + $0x1f0] sm:$0xff]  ;;  %v3710_v13 = vld [vmem:[%s7704_s0 + $0x1e8] sm:$0xff] }
  0x23   :  { %271 = vrot.lane.b32.xlu0 %v3686_v14, %s3883_s15 }
  0x2a   :  { %281 = vrot.lane.b32.xlu2 %v3691_v15, %s3883_s15  ;;  %279 = vrot.lane.b32.xlu1 %v3690_v16, %s3883_s15 }
  0x2b   :  { %277 = vrot.lane.b32.xlu0 %v3689_v17, %s3883_s15  ;;  %v3715_v17 = vld [vmem:[%s7704_s0 + $0x210] sm:$0x3] }
  0x32   :  { %287 = vrot.lane.b32.xlu2 %v3694_v18, %s3883_s15  ;;  %285 = vrot.lane.b32.xlu1 %v3693_v19, %s3883_s15  ;;  %v3714_v18 = vld [vmem:[%s7704_s0 + $0x208] sm:$0xff]  ;;  %v3713_v19 = vld [vmem:[%s7704_s0 + $0x200] sm:$0xff] }
  0x33   :  { %283 = vrot.lane.b32.xlu0 %v3692_v20, %s3883_s15 }
  0x3a   :  { %335 = vrot.lane.b32.xlu2 %v4030_v21, %s3884_s18  ;;  %333 = vrot.lane.b32.xlu1 %v4035_v22, %s3884_s18 }
  0x3b   :  { %331 = vrot.lane.b32.xlu0 %v96_v23, %s3884_s18 }
  0x42   :  { %341 = vrot.lane.b32.xlu2 %v4048_v24, %s3884_s18  ;;  %339 = vrot.lane.b32.xlu1 %v4053_v25, %s3884_s18 }
  0x43   :  { %337 = vrot.lane.b32.xlu0 %v4058_v26, %s3884_s18 }
  0x4a   :  { %347 = vrot.lane.b32.xlu2 %v4069_v27, %s3884_s18  ;;  %345 = vrot.lane.b32.xlu1 %v4074_v28, %s3884_s18 }
  0x4b   :  { %343 = vrot.lane.b32.xlu0 %v4079_v29, %s3884_s18 }
  0x52   :  { %353 = vrot.lane.b32.xlu2 %v4090_v30, %s3884_s18  ;;  %351 = vrot.lane.b32.xlu1 %v4095_v31, %s3884_s18 }
  0x53   :  { %349 = vrot.lane.b32.xlu0 %v4100_v32, %s3884_s18 }
  0x5a   :  { %359 = vrot.lane.b32.xlu2 %v4111_v33, %s3884_s18  ;;  %357 = vrot.lane.b32.xlu1 %v4116_v34, %s3884_s18 }
  0x5b   :  { %355 = vrot.lane.b32.xlu0 %v4121_v35, %s3884_s18 }
  0x5c   :  { %v4129_v36 = vpop.permute.xlu2 %255 }
  0x62   :  { %365 = vrot.lane.b32.xlu2 %v4134_v37, %s3884_s18  ;;  %363 = vrot.lane.b32.xlu1 %v4139_v38, %s3884_s18 }
  0x63   :  { %361 = vrot.lane.b32.xlu0 %v4144_v39, %s3884_s18 }
  0x64   :  { %v4152_v40 = vpop.permute.xlu2 %257 }
  0x6a   :  { %371 = vrot.lane.b32.xlu2 %v116_v41, %s3884_s18  ;;  %369 = vrot.lane.b32.xlu1 %v4160_v42, %s3884_s18 }
  0x6b   :  { %367 = vrot.lane.b32.xlu0 %v4165_v43, %s3884_s18 }
  0x6c   :  { %v4172_v44 = vpop.permute.xlu2 %263 }
  0x6d   :  { %7739 = vst [vmem:[#allocation4_spill] sm:$0xff] %v4172_v44  ;;  %v207_v44 = vld [vmem:[%s7704_s0 + $0x1a] sm:$0xff] }
  0x72   :  { %419 = vrot.lane.b32.xlu2 %v3697_v45, %s3885_s23  ;;  %417 = vrot.lane.b32.xlu1 %v3696_v46, %s3885_s23  ;;  %v3718_v45 = vld [vmem:[%s7704_s0 + $0x238] sm:$0xff]  ;;  %v3717_v46 = vld [vmem:[%s7704_s0 + $0x230] sm:$0xff] }
  0x73   :  { %415 = vrot.lane.b32.xlu0 %v3695_v47, %s3885_s23  ;;  %v3716_v47 = vld [vmem:[%s7704_s0 + $0x228] sm:$0xff] }
  0x74   :  { %v4186_v48 = vpop.permute.xlu2 %269  ;;  %v4188_v49 = vpop.permute.xlu1 %251 }
  0x75   :  { %7740 = vst [vmem:[#allocation5_spill] sm:$0xff] %v4186_v48  ;;  %v4190_v50 = vpop.permute.xlu0 %247  ;;  %v3744_v48 = vld [vmem:[%s7704_s0 + $0x1a9] sm:$0xff] }
  0x7a   :  { %425 = vrot.lane.b32.xlu2 %v3700_v51, %s3885_s23  ;;  %423 = vrot.lane.b32.xlu1 %v3699_v52, %s3885_s23 }
  0x7b   :  { %421 = vrot.lane.b32.xlu0 %v3698_v53, %s3885_s23 }
  0x7c   :  { %v4204_v54 = vpop.permute.xlu2 %275  ;;  %v4206_v55 = vpop.permute.xlu1 %253 }
  0x7d   :  { %7741 = vst [vmem:[#allocation6_spill] sm:$0xff] %v4204_v54  ;;  %v4208_v56 = vpop.permute.xlu0 %249  ;;  %v3739_v54 = vld [vmem:[%s7704_s0 + $0x181] sm:$0xff] }
  0x82   :  { %431 = vrot.lane.b32.xlu2 %v3703_v57, %s3885_s23  ;;  %429 = vrot.lane.b32.xlu1 %v3702_v58, %s3885_s23  ;;  %v3721_v57 = vld [vmem:[%s7704_s0 + $0x250] sm:$0xff]  ;;  %v3720_v58 = vld [vmem:[%s7704_s0 + $0x248] sm:$0xff] }
  0x83   :  { %427 = vrot.lane.b32.xlu0 %v3701_v59, %s3885_s23  ;;  %v3719_v59 = vld [vmem:[%s7704_s0 + $0x240] sm:$0xff] }
  0x84   :  { %v4222_v60 = vpop.permute.xlu2 %281  ;;  %v4224_v61 = vpop.permute.xlu1 %261 }
  0x85   :  { %7742 = vst [vmem:[#allocation7_spill] sm:$0xff] %v4224_v61  ;;  %v4226_v62 = vpop.permute.xlu0 %259 }
  0x8a   :  { %437 = vrot.lane.b32.xlu2 %v3706_v63, %s3885_s23  ;;  %435 = vrot.lane.b32.xlu1 %v3705_v0, %s3885_s23 }
  0x8b   :  { %433 = vrot.lane.b32.xlu0 %v3704_v1, %s3885_s23 }
  0x8c   :  { %v4240_v2 = vpop.permute.xlu2 %287  ;;  %v4242_v3 = vpop.permute.xlu1 %267 }
  0x8d   :  { %7743 = vst [vmem:[#allocation8_spill] sm:$0xff] %v4240_v2  ;;  %v4244_v4 = vpop.permute.xlu0 %265  ;;  %v3756_v2 = vld [vmem:[%s7704_s0 + $0x209] sm:$0xff] }
  0x8e   :  { %7744 = vst [vmem:[#allocation9_spill] sm:$0xff] %v4242_v3  ;;  %v3747_v3 = vld [vmem:[%s7704_s0 + $0x1c1] sm:$0xff] }
  0x8f   :  { %7745 = vst [vmem:[#allocation10_spill] sm:$0xff] %v4244_v4  ;;  %v3750_v4 = vld [vmem:[%s7704_s0 + $0x1d9] sm:$0xff] }
  0x92   :  { %443 = vrot.lane.b32.xlu2 %v3709_v5, %s3885_s23  ;;  %441 = vrot.lane.b32.xlu1 %v3708_v6, %s3885_s23  ;;  %v3724_v5 = vld [vmem:[%s7704_s0 + $0x268] sm:$0xff]  ;;  %v3723_v6 = vld [vmem:[%s7704_s0 + $0x260] sm:$0xff] }
  0x93   :  { %439 = vrot.lane.b32.xlu0 %v3707_v7, %s3885_s23  ;;  %v3722_v7 = vld [vmem:[%s7704_s0 + $0x258] sm:$0xff] }
  0x94   :  { %v4258_v8 = vpop.permute.xlu2 %335  ;;  %v4260_v9 = vpop.permute.xlu1 %273 }
  0x95   :  { %7746 = vst [vmem:[#allocation11_spill] sm:$0xff] %v4260_v9  ;;  %v4262_v10 = vpop.permute.xlu0 %271 }
  0x96   :  { %7747 = vst [vmem:[#allocation12_spill] sm:$0xff] %v4262_v10  ;;  %v3741_v10 = vld [vmem:[%s7704_s0 + $0x191] sm:$0xff] }
  0x9a   :  { %449 = vrot.lane.b32.xlu2 %v3712_v11, %s3885_s23  ;;  %447 = vrot.lane.b32.xlu1 %v3711_v12, %s3885_s23 }
  0x9b   :  { %445 = vrot.lane.b32.xlu0 %v3710_v13, %s3885_s23 }
  0x9c   :  { %v4276_v14 = vpop.permute.xlu2 %341  ;;  %v4278_v15 = vpop.permute.xlu1 %279 }
  0x9d   :  { %v4280_v16 = vpop.permute.xlu0 %277 }
  0x9e   :  { %7748 = vst [vmem:[#allocation13_spill] sm:$0xff] %v4280_v16  ;;  %v3736_v16 = vld [vmem:[%s7704_s0 + $0x2c8] sm:$0x3] }
  0xa2   :  { %455 = vrot.lane.b32.xlu2 %v3715_v17, %s3885_s23  ;;  %453 = vrot.lane.b32.xlu1 %v3714_v18, %s3885_s23  ;;  %v3727_v17 = vld [vmem:[%s7704_s0 + $0x280] sm:$0xff]  ;;  %v3726_v18 = vld [vmem:[%s7704_s0 + $0x278] sm:$0xff] }
  0xa3   :  { %451 = vrot.lane.b32.xlu0 %v3713_v19, %s3885_s23  ;;  %v3725_v19 = vld [vmem:[%s7704_s0 + $0x270] sm:$0xff] }
  0xa4   :  { %v4294_v20 = vpop.permute.xlu2 %347  ;;  %v4296_v23 = vpop.permute.xlu1 %285 }
  0xa5   :  { %7749 = vst [vmem:[#allocation14_spill] sm:$0xff] %v4294_v20  ;;  %v4298_v41 = vpop.permute.xlu0 %283  ;;  %v3771_v20 = vld [vmem:[%s7704_s0 + $0x129] sm:$0xff] }
  0xa6   :  { %7750 = vst [vmem:[#allocation15_spill] sm:$0xff] %v4296_v23  ;;  %v206_v23 = vld [vmem:[%s7704_s0 + $0x12] sm:$0xff] }
  0xa7   :  { %7751 = vst [vmem:[#allocation16_spill] sm:$0xff] %v4298_v41 }
  0xaa   :  { %503 = vrot.lane.b32.xlu2 %v3718_v45, %s3886_s30  ;;  %501 = vrot.lane.b32.xlu1 %v3717_v46, %s3886_s30 }
  0xab   :  { %499 = vrot.lane.b32.xlu0 %v3716_v47, %s3886_s30 }
  0xac   :  { %v4312_v51 = vpop.permute.xlu2 %353  ;;  %v4314_v52 = vpop.permute.xlu1 %333 }
  0xad   :  { %7752 = vst [vmem:[#allocation17_spill] sm:$0xff] %v4312_v51  ;;  %v4316_v53 = vpop.permute.xlu0 %331  ;;  %v3745_v51 = vld [vmem:[%s7704_s0 + $0x1b1] sm:$0xff] }
  0xb2   :  { %509 = vrot.lane.b32.xlu2 %v3721_v57, %s3886_s30  ;;  %507 = vrot.lane.b32.xlu1 %v3720_v58, %s3886_s30  ;;  %v3730_v57 = vld [vmem:[%s7704_s0 + $0x298] sm:$0xff]  ;;  %v3729_v58 = vld [vmem:[%s7704_s0 + $0x290] sm:$0xff] }
  0xb3   :  { %505 = vrot.lane.b32.xlu0 %v3719_v59, %s3886_s30  ;;  %v3728_v59 = vld [vmem:[%s7704_s0 + $0x288] sm:$0xff] }
  0xb4   :  { %v4330_v63 = vpop.permute.xlu2 %359  ;;  %v4332_v0 = vpop.permute.xlu1 %339 }
  0xb5   :  { %7753 = vst [vmem:[#allocation18_spill] sm:$0xff] %v4330_v63  ;;  %v4334_v1 = vpop.permute.xlu0 %337  ;;  %v3735_v63 = vld [vmem:[%s7704_s0 + $0x2c0] sm:$0xff] }
  0xba   :  { %515 = vrot.lane.b32.xlu2 %v3724_v5, %s3886_s30  ;;  %513 = vrot.lane.b32.xlu1 %v3723_v6, %s3886_s30 }
  0xbb   :  { %511 = vrot.lane.b32.xlu0 %v3722_v7, %s3886_s30 }
  0xbc   :  { %v4348_v11 = vpop.permute.xlu2 %365  ;;  %v4350_v12 = vpop.permute.xlu1 %345 }
  0xbd   :  { %7754 = vst [vmem:[#allocation19_spill] sm:$0xff] %v4350_v12  ;;  %v4352_v13 = vpop.permute.xlu0 %343 }
  0xc2   :  { %521 = vrot.lane.b32.xlu2 %v3727_v17, %s3886_s30  ;;  %519 = vrot.lane.b32.xlu1 %v3726_v18, %s3886_s30  ;;  %v3733_v17 = vld [vmem:[%s7704_s0 + $0x2b0] sm:$0xff]  ;;  %v3732_v18 = vld [vmem:[%s7704_s0 + $0x2a8] sm:$0xff] }
  0xc3   :  { %517 = vrot.lane.b32.xlu0 %v3725_v19, %s3886_s30  ;;  %v3731_v19 = vld [vmem:[%s7704_s0 + $0x2a0] sm:$0xff] }
  0xc4   :  { %v4366_v45 = vpop.permute.xlu2 %371  ;;  %v4368_v46 = vpop.permute.xlu1 %351 }
  0xc5   :  { %7755 = vst [vmem:[#allocation20_spill] sm:$0xff] %v4366_v45  ;;  %v4370_v47 = vpop.permute.xlu0 %349  ;;  %v3751_v45 = vld [vmem:[%s7704_s0 + $0x1e1] sm:$0xff] }
  0xc6   :  { %7756 = vst [vmem:[#allocation21_spill] sm:$0xff] %v4368_v46  ;;  %v3748_v46 = vld [vmem:[%s7704_s0 + $0x1c9] sm:$0xff] }
  0xc7   :  { %7757 = vst [vmem:[#allocation22_spill] sm:$0xff] %v4370_v47 }
  0xca   :  { %527 = vrot.lane.b32.xlu2 %v3730_v57, %s3886_s30  ;;  %525 = vrot.lane.b32.xlu1 %v3729_v58, %s3886_s30 }
  0xcb   :  { %523 = vrot.lane.b32.xlu0 %v3728_v59, %s3886_s30 }
  0xcc   :  { %v4384_v5 = vpop.permute.xlu2 %419  ;;  %v4386_v6 = vpop.permute.xlu1 %357 }
  0xcd   :  { %7758 = vst [vmem:[#allocation23_spill] sm:$0xff] %v4386_v6  ;;  %v4388_v7 = vpop.permute.xlu0 %355  ;;  %v3738_v6 = vld [vmem:[%s7704_s0 + $0x179] sm:$0xff] }
  0xce   :  { %7759 = vst [vmem:[#allocation24_spill] sm:$0xff] %v4388_v7  ;;  %v3742_v7 = vld [vmem:[%s7704_s0 + $0x199] sm:$0xff] }
  0xd2   :  { %533 = vrot.lane.b32.xlu2 %v3733_v17, %s3886_s30  ;;  %531 = vrot.lane.b32.xlu1 %v3732_v18, %s3886_s30  ;;  %v3734_v17 = vld [vmem:[%s7704_s0 + $0x2b8] sm:$0xff] }
  0xd3   :  { %529 = vrot.lane.b32.xlu0 %v3731_v19, %s3886_s30 }
  0xd4   :  { %v4402_v57 = vpop.permute.xlu2 %425  ;;  %v4404_v58 = vpop.permute.xlu1 %363 }
  0xd5   :  { %v4406_v59 = vpop.permute.xlu0 %361 }
  0xd6   :  { %7760 = vst [vmem:[#allocation25_spill] sm:$0xff] %v4406_v59 }
  0xda   :  { %539 = vrot.lane.b32.xlu2 %v3736_v16, %s3886_s30  ;;  %537 = vrot.lane.b32.xlu1 %v3735_v63, %s3886_s30  ;;  %v3737_v16 = vld [vmem:[%s7704_s0 + $0x171] sm:$0xff] }
  0xdb   :  { %535 = vrot.lane.b32.xlu0 %v3734_v17, %s3886_s30 }
  0xdc   :  { %v4420_v18 = vpop.permute.xlu2 %431  ;;  %v4422_v19 = vpop.permute.xlu1 %369 }
  0xdd   :  { %7761 = vst [vmem:[#allocation26_spill] sm:$0xff] %v4420_v18  ;;  %v4424_v59 = vpop.permute.xlu0 %367 }
  0xde   :  { %7762 = vst [vmem:[#allocation27_spill] sm:$0xff] %v4422_v19  ;;  %v3777_v19 = vld [vmem:[%s7704_s0 + $0x159] sm:$0xff] }
  0xdf   :  { %7763 = vst [vmem:[#allocation28_spill] sm:$0xff] %v4424_v59 }
  0xe2   :  { %587 = vrot.lane.b32.xlu2 %v3739_v54, %s3887_s20  ;;  %585 = vrot.lane.b32.xlu1 %v3738_v6, %s3887_s20  ;;  %v3740_v54 = vld [vmem:[%s7704_s0 + $0x189] sm:$0xff] }
  0xe3   :  { %583 = vrot.lane.b32.xlu0 %v3737_v16, %s3887_s20 }
  0xe4   :  { %v4438_v63 = vpop.permute.xlu2 %437  ;;  %v4440_v17 = vpop.permute.xlu1 %417 }
  0xe5   :  { %7764 = vst [vmem:[#allocation29_spill] sm:$0xff] %v4438_v63  ;;  %v4442_v9 = vpop.permute.xlu0 %415 }
  0xea   :  { %593 = vrot.lane.b32.xlu2 %v3742_v7, %s3887_s20  ;;  %591 = vrot.lane.b32.xlu1 %v3741_v10, %s3887_s20  ;;  %v3743_v10 = vld [vmem:[%s7704_s0 + $0x1a1] sm:$0xff] }
  0xeb   :  { %589 = vrot.lane.b32.xlu0 %v3740_v54, %s3887_s20 }
  0xec   :  { %v4456_v6 = vpop.permute.xlu2 %443  ;;  %v4458_v16 = vpop.permute.xlu1 %423 }
  0xed   :  { %7765 = vst [vmem:[#allocation30_spill] sm:$0xff] %v4456_v6  ;;  %v4460_v63 = vpop.permute.xlu0 %421 }
  0xf2   :  { %599 = vrot.lane.b32.xlu2 %v3745_v51, %s3887_s20  ;;  %597 = vrot.lane.b32.xlu1 %v3744_v48, %s3887_s20  ;;  %v3746_v48 = vld [vmem:[%s7704_s0 + $0x1b9] sm:$0xff] }
  0xf3   :  { %595 = vrot.lane.b32.xlu0 %v3743_v10, %s3887_s20 }
  0xf4   :  { %v4474_v7 = vpop.permute.xlu2 %449  ;;  %v4476_v54 = vpop.permute.xlu1 %429 }
  0xf5   :  { %7766 = vst [vmem:[#allocation31_spill] sm:$0xff] %v4476_v54  ;;  %v4478_v6 = vpop.permute.xlu0 %427  ;;  %v215_v54 = vld [vmem:[%s7704_s0 + $0x5a] sm:$0xff] }
  0xfa   :  { %605 = vrot.lane.b32.xlu2 %v3748_v46, %s3887_s20  ;;  %603 = vrot.lane.b32.xlu1 %v3747_v3, %s3887_s20  ;;  %v3749_v3 = vld [vmem:[%s7704_s0 + $0x1d1] sm:$0xff] }
  0xfb   :  { %601 = vrot.lane.b32.xlu0 %v3746_v48, %s3887_s20 }
  0xfc   :  { %v4492_v51 = vpop.permute.xlu2 %455  ;;  %v4494_v10 = vpop.permute.xlu1 %435 }
  0xfd   :  { %7767 = vst [vmem:[#allocation32_spill] sm:$0xff] %v4492_v51  ;;  %v4496_v47 = vpop.permute.xlu0 %433  ;;  %v3753_v51 = vld [vmem:[%s7704_s0 + $0x1f1] sm:$0xff] }
  0xfe   :  { %7768 = vst [vmem:[#allocation33_spill] sm:$0xff] %v4494_v10 }
  0xff   :  { %7769 = vst [vmem:[#allocation34_spill] sm:$0xff] %v4496_v47  ;;  %v3754_v47 = vld [vmem:[%s7704_s0 + $0x1f9] sm:$0xff] }
 0x102   :  { %611 = vrot.lane.b32.xlu2 %v3751_v45, %s3887_s20  ;;  %609 = vrot.lane.b32.xlu1 %v3750_v4, %s3887_s20  ;;  %v3752_v4 = vld [vmem:[%s7704_s0 + $0x1e9] sm:$0xff] }
 0x103   :  { %607 = vrot.lane.b32.xlu0 %v3749_v3, %s3887_s20 }
 0x104   :  { %v4510_v46 = vpop.permute.xlu2 %503  ;;  %v4512_v48 = vpop.permute.xlu1 %441 }
 0x105   :  { %7770 = vst [vmem:[#allocation35_spill] sm:$0xff] %v4512_v48  ;;  %v4514_v10 = vpop.permute.xlu0 %439 }
 0x106   :  { %7771 = vst [vmem:[#allocation36_spill] sm:$0xff] %v4514_v10  ;;  %v3757_v10 = vld [vmem:[%s7704_s0 + $0x211] sm:$0x3] }
 0x10a   :  { %617 = vrot.lane.b32.xlu2 %v3754_v47, %s3887_s20  ;;  %615 = vrot.lane.b32.xlu1 %v3753_v51, %s3887_s20  ;;  %v3755_v47 = vld [vmem:[%s7704_s0 + $0x201] sm:$0xff] }
 0x10b   :  { %613 = vrot.lane.b32.xlu0 %v3752_v4, %s3887_s20 }
 0x10c   :  { %v4528_v45 = vpop.permute.xlu2 %509  ;;  %v4530_v3 = vpop.permute.xlu1 %447 }
 0x10d   :  { %v4532_v48 = vpop.permute.xlu0 %445 }
 0x10e   :  { %7772 = vst [vmem:[#allocation37_spill] sm:$0xff] %v4532_v48 }
 0x112   :  { %623 = vrot.lane.b32.xlu2 %v3757_v10, %s3887_s20  ;;  %621 = vrot.lane.b32.xlu1 %v3756_v2, %s3887_s20 }
 0x113   :  { %619 = vrot.lane.b32.xlu0 %v3755_v47, %s3887_s20 }
 0x114   :  { %v4546_v51 = vpop.permute.xlu2 %515  ;;  %v4548_v4 = vpop.permute.xlu1 %453 }
 0x115   :  { %7773 = vst [vmem:[#allocation38_spill] sm:$0xff] %v4546_v51  ;;  %v4550_v48 = vpop.permute.xlu0 %451  ;;  %v3769_v51 = vld [vmem:[%s7704_s0 + $0x119] sm:$0xff] }
 0x116   :  { %7774 = vst [vmem:[#allocation39_spill] sm:$0xff] %v4548_v4  ;;  %v3772_v4 = vld [vmem:[%s7704_s0 + $0x131] sm:$0xff] }
 0x117   :  { %7775 = vst [vmem:[#allocation40_spill] sm:$0xff] %v4550_v48  ;;  %v218_v48 = vld [vmem:[%s7704_s0 + $0x72] sm:$0xff] }
 0x11a   :  { %652 = vrot.lane.b32.xlu2 %v4058_v26, %s3888_s26  ;;  %650 = vrot.lane.b32.xlu1 %v4030_v21, %s3888_s26 }
 0x11b   :  { %648 = vrot.lane.b32.xlu0 %v4035_v22, %s3888_s26 }
 0x11c   :  { %v4558_v10 = vpop.permute.xlu2 %521  ;;  %v4560_v2 = vpop.permute.xlu1 %501 }
 0x11d   :  { %7776 = vst [vmem:[#allocation41_spill] sm:$0xff] %v4558_v10  ;;  %v4562_v47 = vpop.permute.xlu0 %499 }
 0x122   :  { %658 = vrot.lane.b32.xlu2 %v4079_v29, %s3888_s26  ;;  %656 = vrot.lane.b32.xlu1 %v4048_v24, %s3888_s26 }
 0x123   :  { %654 = vrot.lane.b32.xlu0 %v4053_v25, %s3888_s26 }
 0x124   :  { %v4570_v26 = vpop.permute.xlu2 %527  ;;  %v4572_v21 = vpop.permute.xlu1 %507 }
 0x125   :  { %7777 = vst [vmem:[#allocation42_spill] sm:$0xff] %v4570_v26  ;;  %v4574_v22 = vpop.permute.xlu0 %505  ;;  %v183_v26 = vld [vmem:[%s7704_s0 + $0xa9] sm:$0x3] }
 0x12a   :  { %664 = vrot.lane.b32.xlu2 %v4100_v32, %s3888_s26  ;;  %662 = vrot.lane.b32.xlu1 %v4069_v27, %s3888_s26 }
 0x12b   :  { %660 = vrot.lane.b32.xlu0 %v4074_v28, %s3888_s26 }
 0x12c   :  { %v4582_v29 = vpop.permute.xlu2 %533  ;;  %v4584_v24 = vpop.permute.xlu1 %513 }
 0x12d   :  { %7778 = vst [vmem:[#allocation43_spill] sm:$0xff] %v4584_v24  ;;  %v4586_v25 = vpop.permute.xlu0 %511  ;;  %v212_v24 = vld [vmem:[%s7704_s0 + $0x42] sm:$0xff] }
 0x12e   :  { %7779 = vst [vmem:[#allocation44_spill] sm:$0xff] %v4586_v25 }
 0x132   :  { %670 = vrot.lane.b32.xlu2 %v4121_v35, %s3888_s26  ;;  %668 = vrot.lane.b32.xlu1 %v4090_v30, %s3888_s26 }
 0x133   :  { %666 = vrot.lane.b32.xlu0 %v4095_v31, %s3888_s26 }
 0x134   :  { %v4594_v32 = vpop.permute.xlu2 %539  ;;  %v4596_v27 = vpop.permute.xlu1 %519 }
 0x135   :  { %7780 = vst [vmem:[#allocation45_spill] sm:$0xff] %v4594_v32  ;;  %v4598_v28 = vpop.permute.xlu0 %517  ;;  %v3766_v32 = vld [vmem:[%s7704_s0 + $0x101] sm:$0xff] }
 0x136   :  { %7781 = vst [vmem:[#allocation46_spill] sm:$0xff] %v4596_v27  ;;  %v3763_v27 = vld [vmem:[%s7704_s0 + $0xe9] sm:$0xff] }
 0x137   :  { %7782 = vst [vmem:[#allocation47_spill] sm:$0xff] %v4598_v28  ;;  %v3762_v28 = vld [vmem:[%s7704_s0 + $0xe1] sm:$0xff] }
 0x13a   :  { %676 = vrot.lane.b32.xlu2 %v4144_v39, %s3888_s26  ;;  %674 = vrot.lane.b32.xlu1 %v4111_v33, %s3888_s26 }
 0x13b   :  { %672 = vrot.lane.b32.xlu0 %v4116_v34, %s3888_s26 }
 0x13c   :  { %v4606_v35 = vpop.permute.xlu2 %587  ;;  %v4608_v30 = vpop.permute.xlu1 %525 }
 0x13d   :  { %7783 = vst [vmem:[#allocation48_spill] sm:$0xff] %v4608_v30  ;;  %v4610_v31 = vpop.permute.xlu0 %523  ;;  %v3760_v30 = vld [vmem:[%s7704_s0 + $0xd1] sm:$0xff] }
 0x13e   :  { %7784 = vst [vmem:[#allocation49_spill] sm:$0xff] %v4610_v31  ;;  %v3759_v31 = vld [vmem:[%s7704_s0 + $0xc9] sm:$0xff] }
 0x142   :  { %682 = vrot.lane.b32.xlu2 %v4165_v43, %s3888_s26  ;;  %680 = vrot.lane.b32.xlu1 %v4134_v37, %s3888_s26  ;;  %v182_v43 = vld [vmem:[%s7704_s0 + $0xa1] sm:$0xff] }
 0x143   :  { %678 = vrot.lane.b32.xlu0 %v4139_v38, %s3888_s26 }
 0x144   :  { %v4618_v39 = vpop.permute.xlu2 %593  ;;  %v4620_v33 = vpop.permute.xlu1 %531 }
 0x145   :  { %v4622_v34 = vpop.permute.xlu0 %529 }
 0x146   :  { %7785 = vst [vmem:[#allocation50_spill] sm:$0xff] %v4622_v34 }
 0x14a   :  { %688 = vrot.lane.b32.xlu2 %v183_v26, %s3888_s26  ;;  %686 = vrot.lane.b32.xlu1 %v182_v43, %s3888_s26  ;;  %v3758_v26 = vld [vmem:[%s7704_s0 + $0xc1] sm:$0xff] }
 0x14b   :  { %684 = vrot.lane.b32.xlu0 %v4160_v42, %s3888_s26 }
 0x14c   :  { %v4634_v37 = vpop.permute.xlu2 %599  ;;  %v4636_v38 = vpop.permute.xlu1 %537 }
 0x14d   :  { %7786 = vst [vmem:[#allocation51_spill] sm:$0xff] %v4634_v37  ;;  %v4638_v34 = vpop.permute.xlu0 %535  ;;  %v3765_v37 = vld [vmem:[%s7704_s0 + $0xf9] sm:$0xff] }
 0x14e   :  { %7787 = vst [vmem:[#allocation52_spill] sm:$0xff] %v4636_v38  ;;  %v3768_v38 = vld [vmem:[%s7704_s0 + $0x111] sm:$0xff] }
 0x14f   :  { %7788 = vst [vmem:[#allocation53_spill] sm:$0xff] %v4638_v34  ;;  %v216_v34 = vld [vmem:[%s7704_s0 + $0x62] sm:$0xff] }
 0x152   :  { %736 = vrot.lane.b32.xlu2 %v3760_v30, %s3889_s19  ;;  %734 = vrot.lane.b32.xlu1 %v3759_v31, %s3889_s19  ;;  %v3761_v30 = vld [vmem:[%s7704_s0 + $0xd9] sm:$0xff] }
 0x153   :  { %732 = vrot.lane.b32.xlu0 %v3758_v26, %s3889_s19 }
 0x154   :  { %v4652_v42 = vpop.permute.xlu2 %605  ;;  %v4654_v43 = vpop.permute.xlu1 %585 }
 0x155   :  { %7789 = vst [vmem:[#allocation54_spill] sm:$0xff] %v4652_v42  ;;  %v4656_v10 = vpop.permute.xlu0 %583 }
 0x15a   :  { %742 = vrot.lane.b32.xlu2 %v3763_v27, %s3889_s19  ;;  %740 = vrot.lane.b32.xlu1 %v3762_v28, %s3889_s19  ;;  %v3764_v27 = vld [vmem:[%s7704_s0 + $0xf1] sm:$0xff] }
 0x15b   :  { %738 = vrot.lane.b32.xlu0 %v3761_v30, %s3889_s19 }
 0x15c   :  { %v4670_v31 = vpop.permute.xlu2 %611  ;;  %v4672_v26 = vpop.permute.xlu1 %591 }
 0x15d   :  { %7790 = vst [vmem:[#allocation55_spill] sm:$0xff] %v4670_v31  ;;  %v4674_v42 = vpop.permute.xlu0 %589 }
 0x162   :  { %748 = vrot.lane.b32.xlu2 %v3766_v32, %s3889_s19  ;;  %746 = vrot.lane.b32.xlu1 %v3765_v37, %s3889_s19  ;;  %v3767_v32 = vld [vmem:[%s7704_s0 + $0x109] sm:$0xff] }
 0x163   :  { %744 = vrot.lane.b32.xlu0 %v3764_v27, %s3889_s19 }
 0x164   :  { %v4688_v28 = vpop.permute.xlu2 %617  ;;  %v4690_v30 = vpop.permute.xlu1 %597 }
 0x165   :  { %7791 = vst [vmem:[#allocation56_spill] sm:$0xff] %v4688_v28  ;;  %v4692_v31 = vpop.permute.xlu0 %595 }
 0x166   :  { %7792 = vst [vmem:[#allocation57_spill] sm:$0xff] %v4690_v30  ;;  %v209_v30 = vld [vmem:[%s7704_s0 + $0x2a] sm:$0xff] }
 0x167   :  { %7793 = vst [vmem:[#allocation58_spill] sm:$0xff] %v4692_v31  ;;  %v1058_v31 = vld [vmem:[%s7705_s1 + $0x18] sm:$0xff] }
 0x16a   :  { %754 = vrot.lane.b32.xlu2 %v3769_v51, %s3889_s19  ;;  %752 = vrot.lane.b32.xlu1 %v3768_v38, %s3889_s19  ;;  %v3770_v51 = vld [vmem:[%s7704_s0 + $0x121] sm:$0xff] }
 0x16b   :  { %750 = vrot.lane.b32.xlu0 %v3767_v32, %s3889_s19 }
 0x16c   :  { %v4706_v37 = vpop.permute.xlu2 %623  ;;  %v4708_v27 = vpop.permute.xlu1 %603 }
 0x16d   :  { %7794 = vst [vmem:[#allocation59_spill] sm:$0xff] %v4706_v37  ;;  %v4710_v18 = vpop.permute.xlu0 %601  ;;  %v3774_v37 = vld [vmem:[%s7704_s0 + $0x141] sm:$0xff] }
 0x16e   :  { %7795 = vst [vmem:[#allocation60_spill] sm:$0xff] %v4708_v27 }
 0x16f   :  { %7796 = vst [vmem:[#allocation61_spill] sm:$0xff] %v4710_v18  ;;  %v3775_v18 = vld [vmem:[%s7704_s0 + $0x149] sm:$0xff] }
 0x172   :  { %760 = vrot.lane.b32.xlu2 %v3772_v4, %s3889_s19  ;;  %758 = vrot.lane.b32.xlu1 %v3771_v20, %s3889_s19  ;;  %v3773_v20 = vld [vmem:[%s7704_s0 + $0x139] sm:$0xff] }
 0x173   :  { %756 = vrot.lane.b32.xlu0 %v3770_v51, %s3889_s19 }
 0x174   :  { %v4724_v38 = vpop.permute.xlu2 %652  ;;  %v4726_v32 = vpop.permute.xlu1 %609 }
 0x175   :  { %7797 = vst [vmem:[#allocation62_spill] sm:$0xff] %v4726_v32  ;;  %v4728_v27 = vpop.permute.xlu0 %607 }
 0x176   :  { %7798 = vst [vmem:[#allocation63_spill] sm:$0xff] %v4728_v27  ;;  %v3778_v27 = vld [vmem:[%s7704_s0 + $0x161] sm:$0x3] }
 0x17a   :  { %766 = vrot.lane.b32.xlu2 %v3775_v18, %s3889_s19  ;;  %764 = vrot.lane.b32.xlu1 %v3774_v37, %s3889_s19  ;;  %v3776_v18 = vld [vmem:[%s7704_s0 + $0x151] sm:$0xff] }
 0x17b   :  { %762 = vrot.lane.b32.xlu0 %v3773_v20, %s3889_s19 }
 0x17c   :  { %v4742_v4 = vpop.permute.xlu2 %658  ;;  %v4744_v51 = vpop.permute.xlu1 %615 }
 0x17d   :  { %v4746_v32 = vpop.permute.xlu0 %613 }
 0x17e   :  { %7799 = vst [vmem:[#allocation64_spill] sm:$0xff] %v4746_v32 }
 0x182   :  { %772 = vrot.lane.b32.xlu2 %v3778_v27, %s3889_s19  ;;  %770 = vrot.lane.b32.xlu1 %v3777_v19, %s3889_s19  ;;  %v205_v19 = vld [vmem:[%s7704_s0 + $0xa] sm:$0xff] }
 0x183   :  { %768 = vrot.lane.b32.xlu0 %v3776_v18, %s3889_s19 }
 0x184   :  { %v4760_v37 = vpop.permute.xlu2 %664  ;;  %v4762_v20 = vpop.permute.xlu1 %621 }
 0x185   :  { %7800 = vst [vmem:[#allocation65_spill] sm:$0xff] %v4760_v37  ;;  %v4764_v32 = vpop.permute.xlu0 %619 }
 0x186   :  { %7801 = vst [vmem:[#allocation66_spill] sm:$0xff] %v4762_v20  ;;  %v210_v20 = vld [vmem:[%s7704_s0 + $0x32] sm:$0xff] }
 0x187   :  { %7802 = vst [vmem:[#allocation67_spill] sm:$0xff] %v4764_v32  ;;  %v213_v32 = vld [vmem:[%s7704_s0 + $0x4a] sm:$0xff] }
 0x18a   :  { %820 = vrot.lane.b32.xlu2 %v207_v44, %s3890_s21  ;;  %818 = vrot.lane.b32.xlu1 %v206_v23, %s3890_s21  ;;  %v208_v44 = vld [vmem:[%s7704_s0 + $0x22] sm:$0xff] }
 0x18b   :  { %816 = vrot.lane.b32.xlu0 %v205_v19, %s3890_s21 }
 0x18c   :  { %v4778_v27 = vpop.permute.xlu2 %670  ;;  %v4780_v18 = vpop.permute.xlu1 %650 }
 0x18d   :  { %7803 = vst [vmem:[#allocation68_spill] sm:$0xff] %v4778_v27  ;;  %v4782_v37 = vpop.permute.xlu0 %648 }
 0x192   :  { %826 = vrot.lane.b32.xlu2 %v210_v20, %s3890_s21  ;;  %824 = vrot.lane.b32.xlu1 %v209_v30, %s3890_s21  ;;  %v211_v30 = vld [vmem:[%s7704_s0 + $0x3a] sm:$0xff] }
 0x193   :  { %822 = vrot.lane.b32.xlu0 %v208_v44, %s3890_s21 }
 0x194   :  { %v4796_v23 = vpop.permute.xlu2 %676  ;;  %v4798_v19 = vpop.permute.xlu1 %656 }
 0x195   :  { %7804 = vst [vmem:[#allocation69_spill] sm:$0xff] %v4796_v23  ;;  %v4800_v27 = vpop.permute.xlu0 %654 }
 0x19a   :  { %832 = vrot.lane.b32.xlu2 %v213_v32, %s3890_s21  ;;  %830 = vrot.lane.b32.xlu1 %v212_v24, %s3890_s21  ;;  %v214_v24 = vld [vmem:[%s7704_s0 + $0x52] sm:$0xff] }
 0x19b   :  { %828 = vrot.lane.b32.xlu0 %v211_v30, %s3890_s21 }
 0x19c   :  { %v4814_v20 = vpop.permute.xlu1 %662  ;;  %v4818_v23 = vpop.permute.xlu2 %682 }
 0x19d   :  { %7805 = vst [vmem:[#allocation70_spill] sm:$0xff] %v4814_v20  ;;  %v4816_v44 = vpop.permute.xlu0 %660  ;;  %v219_v20 = vld [vmem:[%s7704_s0 + $0x7a] sm:$0xff] }
 0x19e   :  { %7806 = vst [vmem:[#allocation71_spill] sm:$0xff] %v4816_v44 }
 0x19f   :  { %7807 = vst [vmem:[#allocation72_spill] sm:$0xff] %v4818_v23 }
 0x1a2   :  { %838 = vrot.lane.b32.xlu2 %v216_v34, %s3890_s21  ;;  %836 = vrot.lane.b32.xlu1 %v215_v54, %s3890_s21  ;;  %v217_v54 = vld [vmem:[%s7704_s0 + $0x6a] sm:$0xff] }
 0x1a3   :  { %834 = vrot.lane.b32.xlu0 %v214_v24, %s3890_s21 }
 0x1a4   :  { %v4832_v32 = vpop.permute.xlu1 %668  ;;  %v4842_v12 = vpop.permute.xlu2 %688 }
 0x1a5   :  { %7808 = vst [vmem:[#allocation73_spill] sm:$0xff] %v4832_v32  ;;  %v4834_v30 = vpop.permute.xlu0 %666  ;;  %v222_v32 = vld [vmem:[%s7704_s0 + $0x92] sm:$0xff] }
 0x1a6   :  { %7809 = vst [vmem:[#allocation74_spill] sm:$0xff] %v4834_v30  ;;  %v221_v30 = vld [vmem:[%s7704_s0 + $0x8a] sm:$0xff] }
 0x1a7   :  { %7810 = vst [vmem:[#allocation75_spill] sm:$0xff] %v4842_v12 }
 0x1aa   :  { %844 = vrot.lane.b32.xlu2 %v219_v20, %s3890_s21  ;;  %842 = vrot.lane.b32.xlu1 %v218_v48, %s3890_s21  ;;  %v220_v20 = vld [vmem:[%s7704_s0 + $0x82] sm:$0xff] }
 0x1ab   :  { %840 = vrot.lane.b32.xlu0 %v217_v54, %s3890_s21 }
 0x1ac   :  { %v4850_v34 = vpop.permute.xlu1 %674  ;;  %v4863_v12 = vpop.permute.xlu2 %736 }
 0x1ad   :  { %7811 = vst [vmem:[#allocation76_spill] sm:$0xff] %v4850_v34  ;;  %v4852_v24 = vpop.permute.xlu0 %672  ;;  %v225_v34 = vld [vmem:[%s7704_s0 + $0xaa] sm:$0x3] }
 0x1ae   :  { %7812 = vst [vmem:[#allocation77_spill] sm:$0xff] %v4852_v24  ;;  %v224_v24 = vld [vmem:[%s7704_s0 + $0xa2] sm:$0xff] }
 0x1b2   :  { %850 = vrot.lane.b32.xlu2 %v222_v32, %s3890_s21  ;;  %848 = vrot.lane.b32.xlu1 %v221_v30, %s3890_s21  ;;  %v223_v32 = vld [vmem:[%s7704_s0 + $0x9a] sm:$0xff] }
 0x1b3   :  { %846 = vrot.lane.b32.xlu0 %v220_v20, %s3890_s21 }
 0x1b4   :  { %v4868_v48 = vpop.permute.xlu1 %680  ;;  %v4884_v30 = vpop.permute.xlu2 %742 }
 0x1b5   :  { %v4870_v54 = vpop.permute.xlu0 %678 }
 0x1b6   :  { %7813 = vst [vmem:[#allocation78_spill] sm:$0xff] %v4870_v54 }
 0x1ba   :  { %856 = vrot.lane.b32.xlu2 %v225_v34, %s3890_s21  ;;  %854 = vrot.lane.b32.xlu1 %v224_v24, %s3890_s21  ;;  %v1061_v34 = vld [vmem:[%s7705_s1 + $0x30] sm:$0x3f]  ;;  %v1060_v24 = vld [vmem:[%s7705_s1 + $0x28] sm:$0xff] }
 0x1bb   :  { %852 = vrot.lane.b32.xlu0 %v223_v32, %s3890_s21  ;;  %3779 = vmatpush.msk.msra.mxu0 %vm1126_vm0, %v1061_v34 }
 0x1bc   :  { %v4886_v20 = vpop.permute.xlu1 %686  ;;  %v4894_v41 = vpop.permute.xlu2 %748  ;;  %3845 = vmatpush.msk.msra.mxu3 %vm1126_vm0, %v1061_v34  ;;  %v1057_v34 = vld [vmem:[%s7705_s1 + $0x10] sm:$0xff] }
 0x1bd   :  { %7814 = vst [vmem:[#allocation79_spill] sm:$0xff] %v4886_v20  ;;  %v4888_v54 = vpop.permute.xlu0 %684  ;;  %1140 = vmatpush.msra.mxu0 %v1060_v24 }
 0x1be   :  { %7815 = vst [vmem:[#allocation80_spill] sm:$0xff] %v4888_v54  ;;  %3846 = vmatpush.msra.mxu3 %v1060_v24  ;;  %v1059_v54 = vld [vmem:[%s7705_s1 + $0x20] sm:$0xff]  ;;  %v1056_v24 = vld [vmem:[%s7705_s1 + $0x8] sm:$0xff] }
 0x1bf   :  { %7816 = vst [vmem:[#allocation81_spill] sm:$0xff] %v4894_v41  ;;  %1141 = vmatpush.msra.mxu0 %v1059_v54 }
 0x1c0   :  { %3847 = vmatpush.msra.mxu3 %v1059_v54  ;;  %v1055_v54 = vld [vmem:[%s7705_s1] sm:$0xff] }
 0x1c1   :  { %1142 = vmatpush.msra.mxu0 %v1058_v31 }
 0x1c2   :  { %3848 = vmatpush.msra.mxu3 %v1058_v31 }
 0x1c3   :  { %1143 = vmatpush.msra.mxu0 %v1057_v34 }
 0x1c4   :  { %v4890_v59 = vpop.permute.xlu1 %734  ;;  %v4908_v32 = vpop.permute.xlu2 %754  ;;  %3849 = vmatpush.msra.mxu3 %v1057_v34 }
 0x1c5   :  { %v4892_v61 = vpop.permute.xlu0 %732  ;;  %7817 = vst [vmem:[#allocation82_spill] sm:$0xff] %v4908_v32  ;;  %1144 = vmatpush.msra.mxu0 %v1056_v24 }
 0x1c6   :  { %3850 = vmatpush.msra.mxu3 %v1056_v24  ;;  %v3891_v24 = vmov 0  }
 0x1c7   :  { %1145 = vmatpush.msra.mxu0 %v1055_v54  ;;  %3876 = vset.pattern.permute.xlu0 %v3891_v24 }
 0x1c8   :  { %3851 = vmatpush.msra.mxu3 %v1055_v54  ;;  %3877 = vset.pattern.permute.xlu1 %v3891_v24  ;;  %v53_v54 = vld [vmem:[%s7704_s0] sm:$0xff] }
 0x1c9   :  { %3878 = vset.pattern.permute.xlu2 %v3891_v24 }
 0x1cc   :  { %v4896_v44 = vpop.permute.xlu1 %740  ;;  %v4926_v32 = vpop.permute.xlu2 %760 }
 0x1cd   :  { %v4898_v23 = vpop.permute.xlu0 %738  ;;  %7820 = vst [vmem:[#allocation85_spill] sm:$0xff] %v4926_v32 }
 0x1d4   :  { %v4910_v41 = vpop.permute.xlu1 %746  ;;  %v4935_v31 = vpop.permute.xlu2 %766 }
 0x1d5   :  { %7818 = vst [vmem:[#allocation83_spill] sm:$0xff] %v4910_v41  ;;  %v4912_v20 = vpop.permute.xlu0 %744 }
 0x1d6   :  { %7819 = vst [vmem:[#allocation84_spill] sm:$0xff] %v4912_v20 }
 0x1d7   :  { %7823 = vst [vmem:[#allocation88_spill] sm:$0xff] %v4935_v31 }
 0x1dc   :  { %v4928_v41 = vpop.permute.xlu1 %752 }
 0x1dd   :  { %7821 = vst [vmem:[#allocation86_spill] sm:$0xff] %v4928_v41  ;;  %v4930_v20 = vpop.permute.xlu0 %750  ;;  %v4945_v41 = vpop.permute.xlu2 %772 }
 0x1de   :  { %7822 = vst [vmem:[#allocation87_spill] sm:$0xff] %v4930_v20  ;;  %v32_v20 = vld [vmem:[%s7706_s8] sm:$0xff] }
 0x1df   :  { %7827 = vst [vmem:[#allocation92_spill] sm:$0xff] %v4945_v41  ;;  %1329 = vperm.xlu0 %3876, %v32_v20   ;;  %v33_v41 = vld [vmem:[%s7706_s8 + $0x8] sm:$0xff] }
 0x1e0   :  { %1334 = vperm.xlu1 %3877, %v33_v41  }
 0x1e4   :  { %v4937_v28 = vpop.permute.xlu1 %758 }
 0x1e5   :  { %7824 = vst [vmem:[#allocation89_spill] sm:$0xff] %v4937_v28  ;;  %v4939_v25 = vpop.permute.xlu0 %756  ;;  %v821_v24 = vpop.permute.xlu2 %820 }
 0x1e6   :  { %7825 = vst [vmem:[#allocation90_spill] sm:$0xff] %v4939_v25 }
 0x1ec   :  { %v4941_v32 = vpop.permute.xlu1 %764 }
 0x1ed   :  { %v4943_v34 = vpop.permute.xlu0 %762 }
 0x1ee   :  { %7826 = vst [vmem:[#allocation91_spill] sm:$0xff] %v4943_v34  ;;  %v880_v34 = vsel %vm879_vm1, %v53_v54, %v4190_v50  ;;  %v54_v54 = vld [vmem:[%s7704_s0 + $0x8] sm:$0xff] }
 0x1ef   :  { %v902_v20 = vsel %vm901_vm2, %v880_v34, %v4316_v53 }
 0x1f0   :  { %v924_v31 = vsel %vm923_vm3, %v902_v20, %v4442_v9  ;;  %v4987_v20 = vpop.permute.xlu2 %826 }
 0x1f4   :  { %v4953_v28 = vpop.permute.xlu1 %770 }
 0x1f5   :  { %7828 = vst [vmem:[#allocation93_spill] sm:$0xff] %v4953_v28  ;;  %v4955_v25 = vpop.permute.xlu0 %768  ;;  %v946_v28 = vsel %vm945_vm4, %v924_v31, %v4562_v47 }
 0x1f6   :  { %v968_v50 = vsel %vm967_vm5, %v946_v28, %v4656_v10  ;;  %v881_v10 = vsel %vm879_vm1, %v54_v54, %v4208_v56  ;;  %v55_v56 = vld [vmem:[%s7704_s0 + $0x10] sm:$0xff] }
 0x1f7   :  { %v990_v53 = vsel %vm989_vm6, %v968_v50, %v4782_v37  ;;  %v903_v28 = vsel %vm901_vm2, %v881_v10, %v4314_v52 }
 0x1f8   :  { %v1012_v9 = vsel %vm1011_vm7, %v990_v53, %v4892_v61  ;;  %v925_v37 = vsel %vm923_vm3, %v903_v28, %v4440_v17  ;;  %v5023_v10 = vpop.permute.xlu2 %832 }
 0x1f9   :  { %v947_v31 = vsel %vm945_vm4, %v925_v37, %v4560_v2  ;;  %v35_v2 = vld [vmem:[%s7706_s8 + $0x18] sm:$0xff] }
 0x1fa   :  { %v969_v61 = vsel %vm967_vm5, %v947_v31, %v4654_v43  ;;  %v37_v43 = vld [vmem:[%s7706_s8 + $0x28] sm:$0xff]  ;;  %1344 = vperm.xlu1 %3877, %v35_v2  }
 0x1fb   :  { %v991_v50 = vsel %vm989_vm6, %v969_v61, %v4780_v18  ;;  %1354 = vperm.xlu0 %3876, %v37_v43   ;;  %v882_v18 = vsel %vm879_vm1, %v55_v56, %v4188_v49 }
 0x1fc   :  { %v819_v41 = vpop.permute.xlu1 %818  ;;  %v1013_v52 = vsel %vm1011_vm7, %v991_v50, %v4890_v59  ;;  %v904_v59 = vsel %vm901_vm2, %v882_v18, %v4258_v8  ;;  %v36_v50 = vld [vmem:[%s7706_s8 + $0x20] sm:$0xff] }
 0x1fd   :  { %v817_v34 = vpop.permute.xlu0 %816  ;;  %v1035_v53 = vsel %vm1033_vm9, %v1013_v52, %v819_v41  ;;  %v56_v41 = vld [vmem:[%s7704_s0 + $0x18] sm:$0xff] }
 0x1fe   :  { %v1034_v47 = vsel %vm1033_vm9, %v1012_v9, %v817_v34  ;;  %v926_v9 = vsel %vm923_vm3, %v904_v59, %v4384_v5 }
 0x1ff   :  { %3780 = vmatmul.msk.f32.vlgmr.msra.gmra.mxu0 %vm1062_vm8, %v1034_v47  ;;  %v948_v34 = vsel %vm945_vm4, %v926_v9, %v4510_v46  ;;  %v34_v46 = vld [vmem:[%s7706_s8 + $0x10] sm:$0xff] }
 0x200   :  { %v970_v47 = vsel %vm967_vm5, %v948_v34, %v4606_v35  ;;  %v38_v35 = vld [vmem:[%s7706_s8 + $0x30] sm:$0xff]  ;;  %1339 = vperm.xlu2 %3878, %v34_v46   ;;  %v5072_v43 = vpop.permute.xlu2 %838 }
 0x201   :  { %v992_v49 = vsel %vm989_vm6, %v970_v47, %v4724_v38  ;;  %v40_v38 = vld [vmem:[%s7706_s8 + $0x40] sm:$0xff] }
 0x202   :  { %v1014_v8 = vsel %vm1011_vm7, %v992_v49, %v4863_v12  ;;  %1359 = vperm.xlu1 %3877, %v38_v35   ;;  %v883_v12 = vsel %vm879_vm1, %v56_v41, %v4206_v55  ;;  %v41_v55 = vld [vmem:[%s7706_s8 + $0x48] sm:$0xff] }
 0x203   :  { %v1036_v37 = vsel %vm1033_vm9, %v1014_v8, %v821_v24  ;;  %1369 = vperm.xlu0 %3876, %v40_v38   ;;  %v905_v31 = vsel %vm901_vm2, %v883_v12, %v4334_v1  ;;  %v57_v1 = vld [vmem:[%s7704_s0 + $0x20] sm:$0xff] }
 0x204   :  { %v4996_v54 = vpop.permute.xlu1 %824  ;;  %v927_v61 = vsel %vm923_vm3, %v905_v31, %v4460_v63 }
 0x205   :  { %v823_v17 = vpop.permute.xlu0 %822  ;;  %v949_v56 = vsel %vm945_vm4, %v927_v61, %v4574_v22  ;;  %v43_v22 = vld [vmem:[%s7706_s8 + $0x58] sm:$0xff]  ;;  %v49_v61 = vld [vmem:[%s7706_s8 + $0x88] sm:$0xff] }
 0x206   :  { %v971_v24 = vsel %vm967_vm5, %v949_v56, %v4674_v42 }
 0x207   :  { %3781 = vmatmul.msk.f32.gmra.mxu0 %vm1062_vm8, %v1035_v53  ;;  %v993_v63 = vsel %vm989_vm6, %v971_v24, %v4800_v27  ;;  %v884_v27 = vsel %vm879_vm1, %v57_v1, %v4129_v36  ;;  %v39_v36 = vld [vmem:[%s7706_s8 + $0x38] sm:$0xff]  ;;  %v7830_v1 = vld [vmem:[#allocation56_spill] sm:$0xff] }
 0x208   :  { %v1015_v42 = vsel %vm1011_vm7, %v993_v63, %v4898_v23  ;;  %1349 = vperm.xlu2 %3878, %v36_v50   ;;  %v906_v18 = vsel %vm901_vm2, %v884_v27, %v4332_v0  ;;  %v44_v0 = vld [vmem:[%s7706_s8 + $0x60] sm:$0xff]  ;;  %v5122_v35 = vpop.permute.xlu2 %844  ;;  %v60_v27 = vld [vmem:[%s7704_s0 + $0x38] sm:$0xff] }
 0x209   :  { %v1037_v53 = vsel %vm1033_vm9, %v1015_v42, %v823_v17  ;;  %v928_v23 = vsel %vm923_vm3, %v906_v18, %v4458_v16  ;;  %v69_v17 = vld [vmem:[%s7704_s0 + $0x80] sm:$0xff]  ;;  %v58_v16 = vld [vmem:[%s7704_s0 + $0x28] sm:$0xff] }
 0x20a   :  { %1374 = vperm.xlu1 %3877, %v41_v55   ;;  %v950_v59 = vsel %vm945_vm4, %v928_v23, %v4572_v21  ;;  %v896_v41 = vsel %vm879_vm1, %v69_v17, %v4278_v15  ;;  %v7829_v55 = vld [vmem:[#allocation44_spill] sm:$0xff]  ;;  %v7833_v18 = vld [vmem:[#allocation71_spill] sm:$0xff] }
 0x20b   :  { %1384 = vperm.xlu0 %3876, %v43_v22   ;;  %v972_v9 = vsel %vm967_vm5, %v950_v59, %v4672_v26  ;;  %v46_v26 = vld [vmem:[%s7706_s8 + $0x70] sm:$0xff]  ;;  %v918_v46 = vsel %vm901_vm2, %v896_v41, %v4404_v58  ;;  %v7837_v41 = vld [vmem:[#allocation7_spill] sm:$0xff] }
 0x20c   :  { %v5025_v28 = vpop.permute.xlu1 %830  ;;  %v994_v21 = vsel %vm989_vm6, %v972_v9, %v4798_v19  ;;  %v885_v19 = vsel %vm879_vm1, %v58_v16, %v4152_v40  ;;  %v940_v15 = vsel %vm923_vm3, %v918_v46, %v4530_v3  ;;  %v7834_v59 = vld [vmem:[#allocation88_spill] sm:$0xff] }
 0x20d   :  { %v5029_v5 = vpop.permute.xlu0 %828  ;;  %v1016_v47 = vsel %vm1011_vm7, %v994_v21, %v4896_v44  ;;  %v907_v44 = vsel %vm901_vm2, %v885_v19, %v4276_v14  ;;  %v962_v40 = vsel %vm945_vm4, %v940_v15, %v4620_v33  ;;  %v70_v14 = vld [vmem:[%s7704_s0 + $0x88] sm:$0xff]  ;;  %v50_v9 = vld [vmem:[%s7706_s8 + $0x90] sm:$0xff] }
 0x20e   :  { %v1038_v8 = vsel %vm1033_vm9, %v1016_v47, %v4996_v54  ;;  %v929_v54 = vsel %vm923_vm3, %v907_v44, %v4402_v57  ;;  %v984_v38 = vsel %vm967_vm5, %v962_v40, %v4744_v51  ;;  %v42_v57 = vld [vmem:[%s7706_s8 + $0x50] sm:$0xff]  ;;  %v7839_v44 = vld [vmem:[#allocation19_spill] sm:$0xff] }
 0x20f   :  { %3782 = vmatmul.msk.f32.gmra.mxu0 %vm1062_vm8, %v1036_v37  ;;  %v951_v58 = vsel %vm945_vm4, %v929_v54, %v4528_v45  ;;  %v1006_v37 = vsel %vm989_vm6, %v984_v38, %v4868_v48  ;;  %v59_v45 = vld [vmem:[%s7704_s0 + $0x30] sm:$0xff]  ;;  %v7842_v38 = vld [vmem:[#allocation53_spill] sm:$0xff] }
 0x210   :  { %1364 = vperm.xlu2 %3878, %v39_v36   ;;  %v973_v3 = vsel %vm967_vm5, %v951_v58, %v4618_v39  ;;  %v1028_v51 = vsel %vm1011_vm7, %v1006_v37, %v4941_v32  ;;  %v47_v39 = vld [vmem:[%s7706_s8 + $0x78] sm:$0xff]  ;;  %v886_v56 = vsel %vm879_vm1, %v59_v45, %v4226_v62  ;;  %v851_v22 = vpop.permute.xlu2 %850  ;;  %v7835_v36 = vld [vmem:[#allocation84_spill] sm:$0xff]  ;;  %v7841_v58 = vld [vmem:[#allocation31_spill] sm:$0xff] }
 0x211   :  { %v995_v33 = vsel %vm989_vm6, %v973_v3, %v4742_v4  ;;  %v897_v4 = vsel %vm879_vm1, %v70_v14, %v4222_v60  ;;  %v908_v24 = vsel %vm901_vm2, %v886_v56, %v4352_v13  ;;  %v71_v13 = vld [vmem:[%s7704_s0 + $0x90] sm:$0xff]  ;;  %v7843_v3 = vld [vmem:[#allocation43_spill] sm:$0xff] }
 0x212   :  { %1389 = vperm.xlu1 %3877, %v44_v0   ;;  %v1017_v48 = vsel %vm1011_vm7, %v995_v33, %v4884_v30  ;;  %v919_v30 = vsel %vm901_vm2, %v897_v4, %v4348_v11  ;;  %v7836_v21 = vld [vmem:[#allocation16_spill] sm:$0xff]  ;;  %v61_v4 = vld [vmem:[%s7704_s0 + $0x40] sm:$0xff] }
 0x213   :  { %1399 = vperm.xlu0 %3876, %v46_v26   ;;  %v1039_v32 = vsel %vm1033_vm9, %v1017_v48, %v4987_v20  ;;  %v941_v60 = vsel %vm923_vm3, %v919_v30, %v4474_v7  ;;  %v930_v20 = vsel %vm923_vm3, %v908_v24, %v4478_v6  ;;  %v7831_v7 = vld [vmem:[#allocation58_spill] sm:$0xff]  ;;  %v898_v26 = vsel %vm879_vm1, %v71_v13, %v7836_v21  ;;  %v7838_v19 = vld [vmem:[#allocation28_spill] sm:$0xff]  ;;  %v7848_v24 = vld [vmem:[#allocation83_spill] sm:$0xff] }
 0x214   :  { %v5063_v52 = vpop.permute.xlu1 %836  ;;  %v963_v62 = vsel %vm945_vm4, %v941_v60, %v4582_v29  ;;  %v952_v11 = vsel %vm945_vm4, %v930_v20, %v7829_v55  ;;  %v45_v29 = vld [vmem:[%s7706_s8 + $0x68] sm:$0xff]  ;;  %v920_v46 = vsel %vm901_vm2, %v898_v26, %v7838_v19  ;;  %v7840_v54 = vld [vmem:[#allocation40_spill] sm:$0xff]  ;;  %v52_v13 = vld [vmem:[%s7706_s8 + $0xa0] sm:$0x3] }
 0x215   :  { %v5070_v2 = vpop.permute.xlu0 %834  ;;  %v985_v63 = vsel %vm967_vm5, %v963_v62, %v7830_v1  ;;  %v974_v42 = vsel %vm967_vm5, %v952_v11, %v7831_v7  ;;  %v942_v40 = vsel %vm923_vm3, %v920_v46, %v7840_v54  ;;  %v7846_v48 = vld [vmem:[#allocation80_spill] sm:$0xff]  ;;  %v7849_v62 = vld [vmem:[#allocation15_spill] sm:$0xff]  ;;  %v7852_v7 = vld [vmem:[#allocation14_spill] sm:$0xff] }
 0x216   :  { %v996_v23 = vsel %vm989_vm6, %v974_v42, %v7833_v18  ;;  %v964_v14 = vsel %vm945_vm4, %v942_v40, %v7842_v38  ;;  %v7850_v1 = vld [vmem:[#allocation4_spill] sm:$0xff]  ;;  %v7859_v26 = vld [vmem:[#allocation79_spill] sm:$0xff]  ;;  %v7861_v46 = vld [vmem:[#allocation93_spill] sm:$0xff] }
 0x217   :  { %3783 = vmatmul.msk.f32.gmra.mxu0 %vm1062_vm8, %v1037_v53  ;;  %v7832_v53 = vld [vmem:[#allocation72_spill] sm:$0xff]  ;;  %v1018_v0 = vsel %vm1011_vm7, %v996_v23, %v7835_v36  ;;  %v7856_v23 = vld [vmem:[#allocation38_spill] sm:$0xff] }
 0x218   :  { %1379 = vperm.xlu2 %3878, %v42_v57   ;;  %v1007_v6 = vsel %vm989_vm6, %v985_v63, %v7832_v53  ;;  %v1040_v47 = vsel %vm1033_vm9, %v1018_v0, %v5029_v5  ;;  %v7844_v57 = vld [vmem:[#allocation67_spill] sm:$0xff]  ;;  %v888_v63 = vsel %vm879_vm1, %v61_v4, %v7850_v1  ;;  %v73_v0 = vld [vmem:[%s7704_s0 + $0xa0] sm:$0x3] }
 0x219   :  { %v1029_v17 = vsel %vm1011_vm7, %v1007_v6, %v7834_v59  ;;  %v986_v45 = vsel %vm967_vm5, %v964_v14, %v7844_v57  ;;  %v910_v42 = vsel %vm901_vm2, %v888_v63, %v7852_v7  ;;  %v7853_v53 = vld [vmem:[#allocation39_spill] sm:$0xff]  ;;  %v7854_v6 = vld [vmem:[#allocation26_spill] sm:$0xff]  ;;  %v7875_v63 = vld [vmem:[#allocation92_spill] sm:$0xff] }
 0x21a   :  { %1404 = vperm.xlu1 %3877, %v47_v39   ;;  %v1051_v16 = vsel %vm1033_vm9, %v1029_v17, %v851_v22  ;;  %v7851_v22 = vld [vmem:[#allocation27_spill] sm:$0xff]  ;;  %v7857_v17 = vld [vmem:[#allocation66_spill] sm:$0xff] }
 0x21b   :  { %1414 = vperm.xlu0 %3876, %v49_v61   ;;  %v48_v61 = vld [vmem:[%s7706_s8 + $0x80] sm:$0xff] }
 0x21c   :  { %v5100_v34 = vpop.permute.xlu1 %842  ;;  %v7864_v14 = vld [vmem:[#allocation10_spill] sm:$0xff] }
 0x21d   :  { %v5109_v49 = vpop.permute.xlu0 %840 }
 0x21f   :  { %3784 = vmatmul.msk.f32.gmra.mxu0 %vm1062_vm8, %v1038_v8  ;;  %v887_v8 = vsel %vm879_vm1, %v60_v27, %v7837_v41  ;;  %v7855_v27 = vld [vmem:[#allocation52_spill] sm:$0xff]  ;;  %v62_v41 = vld [vmem:[%s7704_s0 + $0x48] sm:$0xff] }
 0x220   :  { %1394 = vperm.xlu2 %3878, %v45_v29   ;;  %v909_v15 = vsel %vm901_vm2, %v887_v8, %v7839_v44  ;;  %v932_v29 = vsel %vm923_vm3, %v910_v42, %v7854_v6  ;;  %v7860_v8 = vld [vmem:[#allocation65_spill] sm:$0xff] }
 0x221   :  { %v931_v5 = vsel %vm923_vm3, %v909_v15, %v7841_v58  ;;  %v954_v59 = vsel %vm945_vm4, %v932_v29, %v7856_v23  ;;  %v7862_v15 = vld [vmem:[#allocation81_spill] sm:$0xff]  ;;  %v7863_v58 = vld [vmem:[#allocation8_spill] sm:$0xff] }
 0x222   :  { %1419 = vperm.xlu1 %3877, %v50_v9   ;;  %v953_v37 = vsel %vm945_vm4, %v931_v5, %v7843_v3  ;;  %v900_v5 = vsel %vm879_vm1, %v73_v0, %v7863_v58  ;;  %v889_v3 = vsel %vm879_vm1, %v62_v41, %v7864_v14  ;;  %v51_v6 = vld [vmem:[%s7706_s8 + $0x98] sm:$0xff]  ;;  %v7888_v58 = vld [vmem:[#allocation54_spill] sm:$0xff] }
 0x223   :  { %1429 = vperm.xlu0 %3876, %v52_v13   ;;  %v7878_v29 = vld [vmem:[#allocation21_spill] sm:$0xff] }
 0x224   :  { %v849_v12 = vpop.permute.xlu1 %848  ;;  %v7882_v0 = vld [vmem:[#allocation73_spill] sm:$0xff] }
 0x225   :  { %v1050_v31 = vsel %vm1033_vm9, %v1028_v51, %v849_v12  ;;  %v5172_v50 = vpop.permute.xlu0 %846  ;;  %v72_v51 = vld [vmem:[%s7704_s0 + $0x98] sm:$0xff] }
 0x226   :  { %3796 = vmatmul.msk.f32.vlgmr.msra.gmra.mxu3 %vm1062_vm8, %v1050_v31  ;;  %v7845_v12 = vld [vmem:[#allocation57_spill] sm:$0xff]  ;;  %v1008_v31 = vsel %vm989_vm6, %v986_v45, %v7846_v48  ;;  %v899_v55 = vsel %vm879_vm1, %v72_v51, %v7849_v62  ;;  %v7866_v45 = vld [vmem:[#allocation22_spill] sm:$0xff]  ;;  %v7867_v51 = vld [vmem:[#allocation32_spill] sm:$0xff] }
 0x227   :  { %3785 = vmatmul.msk.f32.gmra.mxu0 %vm1062_vm8, %v1039_v32  ;;  %v975_v39 = vsel %vm967_vm5, %v953_v37, %v7845_v12  ;;  %v7847_v32 = vld [vmem:[#allocation70_spill] sm:$0xff]  ;;  %v1030_v30 = vsel %vm1011_vm7, %v1008_v31, %v4955_v25  ;;  %v921_v25 = vsel %vm901_vm2, %v899_v55, %v7851_v22  ;;  %v7865_v37 = vld [vmem:[#allocation20_spill] sm:$0xff]  ;;  %v7884_v41 = vld [vmem:[#allocation5_spill] sm:$0xff] }
 0x228   :  { %v997_v56 = vsel %vm989_vm6, %v975_v39, %v7847_v32  ;;  %1409 = vperm.xlu2 %3878, %v48_v61   ;;  %v922_v57 = vsel %vm901_vm2, %v900_v5, %v7865_v37  ;;  %v7868_v39 = vld [vmem:[#allocation34_spill] sm:$0xff]  ;;  %v7870_v61 = vld [vmem:[#allocation47_spill] sm:$0xff]  ;;  %v63_v55 = vld [vmem:[%s7704_s0 + $0x50] sm:$0xff] }
 0x229   :  { %v1019_v60 = vsel %vm1011_vm7, %v997_v56, %v7848_v24  ;;  %v944_v12 = vsel %vm923_vm3, %v922_v57, %v7867_v51  ;;  %v7871_v32 = vld [vmem:[#allocation59_spill] sm:$0xff]  ;;  %v7872_v24 = vld [vmem:[#allocation61_spill] sm:$0xff]  ;;  %v7892_v51 = vld [vmem:[#allocation24_spill] sm:$0xff] }
 0x22a   :  { %v1041_v11 = vsel %vm1033_vm9, %v1019_v60, %v5025_v28  ;;  %v943_v28 = vsel %vm923_vm3, %v921_v25, %v7853_v53  ;;  %v7876_v25 = vld [vmem:[#allocation87_spill] sm:$0xff]  ;;  %v7877_v53 = vld [vmem:[#allocation9_spill] sm:$0xff] }
 0x22b   :  { %v965_v18 = vsel %vm945_vm4, %v943_v28, %v7855_v27  ;;  %v890_v28 = vsel %vm879_vm1, %v63_v55, %v7877_v53  ;;  %v7899_v55 = vld [vmem:[#allocation23_spill] sm:$0xff]  ;;  %v7903_v53 = vld [vmem:[#allocation76_spill] sm:$0xff] }
 0x22c   :  { %v987_v9 = vsel %vm967_vm5, %v965_v18, %v7857_v17  ;;  %v855_v36 = vpop.permute.xlu1 %854  ;;  %v912_v27 = vsel %vm901_vm2, %v890_v28, %v7878_v29  ;;  %v7879_v18 = vld [vmem:[#allocation33_spill] sm:$0xff]  ;;  %v7881_v17 = vld [vmem:[#allocation60_spill] sm:$0xff] }
 0x22d   :  { %v853_v33 = vpop.permute.xlu0 %852  ;;  %v934_v23 = vsel %vm923_vm3, %v912_v27, %v7879_v18  ;;  %v7905_v18 = vld [vmem:[#allocation6_spill] sm:$0xff] }
 0x22e   :  { %3797 = vmatmul.msk.f32.gmra.mxu3 %vm1062_vm8, %v1051_v16  ;;  %v1052_v20 = vsel %vm1033_vm9, %v1030_v30, %v853_v33  ;;  %v7858_v16 = vld [vmem:[#allocation51_spill] sm:$0xff]  ;;  %v911_v33 = vsel %vm901_vm2, %v889_v3, %v7866_v45  ;;  %v857_v30 = vpop.permute.xlu2 %856  ;;  %v7890_v3 = vld [vmem:[#allocation82_spill] sm:$0xff]  ;;  %v7891_v45 = vld [vmem:[#allocation12_spill] sm:$0xff] }
 0x22f   :  { %3786 = vmatmul.msk.f32.gmra.mxu0 %vm1062_vm8, %v1040_v47  ;;  %v976_v21 = vsel %vm967_vm5, %v954_v59, %v7858_v16  ;;  %v1009_v47 = vsel %vm989_vm6, %v987_v9, %v7859_v26  ;;  %v933_v48 = vsel %vm923_vm3, %v911_v33, %v7868_v39  ;;  %v7880_v59 = vld [vmem:[#allocation46_spill] sm:$0xff]  ;;  %v7893_v39 = vld [vmem:[#allocation36_spill] sm:$0xff] }
 0x230   :  { %v998_v19 = vsel %vm989_vm6, %v976_v21, %v7860_v8  ;;  %v1031_v44 = vsel %vm1011_vm7, %v1009_v47, %v7861_v46  ;;  %v955_v4 = vsel %vm945_vm4, %v933_v48, %v7870_v61  ;;  %1424 = vperm.xlu2 %3878, %v51_v6   ;;  %v7883_v21 = vld [vmem:[#allocation86_spill] sm:$0xff]  ;;  %v7895_v61 = vld [vmem:[#allocation63_spill] sm:$0xff]  ;;  %v7904_v6 = vld [vmem:[#allocation89_spill] sm:$0xff] }
 0x231   :  { %v1020_v54 = vsel %vm1011_vm7, %v998_v19, %v7862_v15  ;;  %v1053_v40 = vsel %vm1033_vm9, %v1031_v44, %v855_v36  ;;  %v977_v60 = vsel %vm967_vm5, %v955_v4, %v7872_v24  ;;  %v64_v36 = vld [vmem:[%s7704_s0 + $0x58] sm:$0xff] }
 0x232   :  { %v1042_v38 = vsel %vm1033_vm9, %v1020_v54, %v5023_v10  ;;  %v7869_v10 = vld [vmem:[#allocation45_spill] sm:$0xff]  ;;  %v891_v8 = vsel %vm879_vm1, %v64_v36, %v7884_v41 }
 0x233   :  { %v966_v31 = vsel %vm945_vm4, %v944_v12, %v7869_v10  ;;  %v7885_v19 = vld [vmem:[#allocation17_spill] sm:$0xff] }
 0x234   :  { %v988_v56 = vsel %vm967_vm5, %v966_v31, %v7871_v32  ;;  %v913_v46 = vsel %vm901_vm2, %v891_v8, %v7885_v19  ;;  %v7886_v44 = vld [vmem:[#allocation29_spill] sm:$0xff] }
 0x235   :  { %v935_v15 = vsel %vm923_vm3, %v913_v46, %v7886_v44  ;;  %v7887_v54 = vld [vmem:[#allocation41_spill] sm:$0xff] }
 0x236   :  { %3798 = vmatmul.msk.f32.gmra.mxu3 %vm1062_vm8, %v1052_v20  ;;  %v7873_v20 = vld [vmem:[#allocation75_spill] sm:$0xff]  ;;  %v7894_v10 = vld [vmem:[#allocation49_spill] sm:$0xff] }
 0x237   :  { %3787 = vmatmul.msk.f32.gmra.mxu0 %vm1062_vm8, %v1041_v11  ;;  %v1010_v62 = vsel %vm989_vm6, %v988_v56, %v7873_v20  ;;  %v7874_v11 = vld [vmem:[#allocation74_spill] sm:$0xff]  ;;  %v7896_v32 = vld [vmem:[#allocation77_spill] sm:$0xff]  ;;  %v7898_v20 = vld [vmem:[#allocation11_spill] sm:$0xff] }
 0x238   :  { %v999_v1 = vsel %vm989_vm6, %v977_v60, %v7874_v11  ;;  %v1032_v22 = vsel %vm1011_vm7, %v1010_v62, %v7875_v63  ;;  %v7911_v41 = vld [vmem:[#allocation85_spill] sm:$0xff] }
 0x239   :  { %v1021_v13 = vsel %vm1011_vm7, %v999_v1, %v7876_v25  ;;  %v1054_v7 = vsel %vm1033_vm9, %v1032_v22, %v857_v30  ;;  %v7897_v30 = vld [vmem:[#allocation90_spill] sm:$0xff]  ;;  %v7900_v1 = vld [vmem:[#allocation35_spill] sm:$0xff]  ;;  %v7901_v22 = vld [vmem:[#allocation48_spill] sm:$0xff] }
 0x23a   :  { %v1043_v42 = vsel %vm1033_vm9, %v1021_v13, %v5070_v2  ;;  %v956_v2 = vsel %vm945_vm4, %v934_v23, %v7880_v59  ;;  %v3892_v13 = vmov 0.0   ;;  %v7906_v59 = vld [vmem:[#allocation18_spill] sm:$0xff]  ;;  %v7912_v46 = vld [vmem:[#allocation13_spill] sm:$0xff] }
 0x23b   :  { %v978_v9 = vsel %vm967_vm5, %v956_v2, %v7881_v17  ;;  %1211 = vst.msk [vmem:[#allocation2 + $0x8] sm:$0xff] %vm879_vm1, %v3892_v13  ;;  %v7907_v17 = vld [vmem:[#allocation30_spill] sm:$0xff] }
 0x23c   :  { %v1000_v16 = vsel %vm989_vm6, %v978_v9, %v7882_v0  ;;  %1212 = vst.msk [vmem:[#allocation2 + $0x10] sm:$0xff] %vm879_vm1, %v3892_v13  ;;  %v7908_v9 = vld [vmem:[#allocation42_spill] sm:$0xff]  ;;  %v7909_v0 = vld [vmem:[#allocation55_spill] sm:$0xff] }
 0x23d   :  { %v1022_v26 = vsel %vm1011_vm7, %v1000_v16, %v7883_v21  ;;  %1210 = vst.msk [vmem:[#allocation2] sm:$0xff] %vm879_vm1, %v3892_v13  ;;  %v68_v21 = vld [vmem:[%s7704_s0 + $0x78] sm:$0xff] }
 0x23e   :  { %3799 = vmatmul.msk.f32.gmra.mxu3 %vm1062_vm8, %v1053_v40  ;;  %v1044_v47 = vsel %vm1033_vm9, %v1022_v26, %v5063_v52  ;;  %v957_v40 = vsel %vm945_vm4, %v935_v15, %v7887_v54  ;;  %v65_v52 = vld [vmem:[%s7704_s0 + $0x60] sm:$0xff]  ;;  %1213 = vst.msk [vmem:[#allocation2 + $0x18] sm:$0xff] %vm879_vm1, %v3892_v13  ;;  %v7910_v26 = vld [vmem:[#allocation69_spill] sm:$0xff]  ;;  %v895_v44 = vsel %vm879_vm1, %v68_v21, %v7912_v46 }
 0x23f   :  { %3788 = vmatmul.msk.f32.gmra.mxu0 %vm1062_vm8, %v1042_v38  ;;  %v979_v5 = vsel %vm967_vm5, %v957_v40, %v7888_v58  ;;  %v7889_v38 = vld [vmem:[#allocation68_spill] sm:$0xff]  ;;  %v892_v33 = vsel %vm879_vm1, %v65_v52, %v7891_v45  ;;  %1214 = vst.msk [vmem:[#allocation2 + $0x20] sm:$0xff] %vm879_vm1, %v3892_v13  ;;  %v7913_v15 = vld [vmem:[#allocation25_spill] sm:$0xff]  ;;  %v7915_v58 = vld [vmem:[#allocation50_spill] sm:$0xff] }
 0x240   :  { %v1001_v14 = vsel %vm989_vm6, %v979_v5, %v7889_v38  ;;  %v914_v12 = vsel %vm901_vm2, %v892_v33, %v7892_v51  ;;  %1215 = vst.msk [vmem:[#allocation2 + $0x28] sm:$0xff] %vm879_vm1, %v3892_v13  ;;  %v917_v54 = vsel %vm901_vm2, %v895_v44, %v7913_v15  ;;  %v7914_v40 = vld [vmem:[#allocation37_spill] sm:$0xff]  ;;  %v7916_v52 = vld [vmem:[#allocation64_spill] sm:$0xff]  ;;  %v5498_v51 = vld [vmem:[%s7707_s2] ss:$0 sm:$0xff] }
 0x241   :  { %v1023_v37 = vsel %vm1011_vm7, %v1001_v14, %v7890_v3  ;;  %v936_v48 = vsel %vm923_vm3, %v914_v12, %v7893_v39  ;;  %1216 = vst.msk [vmem:[#allocation2 + $0x30] sm:$0xff] %vm879_vm1, %v3892_v13  ;;  %v7917_v14 = vld [vmem:[#allocation78_spill] sm:$0xff] }
 0x242   :  { %v1045_v57 = vsel %vm1033_vm9, %v1023_v37, %v5072_v43  ;;  %v958_v31 = vsel %vm945_vm4, %v936_v48, %v7894_v10  ;;  %v66_v43 = vld [vmem:[%s7704_s0 + $0x68] sm:$0xff]  ;;  %1217 = vst.msk [vmem:[#allocation2 + $0x38] sm:$0xff] %vm879_vm1, %v3892_v13 }
 0x243   :  { %v980_v4 = vsel %vm967_vm5, %v958_v31, %v7895_v61  ;;  %v893_v62 = vsel %vm879_vm1, %v66_v43, %v7898_v20  ;;  %1218 = vst.msk [vmem:[#allocation2 + $0x40] sm:$0xff] %vm879_vm1, %v3892_v13  ;;  %v7918_v37 = vld [vmem:[#allocation91_spill] sm:$0xff] }
 0x244   :  { %v1002_v56 = vsel %vm989_vm6, %v980_v4, %v7896_v32  ;;  %v915_v11 = vsel %vm901_vm2, %v893_v62, %v7899_v55  ;;  %1219 = vst.msk [vmem:[#allocation2 + $0x48] sm:$0xff] %vm879_vm1, %v3892_v13  ;;  %v1496_v33 = vld [vmem:[#allocation2 + $0x1] sm:$0xff] }
 0x245   :  { %v1024_v24 = vsel %vm1011_vm7, %v1002_v56, %v7897_v30  ;;  %v937_v63 = vsel %vm923_vm3, %v915_v11, %v7900_v1  ;;  %1220 = vst.msk [vmem:[#allocation2 + $0x50] sm:$0xff] %vm879_vm1, %v3892_v13  ;;  %1609 = vrot.lane.b32.xlu1 %v1496_v33, %s3883_s15 }
 0x246   :  { %3800 = vmatmul.msk.f32.gmra.mxu3 %vm1062_vm8, %v1054_v7  ;;  %v1046_v60 = vsel %vm1033_vm9, %v1024_v24, %v5109_v49  ;;  %v959_v25 = vsel %vm945_vm4, %v937_v63, %v7901_v22  ;;  %v7902_v7 = vld [vmem:[#allocation62_spill] sm:$0xff]  ;;  %1221 = vst.msk [vmem:[#allocation2 + $0x58] sm:$0xff] %vm879_vm1, %v3892_v13 }
 0x247   :  { %3789 = vmatmul.msk.f32.gmra.mxu0 %vm1062_vm8, %v1043_v42  ;;  %v981_v49 = vsel %vm967_vm5, %v959_v25, %v7902_v7  ;;  %v67_v42 = vld [vmem:[%s7704_s0 + $0x70] sm:$0xff]  ;;  %1222 = vst.msk [vmem:[#allocation2 + $0x60] sm:$0xff] %vm879_vm1, %v3892_v13 }
 0x248   :  { %v1003_v28 = vsel %vm989_vm6, %v981_v49, %v7903_v53  ;;  %v894_v23 = vsel %vm879_vm1, %v67_v42, %v7905_v18  ;;  %1223 = vst.msk [vmem:[#allocation2 + $0x68] sm:$0xff] %vm879_vm1, %v3892_v13 }
 0x249   :  { %v1025_v29 = vsel %vm1011_vm7, %v1003_v28, %v7904_v6  ;;  %v916_v2 = vsel %vm901_vm2, %v894_v23, %v7906_v59  ;;  %1224 = vst.msk [vmem:[#allocation2 + $0x70] sm:$0xff] %vm879_vm1, %v3892_v13 }
 0x24a   :  { %v1047_v27 = vsel %vm1033_vm9, %v1025_v29, %v5100_v34  ;;  %v938_v34 = vsel %vm923_vm3, %v916_v2, %v7907_v17  ;;  %1225 = vst.msk [vmem:[#allocation2 + $0x78] sm:$0xff] %vm879_vm1, %v3892_v13 }
 0x24b   :  { %v960_v36 = vsel %vm945_vm4, %v938_v34, %v7908_v9  ;;  %1226 = vst.msk [vmem:[#allocation2 + $0x80] sm:$0xff] %vm879_vm1, %v3892_v13 }
 0x24c   :  { %v982_v16 = vsel %vm967_vm5, %v960_v36, %v7909_v0  ;;  %1227 = vst.msk [vmem:[#allocation2 + $0x88] sm:$0xff] %vm879_vm1, %v3892_v13 }
 0x24d   :  { %1228 = vst.msk [vmem:[#allocation2 + $0x90] sm:$0xff] %vm879_vm1, %v3892_v13 }
 0x24e   :  { %1229 = vst.msk [vmem:[#allocation2 + $0x98] sm:$0xff] %vm879_vm1, %v3892_v13 }
 0x24f   :  { %3790 = vmatmul.msk.f32.gmra.mxu0 %vm1062_vm8, %v1044_v47  ;;  %v1004_v47 = vsel %vm989_vm6, %v982_v16, %v7910_v26  ;;  %1230 = vst.msk [vmem:[#allocation2 + $0xa0] sm:$0xff] %vm879_vm1, %v3892_v13 }
 0x250   :  { %v1026_v8 = vsel %vm1011_vm7, %v1004_v47, %v7911_v41  ;;  %1231 = vst.msk [vmem:[#allocation2 + $0xa8] sm:$0xff] %vm879_vm1, %v3892_v13 }
 0x251   :  { %v1048_v19 = vsel %vm1033_vm9, %v1026_v8, %v5122_v35  ;;  %v939_v35 = vsel %vm923_vm3, %v917_v54, %v7914_v40  ;;  %1232 = vst.msk [vmem:[#allocation2 + $0xb0] sm:$0xff] %vm879_vm1, %v3892_v13  ;;  %v5524_v31 = vpop.permute.xlu0 %1329 }
 0x252   :  { %v961_v5 = vsel %vm945_vm4, %v939_v35, %v7915_v58  ;;  %1233 = vst.msk [vmem:[#allocation3] sm:$0xff] %vm879_vm1, %v3892_v13  ;;  %v5535_v43 = vpop.permute.xlu1 %1334 }
 0x253   :  { %v983_v38 = vsel %vm967_vm5, %v961_v5, %v7916_v52  ;;  %1234 = vst.msk [vmem:[#allocation3 + $0x8] sm:$0xff] %vm879_vm1, %v3892_v13 }
 0x254   :  { %v1005_v3 = vsel %vm989_vm6, %v983_v38, %v7917_v14  ;;  %1235 = vst.msk [vmem:[#allocation3 + $0x10] sm:$0xff] %vm879_vm1, %v3892_v13 }
 0x255   :  { %1236 = vst.msk [vmem:[#allocation3 + $0x18] sm:$0xff] %vm879_vm1, %v3892_v13 }
 0x256   :  { %1237 = vst.msk [vmem:[#allocation3 + $0x20] sm:$0xff] %vm879_vm1, %v3892_v13 }
 0x257   :  { %3791 = vmatmul.msk.f32.gmra.mxu0 %vm1062_vm8, %v1045_v57  ;;  %v1027_v57 = vsel %vm1011_vm7, %v1005_v3, %v7918_v37  ;;  %1238 = vst.msk [vmem:[#allocation3 + $0x28] sm:$0xff] %vm879_vm1, %v3892_v13 }
 0x258   :  { %v1049_v45 = vsel %vm1033_vm9, %v1027_v57, %v5172_v50  ;;  %v5508_v50 = vld [vmem:[%s7708_s3] ss:$0 sm:$0xff]  ;;  %1239 = vst.msk [vmem:[#allocation3 + $0x30] sm:$0xff] %vm879_vm1, %v3892_v13 }
 0x259   :  { %7920 = vst [vmem:[#allocation56_spill] sm:$0xff] %v5524_v31 }
 0x25a   :  { %v5512_v12 = vpop.permute.xlu2 %1339  ;;  %1240 = vst.msk [vmem:[#allocation3 + $0x38] sm:$0xff] %vm879_vm1, %v3892_v13 }
 0x25b   :  { %7919 = vst [vmem:[#allocation44_spill] sm:$0xff] %v5512_v12 }
 0x25c   :  { %1241 = vst.msk [vmem:[#allocation3 + $0x40] sm:$0xff] %vm879_vm1, %v3892_v13 }
 0x25d   :  { %1242 = vst.msk [vmem:[#allocation3 + $0x48] sm:$0xff] %vm879_vm1, %v3892_v13 }
 0x25e   :  { %1243 = vst.msk [vmem:[#allocation3 + $0x50] sm:$0xff] %vm879_vm1, %v3892_v13 }
 0x25f   :  { %3792 = vmatmul.msk.f32.gmra.mxu0 %vm1062_vm8, %v1046_v60  ;;  %7921 = vst [vmem:[#allocation58_spill] sm:$0xff] %v5535_v43 }
 0x260   :  { %1244 = vst.msk [vmem:[#allocation3 + $0x58] sm:$0xff] %vm879_vm1, %v3892_v13 }
 0x261   :  { %1245 = vst.msk [vmem:[#allocation3 + $0x60] sm:$0xff] %vm879_vm1, %v3892_v13 }
 0x262   :  { %v5541_v30 = vpop.permute.xlu2 %1349  ;;  %1246 = vst.msk [vmem:[#allocation3 + $0x68] sm:$0xff] %vm879_vm1, %v3892_v13 }
 0x263   :  { %7922 = vst [vmem:[#allocation72_spill] sm:$0xff] %v5541_v30 }
 0x264   :  { %1247 = vst.msk [vmem:[#allocation3 + $0x70] sm:$0xff] %vm879_vm1, %v3892_v13 }
 0x265   :  { %1248 = vst.msk [vmem:[#allocation3 + $0x78] sm:$0xff] %vm879_vm1, %v3892_v13 }
 0x266   :  { %1249 = vst.msk [vmem:[#allocation3 + $0x80] sm:$0xff] %vm879_vm1, %v3892_v13 }
 0x267   :  { %3793 = vmatmul.msk.f32.gmra.mxu0 %vm1062_vm8, %v1047_v27  ;;  %1250 = vst.msk [vmem:[#allocation3 + $0x88] sm:$0xff] %vm879_vm1, %v3892_v13 }
 0x268   :  { %1251 = vst.msk [vmem:[#allocation3 + $0x90] sm:$0xff] %vm879_vm1, %v3892_v13 }
 0x269   :  { %1252 = vst.msk [vmem:[#allocation3 + $0x98] sm:$0xff] %vm879_vm1, %v3892_v13 }
 0x26a   :  { %1253 = vst.msk [vmem:[#allocation3 + $0xa0] sm:$0xff] %vm879_vm1, %v3892_v13  ;;  %v5575_v25 = vpop.permute.xlu2 %1364 }
 0x26b   :  { %1254 = vst.msk [vmem:[#allocation3 + $0xa8] sm:$0xff] %vm879_vm1, %v3892_v13 }
 0x26c   :  { %v5556_v20 = vpop.permute.xlu1 %1344  ;;  %7925 = vst [vmem:[#allocation84_spill] sm:$0xff] %v5575_v25 }
 0x26d   :  { %7923 = vst [vmem:[#allocation71_spill] sm:$0xff] %v5556_v20  ;;  %v5568_v63 = vpop.permute.xlu0 %1354 }
 0x26e   :  { %7924 = vst [vmem:[#allocation88_spill] sm:$0xff] %v5568_v63 }
 0x26f   :  { %3794 = vmatmul.msk.f32.gmra.mxu0 %vm1062_vm8, %v1048_v19  ;;  %1255 = vst.msk [vmem:[#allocation3 + $0xb0] sm:$0xff] %vm879_vm1, %v3892_v13 }
 0x272   :  { %v5592_v13 = vpop.permute.xlu2 %1379 }
 0x273   :  { %7928 = vst [vmem:[#allocation28_spill] sm:$0xff] %v5592_v13 }
 0x274   :  { %v5583_v28 = vpop.permute.xlu1 %1359 }
 0x275   :  { %7926 = vst [vmem:[#allocation16_spill] sm:$0xff] %v5583_v28  ;;  %v5586_v29 = vpop.permute.xlu0 %1369 }
 0x276   :  { %7927 = vst [vmem:[#allocation7_spill] sm:$0xff] %v5586_v29 }
 0x277   :  { %3795 = vmatmul.msk.f32.gmra.mxu0 %vm1062_vm8, %v1049_v45 }
 0x27a   :  { %v5607_v21 = vpop.permute.xlu2 %1394 }
 0x27b   :  { %7931 = vst [vmem:[#allocation31_spill] sm:$0xff] %v5607_v21 }
 0x27c   :  { %v1147_v39 = vpop.f32.mrf.mxu0  ;;  %v5602_v9 = vpop.permute.xlu1 %1374 }
 0x27d   :  { %v1260_v48 = vmul.f32 %v5498_v51, %v1147_v39  ;;  %7929 = vst [vmem:[#allocation19_spill] sm:$0xff] %v5602_v9  ;;  %v5604_v0 = vpop.permute.xlu0 %1384 }
 0x27e   :  { %7930 = vst [vmem:[#allocation40_spill] sm:$0xff] %v5604_v0 }
 0x27f   :  { %v1285_v10 = vadd.f32 %v5508_v50, %v1260_v48 }
 0x281   :  { %v1306_v61 = vmax.f32 %v1285_v10, 0.0 }
 0x282   :  { %v5629_v38 = vpop.permute.xlu2 %1409 }
 0x283   :  { %v1432_v4 = vmul.f32 %v5524_v31, %v1306_v61  ;;  %7934 = vst [vmem:[#allocation67_spill] sm:$0xff] %v5629_v38 }
 0x284   :  { %v1150_v32 = vpop.f32.mrf.mxu0  ;;  %v5616_v44 = vpop.permute.xlu1 %1389 }
 0x285   :  { %1453 = vst.msk [vmem:[#allocation2 + $0xa] sm:$0xff] %vm879_vm1, %v1432_v4  ;;  %v1261_v56 = vmul.f32 %v5498_v51, %v1150_v32  ;;  %v5620_v40 = vpop.permute.xlu0 %1399 }
 0x286   :  { %7932 = vst [vmem:[#allocation53_spill] sm:$0xff] %v5616_v44 }
 0x287   :  { %v1286_v24 = vadd.f32 %v5508_v50, %v1261_v56  ;;  %7933 = vst [vmem:[#allocation43_spill] sm:$0xff] %v5620_v40 }
 0x289   :  { %v1307_v60 = vmax.f32 %v1286_v24, 0.0 }
 0x28b   :  { %v1433_v11 = vmul.f32 %v5535_v43, %v1307_v60 }
 0x28c   :  { %v1153_v62 = vpop.f32.mrf.mxu0  ;;  %v5560_v55 = vld [vmem:[#allocation2 + $0x9] sm:$0xff]  ;;  %v5636_v48 = vpop.permute.xlu1 %1404 }
 0x28d   :  { %v1262_v1 = vmul.f32 %v5498_v51, %v1153_v62  ;;  %1611 = vrot.lane.b32.xlu2 %v5560_v55, %s3883_s15  ;;  %1454 = vst.msk [vmem:[#allocation2 + $0x12] sm:$0xff] %vm879_vm1, %v1433_v11  ;;  %v5645_v56 = vpop.permute.xlu0 %1414 }
 0x28e   :  { %7935 = vst [vmem:[#allocation57_spill] sm:$0xff] %v5636_v48 }
 0x28f   :  { %v1287_v22 = vadd.f32 %v5508_v50, %v1262_v1  ;;  %7936 = vst [vmem:[#allocation80_spill] sm:$0xff] %v5645_v56 }
 0x291   :  { %v1308_v7 = vmax.f32 %v1287_v22, 0.0 }
 0x293   :  { %v1434_v49 = vmul.f32 %v5512_v12, %v1308_v7 }
 0x294   :  { %v1156_v42 = vpop.f32.mrf.mxu0  ;;  %v5588_v27 = vld [vmem:[#allocation2 + $0x11] sm:$0xff] }
 0x295   :  { %1455 = vst.msk [vmem:[#allocation2 + $0x1a] sm:$0xff] %vm879_vm1, %v1434_v49  ;;  %v1263_v53 = vmul.f32 %v5498_v51, %v1156_v42  ;;  %1613 = vrot.lane.b32.xlu0 %v5588_v27, %s3883_s15  ;;  %v1542_v43 = vld [vmem:[#allocation2 + $0xb] sm:$0xff] }
 0x297   :  { %v1288_v6 = vadd.f32 %v5508_v50, %v1263_v53 }
 0x299   :  { %v1309_v18 = vmax.f32 %v1288_v6, 0.0 }
 0x29b   :  { %v1435_v23 = vmul.f32 %v5556_v20, %v1309_v18  ;;  %v5659_v18 = vpop.permute.xlu1 %1419 }
 0x29c   :  { %v1159_v59 = vpop.f32.mrf.mxu0  ;;  %v5595_v2 = vld [vmem:[#allocation2 + $0x19] sm:$0xff]  ;;  %7937 = vst [vmem:[#allocation70_spill] sm:$0xff] %v5659_v18 }
 0x29d   :  { %1456 = vst.msk [vmem:[#allocation2 + $0x22] sm:$0xff] %vm879_vm1, %v1435_v23  ;;  %v1264_v17 = vmul.f32 %v5498_v51, %v1159_v59  ;;  %1615 = vrot.lane.b32.xlu1 %v5595_v2, %s3883_s15 }
 0x29f   :  { %v1289_v34 = vadd.f32 %v5508_v50, %v1264_v17 }
 0x2a1   :  { %v1310_v36 = vmax.f32 %v1289_v34, 0.0 }
 0x2a3   :  { %v1436_v16 = vmul.f32 %v5541_v30, %v1310_v36 }
 0x2a4   :  { %v1162_v26 = vpop.f32.mrf.mxu0  ;;  %v5609_v47 = vld [vmem:[#allocation2 + $0x21] sm:$0xff] }
 0x2a5   :  { %1457 = vst.msk [vmem:[#allocation2 + $0x2a] sm:$0xff] %vm879_vm1, %v1436_v16  ;;  %v1265_v41 = vmul.f32 %v5498_v51, %v1162_v26  ;;  %1617 = vrot.lane.b32.xlu2 %v5609_v47, %s3883_s15 }
 0x2a7   :  { %v1290_v8 = vadd.f32 %v5508_v50, %v1265_v41 }
 0x2a9   :  { %v1311_v19 = vmax.f32 %v1290_v8, 0.0  ;;  %v1195_v46 = vpop.f32.mrf.mxu3 }
 0x2aa   :  { %v1276_v15 = vmul.f32 %v5498_v51, %v1195_v46 }
 0x2ab   :  { %v1437_v54 = vmul.f32 %v5568_v63, %v1311_v19 }
 0x2ac   :  { %v1301_v35 = vadd.f32 %v5508_v50, %v1276_v15  ;;  %v1165_v58 = vpop.f32.mrf.mxu0  ;;  %v5623_v5 = vld [vmem:[#allocation2 + $0x29] sm:$0xff]  ;;  %v5673_v15 = vpop.permute.xlu2 %1424 }
 0x2ad   :  { %1458 = vst.msk [vmem:[#allocation2 + $0x32] sm:$0xff] %vm879_vm1, %v1437_v54  ;;  %v1266_v52 = vmul.f32 %v5498_v51, %v1165_v58  ;;  %1619 = vrot.lane.b32.xlu0 %v5623_v5, %s3883_s15 }
 0x2ae   :  { %v1322_v14 = vmax.f32 %v1301_v35, 0.0  ;;  %7938 = vst [vmem:[#allocation83_spill] sm:$0xff] %v5673_v15 }
 0x2af   :  { %v1291_v3 = vadd.f32 %v5508_v50, %v1266_v52 }
 0x2b0   :  { %v1448_v37 = vmul.f32 %v5629_v38, %v1322_v14 }
 0x2b1   :  { %v1312_v57 = vmax.f32 %v1291_v3, 0.0  ;;  %v1198_v45 = vpop.f32.mrf.mxu3 }
 0x2b2   :  { %1469 = vst.msk [vmem:[#allocation2 + $0x8a] sm:$0xff] %vm879_vm1, %v1448_v37  ;;  %v1277_v33 = vmul.f32 %v5498_v51, %v1198_v45 }
 0x2b3   :  { %v1438_v39 = vmul.f32 %v5583_v28, %v1312_v57 }
 0x2b4   :  { %v1302_v10 = vadd.f32 %v5508_v50, %v1277_v33  ;;  %v1168_v61 = vpop.f32.mrf.mxu0  ;;  %v5639_v4 = vld [vmem:[#allocation2 + $0x31] sm:$0xff] }
 0x2b5   :  { %1459 = vst.msk [vmem:[#allocation2 + $0x3a] sm:$0xff] %vm879_vm1, %v1438_v39  ;;  %v1267_v32 = vmul.f32 %v5498_v51, %v1168_v61  ;;  %1621 = vrot.lane.b32.xlu1 %v5639_v4, %s3883_s15 }
 0x2b6   :  { %v1323_v24 = vmax.f32 %v1302_v10, 0.0  ;;  %v5687_v10 = vpop.permute.xlu0 %1429 }
 0x2b7   :  { %v1292_v60 = vadd.f32 %v5508_v50, %v1267_v32  ;;  %7939 = vst [vmem:[#allocation15_spill] sm:$0xff] %v5687_v10 }
 0x2b8   :  { %v1449_v62 = vmul.f32 %v5645_v56, %v1323_v24 }
 0x2b9   :  { %v1313_v11 = vmax.f32 %v1292_v60, 0.0  ;;  %v1201_v1 = vpop.f32.mrf.mxu3 }
 0x2ba   :  { %1470 = vst.msk [vmem:[#allocation2 + $0x92] sm:$0xff] %vm879_vm1, %v1449_v62  ;;  %v1278_v22 = vmul.f32 %v5498_v51, %v1201_v1 }
 0x2bb   :  { %v1439_v7 = vmul.f32 %v5575_v25, %v1313_v11 }
 0x2bc   :  { %v1303_v49 = vadd.f32 %v5508_v50, %v1278_v22  ;;  %v1171_v42 = vpop.f32.mrf.mxu0  ;;  %v5653_v53 = vld [vmem:[#allocation2 + $0x39] sm:$0xff] }
 0x2bd   :  { %1460 = vst.msk [vmem:[#allocation2 + $0x42] sm:$0xff] %vm879_vm1, %v1439_v7  ;;  %v1268_v6 = vmul.f32 %v5498_v51, %v1171_v42  ;;  %1623 = vrot.lane.b32.xlu2 %v5653_v53, %s3883_s15 }
 0x2be   :  { %v1324_v23 = vmax.f32 %v1303_v49, 0.0 }
 0x2bf   :  { %v1293_v59 = vadd.f32 %v5508_v50, %v1268_v6 }
 0x2c0   :  { %v1450_v17 = vmul.f32 %v5659_v18, %v1324_v23 }
 0x2c1   :  { %v1314_v34 = vmax.f32 %v1293_v59, 0.0  ;;  %v1204_v36 = vpop.f32.mrf.mxu3 }
 0x2c2   :  { %1471 = vst.msk [vmem:[#allocation2 + $0x9a] sm:$0xff] %vm879_vm1, %v1450_v17  ;;  %v1279_v16 = vmul.f32 %v5498_v51, %v1204_v36 }
 0x2c3   :  { %v1440_v26 = vmul.f32 %v5586_v29, %v1314_v34 }
 0x2c4   :  { %v1304_v41 = vadd.f32 %v5508_v50, %v1279_v16  ;;  %v1174_v8 = vpop.f32.mrf.mxu0  ;;  %v5667_v19 = vld [vmem:[#allocation2 + $0x41] sm:$0xff] }
 0x2c5   :  { %1461 = vst.msk [vmem:[#allocation2 + $0x4a] sm:$0xff] %vm879_vm1, %v1440_v26  ;;  %v1269_v46 = vmul.f32 %v5498_v51, %v1174_v8  ;;  %1625 = vrot.lane.b32.xlu0 %v5667_v19, %s3883_s15 }
 0x2c6   :  { %v1325_v54 = vmax.f32 %v1304_v41, 0.0 }
 0x2c7   :  { %v1294_v35 = vadd.f32 %v5508_v50, %v1269_v46 }
 0x2c8   :  { %v1451_v58 = vmul.f32 %v5673_v15, %v1325_v54 }
 0x2c9   :  { %v1315_v52 = vmax.f32 %v1294_v35, 0.0  ;;  %v1207_v14 = vpop.f32.mrf.mxu3 }
 0x2ca   :  { %1472 = vst.msk [vmem:[#allocation2 + $0xa2] sm:$0xff] %vm879_vm1, %v1451_v58  ;;  %v1280_v3 = vmul.f32 %v5498_v51, %v1207_v14 }
 0x2cb   :  { %v1441_v37 = vmul.f32 %v5602_v9, %v1315_v52 }
 0x2cc   :  { %v1305_v57 = vadd.f32 %v5508_v50, %v1280_v3  ;;  %v1177_v45 = vpop.f32.mrf.mxu0  ;;  %v5681_v33 = vld [vmem:[#allocation2 + $0x49] sm:$0xff] }
 0x2cd   :  { %1462 = vst.msk [vmem:[#allocation2 + $0x52] sm:$0xff] %vm879_vm1, %v1441_v37  ;;  %v1270_v39 = vmul.f32 %v5498_v51, %v1177_v45  ;;  %1627 = vrot.lane.b32.xlu1 %v5681_v33, %s3883_s15 }
 0x2ce   :  { %v1326_v61 = vmax.f32 %v1305_v57, 0.0 }
 0x2cf   :  { %v1295_v32 = vadd.f32 %v5508_v50, %v1270_v39 }
 0x2d0   :  { %v1452_v24 = vmul.f32 %v5687_v10, %v1326_v61 }
 0x2d1   :  { %v1316_v60 = vmax.f32 %v1295_v32, 0.0  ;;  %v5999_v31 = vld [vmem:[#allocation2 + $0xa2] sm:$0xff] }
 0x2d2   :  { %1474 = vst.msk [vmem:[#allocation2 + $0xaa] sm:$0x3] %vm1473_vm10, %v1452_v24 }
 0x2d3   :  { %v1442_v62 = vmul.f32 %v5592_v13, %v1316_v60 }
 0x2d4   :  { %v1180_v11 = vpop.f32.mrf.mxu0  ;;  %v5693_v1 = vld [vmem:[#allocation2 + $0x51] sm:$0xff] }
 0x2d5   :  { %1463 = vst.msk [vmem:[#allocation2 + $0x5a] sm:$0xff] %vm879_vm1, %v1442_v62  ;;  %v1271_v22 = vmul.f32 %v5498_v51, %v1180_v11  ;;  %1629 = vrot.lane.b32.xlu2 %v5693_v1, %s3883_s15  ;;  %v5738_v62 = vld [vmem:[#allocation2 + $0x91] sm:$0xff] }
 0x2d7   :  { %v1296_v7 = vadd.f32 %v5508_v50, %v1271_v22  ;;  %v1516_v22 = vld [vmem:[#allocation2 + $0xa1] sm:$0x3] }
 0x2d9   :  { %v1317_v49 = vmax.f32 %v1296_v7, 0.0  ;;  %v5752_v7 = vld [vmem:[#allocation2 + $0x99] sm:$0xff]  ;;  %v1541_v12 = vld [vmem:[#allocation2 + $0xaa] sm:$0x3] }
 0x2db   :  { %v1443_v42 = vmul.f32 %v5604_v0, %v1317_v49  ;;  %v5756_v49 = vld [vmem:[#allocation2 + $0x1a] sm:$0xff] }
 0x2dc   :  { %v1183_v6 = vpop.f32.mrf.mxu0  ;;  %v5701_v23 = vld [vmem:[#allocation2 + $0x59] sm:$0xff] }
 0x2dd   :  { %1464 = vst.msk [vmem:[#allocation2 + $0x62] sm:$0xff] %vm879_vm1, %v1443_v42  ;;  %v1272_v59 = vmul.f32 %v5498_v51, %v1183_v6  ;;  %1631 = vrot.lane.b32.xlu0 %v5701_v23, %s3883_s15  ;;  %v5758_v42 = vld [vmem:[#allocation2 + $0x12] sm:$0xff]  ;;  %v5764_v6 = vld [vmem:[#allocation2 + $0xa] sm:$0xff] }
 0x2df   :  { %v1297_v17 = vadd.f32 %v5508_v50, %v1272_v59  ;;  %v5768_v59 = vld [vmem:[#allocation2 + $0x32] sm:$0xff] }
 0x2e1   :  { %v1318_v34 = vmax.f32 %v1297_v17, 0.0  ;;  %v5770_v17 = vld [vmem:[#allocation2 + $0x2a] sm:$0xff] }
 0x2e3   :  { %v1444_v36 = vmul.f32 %v5616_v44, %v1318_v34  ;;  %v5776_v34 = vld [vmem:[#allocation2 + $0x22] sm:$0xff] }
 0x2e4   :  { %v1186_v16 = vpop.f32.mrf.mxu0  ;;  %v5709_v26 = vld [vmem:[#allocation2 + $0x61] sm:$0xff] }
 0x2e5   :  { %1465 = vst.msk [vmem:[#allocation2 + $0x6a] sm:$0xff] %vm879_vm1, %v1444_v36  ;;  %v1273_v41 = vmul.f32 %v5498_v51, %v1186_v16  ;;  %1633 = vrot.lane.b32.xlu1 %v5709_v26, %s3883_s15  ;;  %v5780_v36 = vld [vmem:[#allocation2 + $0x4a] sm:$0xff]  ;;  %v5782_v16 = vld [vmem:[#allocation2 + $0x42] sm:$0xff] }
 0x2e7   :  { %v1298_v8 = vadd.f32 %v5508_v50, %v1273_v41  ;;  %v5788_v41 = vld [vmem:[#allocation2 + $0x3a] sm:$0xff] }
 0x2e9   :  { %v1319_v46 = vmax.f32 %v1298_v8, 0.0  ;;  %v5792_v8 = vld [vmem:[#allocation2 + $0x62] sm:$0xff] }
 0x2eb   :  { %v1445_v54 = vmul.f32 %v5607_v21, %v1319_v46  ;;  %v5794_v46 = vld [vmem:[#allocation2 + $0x5a] sm:$0xff] }
 0x2ec   :  { %v1189_v35 = vpop.f32.mrf.mxu0  ;;  %v5717_v58 = vld [vmem:[#allocation2 + $0x69] sm:$0xff]  ;;  %v1538_v21 = vld [vmem:[#allocation2 + $0xa1] sm:$0xff] }
 0x2ed   :  { %1466 = vst.msk [vmem:[#allocation2 + $0x72] sm:$0xff] %vm879_vm1, %v1445_v54  ;;  %v1274_v52 = vmul.f32 %v5498_v51, %v1189_v35  ;;  %1635 = vrot.lane.b32.xlu2 %v5717_v58, %s3883_s15  ;;  %v5800_v54 = vld [vmem:[#allocation2 + $0x52] sm:$0xff] }
 0x2ef   :  { %v1299_v14 = vadd.f32 %v5508_v50, %v1274_v52 }
 0x2f1   :  { %v1320_v3 = vmax.f32 %v1299_v14, 0.0  ;;  %v5812_v14 = vld [vmem:[#allocation2 + $0x6a] sm:$0xff] }
 0x2f3   :  { %v1446_v37 = vmul.f32 %v5620_v40, %v1320_v3  ;;  %v5816_v3 = vpop.permute.xlu2 %1611  ;;  %v1539_v40 = vld [vmem:[#allocation2 + $0xa9] sm:$0x3] }
 0x2f4   :  { %v1192_v57 = vpop.f32.mrf.mxu0  ;;  %v5725_v45 = vld [vmem:[#allocation2 + $0x71] sm:$0xff] }
 0x2f5   :  { %1467 = vst.msk [vmem:[#allocation2 + $0x7a] sm:$0xff] %vm879_vm1, %v1446_v37  ;;  %v1275_v39 = vmul.f32 %v5498_v51, %v1192_v57  ;;  %1637 = vrot.lane.b32.xlu0 %v5725_v45, %s3883_s15  ;;  %v5806_v52 = vld [vmem:[#allocation2 + $0x72] sm:$0xff]  ;;  %v5820_v57 = vld [vmem:[#allocation2 + $0x8a] sm:$0xff] }
 0x2f6   :  { %v5818_v37 = vld [vmem:[#allocation2 + $0x92] sm:$0xff] }
 0x2f7   :  { %v1300_v61 = vadd.f32 %v5508_v50, %v1275_v39  ;;  %v1517_v50 = vld [vmem:[#allocation2 + $0x2] sm:$0xff] }
 0x2f9   :  { %v1321_v32 = vmax.f32 %v1300_v61, 0.0 }
 0x2fb   :  { %v1447_v24 = vmul.f32 %v5636_v48, %v1321_v32  ;;  %v1537_v32 = vld [vmem:[#allocation2 + $0xa2] sm:$0x3] }
 0x2fc   :  { %v5733_v60 = vld [vmem:[#allocation2 + $0x79] sm:$0xff] }
 0x2fd   :  { %1468 = vst.msk [vmem:[#allocation2 + $0x82] sm:$0xff] %vm879_vm1, %v1447_v24  ;;  %1639 = vrot.lane.b32.xlu1 %v5733_v60, %s3883_s15  ;;  %v5804_v35 = vld [vmem:[#allocation2 + $0x7a] sm:$0xff]  ;;  %v5832_v24 = vpop.permute.xlu1 %1609 }
 0x2ff   :  { %v5830_v61 = vpop.permute.xlu2 %1617 }
 0x304   :  { %v5740_v11 = vld [vmem:[#allocation2 + $0x89] sm:$0xff]  ;;  %v5742_v51 = vld [vmem:[#allocation2 + $0x81] sm:$0xff] }
 0x305   :  { %1645 = vrot.lane.b32.xlu1 %v5738_v62, %s3883_s15  ;;  %1643 = vrot.lane.b32.xlu0 %v5740_v11, %s3883_s15  ;;  %v5826_v39 = vld [vmem:[#allocation2 + $0x82] sm:$0xff] }
 0x306   :  { %1641 = vrot.lane.b32.xlu2 %v5742_v51, %s3883_s15 }
 0x307   :  { %v5849_v48 = vpop.permute.xlu0 %1613 }
 0x30d   :  { %1693 = vrot.lane.b32.xlu1 %v1517_v50, %s3884_s18  ;;  %1649 = vrot.lane.b32.xlu0 %v1516_v22, %s3883_s15  ;;  %v5837_v50 = vld [vmem:[#allocation2 + $0x9a] sm:$0xff] }
 0x30e   :  { %1647 = vrot.lane.b32.xlu2 %v5752_v7, %s3883_s15 }
 0x315   :  { %1699 = vrot.lane.b32.xlu1 %v5756_v49, %s3884_s18  ;;  %1697 = vrot.lane.b32.xlu0 %v5758_v42, %s3884_s18 }
 0x316   :  { %1695 = vrot.lane.b32.xlu2 %v5764_v6, %s3884_s18 }
 0x317   :  { %v5841_v22 = vpop.permute.xlu2 %1623 }
 0x318   :  { %7940 = vst [vmem:[#allocation4_spill] sm:$0xff] %v5841_v22  ;;  %v6099_v22 = vld [vmem:[#allocation2 + $0x93] sm:$0xff] }
 0x31d   :  { %1705 = vrot.lane.b32.xlu1 %v5768_v59, %s3884_s18  ;;  %1703 = vrot.lane.b32.xlu0 %v5770_v17, %s3884_s18 }
 0x31e   :  { %1701 = vrot.lane.b32.xlu2 %v5776_v34, %s3884_s18 }
 0x325   :  { %1711 = vrot.lane.b32.xlu1 %v5780_v36, %s3884_s18  ;;  %1709 = vrot.lane.b32.xlu0 %v5782_v16, %s3884_s18 }
 0x326   :  { %1707 = vrot.lane.b32.xlu2 %v5788_v41, %s3884_s18 }
 0x32d   :  { %1717 = vrot.lane.b32.xlu1 %v5792_v8, %s3884_s18  ;;  %1715 = vrot.lane.b32.xlu0 %v5794_v46, %s3884_s18 }
 0x32e   :  { %1713 = vrot.lane.b32.xlu2 %v5800_v54, %s3884_s18 }
 0x335   :  { %1723 = vrot.lane.b32.xlu1 %v5804_v35, %s3884_s18  ;;  %1721 = vrot.lane.b32.xlu0 %v5806_v52, %s3884_s18 }
 0x336   :  { %1719 = vrot.lane.b32.xlu2 %v5812_v14, %s3884_s18 }
 0x33d   :  { %1729 = vrot.lane.b32.xlu1 %v5818_v37, %s3884_s18  ;;  %1727 = vrot.lane.b32.xlu0 %v5820_v57, %s3884_s18 }
 0x33e   :  { %1725 = vrot.lane.b32.xlu2 %v5826_v39, %s3884_s18 }
 0x345   :  { %1758 = vrot.lane.b32.xlu1 %v5560_v55, %s3885_s23  ;;  %1733 = vrot.lane.b32.xlu0 %v1537_v32, %s3884_s18  ;;  %v5851_v55 = vpop.permute.xlu1 %1615  ;;  %v5853_v32 = vpop.permute.xlu2 %1629 }
 0x346   :  { %1731 = vrot.lane.b32.xlu2 %v5837_v50, %s3884_s18  ;;  %7941 = vst [vmem:[#allocation27_spill] sm:$0xff] %v5853_v32 }
 0x34d   :  { %1764 = vrot.lane.b32.xlu1 %v5609_v47, %s3885_s23  ;;  %1762 = vrot.lane.b32.xlu0 %v5595_v2, %s3885_s23  ;;  %v5861_v47 = vpop.permute.xlu0 %1619  ;;  %v5863_v2 = vpop.permute.xlu1 %1621 }
 0x34e   :  { %1760 = vrot.lane.b32.xlu2 %v5588_v27, %s3885_s23  ;;  %7942 = vst [vmem:[#allocation14_spill] sm:$0xff] %v5863_v2  ;;  %v5865_v27 = vpop.permute.xlu2 %1635  ;;  %v6120_v2 = vld [vmem:[#allocation2 + $0xa3] sm:$0xff] }
 0x34f   :  { %7943 = vst [vmem:[#allocation39_spill] sm:$0xff] %v5865_v27 }
 0x355   :  { %1770 = vrot.lane.b32.xlu1 %v5653_v53, %s3885_s23  ;;  %1768 = vrot.lane.b32.xlu0 %v5639_v4, %s3885_s23  ;;  %v5873_v53 = vpop.permute.xlu0 %1625  ;;  %v5875_v4 = vpop.permute.xlu1 %1627 }
 0x356   :  { %1766 = vrot.lane.b32.xlu2 %v5623_v5, %s3885_s23  ;;  %7944 = vst [vmem:[#allocation26_spill] sm:$0xff] %v5873_v53  ;;  %v6071_v53 = vld [vmem:[#allocation2 + $0x5b] sm:$0xff] }
 0x357   :  { %7945 = vst [vmem:[#allocation52_spill] sm:$0xff] %v5875_v4 }
 0x35d   :  { %1776 = vrot.lane.b32.xlu1 %v5693_v1, %s3885_s23  ;;  %1774 = vrot.lane.b32.xlu0 %v5681_v33, %s3885_s23  ;;  %v5885_v1 = vpop.permute.xlu0 %1631  ;;  %v5887_v33 = vpop.permute.xlu1 %1633 }
 0x35e   :  { %1772 = vrot.lane.b32.xlu2 %v5667_v19, %s3885_s23  ;;  %7946 = vst [vmem:[#allocation38_spill] sm:$0xff] %v5885_v1  ;;  %v6035_v1 = vld [vmem:[#allocation2 + $0x2b] sm:$0xff] }
 0x35f   :  { %7947 = vst [vmem:[#allocation66_spill] sm:$0xff] %v5887_v33  ;;  %v6027_v33 = vld [vmem:[#allocation2 + $0x33] sm:$0xff] }
 0x360   :  { %v5877_v5 = vpop.permute.xlu2 %1641 }
 0x365   :  { %1782 = vrot.lane.b32.xlu1 %v5717_v58, %s3885_s23  ;;  %1780 = vrot.lane.b32.xlu0 %v5709_v26, %s3885_s23 }
 0x366   :  { %1778 = vrot.lane.b32.xlu2 %v5701_v23, %s3885_s23 }
 0x367   :  { %v5897_v58 = vpop.permute.xlu0 %1637 }
 0x368   :  { %v5889_v19 = vpop.permute.xlu2 %1647  ;;  %7949 = vst [vmem:[#allocation79_spill] sm:$0xff] %v5897_v58  ;;  %v6009_v58 = vld [vmem:[#allocation2 + $0x1b] sm:$0xff] }
 0x369   :  { %7948 = vst [vmem:[#allocation51_spill] sm:$0xff] %v5889_v19  ;;  %v6065_v19 = vld [vmem:[#allocation2 + $0x6b] sm:$0xff] }
 0x36d   :  { %1786 = vrot.lane.b32.xlu0 %v5733_v60, %s3885_s23  ;;  %1788 = vrot.lane.b32.xlu1 %v5742_v51, %s3885_s23 }
 0x36e   :  { %1784 = vrot.lane.b32.xlu2 %v5725_v45, %s3885_s23 }
 0x36f   :  { %v5899_v26 = vpop.permute.xlu1 %1639 }
 0x370   :  { %7950 = vst [vmem:[#allocation65_spill] sm:$0xff] %v5899_v26  ;;  %v5901_v23 = vpop.permute.xlu2 %1695 }
 0x375   :  { %1792 = vrot.lane.b32.xlu0 %v5738_v62, %s3885_s23  ;;  %1794 = vrot.lane.b32.xlu1 %v5752_v7, %s3885_s23 }
 0x376   :  { %1790 = vrot.lane.b32.xlu2 %v5740_v11, %s3885_s23 }
 0x377   :  { %v5909_v60 = vpop.permute.xlu1 %1645  ;;  %v5911_v51 = vpop.permute.xlu0 %1643 }
 0x378   :  { %7951 = vst [vmem:[#allocation93_spill] sm:$0xff] %v5909_v60  ;;  %v5913_v45 = vpop.permute.xlu2 %1701  ;;  %v6089_v60 = vld [vmem:[#allocation2 + $0x73] sm:$0xff] }
 0x379   :  { %7952 = vst [vmem:[#allocation81_spill] sm:$0xff] %v5911_v51  ;;  %v1562_v51 = vld [vmem:[#allocation2 + $0xab] sm:$0x3] }
 0x37d   :  { %1798 = vrot.lane.b32.xlu0 %v1539_v40, %s3885_s23  ;;  %1823 = vrot.lane.b32.xlu1 %v5764_v6, %s3886_s30 }
 0x37e   :  { %1796 = vrot.lane.b32.xlu2 %v1538_v21, %s3885_s23 }
 0x37f   :  { %v5919_v62 = vpop.permute.xlu1 %1693  ;;  %v5921_v7 = vpop.permute.xlu0 %1649 }
 0x380   :  { %7953 = vst [vmem:[#allocation8_spill] sm:$0xff] %v5921_v7  ;;  %v5923_v11 = vpop.permute.xlu2 %1707  ;;  %v6053_v7 = vld [vmem:[#allocation2 + $0x43] sm:$0xff] }
 0x381   :  { %7954 = vst [vmem:[#allocation10_spill] sm:$0xff] %v5923_v11  ;;  %v6083_v11 = vld [vmem:[#allocation2 + $0x83] sm:$0xff] }
 0x385   :  { %1827 = vrot.lane.b32.xlu0 %v5756_v49, %s3886_s30  ;;  %1829 = vrot.lane.b32.xlu1 %v5776_v34, %s3886_s30 }
 0x386   :  { %1825 = vrot.lane.b32.xlu2 %v5758_v42, %s3886_s30 }
 0x387   :  { %v5931_v40 = vpop.permute.xlu1 %1699  ;;  %v5933_v6 = vpop.permute.xlu0 %1697 }
 0x388   :  { %v5935_v21 = vpop.permute.xlu2 %1713 }
 0x389   :  { %7955 = vst [vmem:[#allocation20_spill] sm:$0xff] %v5935_v21 }
 0x38d   :  { %1833 = vrot.lane.b32.xlu0 %v5768_v59, %s3886_s30  ;;  %1835 = vrot.lane.b32.xlu1 %v5788_v41, %s3886_s30 }
 0x38e   :  { %1831 = vrot.lane.b32.xlu2 %v5770_v17, %s3886_s30 }
 0x38f   :  { %v5943_v44 = vpop.permute.xlu1 %1705  ;;  %v5945_v0 = vpop.permute.xlu0 %1703 }
 0x390   :  { %7956 = vst [vmem:[#allocation22_spill] sm:$0xff] %v5943_v44  ;;  %v5947_v13 = vpop.permute.xlu2 %1719 }
 0x391   :  { %7957 = vst [vmem:[#allocation32_spill] sm:$0xff] %v5945_v0 }
 0x392   :  { %7958 = vst [vmem:[#allocation34_spill] sm:$0xff] %v5947_v13  ;;  %v6011_v13 = vld [vmem:[#allocation2 + $0x23] sm:$0xff] }
 0x395   :  { %1839 = vrot.lane.b32.xlu0 %v5780_v36, %s3886_s30  ;;  %1841 = vrot.lane.b32.xlu1 %v5800_v54, %s3886_s30 }
 0x396   :  { %1837 = vrot.lane.b32.xlu2 %v5782_v16, %s3886_s30 }
 0x397   :  { %v5955_v10 = vpop.permute.xlu1 %1711  ;;  %v5957_v9 = vpop.permute.xlu0 %1709 }
 0x398   :  { %7959 = vst [vmem:[#allocation45_spill] sm:$0xff] %v5955_v10  ;;  %v5959_v15 = vpop.permute.xlu2 %1725  ;;  %v6047_v10 = vld [vmem:[#allocation2 + $0x53] sm:$0xff] }
 0x399   :  { %7960 = vst [vmem:[#allocation47_spill] sm:$0xff] %v5957_v9  ;;  %v6063_v9 = vld [vmem:[#allocation2 + $0x63] sm:$0xff] }
 0x39d   :  { %1845 = vrot.lane.b32.xlu0 %v5792_v8, %s3886_s30  ;;  %1847 = vrot.lane.b32.xlu1 %v5812_v14, %s3886_s30 }
 0x39e   :  { %1843 = vrot.lane.b32.xlu2 %v5794_v46, %s3886_s30 }
 0x39f   :  { %v5967_v29 = vpop.permute.xlu1 %1717  ;;  %v5969_v18 = vpop.permute.xlu0 %1715 }
 0x3a0   :  { %7961 = vst [vmem:[#allocation59_spill] sm:$0xff] %v5967_v29  ;;  %v5971_v25 = vpop.permute.xlu2 %1731 }
 0x3a1   :  { %7962 = vst [vmem:[#allocation61_spill] sm:$0xff] %v5969_v18  ;;  %v6029_v18 = vld [vmem:[#allocation2 + $0x3b] sm:$0xff] }
 0x3a2   :  { %7963 = vst [vmem:[#allocation75_spill] sm:$0xff] %v5971_v25 }
 0x3a5   :  { %1851 = vrot.lane.b32.xlu0 %v5804_v35, %s3886_s30  ;;  %1853 = vrot.lane.b32.xlu1 %v5826_v39, %s3886_s30 }
 0x3a6   :  { %1849 = vrot.lane.b32.xlu2 %v5806_v52, %s3886_s30 }
 0x3a7   :  { %v5979_v56 = vpop.permute.xlu1 %1723  ;;  %v5981_v28 = vpop.permute.xlu0 %1721 }
 0x3a8   :  { %7964 = vst [vmem:[#allocation74_spill] sm:$0xff] %v5979_v56  ;;  %v5983_v63 = vpop.permute.xlu2 %1760 }
 0x3a9   :  { %7965 = vst [vmem:[#allocation92_spill] sm:$0xff] %v5981_v28 }
 0x3ad   :  { %1857 = vrot.lane.b32.xlu0 %v5818_v37, %s3886_s30  ;;  %1859 = vrot.lane.b32.xlu1 %v5837_v50, %s3886_s30 }
 0x3ae   :  { %1855 = vrot.lane.b32.xlu2 %v5820_v57, %s3886_s30 }
 0x3af   :  { %v5991_v30 = vpop.permute.xlu1 %1729  ;;  %v5993_v38 = vpop.permute.xlu0 %1727 }
 0x3b0   :  { %7966 = vst [vmem:[#allocation87_spill] sm:$0xff] %v5991_v30  ;;  %v5995_v20 = vpop.permute.xlu2 %1766  ;;  %v6081_v30 = vld [vmem:[#allocation2 + $0x7b] sm:$0xff] }
 0x3b1   :  { %7967 = vst [vmem:[#allocation9_spill] sm:$0xff] %v5993_v38  ;;  %v6107_v38 = vld [vmem:[#allocation2 + $0x8b] sm:$0xff] }
 0x3b5   :  { %1863 = vrot.lane.b32.xlu0 %v1541_v12, %s3886_s30  ;;  %1907 = vrot.lane.b32.xlu1 %v1542_v43, %s3887_s20  ;;  %v6017_v12 = vld [vmem:[#allocation2 + $0x13] sm:$0xff] }
 0x3b6   :  { %1861 = vrot.lane.b32.xlu2 %v5999_v31, %s3886_s30 }
 0x3b7   :  { %v6003_v56 = vpop.permute.xlu1 %1758  ;;  %v6005_v26 = vpop.permute.xlu0 %1733 }
 0x3b8   :  { %7968 = vst [vmem:[#allocation21_spill] sm:$0xff] %v6005_v26  ;;  %v6007_v28 = vpop.permute.xlu2 %1772  ;;  %v6045_v26 = vld [vmem:[#allocation2 + $0x4b] sm:$0xff] }
 0x3b9   :  { %7969 = vst [vmem:[#allocation33_spill] sm:$0xff] %v6007_v28 }
 0x3bd   :  { %1911 = vrot.lane.b32.xlu0 %v6009_v58, %s3887_s20  ;;  %1913 = vrot.lane.b32.xlu1 %v6011_v13, %s3887_s20 }
 0x3be   :  { %1909 = vrot.lane.b32.xlu2 %v6017_v12, %s3887_s20 }
 0x3bf   :  { %v6021_v43 = vpop.permute.xlu1 %1764  ;;  %v6023_v27 = vpop.permute.xlu0 %1762 }
 0x3c0   :  { %v6025_v29 = vpop.permute.xlu2 %1778 }
 0x3c1   :  { %7970 = vst [vmem:[#allocation46_spill] sm:$0xff] %v6025_v29 }
 0x3c5   :  { %1917 = vrot.lane.b32.xlu0 %v6027_v33, %s3887_s20  ;;  %1919 = vrot.lane.b32.xlu1 %v6029_v18, %s3887_s20 }
 0x3c6   :  { %1915 = vrot.lane.b32.xlu2 %v6035_v1, %s3887_s20 }
 0x3c7   :  { %v6039_v21 = vpop.permute.xlu1 %1770  ;;  %v6041_v32 = vpop.permute.xlu0 %1768 }
 0x3c8   :  { %7971 = vst [vmem:[#allocation60_spill] sm:$0xff] %v6039_v21  ;;  %v6043_v29 = vpop.permute.xlu2 %1784  ;;  %v6101_v21 = vld [vmem:[#allocation2 + $0x9b] sm:$0xff] }
 0x3c9   :  { %7972 = vst [vmem:[#allocation73_spill] sm:$0xff] %v6041_v32 }
 0x3ca   :  { %7973 = vst [vmem:[#allocation86_spill] sm:$0xff] %v6043_v29 }
 0x3cd   :  { %1923 = vrot.lane.b32.xlu0 %v6045_v26, %s3887_s20  ;;  %1925 = vrot.lane.b32.xlu1 %v6047_v10, %s3887_s20 }
 0x3ce   :  { %1921 = vrot.lane.b32.xlu2 %v6053_v7, %s3887_s20 }
 0x3cf   :  { %v6057_v4 = vpop.permute.xlu1 %1776  ;;  %v6059_v25 = vpop.permute.xlu0 %1774 }
 0x3d0   :  { %7974 = vst [vmem:[#allocation5_spill] sm:$0xff] %v6057_v4  ;;  %v6061_v29 = vpop.permute.xlu2 %1790 }
 0x3d1   :  { %7975 = vst [vmem:[#allocation17_spill] sm:$0xff] %v6059_v25 }
 0x3d5   :  { %1929 = vrot.lane.b32.xlu0 %v6063_v9, %s3887_s20  ;;  %1931 = vrot.lane.b32.xlu1 %v6065_v19, %s3887_s20 }
 0x3d6   :  { %1927 = vrot.lane.b32.xlu2 %v6071_v53, %s3887_s20 }
 0x3d7   :  { %v6075_v4 = vpop.permute.xlu1 %1782  ;;  %v6077_v25 = vpop.permute.xlu0 %1780 }
 0x3d8   :  { %7976 = vst [vmem:[#allocation29_spill] sm:$0xff] %v6075_v4  ;;  %v6079_v28 = vpop.permute.xlu2 %1796 }
 0x3d9   :  { %7977 = vst [vmem:[#allocation41_spill] sm:$0xff] %v6077_v25 }
 0x3da   :  { %7978 = vst [vmem:[#allocation54_spill] sm:$0xff] %v6079_v28 }
 0x3dd   :  { %1935 = vrot.lane.b32.xlu0 %v6081_v30, %s3887_s20  ;;  %1937 = vrot.lane.b32.xlu1 %v6083_v11, %s3887_s20 }
 0x3de   :  { %1933 = vrot.lane.b32.xlu2 %v6089_v60, %s3887_s20 }
 0x3df   :  { %v6093_v4 = vpop.permute.xlu0 %1786  ;;  %v6095_v25 = vpop.permute.xlu1 %1788 }
 0x3e0   :  { %7979 = vst [vmem:[#allocation68_spill] sm:$0xff] %v6093_v4  ;;  %v6097_v28 = vpop.permute.xlu2 %1825 }
 0x3e1   :  { %7980 = vst [vmem:[#allocation82_spill] sm:$0xff] %v6095_v25 }
 0x3e5   :  { %1941 = vrot.lane.b32.xlu0 %v6099_v22, %s3887_s20  ;;  %1943 = vrot.lane.b32.xlu1 %v6101_v21, %s3887_s20 }
 0x3e6   :  { %1939 = vrot.lane.b32.xlu2 %v6107_v38, %s3887_s20 }
 0x3e7   :  { %v6111_v4 = vpop.permute.xlu0 %1792  ;;  %v6113_v25 = vpop.permute.xlu1 %1794 }
 0x3e8   :  { %7981 = vst [vmem:[#allocation12_spill] sm:$0xff] %v6111_v4  ;;  %v6115_v44 = vpop.permute.xlu2 %1831 }
 0x3e9   :  { %7982 = vst [vmem:[#allocation24_spill] sm:$0xff] %v6113_v25 }
 0x3ed   :  { %1947 = vrot.lane.b32.xlu0 %v1562_v51, %s3887_s20  ;;  %1972 = vrot.lane.b32.xlu1 %v5758_v42, %s3888_s26 }
 0x3ee   :  { %1945 = vrot.lane.b32.xlu2 %v6120_v2, %s3887_s20 }
 0x3ef   :  { %v6124_v32 = vpop.permute.xlu0 %1798  ;;  %v6126_v0 = vpop.permute.xlu1 %1823 }
 0x3f0   :  { %7983 = vst [vmem:[#allocation36_spill] sm:$0xff] %v6124_v32  ;;  %v6128_v4 = vpop.permute.xlu2 %1837  ;;  %v1582_v32 = vld [vmem:[#allocation2 + $0x8c] sm:$0xff] }
 0x3f1   :  { %7984 = vst [vmem:[#allocation49_spill] sm:$0xff] %v6128_v4 }
 0x3f5   :  { %1976 = vrot.lane.b32.xlu0 %v5776_v34, %s3888_s26  ;;  %1978 = vrot.lane.b32.xlu1 %v5770_v17, %s3888_s26 }
 0x3f6   :  { %1974 = vrot.lane.b32.xlu2 %v5756_v49, %s3888_s26 }
 0x3f7   :  { %v6136_v42 = vpop.permute.xlu0 %1827  ;;  %v6138_v51 = vpop.permute.xlu1 %1829 }
 0x3f8   :  { %v6140_v25 = vpop.permute.xlu2 %1843 }
 0x3f9   :  { %7985 = vst [vmem:[#allocation63_spill] sm:$0xff] %v6140_v25  ;;  %v1575_v25 = vld [vmem:[#allocation2 + $0x54] sm:$0xff] }
 0x3fd   :  { %1982 = vrot.lane.b32.xlu0 %v5788_v41, %s3888_s26  ;;  %1984 = vrot.lane.b32.xlu1 %v5782_v16, %s3888_s26 }
 0x3fe   :  { %1980 = vrot.lane.b32.xlu2 %v5768_v59, %s3888_s26 }
 0x3ff   :  { %v6148_v34 = vpop.permute.xlu0 %1833  ;;  %v6150_v17 = vpop.permute.xlu1 %1835 }
 0x400   :  { %v6152_v49 = vpop.permute.xlu2 %1849 }
 0x401   :  { %7986 = vst [vmem:[#allocation77_spill] sm:$0xff] %v6152_v49  ;;  %v1569_v49 = vld [vmem:[#allocation2 + $0x24] sm:$0xff] }
 0x405   :  { %1988 = vrot.lane.b32.xlu0 %v5800_v54, %s3888_s26  ;;  %1990 = vrot.lane.b32.xlu1 %v5794_v46, %s3888_s26 }
 0x406   :  { %1986 = vrot.lane.b32.xlu2 %v5780_v36, %s3888_s26 }
 0x407   :  { %v6160_v41 = vpop.permute.xlu0 %1839  ;;  %v6162_v16 = vpop.permute.xlu1 %1841 }
 0x408   :  { %7987 = vst [vmem:[#allocation90_spill] sm:$0xff] %v6160_v41  ;;  %v6164_v59 = vpop.permute.xlu2 %1855 }
 0x409   :  { %7988 = vst [vmem:[#allocation11_spill] sm:$0xff] %v6162_v16  ;;  %v1581_v16 = vld [vmem:[#allocation2 + $0x84] sm:$0xff] }
 0x40d   :  { %1994 = vrot.lane.b32.xlu0 %v5812_v14, %s3888_s26  ;;  %1996 = vrot.lane.b32.xlu1 %v5806_v52, %s3888_s26 }
 0x40e   :  { %1992 = vrot.lane.b32.xlu2 %v5792_v8, %s3888_s26 }
 0x40f   :  { %v6172_v54 = vpop.permute.xlu0 %1845  ;;  %v6174_v46 = vpop.permute.xlu1 %1847 }
 0x410   :  { %7989 = vst [vmem:[#allocation23_spill] sm:$0xff] %v6172_v54  ;;  %v6176_v36 = vpop.permute.xlu2 %1861  ;;  %v1573_v54 = vld [vmem:[#allocation2 + $0x44] sm:$0xff] }
 0x411   :  { %7990 = vst [vmem:[#allocation35_spill] sm:$0xff] %v6174_v46  ;;  %v1568_v46 = vld [vmem:[#allocation2 + $0x1c] sm:$0xff] }
 0x412   :  { %7991 = vst [vmem:[#allocation48_spill] sm:$0xff] %v6176_v36  ;;  %v2358_v36 = vld [vmem:[%s7709_s4 + $0x30] sm:$0x3f] }
 0x413   :  { %3801 = vmatpush.msk.msra.mxu1 %vm1126_vm0, %v2358_v36  ;;  %3852 = vmatpush.msk.msrb.mxu3 %vm1126_vm0, %v2358_v36  ;;  %v2354_v36 = vld [vmem:[%s7709_s4 + $0x10] sm:$0xff] }
 0x415   :  { %2000 = vrot.lane.b32.xlu0 %v5826_v39, %s3888_s26  ;;  %2002 = vrot.lane.b32.xlu1 %v5820_v57, %s3888_s26 }
 0x416   :  { %1998 = vrot.lane.b32.xlu2 %v5804_v35, %s3888_s26 }
 0x417   :  { %v6184_v14 = vpop.permute.xlu0 %1851  ;;  %v6186_v52 = vpop.permute.xlu1 %1853 }
 0x418   :  { %7992 = vst [vmem:[#allocation62_spill] sm:$0xff] %v6184_v14  ;;  %v6188_v8 = vpop.permute.xlu2 %1909  ;;  %v1564_v14 = vld [vmem:[#allocation2 + $0xb2] sm:$0x3] }
 0x419   :  { %7993 = vst [vmem:[#allocation76_spill] sm:$0xff] %v6186_v52  ;;  %v1563_v52 = vld [vmem:[#allocation2 + $0xaa] sm:$0xff] }
 0x41d   :  { %2006 = vrot.lane.b32.xlu0 %v5837_v50, %s3888_s26  ;;  %2008 = vrot.lane.b32.xlu1 %v5999_v31, %s3888_s26 }
 0x41e   :  { %2004 = vrot.lane.b32.xlu2 %v5818_v37, %s3888_s26 }
 0x41f   :  { %v6196_v39 = vpop.permute.xlu0 %1857  ;;  %v6198_v57 = vpop.permute.xlu1 %1859 }
 0x420   :  { %7994 = vst [vmem:[#allocation89_spill] sm:$0xff] %v6198_v57  ;;  %v6200_v35 = vpop.permute.xlu2 %1915 }
 0x425   :  { %2012 = vrot.lane.b32.xlu0 %v1564_v14, %s3888_s26  ;;  %2037 = vrot.lane.b32.xlu1 %v6017_v12, %s3889_s19 }
 0x426   :  { %2010 = vrot.lane.b32.xlu2 %v1563_v52, %s3888_s26 }
 0x427   :  { %v6206_v50 = vpop.permute.xlu0 %1863  ;;  %v6208_v31 = vpop.permute.xlu1 %1907 }
 0x428   :  { %7995 = vst [vmem:[#allocation6_spill] sm:$0xff] %v6206_v50  ;;  %v6210_v37 = vpop.permute.xlu2 %1921  ;;  %v1579_v50 = vld [vmem:[#allocation2 + $0x74] sm:$0xff] }
 0x429   :  { %7996 = vst [vmem:[#allocation18_spill] sm:$0xff] %v6210_v37 }
 0x42d   :  { %2041 = vrot.lane.b32.xlu0 %v6011_v13, %s3889_s19  ;;  %2043 = vrot.lane.b32.xlu1 %v6035_v1, %s3889_s19 }
 0x42e   :  { %2039 = vrot.lane.b32.xlu2 %v6009_v58, %s3889_s19 }
 0x42f   :  { %v6218_v14 = vpop.permute.xlu0 %1911  ;;  %v6220_v12 = vpop.permute.xlu1 %1913 }
 0x430   :  { %v6222_v52 = vpop.permute.xlu2 %1927 }
 0x431   :  { %7997 = vst [vmem:[#allocation30_spill] sm:$0xff] %v6222_v52  ;;  %v1571_v52 = vld [vmem:[#allocation2 + $0x34] sm:$0xff] }
 0x435   :  { %2047 = vrot.lane.b32.xlu0 %v6029_v18, %s3889_s19  ;;  %2049 = vrot.lane.b32.xlu1 %v6053_v7, %s3889_s19 }
 0x436   :  { %2045 = vrot.lane.b32.xlu2 %v6027_v33, %s3889_s19 }
 0x437   :  { %v6230_v13 = vpop.permute.xlu0 %1917  ;;  %v6232_v1 = vpop.permute.xlu1 %1919 }
 0x438   :  { %v6234_v58 = vpop.permute.xlu2 %1933 }
 0x439   :  { %7998 = vst [vmem:[#allocation42_spill] sm:$0xff] %v6234_v58  ;;  %v1567_v58 = vld [vmem:[#allocation2 + $0x14] sm:$0xff] }
 0x43d   :  { %2053 = vrot.lane.b32.xlu0 %v6047_v10, %s3889_s19  ;;  %2055 = vrot.lane.b32.xlu1 %v6071_v53, %s3889_s19 }
 0x43e   :  { %2051 = vrot.lane.b32.xlu2 %v6045_v26, %s3889_s19 }
 0x43f   :  { %v6242_v18 = vpop.permute.xlu0 %1923  ;;  %v6244_v7 = vpop.permute.xlu1 %1925 }
 0x440   :  { %7999 = vst [vmem:[#allocation55_spill] sm:$0xff] %v6242_v18  ;;  %v6246_v33 = vpop.permute.xlu2 %1939 }
 0x441   :  { %8000 = vst [vmem:[#allocation69_spill] sm:$0xff] %v6244_v7  ;;  %v1578_v7 = vld [vmem:[#allocation2 + $0x6c] sm:$0xff] }
 0x445   :  { %2059 = vrot.lane.b32.xlu0 %v6065_v19, %s3889_s19  ;;  %2061 = vrot.lane.b32.xlu1 %v6089_v60, %s3889_s19 }
 0x446   :  { %2057 = vrot.lane.b32.xlu2 %v6063_v9, %s3889_s19 }
 0x447   :  { %v6254_v10 = vpop.permute.xlu0 %1929  ;;  %v6256_v53 = vpop.permute.xlu1 %1931 }
 0x448   :  { %8001 = vst [vmem:[#allocation85_spill] sm:$0xff] %v6254_v10  ;;  %v6258_v26 = vpop.permute.xlu2 %1945  ;;  %v1572_v10 = vld [vmem:[#allocation2 + $0x3c] sm:$0xff] }
 0x449   :  { %8002 = vst [vmem:[#allocation13_spill] sm:$0xff] %v6256_v53  ;;  %v1570_v53 = vld [vmem:[#allocation2 + $0x2c] sm:$0xff] }
 0x44a   :  { %8003 = vst [vmem:[#allocation25_spill] sm:$0xff] %v6258_v26 }
 0x44d   :  { %2065 = vrot.lane.b32.xlu0 %v6083_v11, %s3889_s19  ;;  %2067 = vrot.lane.b32.xlu1 %v6107_v38, %s3889_s19 }
 0x44e   :  { %2063 = vrot.lane.b32.xlu2 %v6081_v30, %s3889_s19 }
 0x44f   :  { %v6266_v19 = vpop.permute.xlu0 %1935  ;;  %v6268_v60 = vpop.permute.xlu1 %1937 }
 0x450   :  { %8004 = vst [vmem:[#allocation37_spill] sm:$0xff] %v6266_v19  ;;  %v6270_v9 = vpop.permute.xlu2 %1974  ;;  %v1566_v19 = vld [vmem:[#allocation2 + $0xb3] sm:$0x3] }
 0x451   :  { %8005 = vst [vmem:[#allocation50_spill] sm:$0xff] %v6268_v60  ;;  %v1565_v60 = vld [vmem:[#allocation2 + $0xab] sm:$0xff] }
 0x455   :  { %2071 = vrot.lane.b32.xlu0 %v6101_v21, %s3889_s19  ;;  %2073 = vrot.lane.b32.xlu1 %v6120_v2, %s3889_s19 }
 0x456   :  { %2069 = vrot.lane.b32.xlu2 %v6099_v22, %s3889_s19 }
 0x457   :  { %v6278_v11 = vpop.permute.xlu0 %1941  ;;  %v6280_v38 = vpop.permute.xlu1 %1943 }
 0x458   :  { %8006 = vst [vmem:[#allocation64_spill] sm:$0xff] %v6280_v38  ;;  %v6282_v30 = vpop.permute.xlu2 %1980 }
 0x45d   :  { %2077 = vrot.lane.b32.xlu0 %v1566_v19, %s3889_s19  ;;  %2121 = vrot.lane.b32.xlu1 %v1567_v58, %s3890_s21 }
 0x45e   :  { %2075 = vrot.lane.b32.xlu2 %v1565_v60, %s3889_s19 }
 0x45f   :  { %v6287_v21 = vpop.permute.xlu0 %1947  ;;  %v6289_v2 = vpop.permute.xlu1 %1972 }
 0x460   :  { %8007 = vst [vmem:[#allocation78_spill] sm:$0xff] %v6287_v21  ;;  %v6291_v22 = vpop.permute.xlu2 %1986  ;;  %v1576_v21 = vld [vmem:[#allocation2 + $0x5c] sm:$0xff] }
 0x461   :  { %8008 = vst [vmem:[#allocation91_spill] sm:$0xff] %v6291_v22 }
 0x465   :  { %2125 = vrot.lane.b32.xlu0 %v1569_v49, %s3890_s21  ;;  %2127 = vrot.lane.b32.xlu1 %v1570_v53, %s3890_s21 }
 0x466   :  { %2123 = vrot.lane.b32.xlu2 %v1568_v46, %s3890_s21 }
 0x467   :  { %v6296_v19 = vpop.permute.xlu0 %1976  ;;  %v6298_v58 = vpop.permute.xlu1 %1978 }
 0x468   :  { %v6300_v60 = vpop.permute.xlu2 %1992 }
 0x469   :  { %8009 = vst [vmem:[#allocation94_spill] sm:$0xff] %v6300_v60  ;;  %v1574_v60 = vld [vmem:[#allocation2 + $0x4c] sm:$0xff] }
 0x46d   :  { %2131 = vrot.lane.b32.xlu0 %v1572_v10, %s3890_s21  ;;  %2133 = vrot.lane.b32.xlu1 %v1573_v54, %s3890_s21 }
 0x46e   :  { %2129 = vrot.lane.b32.xlu2 %v1571_v52, %s3890_s21 }
 0x46f   :  { %v6305_v49 = vpop.permute.xlu0 %1982  ;;  %v6307_v53 = vpop.permute.xlu1 %1984 }
 0x470   :  { %v6309_v46 = vpop.permute.xlu2 %1998 }
 0x471   :  { %8010 = vst [vmem:[#allocation95_spill] sm:$0xff] %v6309_v46  ;;  %v1577_v46 = vld [vmem:[#allocation2 + $0x64] sm:$0xff] }
 0x475   :  { %2137 = vrot.lane.b32.xlu0 %v1575_v25, %s3890_s21  ;;  %2139 = vrot.lane.b32.xlu1 %v1576_v21, %s3890_s21 }
 0x476   :  { %2135 = vrot.lane.b32.xlu2 %v1574_v60, %s3890_s21 }
 0x477   :  { %v6314_v10 = vpop.permute.xlu0 %1988  ;;  %v6316_v54 = vpop.permute.xlu1 %1990 }
 0x478   :  { %8011 = vst [vmem:[#allocation96_spill] sm:$0xff] %v6314_v10  ;;  %v6318_v52 = vpop.permute.xlu2 %2004  ;;  %v1585_v10 = vld [vmem:[#allocation2 + $0xa4] sm:$0xff] }
 0x479   :  { %8012 = vst [vmem:[#allocation97_spill] sm:$0xff] %v6316_v54  ;;  %v1580_v54 = vld [vmem:[#allocation2 + $0x7c] sm:$0xff] }
 0x47d   :  { %2143 = vrot.lane.b32.xlu0 %v1578_v7, %s3890_s21  ;;  %2145 = vrot.lane.b32.xlu1 %v1579_v50, %s3890_s21 }
 0x47e   :  { %2141 = vrot.lane.b32.xlu2 %v1577_v46, %s3890_s21 }
 0x47f   :  { %v6323_v25 = vpop.permute.xlu0 %1994  ;;  %v6325_v21 = vpop.permute.xlu1 %1996 }
 0x480   :  { %8013 = vst [vmem:[#allocation98_spill] sm:$0xff] %v6323_v25  ;;  %v6327_v60 = vpop.permute.xlu2 %2010  ;;  %v1584_v25 = vld [vmem:[#allocation2 + $0x9c] sm:$0xff] }
 0x481   :  { %8014 = vst [vmem:[#allocation99_spill] sm:$0xff] %v6325_v21  ;;  %v1583_v21 = vld [vmem:[#allocation2 + $0x94] sm:$0xff] }
 0x482   :  { %8015 = vst [vmem:[#allocation100_spill] sm:$0xff] %v6327_v60  ;;  %v1586_v60 = vld [vmem:[#allocation2 + $0xac] sm:$0xff] }
 0x485   :  { %2149 = vrot.lane.b32.xlu0 %v1581_v16, %s3890_s21  ;;  %2151 = vrot.lane.b32.xlu1 %v1582_v32, %s3890_s21 }
 0x486   :  { %2147 = vrot.lane.b32.xlu2 %v1580_v54, %s3890_s21 }
 0x487   :  { %v6332_v7 = vpop.permute.xlu0 %2000  ;;  %v6334_v50 = vpop.permute.xlu1 %2002 }
 0x488   :  { %8016 = vst [vmem:[#allocation101_spill] sm:$0xff] %v6332_v7  ;;  %v6336_v46 = vpop.permute.xlu2 %2039  ;;  %v1587_v7 = vld [vmem:[#allocation2 + $0xb4] sm:$0x3] }
 0x489   :  { %8017 = vst [vmem:[#allocation102_spill] sm:$0xff] %v6334_v50 }
 0x48d   :  { %2155 = vrot.lane.b32.xlu0 %v1584_v25, %s3890_s21  ;;  %2157 = vrot.lane.b32.xlu1 %v1585_v10, %s3890_s21 }
 0x48e   :  { %2153 = vrot.lane.b32.xlu2 %v1583_v21, %s3890_s21 }
 0x48f   :  { %v6341_v16 = vpop.permute.xlu0 %2006  ;;  %v6343_v32 = vpop.permute.xlu1 %2008 }
 0x490   :  { %8018 = vst [vmem:[#allocation103_spill] sm:$0xff] %v6341_v16  ;;  %v6345_v54 = vpop.permute.xlu2 %2045 }
 0x491   :  { %8019 = vst [vmem:[#allocation104_spill] sm:$0xff] %v6343_v32 }
 0x495   :  { %2161 = vrot.lane.b32.xlu0 %v1587_v7, %s3890_s21  ;;  %v2357_v7 = vld [vmem:[%s7709_s4 + $0x28] sm:$0xff] }
 0x496   :  { %2159 = vrot.lane.b32.xlu2 %v1586_v60, %s3890_s21  ;;  %2435 = vmatpush.msra.mxu1 %v2357_v7 }
 0x497   :  { %v6349_v50 = vpop.permute.xlu0 %2012  ;;  %v2038_v25 = vpop.permute.xlu1 %2037  ;;  %3853 = vmatpush.msrb.mxu3 %v2357_v7  ;;  %v2353_v7 = vld [vmem:[%s7709_s4 + $0x8] sm:$0xff] }
 0x498   :  { %8020 = vst [vmem:[#allocation105_spill] sm:$0xff] %v6349_v50  ;;  %v6351_v26 = vpop.permute.xlu2 %2051 }
 0x499   :  { %8021 = vst [vmem:[#allocation106_spill] sm:$0xff] %v6351_v26  ;;  %v2355_v26 = vld [vmem:[%s7709_s4 + $0x18] sm:$0xff] }
 0x49f   :  { %v6353_v10 = vpop.permute.xlu0 %2041  ;;  %v6355_v21 = vpop.permute.xlu1 %2043 }
 0x4a0   :  { %v6357_v18 = vpop.permute.xlu2 %2057 }
 0x4a1   :  { %8022 = vst [vmem:[#allocation107_spill] sm:$0xff] %v6357_v18  ;;  %v2356_v18 = vld [vmem:[%s7709_s4 + $0x20] sm:$0xff] }
 0x4a2   :  { %2436 = vmatpush.msra.mxu1 %v2356_v18  ;;  %3854 = vmatpush.msrb.mxu3 %v2356_v18  ;;  %v2352_v18 = vld [vmem:[%s7709_s4] sm:$0xff] }
 0x4a4   :  { %2437 = vmatpush.msra.mxu1 %v2355_v26  ;;  %3855 = vmatpush.msrb.mxu3 %v2355_v26 }
 0x4a6   :  { %2438 = vmatpush.msra.mxu1 %v2354_v36  ;;  %3856 = vmatpush.msrb.mxu3 %v2354_v36 }
 0x4a7   :  { %v6367_v60 = vpop.permute.xlu0 %2047  ;;  %v6369_v50 = vpop.permute.xlu1 %2049 }
 0x4a8   :  { %8023 = vst [vmem:[#allocation108_spill] sm:$0xff] %v6369_v50  ;;  %v6371_v41 = vpop.permute.xlu2 %2063  ;;  %2439 = vmatpush.msra.mxu1 %v2353_v7  ;;  %3857 = vmatpush.msrb.mxu3 %v2353_v7  ;;  %v1475_v7 = vld [vmem:[#allocation2] sm:$0xff] }
 0x4a9   :  { %8024 = vst [vmem:[#allocation109_spill] sm:$0xff] %v6371_v41 }
 0x4aa   :  { %2440 = vmatpush.msra.mxu1 %v2352_v18  ;;  %3858 = vmatpush.msrb.mxu3 %v2352_v18  ;;  %v2184_v18 = vsel %vm879_vm1, %v1475_v7, %v5832_v24  ;;  %v1476_v7 = vld [vmem:[#allocation2 + $0x8] sm:$0xff] }
 0x4af   :  { %v6385_v41 = vpop.permute.xlu0 %2053  ;;  %v6387_v32 = vpop.permute.xlu1 %2055 }
 0x4b0   :  { %8025 = vst [vmem:[#allocation110_spill] sm:$0xff] %v6385_v41  ;;  %v6389_v22 = vpop.permute.xlu2 %2069 }
 0x4b1   :  { %8026 = vst [vmem:[#allocation111_spill] sm:$0xff] %v6387_v32 }
 0x4b7   :  { %v6394_v26 = vpop.permute.xlu0 %2059  ;;  %v6396_v38 = vpop.permute.xlu1 %2061 }
 0x4b8   :  { %8027 = vst [vmem:[#allocation112_spill] sm:$0xff] %v6394_v26  ;;  %v6398_v37 = vpop.permute.xlu2 %2075 }
 0x4b9   :  { %8028 = vst [vmem:[#allocation113_spill] sm:$0xff] %v6396_v38  ;;  %v2205_v38 = vsel %vm901_vm2, %v2184_v18, %v5919_v62 }
 0x4ba   :  { %8029 = vst [vmem:[#allocation114_spill] sm:$0xff] %v6398_v37  ;;  %v2226_v26 = vsel %vm923_vm3, %v2205_v38, %v6003_v56  ;;  %v2185_v56 = vsel %vm879_vm1, %v1476_v7, %v5816_v3  ;;  %v1491_v7 = vld [vmem:[#allocation2 + $0x80] sm:$0xff] }
 0x4bf   :  { %v6400_v36 = vpop.permute.xlu0 %2065  ;;  %v6402_v41 = vpop.permute.xlu1 %2067 }
 0x4c0   :  { %8030 = vst [vmem:[#allocation115_spill] sm:$0xff] %v6400_v36  ;;  %v2124_v32 = vpop.permute.xlu2 %2123 }
 0x4c1   :  { %8031 = vst [vmem:[#allocation116_spill] sm:$0xff] %v6402_v41  ;;  %v2247_v41 = vsel %vm945_vm4, %v2226_v26, %v6126_v0  ;;  %v2206_v0 = vsel %vm901_vm2, %v2185_v56, %v5901_v23 }
 0x4c2   :  { %v2268_v36 = vsel %vm967_vm5, %v2247_v41, %v6208_v31  ;;  %v2227_v41 = vsel %vm923_vm3, %v2206_v0, %v5983_v63 }
 0x4c3   :  { %v2289_v37 = vsel %vm989_vm6, %v2268_v36, %v6289_v2  ;;  %v2248_v31 = vsel %vm945_vm4, %v2227_v41, %v6097_v28 }
 0x4c7   :  { %v6404_v57 = vpop.permute.xlu0 %2071  ;;  %v6406_v4 = vpop.permute.xlu1 %2073 }
 0x4c8   :  { %8032 = vst [vmem:[#allocation117_spill] sm:$0xff] %v6404_v57  ;;  %v6408_v50 = vpop.permute.xlu2 %2129 }
 0x4c9   :  { %8033 = vst [vmem:[#allocation118_spill] sm:$0xff] %v6406_v4  ;;  %v2310_v4 = vsel %vm1011_vm7, %v2289_v37, %v2038_v25  ;;  %v2269_v37 = vsel %vm967_vm5, %v2248_v31, %v6188_v8  ;;  %v1477_v25 = vld [vmem:[#allocation2 + $0x10] sm:$0xff] }
 0x4ca   :  { %v2186_v63 = vsel %vm879_vm1, %v1477_v25, %v5849_v48 }
 0x4cb   :  { %v2207_v28 = vsel %vm901_vm2, %v2186_v63, %v5933_v6 }
 0x4cc   :  { %v2228_v8 = vsel %vm923_vm3, %v2207_v28, %v6023_v27 }
 0x4cf   :  { %v6423_v57 = vpop.permute.xlu0 %2077  ;;  %v2122_v24 = vpop.permute.xlu1 %2121 }
 0x4d0   :  { %v6425_v16 = vpop.permute.xlu2 %2135  ;;  %v2331_v62 = vsel %vm1033_vm9, %v2310_v4, %v2122_v24  ;;  %v2290_v4 = vsel %vm989_vm6, %v2269_v37, %v6270_v9  ;;  %v2249_v9 = vsel %vm945_vm4, %v2228_v8, %v6136_v42  ;;  %v1478_v24 = vld [vmem:[#allocation2 + $0x18] sm:$0xff]  ;;  %v1481_v8 = vld [vmem:[#allocation2 + $0x30] sm:$0xff] }
 0x4d1   :  { %3802 = vmatmul.msk.f32.vlgmr.msra.gmra.mxu1 %vm1062_vm8, %v2331_v62  ;;  %v2311_v3 = vsel %vm1011_vm7, %v2290_v4, %v6336_v46  ;;  %v2270_v46 = vsel %vm967_vm5, %v2249_v9, %v6218_v14  ;;  %v2187_v42 = vsel %vm879_vm1, %v1478_v24, %v5851_v55  ;;  %v2200_v14 = vsel %vm879_vm1, %v1491_v7, %v5877_v5  ;;  %v1492_v9 = vld [vmem:[#allocation2 + $0x88] sm:$0xff]  ;;  %v8037_v24 = vld [vmem:[#allocation81_spill] sm:$0xff] }
 0x4d2   :  { %v2332_v23 = vsel %vm1033_vm9, %v2311_v3, %v2124_v32  ;;  %v2291_v32 = vsel %vm989_vm6, %v2270_v46, %v6296_v19  ;;  %v2208_v19 = vsel %vm901_vm2, %v2187_v42, %v5931_v40  ;;  %v8040_v42 = vld [vmem:[#allocation60_spill] sm:$0xff] }
 0x4d3   :  { %v2312_v48 = vsel %vm1011_vm7, %v2291_v32, %v6353_v10  ;;  %v2221_v10 = vsel %vm901_vm2, %v2200_v14, %v5959_v15  ;;  %v2229_v62 = vsel %vm923_vm3, %v2208_v19, %v6021_v43  ;;  %v8036_v32 = vld [vmem:[#allocation14_spill] sm:$0xff]  ;;  %v8041_v14 = vld [vmem:[#allocation12_spill] sm:$0xff] }
 0x4d4   :  { %v2242_v56 = vsel %vm923_vm3, %v2221_v10, %v6061_v29  ;;  %v2250_v55 = vsel %vm945_vm4, %v2229_v62, %v6138_v51 }
 0x4d5   :  { %v2263_v0 = vsel %vm945_vm4, %v2242_v56, %v6164_v59  ;;  %v2271_v5 = vsel %vm967_vm5, %v2250_v55, %v6220_v12  ;;  %v1479_v59 = vld [vmem:[#allocation2 + $0x20] sm:$0xff] }
 0x4d6   :  { %v2284_v40 = vsel %vm967_vm5, %v2263_v0, %v6246_v33  ;;  %v2292_v15 = vsel %vm989_vm6, %v2271_v5, %v6298_v58  ;;  %v2188_v58 = vsel %vm879_vm1, %v1479_v59, %v5830_v61  ;;  %v8042_v5 = vld [vmem:[#allocation103_spill] sm:$0xff] }
 0x4d7   :  { %v2126_v38 = vpop.permute.xlu0 %2125  ;;  %v2128_v2 = vpop.permute.xlu1 %2127  ;;  %v2305_v43 = vsel %vm989_vm6, %v2284_v40, %v6318_v52  ;;  %v2313_v29 = vsel %vm1011_vm7, %v2292_v15, %v6355_v21  ;;  %v2209_v52 = vsel %vm901_vm2, %v2188_v58, %v5913_v45  ;;  %v1480_v45 = vld [vmem:[#allocation2 + $0x28] sm:$0xff]  ;;  %v8043_v15 = vld [vmem:[#allocation108_spill] sm:$0xff] }
 0x4d8   :  { %v6443_v26 = vpop.permute.xlu2 %2141  ;;  %v2333_v27 = vsel %vm1033_vm9, %v2312_v48, %v2126_v38  ;;  %v2326_v12 = vsel %vm1011_vm7, %v2305_v43, %v6389_v22  ;;  %v2334_v33 = vsel %vm1033_vm9, %v2313_v29, %v2128_v2  ;;  %v2230_v21 = vsel %vm923_vm3, %v2209_v52, %v5995_v20  ;;  %v8044_v29 = vld [vmem:[#allocation117_spill] sm:$0xff] }
 0x4d9   :  { %3803 = vmatmul.msk.f32.gmra.mxu1 %vm1062_vm8, %v2332_v23  ;;  %v2251_v22 = vsel %vm945_vm4, %v2230_v21, %v6115_v44  ;;  %v2189_v20 = vsel %vm879_vm1, %v1480_v45, %v5861_v47  ;;  %v8034_v44 = vld [vmem:[#allocation32_spill] sm:$0xff]  ;;  %v2190_v48 = vsel %vm879_vm1, %v1481_v8, %v8036_v32  ;;  %v8048_v21 = vld [vmem:[#allocation87_spill] sm:$0xff]  ;;  %v8051_v45 = vld [vmem:[#allocation49_spill] sm:$0xff] }
 0x4da   :  { %v2272_v4 = vsel %vm967_vm5, %v2251_v22, %v6200_v35  ;;  %v2210_v35 = vsel %vm901_vm2, %v2189_v20, %v8034_v44  ;;  %v8052_v20 = vld [vmem:[#allocation89_spill] sm:$0xff]  ;;  %v8056_v8 = vld [vmem:[#allocation104_spill] sm:$0xff] }
 0x4db   :  { %v2293_v61 = vsel %vm989_vm6, %v2272_v4, %v6282_v30  ;;  %v8035_v30 = vld [vmem:[#allocation73_spill] sm:$0xff] }
 0x4dc   :  { %v2314_v3 = vsel %vm1011_vm7, %v2293_v61, %v6345_v54  ;;  %v2231_v23 = vsel %vm923_vm3, %v2210_v35, %v8035_v30  ;;  %v8049_v4 = vld [vmem:[#allocation33_spill] sm:$0xff]  ;;  %v8050_v61 = vld [vmem:[#allocation24_spill] sm:$0xff]  ;;  %v8053_v35 = vld [vmem:[#allocation18_spill] sm:$0xff] }
 0x4dd   :  { %v2335_v2 = vsel %vm1033_vm9, %v2314_v3, %v6408_v50  ;;  %v2252_v54 = vsel %vm945_vm4, %v2231_v23, %v6148_v34  ;;  %v2201_v34 = vsel %vm879_vm1, %v1492_v9, %v8037_v24  ;;  %v8054_v23 = vld [vmem:[#allocation64_spill] sm:$0xff] }
 0x4de   :  { %v2273_v63 = vsel %vm967_vm5, %v2252_v54, %v6230_v13  ;;  %v8038_v13 = vld [vmem:[#allocation22_spill] sm:$0xff] }
 0x4df   :  { %v2132_v36 = vpop.permute.xlu0 %2131  ;;  %v6461_v18 = vpop.permute.xlu1 %2133  ;;  %v2294_v50 = vsel %vm989_vm6, %v2273_v63, %v6305_v49  ;;  %v2211_v49 = vsel %vm901_vm2, %v2190_v48, %v8038_v13  ;;  %v8058_v48 = vld [vmem:[#allocation118_spill] sm:$0xff]  ;;  %v1494_v13 = vld [vmem:[#allocation2 + $0x98] sm:$0xff] }
 0x4e0   :  { %v6463_v6 = vpop.permute.xlu2 %2147  ;;  %v2315_v47 = vsel %vm1011_vm7, %v2294_v50, %v6367_v60  ;;  %v2232_v7 = vsel %vm923_vm3, %v2211_v49, %v8040_v42  ;;  %v8055_v50 = vld [vmem:[#allocation91_spill] sm:$0xff] }
 0x4e1   :  { %3804 = vmatmul.msk.f32.gmra.mxu1 %vm1062_vm8, %v2333_v27  ;;  %v2336_v46 = vsel %vm1033_vm9, %v2315_v47, %v2132_v36  ;;  %v8039_v27 = vld [vmem:[#allocation9_spill] sm:$0xff]  ;;  %v2253_v10 = vsel %vm945_vm4, %v2232_v7, %v6150_v17  ;;  %v8060_v7 = vld [vmem:[#allocation51_spill] sm:$0xff] }
 0x4e2   :  { %v2222_v60 = vsel %vm901_vm2, %v2201_v34, %v8039_v27  ;;  %v2274_v56 = vsel %vm967_vm5, %v2253_v10, %v6232_v1  ;;  %v1483_v34 = vld [vmem:[#allocation2 + $0x40] sm:$0xff] }
 0x4e3   :  { %v2243_v36 = vsel %vm923_vm3, %v2222_v60, %v8041_v14  ;;  %v2295_v0 = vsel %vm989_vm6, %v2274_v56, %v6307_v53  ;;  %v8059_v60 = vld [vmem:[#allocation26_spill] sm:$0xff]  ;;  %v2203_v14 = vsel %vm879_vm1, %v1494_v13, %v8060_v7  ;;  %v8085_v7 = vld [vmem:[#allocation111_spill] sm:$0xff] }
 0x4e4   :  { %v2264_v62 = vsel %vm945_vm4, %v2243_v36, %v6196_v39  ;;  %v2316_v43 = vsel %vm1011_vm7, %v2295_v0, %v8043_v15  ;;  %v1482_v39 = vld [vmem:[#allocation2 + $0x38] sm:$0xff]  ;;  %v2192_v42 = vsel %vm879_vm1, %v1483_v34, %v8059_v60  ;;  %v8061_v36 = vld [vmem:[#allocation47_spill] sm:$0xff]  ;;  %v8064_v0 = vld [vmem:[#allocation54_spill] sm:$0xff] }
 0x4e5   :  { %v2285_v55 = vsel %vm967_vm5, %v2264_v62, %v6278_v11  ;;  %v2337_v1 = vsel %vm1033_vm9, %v2316_v43, %v6461_v18  ;;  %v2213_v10 = vsel %vm901_vm2, %v2192_v42, %v8061_v36  ;;  %v8062_v62 = vld [vmem:[#allocation75_spill] sm:$0xff]  ;;  %v8066_v43 = vld [vmem:[#allocation48_spill] sm:$0xff]  ;;  %v8084_v60 = vld [vmem:[#allocation105_spill] sm:$0xff] }
 0x4e6   :  { %v2306_v40 = vsel %vm989_vm6, %v2285_v55, %v8042_v5  ;;  %v2224_v56 = vsel %vm901_vm2, %v2203_v14, %v8062_v62  ;;  %v8063_v55 = vld [vmem:[#allocation17_spill] sm:$0xff] }
 0x4e7   :  { %v6493_v41 = vpop.permute.xlu0 %2137  ;;  %v6495_v51 = vpop.permute.xlu1 %2139  ;;  %v2327_v17 = vsel %vm1011_vm7, %v2306_v40, %v8044_v29  ;;  %v2245_v5 = vsel %vm923_vm3, %v2224_v56, %v8064_v0  ;;  %v8065_v40 = vld [vmem:[#allocation90_spill] sm:$0xff]  ;;  %v8087_v0 = vld [vmem:[#allocation20_spill] sm:$0xff] }
 0x4e8   :  { %v2154_v31 = vpop.permute.xlu2 %2153  ;;  %v2266_v29 = vsel %vm945_vm4, %v2245_v5, %v8066_v43 }
 0x4e9   :  { %v2347_v37 = vsel %vm1033_vm9, %v2326_v12, %v2154_v31  ;;  %3805 = vmatmul.msk.f32.gmra.mxu1 %vm1062_vm8, %v2334_v33  ;;  %v1493_v12 = vld [vmem:[#allocation2 + $0x90] sm:$0xff]  ;;  %v8046_v33 = vld [vmem:[#allocation93_spill] sm:$0xff] }
 0x4ea   :  { %3818 = vmatmul.msk.f32.vlgmr.msrb.gmra.mxu3 %vm1062_vm8, %v2347_v37  ;;  %v8045_v31 = vld [vmem:[#allocation4_spill] sm:$0xff]  ;;  %v2202_v58 = vsel %vm879_vm1, %v1493_v12, %v8046_v33  ;;  %v8047_v37 = vld [vmem:[#allocation10_spill] sm:$0xff] }
 0x4eb   :  { %v2191_v53 = vsel %vm879_vm1, %v1482_v39, %v8045_v31  ;;  %v2223_v22 = vsel %vm901_vm2, %v2202_v58, %v8048_v21  ;;  %v8068_v39 = vld [vmem:[#allocation25_spill] sm:$0xff]  ;;  %v8071_v58 = vld [vmem:[#allocation110_spill] sm:$0xff] }
 0x4ec   :  { %v2212_v52 = vsel %vm901_vm2, %v2191_v53, %v8047_v37  ;;  %v2244_v3 = vsel %vm923_vm3, %v2223_v22, %v8050_v61  ;;  %v2287_v12 = vsel %vm967_vm5, %v2266_v29, %v8068_v39  ;;  %v8070_v53 = vld [vmem:[#allocation100_spill] sm:$0xff]  ;;  %v1484_v22 = vld [vmem:[#allocation2 + $0x48] sm:$0xff]  ;;  %v8090_v29 = vld [vmem:[#allocation30_spill] sm:$0xff] }
 0x4ed   :  { %v2233_v18 = vsel %vm923_vm3, %v2212_v52, %v8049_v4  ;;  %v2265_v44 = vsel %vm945_vm4, %v2244_v3, %v8052_v20  ;;  %v2308_v33 = vsel %vm989_vm6, %v2287_v12, %v8070_v53  ;;  %v8072_v52 = vld [vmem:[#allocation114_spill] sm:$0xff]  ;;  %v8073_v3 = vld [vmem:[#allocation52_spill] sm:$0xff]  ;;  %v8092_v39 = vld [vmem:[#allocation107_spill] sm:$0xff] }
 0x4ee   :  { %v2286_v54 = vsel %vm967_vm5, %v2265_v44, %v8054_v23  ;;  %v2329_v21 = vsel %vm1011_vm7, %v2308_v33, %v8072_v52  ;;  %v1495_v4 = vld [vmem:[#allocation2 + $0xa0] sm:$0x3]  ;;  %v8075_v44 = vld [vmem:[#allocation45_spill] sm:$0xff] }
 0x4ef   :  { %v6517_v38 = vpop.permute.xlu0 %2143  ;;  %v6523_v25 = vpop.permute.xlu1 %2145  ;;  %v2307_v9 = vsel %vm989_vm6, %v2286_v54, %v8056_v8  ;;  %v8077_v54 = vld [vmem:[#allocation5_spill] sm:$0xff] }
 0x4f0   :  { %v2328_v24 = vsel %vm1011_vm7, %v2307_v9, %v8058_v48  ;;  %v8080_v9 = vld [vmem:[#allocation6_spill] sm:$0xff]  ;;  %v8094_v33 = vld [vmem:[#allocation61_spill] sm:$0xff] }
 0x4f1   :  { %3806 = vmatmul.msk.f32.gmra.mxu1 %vm1062_vm8, %v2335_v2  ;;  %v2254_v2 = vsel %vm945_vm4, %v2233_v18, %v8051_v45  ;;  %v2193_v45 = vsel %vm879_vm1, %v1484_v22, %v8073_v3  ;;  %v8099_v3 = vld [vmem:[#allocation112_spill] sm:$0xff] }
 0x4f2   :  { %v2275_v30 = vsel %vm967_vm5, %v2254_v2, %v8053_v35  ;;  %v8074_v2 = vld [vmem:[#allocation8_spill] sm:$0xff]  ;;  %v2214_v35 = vsel %vm901_vm2, %v2193_v45, %v8075_v44  ;;  %v8100_v44 = vld [vmem:[#allocation66_spill] sm:$0xff] }
 0x4f3   :  { %v2296_v47 = vsel %vm989_vm6, %v2275_v30, %v8055_v50  ;;  %v2204_v20 = vsel %vm879_vm1, %v1495_v4, %v8074_v2  ;;  %v8076_v30 = vld [vmem:[#allocation21_spill] sm:$0xff]  ;;  %v1487_v2 = vld [vmem:[#allocation2 + $0x60] sm:$0xff] }
 0x4f4   :  { %v2225_v23 = vsel %vm901_vm2, %v2204_v20, %v8076_v30  ;;  %v8097_v4 = vld [vmem:[#allocation85_spill] sm:$0xff]  ;;  %v8101_v30 = vld [vmem:[#allocation59_spill] sm:$0xff] }
 0x4f7   :  { %v6538_v28 = vpop.permute.xlu0 %2149  ;;  %v6554_v19 = vpop.permute.xlu1 %2151 }
 0x4f9   :  { %3807 = vmatmul.msk.f32.gmra.mxu1 %vm1062_vm8, %v2336_v46  ;;  %v8057_v46 = vld [vmem:[#allocation106_spill] sm:$0xff] }
 0x4fa   :  { %v2317_v32 = vsel %vm1011_vm7, %v2296_v47, %v8057_v46  ;;  %v8079_v47 = vld [vmem:[#allocation11_spill] sm:$0xff] }
 0x4fb   :  { %v2338_v49 = vsel %vm1033_vm9, %v2317_v32, %v6425_v16  ;;  %v2234_v16 = vsel %vm923_vm3, %v2213_v10, %v8063_v55  ;;  %v8081_v32 = vld [vmem:[#allocation69_spill] sm:$0xff]  ;;  %v1485_v10 = vld [vmem:[#allocation2 + $0x50] sm:$0xff]  ;;  %v8086_v55 = vld [vmem:[#allocation27_spill] sm:$0xff] }
 0x4fc   :  { %v2255_v15 = vsel %vm945_vm4, %v2234_v16, %v8065_v40  ;;  %v2194_v16 = vsel %vm879_vm1, %v1485_v10, %v8086_v55  ;;  %v8088_v40 = vld [vmem:[#allocation46_spill] sm:$0xff] }
 0x4fd   :  { %v2215_v5 = vsel %vm901_vm2, %v2194_v16, %v8087_v0  ;;  %v1489_v16 = vld [vmem:[#allocation2 + $0x70] sm:$0xff] }
 0x4ff   :  { %v2156_v59 = vpop.permute.xlu0 %2155  ;;  %v2158_v63 = vpop.permute.xlu1 %2157 }
 0x500   :  { %v2348_v11 = vsel %vm1033_vm9, %v2327_v17, %v2156_v59  ;;  %v2349_v27 = vsel %vm1033_vm9, %v2328_v24, %v2158_v63  ;;  %v8067_v17 = vld [vmem:[#allocation55_spill] sm:$0xff]  ;;  %v8078_v63 = vld [vmem:[#allocation36_spill] sm:$0xff]  ;;  %v8082_v24 = vld [vmem:[#allocation78_spill] sm:$0xff] }
 0x501   :  { %3808 = vmatmul.msk.f32.gmra.mxu1 %vm1062_vm8, %v2337_v1  ;;  %3819 = vmatmul.msk.f32.gmra.mxu3 %vm1062_vm8, %v2348_v11  ;;  %v2276_v59 = vsel %vm967_vm5, %v2255_v15, %v8067_v17  ;;  %v2160_v1 = vpop.permute.xlu2 %2159  ;;  %v8069_v11 = vld [vmem:[#allocation96_spill] sm:$0xff]  ;;  %v2246_v50 = vsel %vm923_vm3, %v2225_v23, %v8078_v63  ;;  %v2236_v15 = vsel %vm923_vm3, %v2215_v5, %v8088_v40  ;;  %v8091_v17 = vld [vmem:[#allocation94_spill] sm:$0xff]  ;;  %v8103_v63 = vld [vmem:[#allocation35_spill] sm:$0xff] }
 0x502   :  { %v2297_v31 = vsel %vm989_vm6, %v2276_v59, %v8069_v11  ;;  %v2350_v61 = vsel %vm1033_vm9, %v2329_v21, %v2160_v1  ;;  %v2267_v46 = vsel %vm945_vm4, %v2246_v50, %v8080_v9  ;;  %v1486_v1 = vld [vmem:[#allocation2 + $0x58] sm:$0xff]  ;;  %v8096_v21 = vld [vmem:[#allocation23_spill] sm:$0xff] }
 0x503   :  { %v2318_v37 = vsel %vm1011_vm7, %v2297_v31, %v8071_v58  ;;  %v2288_v34 = vsel %vm967_vm5, %v2267_v46, %v8082_v24  ;;  %v8093_v31 = vld [vmem:[#allocation38_spill] sm:$0xff]  ;;  %v8105_v9 = vld [vmem:[#allocation99_spill] sm:$0xff]  ;;  %v8106_v46 = vld [vmem:[#allocation113_spill] sm:$0xff] }
 0x504   :  { %v2339_v18 = vsel %vm1033_vm9, %v2318_v37, %v6493_v41  ;;  %v2235_v41 = vsel %vm923_vm3, %v2214_v35, %v8077_v54  ;;  %v2309_v42 = vsel %vm989_vm6, %v2288_v34, %v8084_v60  ;;  %v2195_v53 = vsel %vm879_vm1, %v1486_v1, %v8093_v31  ;;  %v8095_v37 = vld [vmem:[#allocation41_spill] sm:$0xff]  ;;  %v8107_v34 = vld [vmem:[#allocation39_spill] sm:$0xff]  ;;  %v8109_v60 = vld [vmem:[#allocation86_spill] sm:$0xff] }
 0x505   :  { %v2256_v8 = vsel %vm945_vm4, %v2235_v41, %v8079_v47  ;;  %v2330_v36 = vsel %vm1011_vm7, %v2309_v42, %v6423_v57  ;;  %v8089_v57 = vld [vmem:[#allocation63_spill] sm:$0xff]  ;;  %v2216_v58 = vsel %vm901_vm2, %v2195_v53, %v8094_v33  ;;  %v2196_v35 = vsel %vm879_vm1, %v1487_v2, %v8100_v44  ;;  %v8102_v54 = vld [vmem:[#allocation29_spill] sm:$0xff]  ;;  %v6781_v44 = vld [vmem:[%s7710_s5] ss:$0 sm:$0xff] }
 0x506   :  { %v2277_v48 = vsel %vm967_vm5, %v2256_v8, %v8081_v32  ;;  %v2257_v43 = vsel %vm945_vm4, %v2236_v15, %v8089_v57  ;;  %v2237_v52 = vsel %vm923_vm3, %v2216_v58, %v8095_v37  ;;  %v2217_v23 = vsel %vm901_vm2, %v2196_v35, %v8101_v30  ;;  %v8104_v47 = vld [vmem:[#allocation13_spill] sm:$0xff]  ;;  %v8114_v5 = vld [vmem:[#allocation79_spill] sm:$0xff]  ;;  %v8115_v15 = vld [vmem:[#allocation92_spill] sm:$0xff] }
 0x507   :  { %v2162_v13 = vpop.permute.xlu0 %2161  ;;  %v2258_v22 = vsel %vm945_vm4, %v2237_v52, %v8096_v21  ;;  %v2238_v41 = vsel %vm923_vm3, %v2217_v23, %v8102_v54  ;;  %v2198_v40 = vsel %vm879_vm1, %v1489_v16, %v8114_v5  ;;  %v8120_v1 = vld [vmem:[#allocation115_spill] sm:$0xff]  ;;  %v1490_v31 = vld [vmem:[#allocation2 + $0x78] sm:$0xff]  ;;  %v8122_v37 = vld [vmem:[#allocation74_spill] sm:$0xff] }
 0x508   :  { %v2351_v56 = vsel %vm1033_vm9, %v2330_v36, %v2162_v13  ;;  %v2259_v50 = vsel %vm945_vm4, %v2238_v41, %v8103_v63  ;;  %v8111_v36 = vld [vmem:[#allocation42_spill] sm:$0xff]  ;;  %v2219_v57 = vsel %vm901_vm2, %v2198_v40, %v8115_v15  ;;  %v8121_v33 = vld [vmem:[#allocation65_spill] sm:$0xff]  ;;  %v8128_v63 = vld [vmem:[#allocation56_spill] sm:$0xff] }
 0x509   :  { %3809 = vmatmul.msk.f32.gmra.mxu1 %vm1062_vm8, %v2338_v49  ;;  %3820 = vmatmul.msk.f32.gmra.mxu3 %vm1062_vm8, %v2349_v27  ;;  %v8083_v49 = vld [vmem:[#allocation97_spill] sm:$0xff]  ;;  %v2280_v8 = vsel %vm967_vm5, %v2259_v50, %v8104_v47  ;;  %v2199_v58 = vsel %vm879_vm1, %v1490_v31, %v8121_v33  ;;  %v8123_v21 = vld [vmem:[#allocation82_spill] sm:$0xff]  ;;  %v8134_v31 = vld [vmem:[#allocation88_spill] sm:$0xff] }
 0x50a   :  { %v2298_v27 = vsel %vm989_vm6, %v2277_v48, %v8083_v49  ;;  %v1488_v48 = vld [vmem:[#allocation2 + $0x68] sm:$0xff]  ;;  %v8108_v49 = vld [vmem:[#allocation34_spill] sm:$0xff]  ;;  %v2220_v52 = vsel %vm901_vm2, %v2199_v58, %v8122_v37 }
 0x50b   :  { %v2319_v14 = vsel %vm1011_vm7, %v2298_v27, %v8085_v7  ;;  %v2197_v13 = vsel %vm879_vm1, %v1488_v48, %v8107_v34  ;;  %v8110_v7 = vld [vmem:[#allocation77_spill] sm:$0xff]  ;;  %v6787_v30 = vld [vmem:[%s7711_s6] ss:$0 sm:$0xff] }
 0x50c   :  { %v2340_v62 = vsel %vm1033_vm9, %v2319_v14, %v6495_v51  ;;  %v2278_v51 = vsel %vm967_vm5, %v2257_v43, %v8090_v29  ;;  %v2218_v27 = vsel %vm901_vm2, %v2197_v13, %v8108_v49  ;;  %v8116_v43 = vld [vmem:[#allocation68_spill] sm:$0xff]  ;;  %v2639_v35 = vld [vmem:[#allocation3 + $0x1] sm:$0xff] }
 0x50d   :  { %v2299_v59 = vsel %vm989_vm6, %v2278_v51, %v8091_v17  ;;  %v2239_v42 = vsel %vm923_vm3, %v2218_v27, %v8109_v60  ;;  %v2240_v29 = vsel %vm923_vm3, %v2219_v57, %v8116_v43  ;;  %v8117_v51 = vld [vmem:[#allocation62_spill] sm:$0xff]  ;;  %2752 = vrot.lane.b32.xlu1 %v2639_v35, %s3883_s15  ;;  %v8130_v27 = vld [vmem:[#allocation44_spill] sm:$0xff] }
 0x50e   :  { %v2320_v12 = vsel %vm1011_vm7, %v2299_v59, %v8092_v39  ;;  %v2260_v14 = vsel %vm945_vm4, %v2239_v42, %v8110_v7  ;;  %v2261_v17 = vsel %vm945_vm4, %v2240_v29, %v8117_v51  ;;  %v8118_v59 = vld [vmem:[#allocation37_spill] sm:$0xff]  ;;  %v8132_v29 = vld [vmem:[#allocation67_spill] sm:$0xff]  ;;  %v8136_v35 = vld [vmem:[#allocation80_spill] sm:$0xff] }
 0x50f   :  { %v2341_v11 = vsel %vm1033_vm9, %v2320_v12, %v6443_v26  ;;  %v2281_v10 = vsel %vm967_vm5, %v2260_v14, %v8111_v36  ;;  %v2282_v39 = vsel %vm967_vm5, %v2261_v17, %v8118_v59  ;;  %v8119_v12 = vld [vmem:[#allocation101_spill] sm:$0xff]  ;;  %v8133_v17 = vld [vmem:[#allocation72_spill] sm:$0xff] }
 0x511   :  { %3810 = vmatmul.msk.f32.gmra.mxu1 %vm1062_vm8, %v2339_v18  ;;  %3821 = vmatmul.msk.f32.gmra.mxu3 %vm1062_vm8, %v2350_v61  ;;  %v2279_v18 = vsel %vm967_vm5, %v2258_v22, %v8097_v4  ;;  %v8098_v61 = vld [vmem:[#allocation98_spill] sm:$0xff]  ;;  %v2241_v22 = vsel %vm923_vm3, %v2220_v52, %v8123_v21  ;;  %v8124_v4 = vld [vmem:[#allocation76_spill] sm:$0xff] }
 0x512   :  { %v2300_v26 = vsel %vm989_vm6, %v2279_v18, %v8098_v61  ;;  %v2262_v18 = vsel %vm945_vm4, %v2241_v22, %v8124_v4  ;;  %v8125_v61 = vld [vmem:[#allocation50_spill] sm:$0xff]  ;;  %v8135_v4 = vld [vmem:[#allocation16_spill] sm:$0xff] }
 0x513   :  { %v2321_v45 = vsel %vm1011_vm7, %v2300_v26, %v8099_v3  ;;  %v2283_v26 = vsel %vm967_vm5, %v2262_v18, %v8125_v61  ;;  %v8126_v3 = vld [vmem:[#allocation102_spill] sm:$0xff] }
 0x514   :  { %v2342_v20 = vsel %vm1033_vm9, %v2321_v45, %v6517_v38  ;;  %v2301_v38 = vsel %vm989_vm6, %v2280_v8, %v8105_v9  ;;  %v8127_v45 = vld [vmem:[#allocation116_spill] sm:$0xff] }
 0x515   :  { %v2322_v32 = vsel %vm1011_vm7, %v2301_v38, %v8106_v46  ;;  %v8129_v46 = vld [vmem:[#allocation58_spill] sm:$0xff] }
 0x516   :  { %v2343_v24 = vsel %vm1033_vm9, %v2322_v32, %v6523_v25 }
 0x519   :  { %3811 = vmatmul.msk.f32.gmra.mxu1 %vm1062_vm8, %v2340_v62  ;;  %3822 = vmatmul.msk.f32.gmra.mxu3 %vm1062_vm8, %v2351_v56  ;;  %v8112_v62 = vld [vmem:[#allocation95_spill] sm:$0xff]  ;;  %v8113_v56 = vld [vmem:[#allocation109_spill] sm:$0xff] }
 0x51a   :  { %v2302_v25 = vsel %vm989_vm6, %v2281_v10, %v8112_v62  ;;  %v8131_v62 = vld [vmem:[#allocation71_spill] sm:$0xff] }
 0x51b   :  { %v2323_v55 = vsel %vm1011_vm7, %v2302_v25, %v8113_v56 }
 0x51c   :  { %v2344_v0 = vsel %vm1033_vm9, %v2323_v55, %v6463_v6  ;;  %v2303_v6 = vsel %vm989_vm6, %v2282_v39, %v8119_v12 }
 0x521   :  { %3812 = vmatmul.msk.f32.gmra.mxu1 %vm1062_vm8, %v2341_v11  ;;  %v2324_v11 = vsel %vm1011_vm7, %v2303_v6, %v8120_v1 }
 0x522   :  { %v2345_v53 = vsel %vm1033_vm9, %v2324_v11, %v6538_v28  ;;  %v2304_v28 = vsel %vm989_vm6, %v2283_v26, %v8126_v3 }
 0x523   :  { %v2325_v2 = vsel %vm1011_vm7, %v2304_v28, %v8127_v45 }
 0x529   :  { %3813 = vmatmul.msk.f32.gmra.mxu1 %vm1062_vm8, %v2342_v20  ;;  %v2346_v20 = vsel %vm1033_vm9, %v2325_v2, %v6554_v19 }
 0x531   :  { %3814 = vmatmul.msk.f32.gmra.mxu1 %vm1062_vm8, %v2343_v24 }
 0x539   :  { %3815 = vmatmul.msk.f32.gmra.mxu1 %vm1062_vm8, %v2344_v0 }
 0x541   :  { %3816 = vmatmul.msk.f32.gmra.mxu1 %vm1062_vm8, %v2345_v53 }
 0x549   :  { %3817 = vmatmul.msk.f32.gmra.mxu1 %vm1062_vm8, %v2346_v20 }
 0x54e   :  { %v2442_v23 = vpop.f32.mrf.mxu1 }
 0x54f   :  { %v2509_v54 = vmul.f32 %v6781_v44, %v2442_v23 }
 0x551   :  { %v2534_v19 = vadd.f32 %v6787_v30, %v2509_v54 }
 0x553   :  { %v2555_v41 = vmax.f32 %v2534_v19, 0.0 }
 0x555   :  { %v2576_v50 = vmul.f32 %v2555_v41, %v8128_v63  ;;  %v8137_v41 = vld [vmem:[#allocation84_spill] sm:$0xff] }
 0x556   :  { %v2445_v47 = vpop.f32.mrf.mxu1 }
 0x557   :  { %2597 = vst.msk [vmem:[#allocation3 + $0xa] sm:$0xff] %vm879_vm1, %v2576_v50  ;;  %v2510_v8 = vmul.f32 %v6781_v44, %v2445_v47 }
 0x559   :  { %v2535_v9 = vadd.f32 %v6787_v30, %v2510_v8 }
 0x55b   :  { %v2556_v38 = vmax.f32 %v2535_v9, 0.0 }
 0x55d   :  { %v2577_v32 = vmul.f32 %v2556_v38, %v8129_v46 }
 0x55e   :  { %v2448_v48 = vpop.f32.mrf.mxu1  ;;  %v6796_v24 = vld [vmem:[#allocation3 + $0x9] sm:$0xff] }
 0x55f   :  { %2598 = vst.msk [vmem:[#allocation3 + $0x12] sm:$0xff] %vm879_vm1, %v2577_v32  ;;  %v2511_v34 = vmul.f32 %v6781_v44, %v2448_v48  ;;  %2754 = vrot.lane.b32.xlu2 %v6796_v24, %s3883_s15  ;;  %v8138_v48 = vld [vmem:[#allocation70_spill] sm:$0xff] }
 0x561   :  { %v2536_v13 = vadd.f32 %v6787_v30, %v2511_v34 }
 0x563   :  { %v2557_v49 = vmax.f32 %v2536_v13, 0.0 }
 0x565   :  { %v2578_v60 = vmul.f32 %v2557_v49, %v8130_v27  ;;  %v8139_v27 = vld [vmem:[#allocation7_spill] sm:$0xff] }
 0x566   :  { %v2451_v42 = vpop.f32.mrf.mxu1  ;;  %v6804_v7 = vld [vmem:[#allocation3 + $0x11] sm:$0xff] }
 0x567   :  { %2599 = vst.msk [vmem:[#allocation3 + $0x1a] sm:$0xff] %vm879_vm1, %v2578_v60  ;;  %v2512_v14 = vmul.f32 %v6781_v44, %v2451_v42  ;;  %2756 = vrot.lane.b32.xlu0 %v6804_v7, %s3883_s15 }
 0x569   :  { %v2537_v36 = vadd.f32 %v6787_v30, %v2512_v14 }
 0x56b   :  { %v2558_v10 = vmax.f32 %v2537_v36, 0.0 }
 0x56d   :  { %v2579_v25 = vmul.f32 %v2558_v10, %v8131_v62  ;;  %v2490_v56 = vpop.f32.mrf.mxu3 }
 0x56e   :  { %v2525_v55 = vmul.f32 %v6781_v44, %v2490_v56  ;;  %v2454_v16 = vpop.f32.mrf.mxu1  ;;  %v6813_v0 = vld [vmem:[#allocation3 + $0x19] sm:$0xff] }
 0x56f   :  { %2600 = vst.msk [vmem:[#allocation3 + $0x22] sm:$0xff] %vm879_vm1, %v2579_v25  ;;  %v2513_v5 = vmul.f32 %v6781_v44, %v2454_v16  ;;  %2758 = vrot.lane.b32.xlu1 %v6813_v0, %s3883_s15 }
 0x570   :  { %v2550_v40 = vadd.f32 %v6787_v30, %v2525_v55  ;;  %v8140_v55 = vld [vmem:[#allocation83_spill] sm:$0xff] }
 0x571   :  { %v2538_v15 = vadd.f32 %v6787_v30, %v2513_v5 }
 0x572   :  { %v2571_v57 = vmax.f32 %v2550_v40, 0.0 }
 0x573   :  { %v2559_v43 = vmax.f32 %v2538_v15, 0.0  ;;  %v8141_v15 = vld [vmem:[#allocation19_spill] sm:$0xff] }
 0x574   :  { %v2592_v51 = vmul.f32 %v2571_v57, %v8132_v29 }
 0x575   :  { %v2580_v59 = vmul.f32 %v2559_v43, %v8133_v17 }
 0x576   :  { %2613 = vst.msk [vmem:[#allocation3 + $0x8a] sm:$0xff] %vm879_vm1, %v2592_v51  ;;  %v2457_v39 = vpop.f32.mrf.mxu1  ;;  %v6824_v12 = vld [vmem:[#allocation3 + $0x21] sm:$0xff] }
 0x577   :  { %2601 = vst.msk [vmem:[#allocation3 + $0x2a] sm:$0xff] %vm879_vm1, %v2580_v59  ;;  %v2514_v6 = vmul.f32 %v6781_v44, %v2457_v39  ;;  %2760 = vrot.lane.b32.xlu2 %v6824_v12, %s3883_s15 }
 0x579   :  { %v2539_v1 = vadd.f32 %v6787_v30, %v2514_v6 }
 0x57b   :  { %v2560_v11 = vmax.f32 %v2539_v1, 0.0  ;;  %v8142_v1 = vld [vmem:[#allocation15_spill] sm:$0xff] }
 0x57d   :  { %v2581_v53 = vmul.f32 %v2560_v11, %v8134_v31 }
 0x57e   :  { %v2460_v33 = vpop.f32.mrf.mxu1  ;;  %v6832_v58 = vld [vmem:[#allocation3 + $0x29] sm:$0xff] }
 0x57f   :  { %2602 = vst.msk [vmem:[#allocation3 + $0x32] sm:$0xff] %vm879_vm1, %v2581_v53  ;;  %v2515_v37 = vmul.f32 %v6781_v44, %v2460_v33  ;;  %2762 = vrot.lane.b32.xlu0 %v6832_v58, %s3883_s15  ;;  %v8143_v53 = vld [vmem:[#allocation28_spill] sm:$0xff] }
 0x581   :  { %v2540_v52 = vadd.f32 %v6787_v30, %v2515_v37 }
 0x583   :  { %v2561_v21 = vmax.f32 %v2540_v52, 0.0 }
 0x584   :  { %v2493_v22 = vpop.f32.mrf.mxu3 }
 0x585   :  { %v2582_v18 = vmul.f32 %v2561_v21, %v8135_v4  ;;  %v2526_v61 = vmul.f32 %v6781_v44, %v2493_v22 }
 0x586   :  { %v2463_v26 = vpop.f32.mrf.mxu1  ;;  %v6841_v3 = vld [vmem:[#allocation3 + $0x31] sm:$0xff] }
 0x587   :  { %2603 = vst.msk [vmem:[#allocation3 + $0x3a] sm:$0xff] %vm879_vm1, %v2582_v18  ;;  %v2551_v28 = vadd.f32 %v6787_v30, %v2526_v61  ;;  %v2516_v45 = vmul.f32 %v6781_v44, %v2463_v26  ;;  %2764 = vrot.lane.b32.xlu1 %v6841_v3, %s3883_s15  ;;  %v8144_v18 = vld [vmem:[#allocation40_spill] sm:$0xff] }
 0x589   :  { %v2572_v2 = vmax.f32 %v2551_v28, 0.0  ;;  %v2541_v20 = vadd.f32 %v6787_v30, %v2516_v45 }
 0x58b   :  { %v2593_v23 = vmul.f32 %v2572_v2, %v8136_v35  ;;  %v2562_v54 = vmax.f32 %v2541_v20, 0.0  ;;  %v8145_v35 = vld [vmem:[#allocation53_spill] sm:$0xff] }
 0x58c   :  { %v2496_v19 = vpop.f32.mrf.mxu3 }
 0x58d   :  { %2614 = vst.msk [vmem:[#allocation3 + $0x92] sm:$0xff] %vm879_vm1, %v2593_v23  ;;  %v2583_v63 = vmul.f32 %v2562_v54, %v8137_v41  ;;  %v2527_v50 = vmul.f32 %v6781_v44, %v2496_v19 }
 0x58e   :  { %v2466_v47 = vpop.f32.mrf.mxu1  ;;  %v6853_v8 = vld [vmem:[#allocation3 + $0x39] sm:$0xff] }
 0x58f   :  { %2604 = vst.msk [vmem:[#allocation3 + $0x42] sm:$0xff] %vm879_vm1, %v2583_v63  ;;  %v2552_v9 = vadd.f32 %v6787_v30, %v2527_v50  ;;  %v2517_v38 = vmul.f32 %v6781_v44, %v2466_v47  ;;  %2766 = vrot.lane.b32.xlu2 %v6853_v8, %s3883_s15  ;;  %v8146_v47 = vld [vmem:[#allocation31_spill] sm:$0xff] }
 0x591   :  { %v2573_v46 = vmax.f32 %v2552_v9, 0.0  ;;  %v2542_v32 = vadd.f32 %v6787_v30, %v2517_v38 }
 0x593   :  { %v2594_v34 = vmul.f32 %v2573_v46, %v8138_v48  ;;  %v2563_v13 = vmax.f32 %v2542_v32, 0.0 }
 0x594   :  { %v2499_v49 = vpop.f32.mrf.mxu3 }
 0x595   :  { %2615 = vst.msk [vmem:[#allocation3 + $0x9a] sm:$0xff] %vm879_vm1, %v2594_v34  ;;  %v2584_v60 = vmul.f32 %v2563_v13, %v8139_v27  ;;  %v2528_v42 = vmul.f32 %v6781_v44, %v2499_v49  ;;  %v8147_v13 = vld [vmem:[#allocation43_spill] sm:$0xff] }
 0x596   :  { %v2469_v14 = vpop.f32.mrf.mxu1  ;;  %v6865_v36 = vld [vmem:[#allocation3 + $0x41] sm:$0xff] }
 0x597   :  { %2605 = vst.msk [vmem:[#allocation3 + $0x4a] sm:$0xff] %vm879_vm1, %v2584_v60  ;;  %v2553_v10 = vadd.f32 %v6787_v30, %v2528_v42  ;;  %v2518_v62 = vmul.f32 %v6781_v44, %v2469_v14  ;;  %2768 = vrot.lane.b32.xlu0 %v6865_v36, %s3883_s15 }
 0x599   :  { %v2574_v25 = vmax.f32 %v2553_v10, 0.0  ;;  %v2543_v56 = vadd.f32 %v6787_v30, %v2518_v62  ;;  %v8148_v62 = vld [vmem:[#allocation57_spill] sm:$0xff] }
 0x59b   :  { %v2595_v16 = vmul.f32 %v2574_v25, %v8140_v55  ;;  %v2564_v5 = vmax.f32 %v2543_v56, 0.0 }
 0x59c   :  { %v2502_v40 = vpop.f32.mrf.mxu3 }
 0x59d   :  { %2616 = vst.msk [vmem:[#allocation3 + $0xa2] sm:$0xff] %vm879_vm1, %v2595_v16  ;;  %v2585_v57 = vmul.f32 %v2564_v5, %v8141_v15  ;;  %v2529_v43 = vmul.f32 %v6781_v44, %v2502_v40  ;;  %v6945_v5 = vld [vmem:[#allocation3 + $0x99] sm:$0xff]  ;;  %v6951_v15 = vld [vmem:[#allocation3 + $0xa] sm:$0xff] }
 0x59e   :  { %v2472_v29 = vpop.f32.mrf.mxu1  ;;  %v6877_v51 = vld [vmem:[#allocation3 + $0x49] sm:$0xff] }
 0x59f   :  { %2606 = vst.msk [vmem:[#allocation3 + $0x52] sm:$0xff] %vm879_vm1, %v2585_v57  ;;  %v2554_v17 = vadd.f32 %v6787_v30, %v2529_v43  ;;  %v2519_v59 = vmul.f32 %v6781_v44, %v2472_v29  ;;  %2770 = vrot.lane.b32.xlu1 %v6877_v51, %s3883_s15  ;;  %v6953_v57 = vld [vmem:[#allocation3 + $0x12] sm:$0xff]  ;;  %v6955_v43 = vld [vmem:[#allocation3 + $0x1a] sm:$0xff]  ;;  %v6963_v29 = vld [vmem:[#allocation3 + $0x22] sm:$0xff] }
 0x5a1   :  { %v2575_v39 = vmax.f32 %v2554_v17, 0.0  ;;  %v2544_v6 = vadd.f32 %v6787_v30, %v2519_v59  ;;  %v6965_v17 = vld [vmem:[#allocation3 + $0x2a] sm:$0xff]  ;;  %v6967_v59 = vld [vmem:[#allocation3 + $0x32] sm:$0xff] }
 0x5a3   :  { %v2596_v11 = vmul.f32 %v2575_v39, %v8142_v1  ;;  %v2565_v31 = vmax.f32 %v2544_v6, 0.0  ;;  %v6975_v39 = vld [vmem:[#allocation3 + $0x3a] sm:$0xff]  ;;  %v6977_v6 = vld [vmem:[#allocation3 + $0x42] sm:$0xff]  ;;  %v6979_v1 = vld [vmem:[#allocation3 + $0x4a] sm:$0xff] }
 0x5a4   :  { %v2659_v40 = vld [vmem:[#allocation3 + $0xa1] sm:$0x3] }
 0x5a5   :  { %2617 = vst.msk [vmem:[#allocation3 + $0xaa] sm:$0x3] %vm1473_vm10, %v2596_v11  ;;  %v2586_v33 = vmul.f32 %v2565_v31, %v8143_v53 }
 0x5a6   :  { %v2475_v37 = vpop.f32.mrf.mxu1  ;;  %v6888_v52 = vld [vmem:[#allocation3 + $0x51] sm:$0xff] }
 0x5a7   :  { %2607 = vst.msk [vmem:[#allocation3 + $0x5a] sm:$0xff] %vm879_vm1, %v2586_v33  ;;  %v2520_v21 = vmul.f32 %v6781_v44, %v2475_v37  ;;  %2772 = vrot.lane.b32.xlu2 %v6888_v52, %s3883_s15  ;;  %v6987_v11 = vld [vmem:[#allocation3 + $0x52] sm:$0xff] }
 0x5a9   :  { %v2545_v22 = vadd.f32 %v6787_v30, %v2520_v21 }
 0x5ab   :  { %v2566_v4 = vmax.f32 %v2545_v22, 0.0 }
 0x5ad   :  { %v2587_v61 = vmul.f32 %v2566_v4, %v8144_v18  ;;  %v7015_v18 = vld [vmem:[#allocation3 + $0x8a] sm:$0xff] }
 0x5ae   :  { %v2478_v26 = vpop.f32.mrf.mxu1  ;;  %v6896_v28 = vld [vmem:[#allocation3 + $0x59] sm:$0xff] }
 0x5af   :  { %2608 = vst.msk [vmem:[#allocation3 + $0x62] sm:$0xff] %vm879_vm1, %v2587_v61  ;;  %v2521_v45 = vmul.f32 %v6781_v44, %v2478_v26  ;;  %2774 = vrot.lane.b32.xlu0 %v6896_v28, %s3883_s15  ;;  %v6989_v31 = vld [vmem:[#allocation3 + $0x5a] sm:$0xff]  ;;  %v7017_v61 = vld [vmem:[#allocation3 + $0x92] sm:$0xff] }
 0x5b1   :  { %v2546_v2 = vadd.f32 %v6787_v30, %v2521_v45  ;;  %v7027_v45 = vld [vmem:[#allocation3 + $0x9a] sm:$0xff] }
 0x5b3   :  { %v2567_v20 = vmax.f32 %v2546_v2, 0.0  ;;  %v2680_v2 = vld [vmem:[#allocation3 + $0xa2] sm:$0x3] }
 0x5b5   :  { %v2588_v23 = vmul.f32 %v2567_v20, %v8145_v35  ;;  %v7029_v20 = vpop.permute.xlu1 %2752 }
 0x5b6   :  { %v2481_v54 = vpop.f32.mrf.mxu1  ;;  %v6904_v19 = vld [vmem:[#allocation3 + $0x61] sm:$0xff] }
 0x5b7   :  { %2609 = vst.msk [vmem:[#allocation3 + $0x6a] sm:$0xff] %vm879_vm1, %v2588_v23  ;;  %v2522_v41 = vmul.f32 %v6781_v44, %v2481_v54  ;;  %2776 = vrot.lane.b32.xlu1 %v6904_v19, %s3883_s15  ;;  %v6991_v53 = vld [vmem:[#allocation3 + $0x62] sm:$0xff] }
 0x5b9   :  { %v2547_v63 = vadd.f32 %v6787_v30, %v2522_v41  ;;  %v7011_v22 = vpop.permute.xlu2 %2754 }
 0x5bb   :  { %v2568_v50 = vmax.f32 %v2547_v63, 0.0 }
 0x5bd   :  { %v2589_v9 = vmul.f32 %v2568_v50, %v8146_v47 }
 0x5be   :  { %v2484_v38 = vpop.f32.mrf.mxu1  ;;  %v6912_v46 = vld [vmem:[#allocation3 + $0x69] sm:$0xff] }
 0x5bf   :  { %2610 = vst.msk [vmem:[#allocation3 + $0x72] sm:$0xff] %vm879_vm1, %v2589_v9  ;;  %v2523_v32 = vmul.f32 %v6781_v44, %v2484_v38  ;;  %2778 = vrot.lane.b32.xlu2 %v6912_v46, %s3883_s15  ;;  %v6999_v33 = vld [vmem:[#allocation3 + $0x6a] sm:$0xff]  ;;  %v2681_v9 = vld [vmem:[#allocation3 + $0xa1] sm:$0xff] }
 0x5c0   :  { %v2682_v38 = vld [vmem:[#allocation3 + $0xa9] sm:$0x3] }
 0x5c1   :  { %v2548_v48 = vadd.f32 %v6787_v30, %v2523_v32 }
 0x5c3   :  { %v2569_v34 = vmax.f32 %v2548_v48, 0.0 }
 0x5c5   :  { %v2590_v49 = vmul.f32 %v2569_v34, %v8147_v13 }
 0x5c6   :  { %v2487_v27 = vpop.f32.mrf.mxu1  ;;  %v6920_v60 = vld [vmem:[#allocation3 + $0x71] sm:$0xff] }
 0x5c7   :  { %2611 = vst.msk [vmem:[#allocation3 + $0x7a] sm:$0xff] %vm879_vm1, %v2590_v49  ;;  %v2524_v42 = vmul.f32 %v6781_v44, %v2487_v27  ;;  %2780 = vrot.lane.b32.xlu0 %v6920_v60, %s3883_s15  ;;  %v6941_v44 = vld [vmem:[#allocation3 + $0x91] sm:$0xff] }
 0x5c8   :  { %v7001_v37 = vld [vmem:[#allocation3 + $0x72] sm:$0xff] }
 0x5c9   :  { %v2549_v14 = vadd.f32 %v6787_v30, %v2524_v42  ;;  %v2660_v30 = vld [vmem:[#allocation3 + $0x2] sm:$0xff] }
 0x5cb   :  { %v2570_v10 = vmax.f32 %v2549_v14, 0.0  ;;  %v2685_v14 = vld [vmem:[#allocation3 + $0xb] sm:$0xff] }
 0x5cd   :  { %v2591_v25 = vmul.f32 %v2570_v10, %v8148_v62  ;;  %v2686_v10 = vld [vmem:[#allocation3 + $0x13] sm:$0xff] }
 0x5ce   :  { %v6928_v56 = vld [vmem:[#allocation3 + $0x79] sm:$0xff] }
 0x5cf   :  { %2612 = vst.msk [vmem:[#allocation3 + $0x82] sm:$0xff] %vm879_vm1, %v2591_v25  ;;  %2782 = vrot.lane.b32.xlu1 %v6928_v56, %s3883_s15  ;;  %v7003_v21 = vld [vmem:[#allocation3 + $0x7a] sm:$0xff] }
 0x5d0   :  { %8149 = vst [vmem:[#allocation32_spill] sm:$0xff] %v7003_v21 }
 0x5d1   :  { %v7025_v26 = vpop.permute.xlu2 %2760 }
 0x5d6   :  { %v6933_v55 = vld [vmem:[#allocation3 + $0x81] sm:$0xff]  ;;  %v6935_v16 = vld [vmem:[#allocation3 + $0x89] sm:$0xff] }
 0x5d7   :  { %2784 = vrot.lane.b32.xlu2 %v6933_v55, %s3883_s15  ;;  %2786 = vrot.lane.b32.xlu0 %v6935_v16, %s3883_s15  ;;  %v7013_v4 = vld [vmem:[#allocation3 + $0x82] sm:$0xff] }
 0x5d8   :  { %2788 = vrot.lane.b32.xlu1 %v6941_v44, %s3883_s15  ;;  %8150 = vst [vmem:[#allocation73_spill] sm:$0xff] %v7013_v4 }
 0x5d9   :  { %v7042_v23 = vpop.permute.xlu0 %2756 }
 0x5df   :  { %2790 = vrot.lane.b32.xlu2 %v6945_v5, %s3883_s15  ;;  %2792 = vrot.lane.b32.xlu0 %v2659_v40, %s3883_s15  ;;  %v2711_v40 = vld [vmem:[#allocation3 + $0x1c] sm:$0xff] }
 0x5e0   :  { %2836 = vrot.lane.b32.xlu1 %v2660_v30, %s3884_s18 }
 0x5e1   :  { %v7046_v54 = vpop.permute.xlu1 %2758 }
 0x5e7   :  { %2838 = vrot.lane.b32.xlu2 %v6951_v15, %s3884_s18  ;;  %2840 = vrot.lane.b32.xlu0 %v6953_v57, %s3884_s18 }
 0x5e8   :  { %2842 = vrot.lane.b32.xlu1 %v6955_v43, %s3884_s18 }
 0x5e9   :  { %v7036_v35 = vpop.permute.xlu2 %2766 }
 0x5ef   :  { %2844 = vrot.lane.b32.xlu2 %v6963_v29, %s3884_s18  ;;  %2846 = vrot.lane.b32.xlu0 %v6965_v17, %s3884_s18 }
 0x5f0   :  { %2848 = vrot.lane.b32.xlu1 %v6967_v59, %s3884_s18 }
 0x5f7   :  { %2850 = vrot.lane.b32.xlu2 %v6975_v39, %s3884_s18  ;;  %2852 = vrot.lane.b32.xlu0 %v6977_v6, %s3884_s18 }
 0x5f8   :  { %2854 = vrot.lane.b32.xlu1 %v6979_v1, %s3884_s18 }
 0x5ff   :  { %2856 = vrot.lane.b32.xlu2 %v6987_v11, %s3884_s18  ;;  %2858 = vrot.lane.b32.xlu0 %v6989_v31, %s3884_s18 }
 0x600   :  { %2860 = vrot.lane.b32.xlu1 %v6991_v53, %s3884_s18 }
 0x601   :  { %v7048_v41 = vpop.permute.xlu2 %2772 }
 0x607   :  { %2862 = vrot.lane.b32.xlu2 %v6999_v33, %s3884_s18  ;;  %2864 = vrot.lane.b32.xlu0 %v7001_v37, %s3884_s18 }
 0x608   :  { %2866 = vrot.lane.b32.xlu1 %v7003_v21, %s3884_s18  ;;  %v2628_v21 = vld [vmem:[#allocation3 + $0x50] sm:$0xff] }
 0x60f   :  { %2868 = vrot.lane.b32.xlu2 %v7013_v4, %s3884_s18  ;;  %2870 = vrot.lane.b32.xlu0 %v7015_v18, %s3884_s18  ;;  %v2712_v4 = vld [vmem:[#allocation3 + $0x24] sm:$0xff] }
 0x610   :  { %2872 = vrot.lane.b32.xlu1 %v7017_v61, %s3884_s18 }
 0x617   :  { %2874 = vrot.lane.b32.xlu2 %v7027_v45, %s3884_s18  ;;  %2876 = vrot.lane.b32.xlu0 %v2680_v2, %s3884_s18 }
 0x618   :  { %2901 = vrot.lane.b32.xlu1 %v6796_v24, %s3885_s23  ;;  %v7054_v24 = vpop.permute.xlu0 %2762 }
 0x61f   :  { %2903 = vrot.lane.b32.xlu2 %v6804_v7, %s3885_s23  ;;  %2905 = vrot.lane.b32.xlu0 %v6813_v0, %s3885_s23  ;;  %v7058_v7 = vpop.permute.xlu1 %2764  ;;  %v7060_v0 = vpop.permute.xlu2 %2778 }
 0x620   :  { %2907 = vrot.lane.b32.xlu1 %v6824_v12, %s3885_s23  ;;  %v7066_v12 = vpop.permute.xlu0 %2768 }
 0x627   :  { %2909 = vrot.lane.b32.xlu2 %v6832_v58, %s3885_s23  ;;  %2911 = vrot.lane.b32.xlu0 %v6841_v3, %s3885_s23  ;;  %v7070_v58 = vpop.permute.xlu1 %2770 }
 0x628   :  { %2913 = vrot.lane.b32.xlu1 %v6853_v8, %s3885_s23  ;;  %v7078_v8 = vpop.permute.xlu0 %2774 }
 0x62f   :  { %2915 = vrot.lane.b32.xlu2 %v6865_v36, %s3885_s23  ;;  %2917 = vrot.lane.b32.xlu0 %v6877_v51, %s3885_s23  ;;  %v7082_v36 = vpop.permute.xlu1 %2776 }
 0x630   :  { %2919 = vrot.lane.b32.xlu1 %v6888_v52, %s3885_s23 }
 0x631   :  { %v7072_v3 = vpop.permute.xlu2 %2784 }
 0x637   :  { %2921 = vrot.lane.b32.xlu2 %v6896_v28, %s3885_s23  ;;  %2923 = vrot.lane.b32.xlu0 %v6904_v19, %s3885_s23 }
 0x638   :  { %2925 = vrot.lane.b32.xlu1 %v6912_v46, %s3885_s23 }
 0x639   :  { %v7084_v51 = vpop.permute.xlu2 %2790  ;;  %v7090_v52 = vpop.permute.xlu0 %2780 }
 0x63f   :  { %2927 = vrot.lane.b32.xlu2 %v6920_v60, %s3885_s23  ;;  %2929 = vrot.lane.b32.xlu0 %v6928_v56, %s3885_s23 }
 0x640   :  { %2931 = vrot.lane.b32.xlu1 %v6933_v55, %s3885_s23  ;;  %v2710_v55 = vld [vmem:[#allocation3 + $0x14] sm:$0xff] }
 0x641   :  { %v7094_v28 = vpop.permute.xlu1 %2782  ;;  %v2839_v19 = vpop.permute.xlu2 %2838 }
 0x647   :  { %2933 = vrot.lane.b32.xlu2 %v6935_v16, %s3885_s23  ;;  %2935 = vrot.lane.b32.xlu0 %v6941_v44, %s3885_s23 }
 0x648   :  { %2937 = vrot.lane.b32.xlu1 %v6945_v5, %s3885_s23  ;;  %v2687_v5 = vld [vmem:[#allocation3 + $0x1b] sm:$0xff] }
 0x649   :  { %v7102_v63 = vpop.permute.xlu0 %2786  ;;  %v2845_v50 = vpop.permute.xlu2 %2844 }
 0x64a   :  { %v7104_v47 = vpop.permute.xlu1 %2788 }
 0x64f   :  { %2939 = vrot.lane.b32.xlu2 %v2681_v9, %s3885_s23  ;;  %2941 = vrot.lane.b32.xlu0 %v2682_v38, %s3885_s23 }
 0x650   :  { %2966 = vrot.lane.b32.xlu1 %v6951_v15, %s3886_s30  ;;  %v2619_v15 = vld [vmem:[#allocation3 + $0x8] sm:$0xff] }
 0x651   :  { %v7110_v46 = vpop.permute.xlu2 %2850  ;;  %v7112_v32 = vpop.permute.xlu0 %2792 }
 0x652   :  { %v7114_v48 = vpop.permute.xlu1 %2836 }
 0x657   :  { %2968 = vrot.lane.b32.xlu2 %v6953_v57, %s3886_s30  ;;  %2970 = vrot.lane.b32.xlu0 %v6955_v43, %s3886_s30 }
 0x658   :  { %2972 = vrot.lane.b32.xlu1 %v6963_v29, %s3886_s30 }
 0x659   :  { %v7122_v34 = vpop.permute.xlu2 %2856  ;;  %v7124_v13 = vpop.permute.xlu0 %2840 }
 0x65a   :  { %v7126_v49 = vpop.permute.xlu1 %2842 }
 0x65f   :  { %2974 = vrot.lane.b32.xlu2 %v6965_v17, %s3886_s30  ;;  %2976 = vrot.lane.b32.xlu0 %v6967_v59, %s3886_s30 }
 0x660   :  { %2978 = vrot.lane.b32.xlu1 %v6975_v39, %s3886_s30 }
 0x661   :  { %v7134_v27 = vpop.permute.xlu2 %2862  ;;  %v7136_v60 = vpop.permute.xlu0 %2846 }
 0x662   :  { %v7138_v42 = vpop.permute.xlu1 %2848 }
 0x667   :  { %3050 = vrot.lane.b32.xlu2 %v2685_v14, %s3887_s20  ;;  %3115 = vrot.lane.b32.xlu0 %v6953_v57, %s3888_s26  ;;  %v3328_v57 = vsel %vm879_vm1, %v2619_v15, %v7011_v22 }
 0x668   :  { %3180 = vrot.lane.b32.xlu1 %v2686_v10, %s3889_s19 }
 0x669   :  { %v7144_v62 = vpop.permute.xlu2 %2868  ;;  %v7146_v25 = vpop.permute.xlu0 %2852 }
 0x66a   :  { %v7148_v56 = vpop.permute.xlu1 %2854 }
 0x66f   :  { %3264 = vrot.lane.b32.xlu2 %v2710_v55, %s3890_s21  ;;  %3052 = vrot.lane.b32.xlu0 %v2686_v10, %s3887_s20  ;;  %v2688_v10 = vld [vmem:[#allocation3 + $0x23] sm:$0xff] }
 0x670   :  { %3117 = vrot.lane.b32.xlu1 %v6955_v43, %s3888_s26  ;;  %v3349_v43 = vsel %vm901_vm2, %v3328_v57, %v2839_v19  ;;  %v2622_v55 = vld [vmem:[#allocation3 + $0x20] sm:$0xff] }
 0x671   :  { %v7154_v16 = vpop.permute.xlu2 %2874  ;;  %v7156_v44 = vpop.permute.xlu0 %2858  ;;  %v3331_v22 = vsel %vm879_vm1, %v2622_v55, %v7025_v26 }
 0x672   :  { %v7158_v30 = vpop.permute.xlu1 %2860  ;;  %v3352_v19 = vsel %vm901_vm2, %v3331_v22, %v2845_v50 }
 0x677   :  { %3182 = vrot.lane.b32.xlu2 %v2687_v5, %s3889_s19  ;;  %3266 = vrot.lane.b32.xlu0 %v2711_v40, %s3890_s21 }
 0x678   :  { %3054 = vrot.lane.b32.xlu1 %v2687_v5, %s3887_s20 }
 0x679   :  { %v2904_v2 = vpop.permute.xlu2 %2903  ;;  %v7166_v9 = vpop.permute.xlu0 %2864 }
 0x67a   :  { %v7168_v38 = vpop.permute.xlu1 %2866  ;;  %v7171_v14 = vsel %vm923_vm3, %v3349_v43, %v2904_v2  ;;  %v2618_v43 = vld [vmem:[#allocation3] sm:$0xff]  ;;  %v2625_v2 = vld [vmem:[#allocation3 + $0x38] sm:$0xff] }
 0x67b   :  { %v3327_v26 = vsel %vm879_vm1, %v2618_v43, %v7029_v20 }
 0x67f   :  { %3119 = vrot.lane.b32.xlu2 %v6963_v29, %s3888_s26  ;;  %3184 = vrot.lane.b32.xlu0 %v2688_v10, %s3889_s19  ;;  %v2689_v29 = vld [vmem:[#allocation3 + $0x2b] sm:$0xff] }
 0x680   :  { %3268 = vrot.lane.b32.xlu1 %v2712_v4, %s3890_s21  ;;  %v3334_v4 = vsel %vm879_vm1, %v2625_v2, %v7036_v35  ;;  %v2620_v2 = vld [vmem:[#allocation3 + $0x10] sm:$0xff] }
 0x681   :  { %v2910_v5 = vpop.permute.xlu2 %2909  ;;  %v7180_v40 = vpop.permute.xlu0 %2870  ;;  %v3355_v50 = vsel %vm901_vm2, %v3334_v4, %v7110_v46  ;;  %v3329_v20 = vsel %vm879_vm1, %v2620_v2, %v7042_v23  ;;  %v2621_v46 = vld [vmem:[#allocation3 + $0x18] sm:$0xff] }
 0x682   :  { %v7182_v15 = vpop.permute.xlu1 %2872  ;;  %v7185_v57 = vsel %vm923_vm3, %v3352_v19, %v2910_v5  ;;  %v2713_v5 = vld [vmem:[#allocation3 + $0x2c] sm:$0xff]  ;;  %v3330_v43 = vsel %vm879_vm1, %v2621_v46, %v7046_v54 }
 0x683   :  { %v3351_v23 = vsel %vm901_vm2, %v3330_v43, %v7126_v49  ;;  %v2624_v49 = vld [vmem:[#allocation3 + $0x30] sm:$0xff] }
 0x684   :  { %v3333_v2 = vsel %vm879_vm1, %v2624_v49, %v7058_v7 }
 0x687   :  { %3056 = vrot.lane.b32.xlu2 %v2688_v10, %s3887_s20  ;;  %3121 = vrot.lane.b32.xlu0 %v6965_v17, %s3888_s26  ;;  %v3348_v10 = vsel %vm901_vm2, %v3327_v26, %v7114_v48  ;;  %v3337_v48 = vsel %vm879_vm1, %v2628_v21, %v7048_v41  ;;  %v3350_v26 = vsel %vm901_vm2, %v3329_v20, %v7124_v13  ;;  %v2690_v41 = vld [vmem:[#allocation3 + $0x33] sm:$0xff] }
 0x688   :  { %3186 = vrot.lane.b32.xlu1 %v2689_v29, %s3889_s19  ;;  %v3358_v4 = vsel %vm901_vm2, %v3337_v48, %v7122_v34  ;;  %v2714_v34 = vld [vmem:[#allocation3 + $0x34] sm:$0xff] }
 0x689   :  { %v2916_v55 = vpop.permute.xlu2 %2915  ;;  %v7197_v22 = vpop.permute.xlu0 %2876 }
 0x68a   :  { %v2902_v19 = vpop.permute.xlu1 %2901  ;;  %v7202_v17 = vsel %vm923_vm3, %v3355_v50, %v2916_v55 }
 0x68b   :  { %v7205_v35 = vsel %vm923_vm3, %v3348_v10, %v2902_v19  ;;  %v2623_v10 = vld [vmem:[#allocation3 + $0x28] sm:$0xff] }
 0x68c   :  { %v2631_v19 = vld [vmem:[#allocation3 + $0x68] sm:$0xff]  ;;  %v3332_v13 = vsel %vm879_vm1, %v2623_v10, %v7054_v24  ;;  %v3354_v24 = vsel %vm901_vm2, %v3333_v2, %v7138_v42 }
 0x68d   :  { %v3353_v46 = vsel %vm901_vm2, %v3332_v13, %v7136_v60  ;;  %v2627_v42 = vld [vmem:[#allocation3 + $0x48] sm:$0xff] }
 0x68e   :  { %v2692_v2 = vld [vmem:[#allocation3 + $0x43] sm:$0xff] }
 0x68f   :  { %3270 = vrot.lane.b32.xlu2 %v2713_v5, %s3890_s21  ;;  %3058 = vrot.lane.b32.xlu0 %v2689_v29, %s3887_s20  ;;  %v3340_v5 = vsel %vm879_vm1, %v2631_v19, %v7060_v0 }
 0x690   :  { %3123 = vrot.lane.b32.xlu1 %v6967_v59, %s3888_s26  ;;  %v3361_v20 = vsel %vm901_vm2, %v3340_v5, %v7134_v27  ;;  %v2626_v27 = vld [vmem:[#allocation3 + $0x40] sm:$0xff]  ;;  %v2629_v5 = vld [vmem:[#allocation3 + $0x58] sm:$0xff] }
 0x691   :  { %v2922_v29 = vpop.permute.xlu2 %2921  ;;  %v2906_v50 = vpop.permute.xlu0 %2905  ;;  %v3335_v60 = vsel %vm879_vm1, %v2626_v27, %v7066_v12 }
 0x692   :  { %v2908_v55 = vpop.permute.xlu1 %2907  ;;  %v7224_v21 = vsel %vm923_vm3, %v3358_v4, %v2922_v29  ;;  %v7227_v59 = vsel %vm923_vm3, %v3350_v26, %v2906_v50  ;;  %v2691_v29 = vld [vmem:[#allocation3 + $0x3b] sm:$0xff] }
 0x693   :  { %v7230_v54 = vsel %vm923_vm3, %v3351_v23, %v2908_v55  ;;  %v2634_v50 = vld [vmem:[#allocation3 + $0x80] sm:$0xff] }
 0x694   :  { %v2715_v23 = vld [vmem:[#allocation3 + $0x3c] sm:$0xff]  ;;  %v3343_v55 = vsel %vm879_vm1, %v2634_v50, %v7072_v3  ;;  %v2716_v50 = vld [vmem:[#allocation3 + $0x44] sm:$0xff] }
 0x697   :  { %3188 = vrot.lane.b32.xlu2 %v2690_v41, %s3889_s19  ;;  %3272 = vrot.lane.b32.xlu0 %v2714_v34, %s3890_s21  ;;  %v3364_v34 = vsel %vm901_vm2, %v3343_v55, %v7144_v62  ;;  %v2637_v62 = vld [vmem:[#allocation3 + $0x98] sm:$0xff] }
 0x698   :  { %3060 = vrot.lane.b32.xlu1 %v2690_v41, %s3887_s20  ;;  %v3336_v41 = vsel %vm879_vm1, %v2627_v42, %v7070_v58 }
 0x699   :  { %v2928_v48 = vpop.permute.xlu2 %2927  ;;  %v2912_v43 = vpop.permute.xlu0 %2911  ;;  %v3357_v12 = vsel %vm901_vm2, %v3336_v41, %v7148_v56  ;;  %v2630_v56 = vld [vmem:[#allocation3 + $0x60] sm:$0xff] }
 0x69a   :  { %v2914_v4 = vpop.permute.xlu1 %2913  ;;  %v7248_v26 = vsel %vm923_vm3, %v3361_v20, %v2928_v48  ;;  %v7251_v0 = vsel %vm923_vm3, %v3353_v46, %v2912_v43  ;;  %v3346_v20 = vsel %vm879_vm1, %v2637_v62, %v7084_v51  ;;  %v3339_v46 = vsel %vm879_vm1, %v2630_v56, %v7082_v36  ;;  %v3497_v62 = vld [vmem:[%s7712_s7 + $0x10] sm:$0xff] }
 0x69b   :  { %v7254_v7 = vsel %vm923_vm3, %v3354_v24, %v2914_v4  ;;  %v3367_v48 = vsel %vm901_vm2, %v3346_v20, %v7154_v16  ;;  %v2632_v16 = vld [vmem:[#allocation3 + $0x70] sm:$0xff] }
 0x69f   :  { %3125 = vrot.lane.b32.xlu2 %v6975_v39, %s3888_s26  ;;  %3190 = vrot.lane.b32.xlu0 %v2691_v29, %s3889_s19  ;;  %v3356_v39 = vsel %vm901_vm2, %v3335_v60, %v7146_v25  ;;  %v3338_v25 = vsel %vm879_vm1, %v2629_v5, %v7078_v8  ;;  %v3360_v8 = vsel %vm901_vm2, %v3339_v46, %v7158_v30  ;;  %v2633_v30 = vld [vmem:[#allocation3 + $0x78] sm:$0xff]  ;;  %v2636_v5 = vld [vmem:[#allocation3 + $0x90] sm:$0xff] }
 0x6a0   :  { %3274 = vrot.lane.b32.xlu1 %v2715_v23, %s3890_s21  ;;  %v3359_v43 = vsel %vm901_vm2, %v3338_v25, %v7156_v44  ;;  %v3341_v44 = vsel %vm879_vm1, %v2632_v16, %v7090_v52  ;;  %v3501_v23 = vld [vmem:[%s7712_s7 + $0x30] sm:$0x3f]  ;;  %v3342_v60 = vsel %vm879_vm1, %v2633_v30, %v7094_v28  ;;  %v3500_v28 = vld [vmem:[%s7712_s7 + $0x28] sm:$0xff] }
 0x6a1   :  { %v2934_v10 = vpop.permute.xlu2 %2933  ;;  %v2918_v19 = vpop.permute.xlu0 %2917  ;;  %v3362_v42 = vsel %vm901_vm2, %v3341_v44, %v7166_v9  ;;  %3823 = vmatpush.msk.msra.mxu2 %vm1126_vm0, %v3501_v23  ;;  %3859 = vmatpush.msk.msra.mxu3 %vm1126_vm0, %v3501_v23  ;;  %v3499_v9 = vld [vmem:[%s7712_s7 + $0x20] sm:$0xff]  ;;  %v2694_v44 = vld [vmem:[#allocation3 + $0x53] sm:$0xff] }
 0x6a2   :  { %v2920_v13 = vpop.permute.xlu1 %2919  ;;  %v7273_v49 = vsel %vm923_vm3, %v3364_v34, %v2934_v10  ;;  %v7276_v3 = vsel %vm923_vm3, %v3356_v39, %v2918_v19  ;;  %v2693_v10 = vld [vmem:[#allocation3 + $0x4b] sm:$0xff] }
 0x6a3   :  { %v7279_v58 = vsel %vm923_vm3, %v3357_v12, %v2920_v13  ;;  %3578 = vmatpush.msra.mxu2 %v3500_v28  ;;  %3860 = vmatpush.msra.mxu3 %v3500_v28  ;;  %v2635_v19 = vld [vmem:[#allocation3 + $0x88] sm:$0xff] }
 0x6a4   :  { %v2717_v12 = vld [vmem:[#allocation3 + $0x4c] sm:$0xff]  ;;  %v3344_v13 = vsel %vm879_vm1, %v2635_v19, %v7102_v63 }
 0x6a5   :  { %3579 = vmatpush.msra.mxu2 %v3499_v9  ;;  %3861 = vmatpush.msra.mxu3 %v3499_v9  ;;  %v3365_v25 = vsel %vm901_vm2, %v3344_v13, %v7180_v40  ;;  %v3495_v40 = vld [vmem:[%s7712_s7] sm:$0xff] }
 0x6a6   :  { %v2720_v13 = vld [vmem:[#allocation3 + $0x64] sm:$0xff] }
 0x6a7   :  { %3062 = vrot.lane.b32.xlu2 %v2691_v29, %s3887_s20  ;;  %3127 = vrot.lane.b32.xlu0 %v6977_v6, %s3888_s26 }
 0x6a8   :  { %3192 = vrot.lane.b32.xlu1 %v2692_v2, %s3889_s19 }
 0x6a9   :  { %v2940_v24 = vpop.permute.xlu2 %2939  ;;  %v2924_v4 = vpop.permute.xlu0 %2923 }
 0x6aa   :  { %v2926_v29 = vpop.permute.xlu1 %2925  ;;  %v7298_v27 = vsel %vm923_vm3, %v3367_v48, %v2940_v24  ;;  %v7301_v51 = vsel %vm923_vm3, %v3359_v43, %v2924_v4  ;;  %v3496_v43 = vld [vmem:[%s7712_s7 + $0x8] sm:$0xff] }
 0x6ab   :  { %v7304_v36 = vsel %vm923_vm3, %v3360_v8, %v2926_v29 }
 0x6af   :  { %3276 = vrot.lane.b32.xlu2 %v2716_v50, %s3890_s21  ;;  %2980 = vrot.lane.b32.xlu0 %v6977_v6, %s3886_s30  ;;  %v3363_v6 = vsel %vm901_vm2, %v3342_v60, %v7168_v38  ;;  %v3498_v38 = vld [vmem:[%s7712_s7 + $0x18] sm:$0xff] }
 0x6b0   :  { %3064 = vrot.lane.b32.xlu1 %v2692_v2, %s3887_s20  ;;  %3580 = vmatpush.msra.mxu2 %v3498_v38  ;;  %v3345_v2 = vsel %vm879_vm1, %v2636_v5, %v7104_v47  ;;  %v2695_v60 = vld [vmem:[#allocation3 + $0x5b] sm:$0xff] }
 0x6b1   :  { %v7319_v55 = vpop.permute.xlu2 %2968  ;;  %v2930_v41 = vpop.permute.xlu0 %2929  ;;  %3862 = vmatpush.msra.mxu3 %v3498_v38  ;;  %v3366_v63 = vsel %vm901_vm2, %v3345_v2, %v7182_v15  ;;  %v2638_v15 = vld [vmem:[#allocation3 + $0xa0] sm:$0x3] }
 0x6b2   :  { %v2932_v52 = vpop.permute.xlu1 %2931  ;;  %v7326_v34 = vsel %vm923_vm3, %v3362_v42, %v2930_v41  ;;  %3581 = vmatpush.msra.mxu2 %v3497_v62  ;;  %v3347_v24 = vsel %vm879_vm1, %v2638_v15, %v7112_v32 }
 0x6b3   :  { %v7329_v39 = vsel %vm923_vm3, %v3363_v6, %v2932_v52  ;;  %3863 = vmatpush.msra.mxu3 %v3497_v62  ;;  %v3368_v4 = vsel %vm901_vm2, %v3347_v24, %v7197_v22  ;;  %v2719_v52 = vld [vmem:[#allocation3 + $0x5c] sm:$0xff]  ;;  %v3391_v62 = vsel %vm945_vm4, %v7171_v14, %v7319_v55 }
 0x6b4   :  { %3582 = vmatpush.msra.mxu2 %v3496_v43 }
 0x6b5   :  { %3864 = vmatpush.msra.mxu3 %v3496_v43 }
 0x6b6   :  { %3583 = vmatpush.msra.mxu2 %v3495_v40 }
 0x6b7   :  { %3129 = vrot.lane.b32.xlu2 %v6979_v1, %s3888_s26  ;;  %3194 = vrot.lane.b32.xlu0 %v2693_v10, %s3889_s19 }
 0x6b8   :  { %3278 = vrot.lane.b32.xlu1 %v2717_v12, %s3890_s21  ;;  %3865 = vmatpush.msra.mxu3 %v3495_v40 }
 0x6b9   :  { %v7353_v56 = vpop.permute.xlu2 %2974  ;;  %v2936_v20 = vpop.permute.xlu0 %2935 }
 0x6ba   :  { %v2938_v46 = vpop.permute.xlu1 %2937  ;;  %v7358_v48 = vsel %vm923_vm3, %v3365_v25, %v2936_v20 }
 0x6bb   :  { %v7364_v47 = vsel %vm923_vm3, %v3366_v63, %v2938_v46 }
 0x6bf   :  { %2982 = vrot.lane.b32.xlu2 %v6979_v1, %s3886_s30  ;;  %3066 = vrot.lane.b32.xlu0 %v2693_v10, %s3887_s20  ;;  %v2718_v1 = vld [vmem:[#allocation3 + $0x54] sm:$0xff] }
 0x6c0   :  { %3131 = vrot.lane.b32.xlu1 %v6987_v11, %s3888_s26 }
 0x6c1   :  { %v3051_v8 = vpop.permute.xlu2 %3050  ;;  %v2942_v29 = vpop.permute.xlu0 %2941 }
 0x6c2   :  { %v2967_v50 = vpop.permute.xlu1 %2966  ;;  %v7379_v16 = vsel %vm923_vm3, %v3368_v4, %v2942_v29 }
 0x6c7   :  { %3196 = vrot.lane.b32.xlu2 %v2694_v44, %s3889_s19  ;;  %3280 = vrot.lane.b32.xlu0 %v2718_v1, %s3890_s21  ;;  %v2702_v1 = vld [vmem:[#allocation3 + $0x93] sm:$0xff] }
 0x6c8   :  { %2984 = vrot.lane.b32.xlu1 %v6987_v11, %s3886_s30  ;;  %v3390_v11 = vsel %vm945_vm4, %v7205_v35, %v2967_v50  ;;  %v2696_v35 = vld [vmem:[#allocation3 + $0x63] sm:$0xff] }
 0x6c9   :  { %v3265_v32 = vpop.permute.xlu2 %3264  ;;  %v2971_v30 = vpop.permute.xlu0 %2970  ;;  %v3411_v28 = vsel %vm967_vm5, %v3390_v11, %v3051_v8 }
 0x6ca   :  { %v2973_v23 = vpop.permute.xlu1 %2972  ;;  %v3392_v55 = vsel %vm945_vm4, %v7227_v59, %v2971_v30 }
 0x6cb   :  { %v3393_v30 = vsel %vm945_vm4, %v7230_v54, %v2973_v23 }
 0x6cf   :  { %3068 = vrot.lane.b32.xlu2 %v2694_v44, %s3887_s20  ;;  %3133 = vrot.lane.b32.xlu0 %v6989_v31, %s3888_s26  ;;  %v2697_v44 = vld [vmem:[#allocation3 + $0x6b] sm:$0xff] }
 0x6d0   :  { %3198 = vrot.lane.b32.xlu1 %v2695_v60, %s3889_s19 }
 0x6d1   :  { %v3183_v22 = vpop.permute.xlu2 %3182  ;;  %v7389_v42 = vpop.permute.xlu0 %2976 }
 0x6d2   :  { %v2979_v41 = vpop.permute.xlu1 %2978 }
 0x6d3   :  { %v7393_v6 = vsel %vm945_vm4, %v7254_v7, %v2979_v41 }
 0x6d7   :  { %3282 = vrot.lane.b32.xlu2 %v2719_v52, %s3890_s21  ;;  %2986 = vrot.lane.b32.xlu0 %v6989_v31, %s3886_s30 }
 0x6d8   :  { %3070 = vrot.lane.b32.xlu1 %v2695_v60, %s3887_s20 }
 0x6d9   :  { %v3120_v9 = vpop.permute.xlu2 %3119  ;;  %v3116_v38 = vpop.permute.xlu0 %3115 }
 0x6da   :  { %v3181_v10 = vpop.permute.xlu1 %3180  ;;  %v3432_v19 = vsel %vm989_vm6, %v3411_v28, %v3116_v38  ;;  %v2726_v38 = vld [vmem:[#allocation3 + $0x94] sm:$0xff] }
 0x6db   :  { %v3453_v7 = vsel %vm1011_vm7, %v3432_v19, %v3181_v10  ;;  %v3394_v10 = vsel %vm945_vm4, %v7185_v57, %v7353_v56  ;;  %v3395_v57 = vsel %vm945_vm4, %v7251_v0, %v7389_v42  ;;  %v2722_v42 = vld [vmem:[#allocation3 + $0x74] sm:$0xff] }
 0x6dc   :  { %v3474_v12 = vsel %vm1033_vm9, %v3453_v7, %v3265_v32  ;;  %v2721_v32 = vld [vmem:[#allocation3 + $0x6c] sm:$0xff] }
 0x6dd   :  { %3824 = vmatmul.msk.f32.vlgmr.msra.gmra.mxu2 %vm1062_vm8, %v3474_v12 }
 0x6df   :  { %3135 = vrot.lane.b32.xlu2 %v6991_v53, %s3888_s26  ;;  %3200 = vrot.lane.b32.xlu0 %v2696_v35, %s3889_s19 }
 0x6e0   :  { %3284 = vrot.lane.b32.xlu1 %v2720_v13, %s3890_s21 }
 0x6e1   :  { %v3057_v31 = vpop.permute.xlu2 %3056  ;;  %v3053_v5 = vpop.permute.xlu0 %3052 }
 0x6e2   :  { %v3118_v2 = vpop.permute.xlu1 %3117  ;;  %v3412_v25 = vsel %vm967_vm5, %v3391_v62, %v3053_v5  ;;  %v3414_v60 = vsel %vm967_vm5, %v3393_v30, %v3057_v31  ;;  %v2698_v5 = vld [vmem:[#allocation3 + $0x73] sm:$0xff]  ;;  %v2703_v62 = vld [vmem:[#allocation3 + $0x9b] sm:$0xff] }
 0x6e3   :  { %v3433_v20 = vsel %vm989_vm6, %v3412_v25, %v3118_v2 }
 0x6e4   :  { %v3454_v43 = vsel %vm1011_vm7, %v3433_v20, %v3183_v22 }
 0x6e7   :  { %2988 = vrot.lane.b32.xlu2 %v6991_v53, %s3886_s30  ;;  %2998 = vrot.lane.b32.xlu0 %v7015_v18, %s3886_s30  ;;  %v7426_v53 = vld [vmem:[#allocation3 + $0x8b] sm:$0xff] }
 0x6e8   :  { %3072 = vrot.lane.b32.xlu1 %v2696_v35, %s3887_s20 }
 0x6e9   :  { %v3271_v63 = vpop.permute.xlu2 %3270  ;;  %v3267_v46 = vpop.permute.xlu0 %3266 }
 0x6ea   :  { %v3055_v40 = vpop.permute.xlu1 %3054  ;;  %v3475_v14 = vsel %vm1033_vm9, %v3454_v43, %v3267_v46  ;;  %v2727_v43 = vld [vmem:[#allocation3 + $0x9c] sm:$0xff] }
 0x6eb   :  { %3825 = vmatmul.msk.f32.gmra.mxu2 %vm1062_vm8, %v3475_v14  ;;  %v3413_v15 = vsel %vm967_vm5, %v3392_v55, %v3055_v40 }
 0x6ec   :  { %v3434_v4 = vsel %vm989_vm6, %v3413_v15, %v3120_v9 }
 0x6ef   :  { %3082 = vrot.lane.b32.xlu2 %v7426_v53, %s3887_s20  ;;  %3137 = vrot.lane.b32.xlu0 %v6999_v33, %s3888_s26 }
 0x6f0   :  { %3147 = vrot.lane.b32.xlu1 %v7017_v61, %s3888_s26 }
 0x6f1   :  { %v3189_v24 = vpop.permute.xlu2 %3188  ;;  %v3185_v8 = vpop.permute.xlu0 %3184 }
 0x6f2   :  { %v3269_v29 = vpop.permute.xlu1 %3268  ;;  %v3455_v59 = vsel %vm1011_vm7, %v3434_v4, %v3185_v8 }
 0x6f3   :  { %v3476_v50 = vsel %vm1033_vm9, %v3455_v59, %v3269_v29 }
 0x6f4   :  { %3826 = vmatmul.msk.f32.gmra.mxu2 %vm1062_vm8, %v3476_v50 }
 0x6f7   :  { %3202 = vrot.lane.b32.xlu2 %v2697_v44, %s3889_s19  ;;  %3212 = vrot.lane.b32.xlu0 %v2702_v1, %s3889_s19 }
 0x6f8   :  { %3286 = vrot.lane.b32.xlu1 %v2721_v32, %s3890_s21  ;;  %v8151_v32 = vld [vmem:[#allocation32_spill] sm:$0xff] }
 0x6f9   :  { %v3126_v22 = vpop.permute.xlu2 %3125  ;;  %v3122_v41 = vpop.permute.xlu0 %3121 }
 0x6fa   :  { %v3187_v11 = vpop.permute.xlu1 %3186  ;;  %v3435_v52 = vsel %vm989_vm6, %v3414_v60, %v3122_v41 }
 0x6fb   :  { %v3456_v28 = vsel %vm1011_vm7, %v3435_v52, %v3187_v11  ;;  %v2704_v11 = vld [vmem:[#allocation3 + $0xa3] sm:$0xff] }
 0x6fc   :  { %v3477_v9 = vsel %vm1033_vm9, %v3456_v28, %v3271_v63  ;;  %v2723_v52 = vld [vmem:[#allocation3 + $0x7c] sm:$0xff]  ;;  %v2728_v28 = vld [vmem:[#allocation3 + $0xa4] sm:$0xff] }
 0x6fd   :  { %3827 = vmatmul.msk.f32.gmra.mxu2 %vm1062_vm8, %v3477_v9 }
 0x6ff   :  { %3296 = vrot.lane.b32.xlu2 %v2726_v38, %s3890_s21  ;;  %2990 = vrot.lane.b32.xlu0 %v6999_v33, %s3886_s30 }
 0x700   :  { %3000 = vrot.lane.b32.xlu1 %v7017_v61, %s3886_s30 }
 0x701   :  { %v3063_v54 = vpop.permute.xlu2 %3062  ;;  %v3059_v23 = vpop.permute.xlu0 %3058 }
 0x702   :  { %v3124_v19 = vpop.permute.xlu1 %3123  ;;  %v3415_v7 = vsel %vm967_vm5, %v3394_v10, %v3059_v23  ;;  %v3417_v40 = vsel %vm967_vm5, %v7393_v6, %v3063_v54 }
 0x703   :  { %v3436_v12 = vsel %vm989_vm6, %v3415_v7, %v3124_v19 }
 0x704   :  { %v3457_v35 = vsel %vm1011_vm7, %v3436_v12, %v3189_v24 }
 0x707   :  { %3074 = vrot.lane.b32.xlu2 %v2697_v44, %s3887_s20  ;;  %3084 = vrot.lane.b32.xlu0 %v2702_v1, %s3887_s20  ;;  %v2683_v44 = vld [vmem:[#allocation3 + $0xa2] sm:$0xff] }
 0x708   :  { %3139 = vrot.lane.b32.xlu1 %v7001_v37, %s3888_s26  ;;  %v2699_v1 = vld [vmem:[#allocation3 + $0x7b] sm:$0xff] }
 0x709   :  { %v3277_v33 = vpop.permute.xlu2 %3276  ;;  %v3273_v61 = vpop.permute.xlu0 %3272 }
 0x70a   :  { %v3061_v13 = vpop.permute.xlu1 %3060  ;;  %v3478_v31 = vsel %vm1033_vm9, %v3457_v35, %v3273_v61 }
 0x70b   :  { %3828 = vmatmul.msk.f32.gmra.mxu2 %vm1062_vm8, %v3478_v31  ;;  %v3416_v56 = vsel %vm967_vm5, %v3395_v57, %v3061_v13  ;;  %v2706_v13 = vld [vmem:[#allocation3 + $0xaa] sm:$0xff]  ;;  %v8152_v31 = vld [vmem:[#allocation73_spill] sm:$0xff] }
 0x70c   :  { %v3437_v25 = vsel %vm989_vm6, %v3416_v56, %v3126_v22 }
 0x70f   :  { %3149 = vrot.lane.b32.xlu2 %v7027_v45, %s3888_s26  ;;  %3204 = vrot.lane.b32.xlu0 %v2698_v5, %s3889_s19 }
 0x710   :  { %3214 = vrot.lane.b32.xlu1 %v2703_v62, %s3889_s19 }
 0x711   :  { %v3130_v2 = vpop.permute.xlu2 %3129  ;;  %v3191_v20 = vpop.permute.xlu0 %3190 }
 0x712   :  { %v3275_v63 = vpop.permute.xlu1 %3274  ;;  %v3458_v46 = vsel %vm1011_vm7, %v3437_v25, %v3191_v20 }
 0x713   :  { %v3479_v0 = vsel %vm1033_vm9, %v3458_v46, %v3275_v63  ;;  %v2708_v63 = vld [vmem:[#allocation3 + $0xab] sm:$0xff] }
 0x714   :  { %3829 = vmatmul.msk.f32.gmra.mxu2 %vm1062_vm8, %v3479_v0  ;;  %v2724_v46 = vld [vmem:[#allocation3 + $0x84] sm:$0xff] }
 0x717   :  { %3288 = vrot.lane.b32.xlu2 %v2722_v42, %s3890_s21  ;;  %3298 = vrot.lane.b32.xlu0 %v2727_v43, %s3890_s21 }
 0x718   :  { %2992 = vrot.lane.b32.xlu1 %v7001_v37, %s3886_s30 }
 0x719   :  { %v2983_v14 = vpop.permute.xlu2 %2982  ;;  %v3128_v55 = vpop.permute.xlu0 %3127 }
 0x71a   :  { %v3193_v15 = vpop.permute.xlu1 %3192  ;;  %v3438_v24 = vsel %vm989_vm6, %v3417_v40, %v3128_v55  ;;  %v3398_v54 = vsel %vm945_vm4, %v7276_v3, %v2983_v14  ;;  %v2729_v14 = vld [vmem:[#allocation3 + $0xac] sm:$0xff] }
 0x71b   :  { %v3459_v4 = vsel %vm1011_vm7, %v3438_v24, %v3193_v15  ;;  %v2684_v15 = vld [vmem:[#allocation3 + $0xaa] sm:$0x3] }
 0x71c   :  { %v3480_v8 = vsel %vm1033_vm9, %v3459_v4, %v3277_v33 }
 0x71d   :  { %3830 = vmatmul.msk.f32.gmra.mxu2 %vm1062_vm8, %v3480_v8 }
 0x71f   :  { %3002 = vrot.lane.b32.xlu2 %v7027_v45, %s3886_s30  ;;  %3076 = vrot.lane.b32.xlu0 %v2698_v5, %s3887_s20 }
 0x720   :  { %3086 = vrot.lane.b32.xlu1 %v2703_v62, %s3887_s20 }
 0x721   :  { %v3197_v37 = vpop.permute.xlu2 %3196  ;;  %v2981_v6 = vpop.permute.xlu0 %2980 }
 0x722   :  { %v3065_v29 = vpop.permute.xlu1 %3064  ;;  %v3397_v59 = vsel %vm945_vm4, %v7202_v17, %v2981_v6 }
 0x723   :  { %v3418_v50 = vsel %vm967_vm5, %v3397_v59, %v3065_v29  ;;  %v2705_v29 = vld [vmem:[#allocation3 + $0xab] sm:$0x3] }
 0x724   :  { %v3439_v30 = vsel %vm989_vm6, %v3418_v50, %v3130_v2 }
 0x727   :  { %3141 = vrot.lane.b32.xlu2 %v8151_v32, %s3888_s26  ;;  %3151 = vrot.lane.b32.xlu0 %v2683_v44, %s3888_s26 }
 0x728   :  { %3206 = vrot.lane.b32.xlu1 %v2699_v1, %s3889_s19 }
 0x729   :  { %v3069_v45 = vpop.permute.xlu2 %3068  ;;  %v3195_v60 = vpop.permute.xlu0 %3194 }
 0x72a   :  { %v3279_v22 = vpop.permute.xlu1 %3278  ;;  %v3460_v41 = vsel %vm1011_vm7, %v3439_v30, %v3195_v60 }
 0x72b   :  { %v3481_v17 = vsel %vm1033_vm9, %v3460_v41, %v3279_v22  ;;  %v2730_v22 = vld [vmem:[#allocation3 + $0xb4] sm:$0x3] }
 0x72c   :  { %3831 = vmatmul.msk.f32.gmra.mxu2 %vm1062_vm8, %v3481_v17 }
 0x72f   :  { %3216 = vrot.lane.b32.xlu2 %v2704_v11, %s3889_s19  ;;  %3290 = vrot.lane.b32.xlu0 %v2723_v52, %s3890_s21 }
 0x730   :  { %3300 = vrot.lane.b32.xlu1 %v2728_v28, %s3890_s21 }
 0x731   :  { %v3283_v9 = vpop.permute.xlu2 %3282  ;;  %v3067_v38 = vpop.permute.xlu0 %3066 }
 0x732   :  { %v3132_v23 = vpop.permute.xlu1 %3131  ;;  %v3419_v10 = vsel %vm967_vm5, %v3398_v54, %v3067_v38 }
 0x733   :  { %v3440_v19 = vsel %vm989_vm6, %v3419_v10, %v3132_v23 }
 0x734   :  { %v3461_v33 = vsel %vm1011_vm7, %v3440_v19, %v3197_v37 }
 0x737   :  { %2994 = vrot.lane.b32.xlu2 %v8151_v32, %s3886_s30  ;;  %3004 = vrot.lane.b32.xlu0 %v2683_v44, %s3886_s30  ;;  %v2709_v32 = vld [vmem:[#allocation3 + $0xb3] sm:$0x3] }
 0x738   :  { %3078 = vrot.lane.b32.xlu1 %v2699_v1, %s3887_s20  ;;  %v2707_v1 = vld [vmem:[#allocation3 + $0xb2] sm:$0x3] }
 0x739   :  { %v3136_v7 = vpop.permute.xlu2 %3135  ;;  %v3281_v12 = vpop.permute.xlu0 %3280 }
 0x73a   :  { %v2985_v61 = vpop.permute.xlu1 %2984  ;;  %v3482_v35 = vsel %vm1033_vm9, %v3461_v33, %v3281_v12 }
 0x73b   :  { %3832 = vmatmul.msk.f32.gmra.mxu2 %vm1062_vm8, %v3482_v35  ;;  %v3399_v3 = vsel %vm945_vm4, %v7279_v58, %v2985_v61  ;;  %v2700_v58 = vld [vmem:[#allocation3 + $0x83] sm:$0xff] }
 0x73c   :  { %v3420_v56 = vsel %vm967_vm5, %v3399_v3, %v3069_v45 }
 0x73f   :  { %3088 = vrot.lane.b32.xlu2 %v2704_v11, %s3887_s20  ;;  %3143 = vrot.lane.b32.xlu0 %v8152_v31, %s3888_s26  ;;  %v2725_v11 = vld [vmem:[#allocation3 + $0x8c] sm:$0xff] }
 0x740   :  { %3153 = vrot.lane.b32.xlu1 %v2706_v13, %s3888_s26 }
 0x741   :  { %v2989_v57 = vpop.permute.xlu2 %2988  ;;  %v3134_v5 = vpop.permute.xlu0 %3133 }
 0x742   :  { %v3199_v62 = vpop.permute.xlu1 %3198  ;;  %v3441_v2 = vsel %vm989_vm6, %v3420_v56, %v3134_v5  ;;  %v3401_v41 = vsel %vm945_vm4, %v7301_v51, %v2989_v57 }
 0x743   :  { %v3462_v25 = vsel %vm1011_vm7, %v3441_v2, %v3199_v62 }
 0x744   :  { %v3483_v20 = vsel %vm1033_vm9, %v3462_v25, %v3283_v9 }
 0x745   :  { %3833 = vmatmul.msk.f32.gmra.mxu2 %vm1062_vm8, %v3483_v20 }
 0x747   :  { %3208 = vrot.lane.b32.xlu2 %v2700_v58, %s3889_s19  ;;  %3218 = vrot.lane.b32.xlu0 %v2708_v63, %s3889_s19 }
 0x748   :  { %3292 = vrot.lane.b32.xlu1 %v2724_v46, %s3890_s21 }
 0x749   :  { %v3083_v0 = vpop.permute.xlu2 %3082  ;;  %v2987_v42 = vpop.permute.xlu0 %2986 }
 0x74a   :  { %v3071_v43 = vpop.permute.xlu1 %3070  ;;  %v3400_v40 = vsel %vm945_vm4, %v7224_v21, %v2987_v42 }
 0x74b   :  { %v3421_v55 = vsel %vm967_vm5, %v3400_v40, %v3071_v43 }
 0x74c   :  { %v3442_v4 = vsel %vm989_vm6, %v3421_v55, %v3136_v7 }
 0x74f   :  { %3302 = vrot.lane.b32.xlu2 %v2729_v14, %s3890_s21  ;;  %2996 = vrot.lane.b32.xlu0 %v8152_v31, %s3886_s30 }
 0x750   :  { %3006 = vrot.lane.b32.xlu1 %v2684_v15, %s3886_s30 }
 0x751   :  { %v3203_v24 = vpop.permute.xlu2 %3202  ;;  %v3201_v8 = vpop.permute.xlu0 %3200 }
 0x752   :  { %v3285_v37 = vpop.permute.xlu1 %3284  ;;  %v3463_v6 = vsel %vm1011_vm7, %v3442_v4, %v3201_v8 }
 0x753   :  { %v3484_v21 = vsel %vm1033_vm9, %v3463_v6, %v3285_v37 }
 0x754   :  { %3834 = vmatmul.msk.f32.gmra.mxu2 %vm1062_vm8, %v3484_v21 }
 0x757   :  { %3080 = vrot.lane.b32.xlu2 %v2700_v58, %s3887_s20  ;;  %3090 = vrot.lane.b32.xlu0 %v2705_v29, %s3887_s20 }
 0x758   :  { %3145 = vrot.lane.b32.xlu1 %v7015_v18, %s3888_s26 }
 0x759   :  { %v3297_v59 = vpop.permute.xlu2 %3296  ;;  %v2999_v50 = vpop.permute.xlu0 %2998 }
 0x75a   :  { %v3073_v44 = vpop.permute.xlu1 %3072  ;;  %v3406_v17 = vsel %vm945_vm4, %v7273_v49, %v2999_v50 }
 0x75b   :  { %v3427_v28 = vsel %vm967_vm5, %v3406_v17, %v3083_v0 }
 0x75f   :  { %3155 = vrot.lane.b32.xlu2 %v2707_v1, %s3888_s26  ;;  %3210 = vrot.lane.b32.xlu0 %v7426_v53, %s3889_s19  ;;  %v3422_v53 = vsel %vm967_vm5, %v3401_v41, %v3073_v44 }
 0x760   :  { %3220 = vrot.lane.b32.xlu1 %v2709_v32, %s3889_s19  ;;  %v3585_v45 = vpop.f32.mrf.mxu2 }
 0x761   :  { %3648 = vst.msk [vmem:[%s7713_s9] sm:$0xff] %vm945_vm4, %v3585_v45  ;;  %v3075_v30 = vpop.permute.xlu2 %3074  ;;  %v3138_v18 = vpop.permute.xlu0 %3137 }
 0x762   :  { %v3148_v60 = vpop.permute.xlu1 %3147  ;;  %v3443_v52 = vsel %vm989_vm6, %v3422_v53, %v3138_v18 }
 0x763   :  { %v3448_v9 = vsel %vm989_vm6, %v3427_v28, %v3148_v60  ;;  %v3464_v49 = vsel %vm1011_vm7, %v3443_v52, %v3203_v24 }
 0x767   :  { %3294 = vrot.lane.b32.xlu2 %v2725_v11, %s3890_s21  ;;  %3304 = vrot.lane.b32.xlu0 %v2730_v22, %s3890_s21 }
 0x769   :  { %v3150_v38 = vpop.permute.xlu2 %3149  ;;  %v3213_v54 = vpop.permute.xlu0 %3212 }
 0x76a   :  { %v3287_v23 = vpop.permute.xlu1 %3286  ;;  %v3469_v51 = vsel %vm1011_vm7, %v3448_v9, %v3213_v54 }
 0x76b   :  { %v3490_v10 = vsel %vm1033_vm9, %v3469_v51, %v3297_v59  ;;  %v3485_v19 = vsel %vm1033_vm9, %v3464_v49, %v3287_v23 }
 0x76c   :  { %3835 = vmatmul.msk.f32.gmra.mxu2 %vm1062_vm8, %v3485_v19  ;;  %3840 = vmatmul.msk.f32.vlgmr.msra.gmra.mxu3 %vm1062_vm8, %v3490_v10 }
 0x76e   :  { %v3588_v7 = vpop.f32.mrf.mxu2 }
 0x76f   :  { %3649 = vst.msk [vmem:[%s7713_s9 + $0x8] sm:$0xff] %vm945_vm4, %v3588_v7 }
 0x771   :  { %v3289_v12 = vpop.permute.xlu2 %3288  ;;  %v2991_v33 = vpop.permute.xlu0 %2990 }
 0x772   :  { %v3001_v61 = vpop.permute.xlu1 %3000  ;;  %v3402_v57 = vsel %vm945_vm4, %v7304_v36, %v2991_v33 }
 0x773   :  { %v3423_v56 = vsel %vm967_vm5, %v3402_v57, %v3075_v30  ;;  %v3407_v36 = vsel %vm945_vm4, %v7358_v48, %v3001_v61 }
 0x777   :  { %v3591_v35 = vpop.f32.mrf.mxu2 }
 0x778   :  { %3650 = vst.msk [vmem:[%s7713_s9 + $0x10] sm:$0xff] %vm945_vm4, %v3591_v35 }
 0x779   :  { %v3003_v3 = vpop.permute.xlu2 %3002  ;;  %v3085_v13 = vpop.permute.xlu0 %3084 }
 0x77a   :  { %v3140_v31 = vpop.permute.xlu1 %3139  ;;  %v3428_v46 = vsel %vm967_vm5, %v3407_v36, %v3085_v13  ;;  %v3408_v29 = vsel %vm945_vm4, %v7364_v47, %v3003_v3 }
 0x77b   :  { %v3444_v62 = vsel %vm989_vm6, %v3423_v56, %v3140_v31  ;;  %v3449_v0 = vsel %vm989_vm6, %v3428_v46, %v3150_v38 }
 0x780   :  { %v3594_v5 = vpop.f32.mrf.mxu2 }
 0x781   :  { %3651 = vst.msk [vmem:[%s7713_s9 + $0x18] sm:$0xff] %vm945_vm4, %v3594_v5  ;;  %v3205_v2 = vpop.permute.xlu0 %3204  ;;  %v3142_v20 = vpop.permute.xlu2 %3141 }
 0x782   :  { %v3215_v25 = vpop.permute.xlu1 %3214  ;;  %v3465_v58 = vsel %vm1011_vm7, %v3444_v62, %v3205_v2 }
 0x783   :  { %v3486_v63 = vsel %vm1033_vm9, %v3465_v58, %v3289_v12  ;;  %v3470_v42 = vsel %vm1011_vm7, %v3449_v0, %v3215_v25 }
 0x784   :  { %3836 = vmatmul.msk.f32.gmra.mxu2 %vm1062_vm8, %v3486_v63 }
 0x789   :  { %v3299_v43 = vpop.permute.xlu0 %3298  ;;  %v3217_v55 = vpop.permute.xlu2 %3216 }
 0x78a   :  { %v2993_v40 = vpop.permute.xlu1 %2992  ;;  %v3491_v14 = vsel %vm1033_vm9, %v3470_v42, %v3299_v43 }
 0x78b   :  { %3841 = vmatmul.msk.f32.gmra.mxu3 %vm1062_vm8, %v3491_v14  ;;  %v3403_v21 = vsel %vm945_vm4, %v7248_v26, %v2993_v40 }
 0x78e   :  { %v3597_v15 = vpop.f32.mrf.mxu2 }
 0x78f   :  { %3652 = vst.msk [vmem:[%s7713_s9 + $0x20] sm:$0xff] %vm945_vm4, %v3597_v15 }
 0x791   :  { %v3077_v48 = vpop.permute.xlu0 %3076  ;;  %v2995_v4 = vpop.permute.xlu2 %2994 }
 0x792   :  { %v3087_v24 = vpop.permute.xlu1 %3086  ;;  %v3424_v59 = vsel %vm967_vm5, %v3403_v21, %v3077_v48  ;;  %v3404_v38 = vsel %vm945_vm4, %v7326_v34, %v2995_v4 }
 0x793   :  { %v3429_v50 = vsel %vm967_vm5, %v3408_v29, %v3087_v24  ;;  %v3445_v1 = vsel %vm989_vm6, %v3424_v59, %v3142_v20 }
 0x797   :  { %v3600_v8 = vpop.f32.mrf.mxu2 }
 0x798   :  { %3653 = vst.msk [vmem:[%s7713_s9 + $0x28] sm:$0xff] %vm945_vm4, %v3600_v8 }
 0x799   :  { %v3152_v37 = vpop.permute.xlu0 %3151  ;;  %v3089_v32 = vpop.permute.xlu2 %3088 }
 0x79a   :  { %v3207_v6 = vpop.permute.xlu1 %3206  ;;  %v3450_v44 = vsel %vm989_vm6, %v3429_v50, %v3152_v37 }
 0x79b   :  { %v3466_v30 = vsel %vm1011_vm7, %v3445_v1, %v3207_v6  ;;  %v3471_v60 = vsel %vm1011_vm7, %v3450_v44, %v3217_v55 }
 0x7a0   :  { %v3603_v45 = vpop.f32.mrf.mxu2 }
 0x7a1   :  { %3654 = vst.msk [vmem:[%s7713_s9 + $0x30] sm:$0xff] %vm945_vm4, %v3603_v45  ;;  %v3291_v26 = vpop.permute.xlu0 %3290  ;;  %v3209_v17 = vpop.permute.xlu2 %3208 }
 0x7a2   :  { %v3301_v18 = vpop.permute.xlu1 %3300  ;;  %v3487_v47 = vsel %vm1033_vm9, %v3466_v30, %v3291_v26 }
 0x7a3   :  { %3837 = vmatmul.msk.f32.gmra.mxu2 %vm1062_vm8, %v3487_v47  ;;  %v3492_v22 = vsel %vm1033_vm9, %v3471_v60, %v3301_v18 }
 0x7a4   :  { %3842 = vmatmul.msk.f32.gmra.mxu3 %vm1062_vm8, %v3492_v22 }
 0x7a9   :  { %v3005_v41 = vpop.permute.xlu0 %3004  ;;  %v3303_v9 = vpop.permute.xlu2 %3302 }
 0x7aa   :  { %v3079_v53 = vpop.permute.xlu1 %3078  ;;  %v3409_v54 = vsel %vm945_vm4, %v7298_v27, %v3005_v41 }
 0x7ab   :  { %v3425_v23 = vsel %vm967_vm5, %v3404_v38, %v3079_v53  ;;  %v3430_v49 = vsel %vm967_vm5, %v3409_v54, %v3089_v32 }
 0x7af   :  { %v3606_v11 = vpop.f32.mrf.mxu2 }
 0x7b0   :  { %3655 = vst.msk [vmem:[%s7713_s9 + $0x38] sm:$0xff] %vm945_vm4, %v3606_v11 }
 0x7b1   :  { %v3144_v52 = vpop.permute.xlu0 %3143  ;;  %v3081_v27 = vpop.permute.xlu2 %3080 }
 0x7b2   :  { %v3154_v28 = vpop.permute.xlu1 %3153  ;;  %v3446_v51 = vsel %vm989_vm6, %v3425_v23, %v3144_v52 }
 0x7b3   :  { %v3451_v10 = vsel %vm989_vm6, %v3430_v49, %v3154_v28  ;;  %v3467_v33 = vsel %vm1011_vm7, %v3446_v51, %v3209_v17 }
 0x7b9   :  { %v3219_v19 = vpop.permute.xlu0 %3218  ;;  %v3156_v31 = vpop.permute.xlu2 %3155 }
 0x7ba   :  { %v3293_v7 = vpop.permute.xlu1 %3292  ;;  %v3472_v12 = vsel %vm1011_vm7, %v3451_v10, %v3219_v19 }
 0x7bb   :  { %v3488_v61 = vsel %vm1033_vm9, %v3467_v33, %v3293_v7  ;;  %v3493_v34 = vsel %vm1033_vm9, %v3472_v12, %v3303_v9 }
 0x7bc   :  { %3838 = vmatmul.msk.f32.gmra.mxu2 %vm1062_vm8, %v3488_v61  ;;  %3843 = vmatmul.msk.f32.gmra.mxu3 %vm1062_vm8, %v3493_v34 }
 0x7be   :  { %v3609_v35 = vpop.f32.mrf.mxu2 }
 0x7bf   :  { %3656 = vst.msk [vmem:[%s7713_s9 + $0x40] sm:$0xff] %vm945_vm4, %v3609_v35 }
 0x7c1   :  { %v2997_v3 = vpop.permute.xlu0 %2996  ;;  %v3295_v58 = vpop.permute.xlu2 %3294 }
 0x7c2   :  { %v3007_v13 = vpop.permute.xlu1 %3006  ;;  %v3405_v62 = vsel %vm945_vm4, %v7329_v39, %v2997_v3 }
 0x7c3   :  { %v3426_v2 = vsel %vm967_vm5, %v3405_v62, %v3081_v27  ;;  %v3410_v46 = vsel %vm945_vm4, %v7379_v16, %v3007_v13 }
 0x7c8   :  { %v3612_v57 = vpop.f32.mrf.mxu2 }
 0x7c9   :  { %3657 = vst.msk [vmem:[%s7713_s9 + $0x48] sm:$0xff] %vm945_vm4, %v3612_v57  ;;  %v3091_v56 = vpop.permute.xlu0 %3090 }
 0x7ca   :  { %v3146_v5 = vpop.permute.xlu1 %3145  ;;  %v3431_v0 = vsel %vm967_vm5, %v3410_v46, %v3091_v56 }
 0x7cb   :  { %v3447_v25 = vsel %vm989_vm6, %v3426_v2, %v3146_v5  ;;  %v3452_v39 = vsel %vm989_vm6, %v3431_v0, %v3156_v31 }
 0x7d1   :  { %v3211_v20 = vpop.permute.xlu0 %3210 }
 0x7d2   :  { %v3468_v63 = vsel %vm1011_vm7, %v3447_v25, %v3211_v20  ;;  %v3221_v42 = vpop.permute.xlu1 %3220 }
 0x7d3   :  { %v3489_v36 = vsel %vm1033_vm9, %v3468_v63, %v3295_v58  ;;  %v3473_v40 = vsel %vm1011_vm7, %v3452_v39, %v3221_v42 }
 0x7d4   :  { %3839 = vmatmul.msk.f32.gmra.mxu2 %vm1062_vm8, %v3489_v36 }
 0x7d7   :  { %v3615_v43 = vpop.f32.mrf.mxu2 }
 0x7d8   :  { %3658 = vst.msk [vmem:[%s7713_s9 + $0x50] sm:$0xff] %vm945_vm4, %v3615_v43 }
 0x7d9   :  { %v3305_v14 = vpop.permute.xlu0 %3304 }
 0x7da   :  { %v3494_v55 = vsel %vm1033_vm9, %v3473_v40, %v3305_v14 }
 0x7db   :  { %3844 = vmatmul.msk.f32.gmra.mxu3 %vm1062_vm8, %v3494_v55 }
 0x7ef   :  { %v3618_v16 = vpop.f32.mrf.mxu2  ;;  %v3633_v15 = vpop.f32.mrf.mxu3 }
 0x7f0   :  { %3659 = vst.msk [vmem:[%s7713_s9 + $0x58] sm:$0xff] %vm945_vm4, %v3618_v16 }
 0x7f1   :  { %3664 = vst.msk [vmem:[%s7713_s9 + $0x80] sm:$0xff] %vm945_vm4, %v3633_v15 }
 0x807   :  { %v3621_v48 = vpop.f32.mrf.mxu2 }
 0x808   :  { %3660 = vst.msk [vmem:[%s7713_s9 + $0x60] sm:$0xff] %vm945_vm4, %v3621_v48 }
 0x80e   :  { %v3636_v24 = vpop.f32.mrf.mxu3 }
 0x80f   :  { %3665 = vst.msk [vmem:[%s7713_s9 + $0x88] sm:$0xff] %vm945_vm4, %v3636_v24 }
 0x826   :  { %v3624_v4 = vpop.f32.mrf.mxu2 }
 0x827   :  { %3661 = vst.msk [vmem:[%s7713_s9 + $0x68] sm:$0xff] %vm945_vm4, %v3624_v4  ;;  %v3639_v8 = vpop.f32.mrf.mxu3 }
 0x828   :  { %3666 = vst.msk [vmem:[%s7713_s9 + $0x90] sm:$0xff] %vm945_vm4, %v3639_v8 }
 0x83f   :  { %v3627_v37 = vpop.f32.mrf.mxu2  ;;  %v3642_v6 = vpop.f32.mrf.mxu3 }
 0x840   :  { %3662 = vst.msk [vmem:[%s7713_s9 + $0x70] sm:$0xff] %vm945_vm4, %v3627_v37 }
 0x841   :  { %3667 = vst.msk [vmem:[%s7713_s9 + $0x98] sm:$0xff] %vm945_vm4, %v3642_v6 }
 0x857   :  { %v3630_v21 = vpop.f32.mrf.mxu2 }
 0x858   :  { %3663 = vst.msk [vmem:[%s7713_s9 + $0x78] sm:$0xff] %vm945_vm4, %v3630_v21 }
 0x85e   :  { %v3645_v29 = vpop.f32.mrf.mxu3 }
 0x85f   :  { %3669 = vst.msk [vmem:[%s7713_s9 + $0xa0] sm:$0x3] %vm3668_vm11, %v3645_v29 }

// kernel: irevnet_forward.4
= control target key start
LH: loop header
LB: loop body
LE: loop exit
PB: predicated region body
PF: predicated region fallthrough
CT: control target
= control target key end

     0   :  { %s3949_s19 = smov 24   ;;  %s3950_s15 = smov 48   ;;  %vm762_vm0 = vcmask 195584   ;;  %vm784_vm1 = vcmask 392192   ;;  %vm806_vm2 = vcmask 588800   ;;  %vm828_vm3 = vcmask 785408   ;;  %s7614_s0 = inlined_call_operand.vmem [shape: f32[184,24], index: 0, kind: input, shape index: {}]   ;;  %s7615_s1 = inlined_call_operand.vmem [shape: f32[216,6], index: 1, kind: input, shape index: {}]   ;;  %s7616_s2 = inlined_call_operand.vmem [shape: f32[1,6], index: 2, kind: input, shape index: {}]   ;;  %s7617_s3 = inlined_call_operand.vmem [shape: f32[1,6], index: 3, kind: input, shape index: {}]   ;;  %s7618_s8 = inlined_call_operand.vmem [shape: f32[162,1], index: 8, kind: input, shape index: {}]   ;;  %s7619_s4 = inlined_call_operand.vmem [shape: f32[54,6], index: 4, kind: input, shape index: {}]   ;;  %s7620_s5 = inlined_call_operand.vmem [shape: f32[1,6], index: 5, kind: input, shape index: {}]   ;;  %s7621_s6 = inlined_call_operand.vmem [shape: f32[1,6], index: 6, kind: input, shape index: {}]   ;;  %s7622_s7 = inlined_call_operand.vmem [shape: f32[54,24], index: 7, kind: input, shape index: {}]   ;;  %s7623_s9 = inlined_call_operand.vmem [shape: f32[162,24], index: 9, kind: output, shape index: {}]  }
   0x1   :  { %v4018_v0 = vld [vmem:[%s7614_s0 + $0x49] sm:$0xff]  ;;  %v4023_v1 = vld [vmem:[%s7614_s0 + $0x41] sm:$0xff]  ;;  %v4051_v8 = vld [vmem:[%s7614_s0 + $0x51] sm:$0xff]  ;;  %s3951_s13 = smov 72   ;;  %s3952_s22 = smov 96   ;;  %vm850_vm4 = vcmask 982016  }
   0x2   :  { %v3762_v2 = vpack.i.bf16 %v4018_v0, %v4023_v1  ;;  %v4030_v3 = vld [vmem:[%s7614_s0 + $0x29] sm:$0xff]  ;;  %v4035_v4 = vld [vmem:[%s7614_s0 + $0x21] sm:$0xff]  ;;  %v4057_v10 = vld [vmem:[%s7614_s0 + $0x59] sm:$0xff]  ;;  %s3953_s29 = smov 120   ;;  %s3954_s18 = smov 16   ;;  %vm872_vm5 = vcmask 130048  }
   0x3   :  { %v4040_v5 = vld [vmem:[%s7614_s0 + $0x9] sm:$0xff]  ;;  %v3752_v6 = vpack.i.bf16 %v4030_v3, %v4035_v4  ;;  %v74_v7 = vld [vmem:[%s7614_s0 + $0x1] sm:$0xff]  ;;  %v4063_v11 = vld [vmem:[%s7614_s0 + $0x39] sm:$0xff]  ;;  %v3767_v15 = vpack.i.bf16 %v4057_v10, %v4051_v8  ;;  %s3955_s28 = smov 40   ;;  %s3956_s26 = smov 64   ;;  %vm894_vm6 = vcmask 326656  }
   0x4   :  { %3763 = vrot.lane.b32.xlu2 %v3762_v2, %s3949_s19  ;;  %v3742_v9 = vpack.i.bf16 %v4040_v5, %v74_v7  ;;  %v4068_v12 = vld [vmem:[%s7614_s0 + $0x31] sm:$0xff]  ;;  %v4074_v13 = vld [vmem:[%s7614_s0 + $0x19] sm:$0xff]  ;;  %v4091_v18 = vld [vmem:[%s7614_s0 + $0x81] sm:$0xff]  ;;  %v3862_v2 = vpack.i.bf16 %v4051_v8, %v4018_v0  ;;  %vm916_vm7 = vcmask 523264   ;;  %vm965_vm8 = vcmask 719872   ;;  %s3962_s17 = smov 30  }
   0x5   :  { %3753 = vrot.lane.b32.xlu1 %v3752_v6, %s3949_s19  ;;  %v4079_v14 = vld [vmem:[%s7614_s0 + $0x11] sm:$0xff]  ;;  %v3757_v16 = vpack.i.bf16 %v4063_v11, %v4068_v12  ;;  %v4096_v19 = vld [vmem:[%s7614_s0 + $0x89] sm:$0xff]  ;;  %v4108_v21 = vld [vmem:[%s7614_s0 + $0x79] sm:$0xff]  ;;  %v3847_v61 = vpack.i.bf16 %v4035_v4, %v4074_v13  ;;  %v3857_v6 = vpack.i.bf16 %v4023_v1, %v4063_v11  ;;  %v3852_v4 = vpack.i.bf16 %v4068_v12, %v4030_v3  ;;  %s3963_s20 = smov 36   ;;  %s3964_s21 = smov 42  }
   0x6   :  { %3743 = vrot.lane.b32.xlu0 %v3742_v9, %s3949_s19  ;;  %v3747_v17 = vpack.i.bf16 %v4074_v13, %v4079_v14  ;;  %v4103_v20 = vld [vmem:[%s7614_s0 + $0x71] sm:$0xff]  ;;  %v3782_v22 = vpack.i.bf16 %v4096_v19, %v4091_v18  ;;  %v4115_v23 = vld [vmem:[%s7614_s0 + $0x61] sm:$0xff]  ;;  %v4120_v24 = vld [vmem:[%s7614_s0 + $0x69] sm:$0xff]  ;;  %v3842_v62 = vpack.i.bf16 %v4079_v14, %v4040_v5  ;;  %v3877_v5 = vpack.i.bf16 %v4091_v18, %v4108_v21 }
   0x7   :  { %v3777_v25 = vpack.i.bf16 %v4108_v21, %v4103_v20  ;;  %v3772_v26 = vpack.i.bf16 %v4120_v24, %v4115_v23  ;;  %v95_v27 = vld [vmem:[%s7614_s0 + $0x2] sm:$0xff]  ;;  %v4133_v28 = vld [vmem:[%s7614_s0 + $0xa] sm:$0xff]  ;;  %v4146_v31 = vld [vmem:[%s7614_s0 + $0x99] sm:$0xff]  ;;  %v3872_v7 = vpack.i.bf16 %v4103_v20, %v4120_v24  ;;  %v3867_v9 = vpack.i.bf16 %v4115_v23, %v4057_v10 }
   0x8   :  { %v3792_v29 = vpack.i.bf16 %v4133_v28, %v95_v27  ;;  %v4141_v30 = vld [vmem:[%s7614_s0 + $0x91] sm:$0xff]  ;;  %v94_v32 = vld [vmem:[%s7614_s0 + $0xa1] sm:$0x3]  ;;  %v117_v1 = vld [vmem:[%s7614_s0 + $0xa9] sm:$0x3]  ;;  %vm1189_vm9 = vcmask 48128  }
   0x9   :  { %v3787_v33 = vpack.i.bf16 %v4146_v31, %v4141_v30  ;;  %v4157_v34 = vld [vmem:[%s7614_s0 + $0x32] sm:$0xff]  ;;  %v4162_v35 = vld [vmem:[%s7614_s0 + $0x3a] sm:$0xff]  ;;  %v4169_v36 = vld [vmem:[%s7614_s0 + $0x22] sm:$0xff]  ;;  %v3882_v8 = vpack.i.bf16 %v4141_v30, %v4096_v19  ;;  %vm1453_vm10 = vcmask 41984   ;;  %vm2408_vm11 = vcmask 1045504  }
   0xa   :  { %v4174_v37 = vld [vmem:[%s7614_s0 + $0x2a] sm:$0xff]  ;;  %v3807_v38 = vpack.i.bf16 %v4162_v35, %v4157_v34  ;;  %v4181_v39 = vld [vmem:[%s7614_s0 + $0x12] sm:$0xff]  ;;  %v4186_v40 = vld [vmem:[%s7614_s0 + $0x1a] sm:$0xff]  ;;  %vm2185_vm12 = vcmask 97280   ;;  %vm2207_vm13 = vcmask 146432   ;;  %vm2250_vm14 = vcmask 244736  }
   0xb   :  { %v3802_v41 = vpack.i.bf16 %v4174_v37, %v4169_v36  ;;  %v3797_v42 = vpack.i.bf16 %v4186_v40, %v4181_v39  ;;  %v4196_v43 = vld [vmem:[%s7614_s0 + $0x62] sm:$0xff]  ;;  %v4201_v44 = vld [vmem:[%s7614_s0 + $0x6a] sm:$0xff]  ;;  %v4208_v45 = vld [vmem:[%s7614_s0 + $0x52] sm:$0xff]  ;;  %v3902_v10 = vpack.i.bf16 %v4157_v34, %v4174_v37  ;;  %v3897_v11 = vpack.i.bf16 %v4169_v36, %v4186_v40 }
   0xc   :  { %3768 = vrot.lane.b32.xlu2 %v3767_v15, %s3949_s19  ;;  %v4213_v46 = vld [vmem:[%s7614_s0 + $0x5a] sm:$0xff]  ;;  %v3822_v47 = vpack.i.bf16 %v4201_v44, %v4196_v43  ;;  %v4220_v48 = vld [vmem:[%s7614_s0 + $0x42] sm:$0xff]  ;;  %v4225_v49 = vld [vmem:[%s7614_s0 + $0x4a] sm:$0xff]  ;;  %v3892_v12 = vpack.i.bf16 %v4181_v39, %v4133_v28  ;;  %vm2272_vm15 = vcmask 293888  }
   0xd   :  { %3758 = vrot.lane.b32.xlu1 %v3757_v16, %s3949_s19  ;;  %v3817_v50 = vpack.i.bf16 %v4213_v46, %v4208_v45  ;;  %v3812_v51 = vpack.i.bf16 %v4225_v49, %v4220_v48  ;;  %v4235_v52 = vld [vmem:[%s7614_s0 + $0x92] sm:$0xff]  ;;  %v4240_v53 = vld [vmem:[%s7614_s0 + $0x9a] sm:$0xff]  ;;  %v4247_v54 = vld [vmem:[%s7614_s0 + $0x82] sm:$0xff]  ;;  %v3917_v14 = vpack.i.bf16 %v4196_v43, %v4213_v46  ;;  %v3912_v15 = vpack.i.bf16 %v4208_v45, %v4225_v49 }
   0xe   :  { %3748 = vrot.lane.b32.xlu0 %v3747_v17, %s3949_s19  ;;  %v4252_v55 = vld [vmem:[%s7614_s0 + $0x8a] sm:$0xff]  ;;  %v3837_v56 = vpack.i.bf16 %v4240_v53, %v4235_v52  ;;  %v4259_v57 = vld [vmem:[%s7614_s0 + $0x72] sm:$0xff]  ;;  %v4264_v58 = vld [vmem:[%s7614_s0 + $0x7a] sm:$0xff]  ;;  %v3907_v16 = vpack.i.bf16 %v4220_v48, %v4162_v35 }
   0xf   :  { %v3832_v59 = vpack.i.bf16 %v4252_v55, %v4247_v54  ;;  %v3827_v60 = vpack.i.bf16 %v4264_v58, %v4259_v57  ;;  %v115_v63 = vld [vmem:[%s7614_s0 + $0xa2] sm:$0x3]  ;;  %v3932_v18 = vpack.i.bf16 %v4235_v52, %v4252_v55  ;;  %v3927_v19 = vpack.i.bf16 %v4247_v54, %v4264_v58  ;;  %v120_v23 = vld [vmem:[%s7614_s0 + $0xb] sm:$0xff] }
  0x10   :  { %v116_v0 = vld [vmem:[%s7614_s0 + $0xa1] sm:$0xff]  ;;  %v3922_v20 = vpack.i.bf16 %v4259_v57, %v4201_v44  ;;  %v119_v24 = vld [vmem:[%s7614_s0 + $0xaa] sm:$0x3] }
  0x11   :  { %v3887_v3 = vpack.i.bf16 %v116_v0, %v4146_v31  ;;  %v4354_v30 = vld [vmem:[%s7614_s0 + $0x1b] sm:$0xff]  ;;  %v4361_v31 = vld [vmem:[%s7614_s0 + $0x13] sm:$0xff] }
  0x12   :  { %v952_v0 = vld [vmem:[%s7615_s1 + $0x70] sm:$0xff] }
  0x14   :  { %3783 = vrot.lane.b32.xlu2 %v3782_v22, %s3949_s19  ;;  %v4329_v22 = vld [vmem:[%s7614_s0 + $0xa2] sm:$0xff] }
  0x15   :  { %3778 = vrot.lane.b32.xlu1 %v3777_v25, %s3949_s19  ;;  %v3937_v25 = vpack.i.bf16 %v4329_v22, %v4240_v53 }
  0x16   :  { %3773 = vrot.lane.b32.xlu0 %v3772_v26, %s3949_s19 }
  0x1c   :  { %3793 = vrot.lane.b32.xlu2 %v3792_v29, %s3950_s15  ;;  %v4349_v29 = vld [vmem:[%s7614_s0 + $0x23] sm:$0xff] }
  0x1d   :  { %227 = vrot.lane.b32.xlu1 %v94_v32, %s3949_s19 }
  0x1e   :  { %3788 = vrot.lane.b32.xlu0 %v3787_v33, %s3949_s19 }
  0x24   :  { %3808 = vrot.lane.b32.xlu2 %v3807_v38, %s3950_s15 }
  0x25   :  { %3803 = vrot.lane.b32.xlu1 %v3802_v41, %s3950_s15  ;;  %v4376_v41 = vld [vmem:[%s7614_s0 + $0x3b] sm:$0xff] }
  0x26   :  { %3798 = vrot.lane.b32.xlu0 %v3797_v42, %s3950_s15  ;;  %v4381_v42 = vld [vmem:[%s7614_s0 + $0x33] sm:$0xff] }
  0x2c   :  { %3823 = vrot.lane.b32.xlu2 %v3822_v47, %s3950_s15  ;;  %v4388_v47 = vld [vmem:[%s7614_s0 + $0x2b] sm:$0xff] }
  0x2d   :  { %3818 = vrot.lane.b32.xlu1 %v3817_v50, %s3950_s15 }
  0x2e   :  { %3813 = vrot.lane.b32.xlu0 %v3812_v51, %s3950_s15 }
  0x34   :  { %3838 = vrot.lane.b32.xlu2 %v3837_v56, %s3950_s15 }
  0x35   :  { %3833 = vrot.lane.b32.xlu1 %v3832_v59, %s3950_s15  ;;  %v4403_v59 = vld [vmem:[%s7614_s0 + $0x53] sm:$0xff] }
  0x36   :  { %3828 = vrot.lane.b32.xlu0 %v3827_v60, %s3950_s15  ;;  %v4408_v60 = vld [vmem:[%s7614_s0 + $0x4b] sm:$0xff] }
  0x37   :  { %7661 = vst [vmem:[#allocation5_spill] sm:$0xff] %v4408_v60 }
  0x3c   :  { %3848 = vrot.lane.b32.xlu2 %v3847_v61, %s3951_s13  ;;  %v4415_v61 = vld [vmem:[%s7614_s0 + $0x43] sm:$0xff] }
  0x3d   :  { %3843 = vrot.lane.b32.xlu1 %v3842_v62, %s3951_s13 }
  0x3e   :  { %311 = vrot.lane.b32.xlu0 %v115_v63, %s3950_s15 }
  0x44   :  { %3863 = vrot.lane.b32.xlu2 %v3862_v2, %s3951_s13 }
  0x45   :  { %3858 = vrot.lane.b32.xlu1 %v3857_v6, %s3951_s13  ;;  %v4430_v6 = vld [vmem:[%s7614_s0 + $0x6b] sm:$0xff] }
  0x46   :  { %3853 = vrot.lane.b32.xlu0 %v3852_v4, %s3951_s13  ;;  %7662 = vst [vmem:[#allocation6_spill] sm:$0xff] %v4430_v6  ;;  %v953_v4 = vld [vmem:[%s7615_s1 + $0x78] sm:$0xff] }
  0x47   :  { %1029 = vmatpush.msra.mxu0 %v953_v4  ;;  %v4513_v4 = vld [vmem:[%s7614_s0 + $0x93] sm:$0xff] }
  0x48   :  { %7669 = vst [vmem:[#allocation13_spill] sm:$0xff] %v4513_v4 }
  0x49   :  { %1030 = vmatpush.msra.mxu0 %v952_v0  ;;  %v4520_v0 = vld [vmem:[%s7614_s0 + $0x8b] sm:$0xff] }
  0x4a   :  { %7670 = vst [vmem:[#allocation14_spill] sm:$0xff] %v4520_v0 }
  0x4c   :  { %3878 = vrot.lane.b32.xlu2 %v3877_v5, %s3951_s13  ;;  %v4438_v5 = vld [vmem:[%s7614_s0 + $0x63] sm:$0xff] }
  0x4d   :  { %3873 = vrot.lane.b32.xlu1 %v3872_v7, %s3951_s13  ;;  %7663 = vst [vmem:[#allocation7_spill] sm:$0xff] %v4438_v5  ;;  %v4445_v7 = vld [vmem:[%s7614_s0 + $0x5b] sm:$0xff] }
  0x4e   :  { %3868 = vrot.lane.b32.xlu0 %v3867_v9, %s3951_s13 }
  0x54   :  { %376 = vrot.lane.b32.xlu2 %v117_v1, %s3951_s13 }
  0x55   :  { %3888 = vrot.lane.b32.xlu1 %v3887_v3, %s3951_s13 }
  0x56   :  { %3883 = vrot.lane.b32.xlu0 %v3882_v8, %s3951_s13  ;;  %v4463_v8 = vld [vmem:[%s7614_s0 + $0x83] sm:$0xff] }
  0x57   :  { %7665 = vst [vmem:[#allocation9_spill] sm:$0xff] %v4463_v8 }
  0x5c   :  { %3903 = vrot.lane.b32.xlu2 %v3902_v10, %s3952_s22  ;;  %v951_v10 = vld [vmem:[%s7615_s1 + $0x68] sm:$0xff] }
  0x5d   :  { %3898 = vrot.lane.b32.xlu1 %v3897_v11, %s3952_s22  ;;  %v950_v11 = vld [vmem:[%s7615_s1 + $0x60] sm:$0xff]  ;;  %1031 = vmatpush.msra.mxu0 %v951_v10  ;;  %v945_v10 = vld [vmem:[%s7615_s1 + $0x38] sm:$0xff] }
  0x5e   :  { %v4308_v13 = vpop.permute.xlu2 %3763  ;;  %3893 = vrot.lane.b32.xlu0 %v3892_v12, %s3952_s22  ;;  %v4474_v12 = vld [vmem:[%s7614_s0 + $0x7b] sm:$0xff] }
  0x5f   :  { %7666 = vst [vmem:[#allocation10_spill] sm:$0xff] %v4474_v12  ;;  %1032 = vmatpush.msra.mxu0 %v950_v11 }
  0x64   :  { %3918 = vrot.lane.b32.xlu2 %v3917_v14, %s3952_s22  ;;  %v4481_v14 = vld [vmem:[%s7614_s0 + $0x73] sm:$0xff] }
  0x65   :  { %3913 = vrot.lane.b32.xlu1 %v3912_v15, %s3952_s22  ;;  %7667 = vst [vmem:[#allocation11_spill] sm:$0xff] %v4481_v14  ;;  %v949_v15 = vld [vmem:[%s7615_s1 + $0x58] sm:$0xff] }
  0x66   :  { %v4316_v17 = vpop.permute.xlu2 %3768  ;;  %3908 = vrot.lane.b32.xlu0 %v3907_v16, %s3952_s22  ;;  %1033 = vmatpush.msra.mxu0 %v949_v15  ;;  %v944_v15 = vld [vmem:[%s7615_s1 + $0x30] sm:$0xff] }
  0x6c   :  { %3933 = vrot.lane.b32.xlu2 %v3932_v18, %s3952_s22  ;;  %v948_v18 = vld [vmem:[%s7615_s1 + $0x50] sm:$0xff] }
  0x6d   :  { %3928 = vrot.lane.b32.xlu1 %v3927_v19, %s3952_s22  ;;  %1034 = vmatpush.msra.mxu0 %v948_v18 }
  0x6e   :  { %v4324_v21 = vpop.permute.xlu2 %3783  ;;  %3923 = vrot.lane.b32.xlu0 %v3922_v20, %s3952_s22 }
  0x74   :  { %485 = vrot.lane.b32.xlu2 %v120_v23, %s3953_s29  ;;  %v4502_v23 = vld [vmem:[%s7614_s0 + $0x9b] sm:$0xff] }
  0x75   :  { %441 = vrot.lane.b32.xlu1 %v119_v24, %s3952_s22  ;;  %7668 = vst [vmem:[#allocation12_spill] sm:$0xff] %v4502_v23  ;;  %v947_v24 = vld [vmem:[%s7615_s1 + $0x48] sm:$0xff] }
  0x76   :  { %v4340_v26 = vpop.permute.xlu2 %3793  ;;  %3938 = vrot.lane.b32.xlu0 %v3937_v25, %s3952_s22  ;;  %v946_v25 = vld [vmem:[%s7615_s1 + $0x40] sm:$0xff]  ;;  %1035 = vmatpush.msra.mxu0 %v947_v24 }
  0x77   :  { %v4342_v27 = vpop.permute.xlu1 %3753 }
  0x78   :  { %7660 = vst [vmem:[#allocation4_spill] sm:$0xff] %v4342_v27  ;;  %v4344_v28 = vpop.permute.xlu0 %3743  ;;  %1036 = vmatpush.msra.mxu0 %v946_v25  ;;  %v943_v25 = vld [vmem:[%s7615_s1 + $0x28] sm:$0xff] }
  0x7a   :  { %1037 = vmatpush.msra.mxu0 %v945_v10  ;;  %v140_v10 = vld [vmem:[%s7614_s0 + $0xab] sm:$0x3] }
  0x7c   :  { %491 = vrot.lane.b32.xlu2 %v4349_v29, %s3953_s29  ;;  %1038 = vmatpush.msra.mxu0 %v944_v15  ;;  %v4552_v15 = vld [vmem:[%s7614_s0 + $0xa3] sm:$0xff] }
  0x7d   :  { %489 = vrot.lane.b32.xlu1 %v4354_v30, %s3953_s29  ;;  %7671 = vst [vmem:[#allocation15_spill] sm:$0xff] %v4552_v15 }
  0x7e   :  { %v4365_v32 = vpop.permute.xlu2 %3808  ;;  %487 = vrot.lane.b32.xlu0 %v4361_v31, %s3953_s29  ;;  %1039 = vmatpush.msra.mxu0 %v943_v25 }
  0x7f   :  { %v4369_v33 = vpop.permute.xlu1 %3758 }
  0x80   :  { %v4371_v38 = vpop.permute.xlu0 %3748 }
  0x84   :  { %497 = vrot.lane.b32.xlu2 %v4376_v41, %s3953_s29 }
  0x85   :  { %495 = vrot.lane.b32.xlu1 %v4381_v42, %s3953_s29 }
  0x86   :  { %v4392_v50 = vpop.permute.xlu2 %3823  ;;  %493 = vrot.lane.b32.xlu0 %v4388_v47, %s3953_s29 }
  0x87   :  { %v4396_v51 = vpop.permute.xlu1 %3778 }
  0x88   :  { %v4398_v56 = vpop.permute.xlu0 %3773 }
  0x8c   :  { %503 = vrot.lane.b32.xlu2 %v4403_v59, %s3953_s29 }
  0x8d   :  { %501 = vrot.lane.b32.xlu1 %v4408_v60, %s3953_s29  ;;  %v3785_v60 = vunpack.i.l.bf16 %v4324_v21 }
  0x8e   :  { %v4419_v62 = vpop.permute.xlu2 %3838  ;;  %499 = vrot.lane.b32.xlu0 %v4415_v61, %s3953_s29 }
  0x8f   :  { %v4423_v63 = vpop.permute.xlu1 %227 }
  0x90   :  { %v4425_v2 = vpop.permute.xlu0 %3788 }
  0x94   :  { %509 = vrot.lane.b32.xlu2 %v4430_v6, %s3953_s29 }
  0x95   :  { %507 = vrot.lane.b32.xlu1 %v4438_v5, %s3953_s29 }
  0x96   :  { %v4449_v9 = vpop.permute.xlu2 %3848  ;;  %505 = vrot.lane.b32.xlu0 %v4445_v7, %s3953_s29 }
  0x97   :  { %v4456_v1 = vpop.permute.xlu1 %3803 }
  0x98   :  { %7664 = vst [vmem:[#allocation8_spill] sm:$0xff] %v4456_v1  ;;  %v4458_v3 = vpop.permute.xlu0 %3798 }
  0x9c   :  { %515 = vrot.lane.b32.xlu2 %v4463_v8, %s3953_s29 }
  0x9d   :  { %513 = vrot.lane.b32.xlu1 %v4474_v12, %s3953_s29 }
  0x9e   :  { %v4488_v16 = vpop.permute.xlu2 %3863  ;;  %511 = vrot.lane.b32.xlu0 %v4481_v14, %s3953_s29 }
  0x9f   :  { %v4495_v19 = vpop.permute.xlu1 %3818 }
  0xa0   :  { %v4497_v20 = vpop.permute.xlu0 %3813 }
  0xa4   :  { %521 = vrot.lane.b32.xlu2 %v4502_v23, %s3953_s29  ;;  %v941_v23 = vld [vmem:[%s7615_s1 + $0x18] sm:$0xff] }
  0xa5   :  { %519 = vrot.lane.b32.xlu1 %v4513_v4, %s3953_s29  ;;  %v942_v4 = vld [vmem:[%s7615_s1 + $0x20] sm:$0xff] }
  0xa6   :  { %v4527_v11 = vpop.permute.xlu2 %3878  ;;  %517 = vrot.lane.b32.xlu0 %v4520_v0, %s3953_s29  ;;  %1040 = vmatpush.msra.mxu0 %v942_v4  ;;  %v939_v4 = vld [vmem:[%s7615_s1 + $0x8] sm:$0xff]  ;;  %v3821_v0 = vunpack.i.h.bf16 %v4495_v19 }
  0xa7   :  { %v4534_v18 = vpop.permute.xlu1 %3833 }
  0xa8   :  { %v4536_v24 = vpop.permute.xlu0 %3828  ;;  %1041 = vmatpush.msra.mxu0 %v941_v23 }
  0xac   :  { %550 = vrot.lane.b32.xlu2 %v4181_v39, %s3954_s18  ;;  %v940_v39 = vld [vmem:[%s7615_s1 + $0x10] sm:$0xff] }
  0xad   :  { %525 = vrot.lane.b32.xlu1 %v140_v10, %s3953_s29  ;;  %1042 = vmatpush.msra.mxu0 %v940_v39  ;;  %v938_v10 = vld [vmem:[%s7615_s1] sm:$0xff] }
  0xae   :  { %v4558_v12 = vpop.permute.xlu2 %376  ;;  %523 = vrot.lane.b32.xlu0 %v4552_v15, %s3953_s29 }
  0xaf   :  { %v4565_v25 = vpop.permute.xlu1 %3843  ;;  %1043 = vmatpush.msra.mxu0 %v939_v4  ;;  %v3771_v4 = vunpack.i.h.bf16 %v4316_v17 }
  0xb0   :  { %v4567_v8 = vpop.permute.xlu0 %311 }
  0xb1   :  { %1044 = vmatpush.msra.mxu0 %v938_v10  ;;  %v63_v10 = vld [vmem:[%s7614_s0 + $0x50] sm:$0xff] }
  0xb4   :  { %556 = vrot.lane.b32.xlu2 %v4174_v37, %s3954_s18  ;;  %v3770_v37 = vunpack.i.l.bf16 %v4316_v17 }
  0xb5   :  { %554 = vrot.lane.b32.xlu1 %v4169_v36, %s3954_s18 }
  0xb6   :  { %v4579_v23 = vpop.permute.xlu2 %3903  ;;  %552 = vrot.lane.b32.xlu0 %v4186_v40, %s3954_s18  ;;  %v64_v40 = vld [vmem:[%s7614_s0 + $0x58] sm:$0xff] }
  0xb7   :  { %7672 = vst [vmem:[#allocation16_spill] sm:$0xff] %v4579_v23  ;;  %v4583_v39 = vpop.permute.xlu1 %3858  ;;  %v773_v23 = vsel %vm762_vm0, %v63_v10, %v3770_v37  ;;  %v774_v14 = vsel %vm762_vm0, %v64_v40, %v3771_v4  ;;  %v3745_v40 = vunpack.i.l.bf16 %v4344_v28 }
  0xb8   :  { %v4585_v15 = vpop.permute.xlu0 %3853 }
  0xb9   :  { %7673 = vst [vmem:[#allocation17_spill] sm:$0xff] %v4585_v15 }
  0xbc   :  { %562 = vrot.lane.b32.xlu2 %v4220_v48, %s3954_s18  ;;  %v3820_v48 = vunpack.i.l.bf16 %v4495_v19  ;;  %v796_v19 = vsel %vm784_vm1, %v774_v14, %v3821_v0  ;;  %v69_v14 = vld [vmem:[%s7614_s0 + $0x80] sm:$0xff] }
  0xbd   :  { %560 = vrot.lane.b32.xlu1 %v4162_v35, %s3954_s18  ;;  %v779_v0 = vsel %vm762_vm0, %v69_v14, %v3785_v60 }
  0xbe   :  { %v3919_v36 = vpop.permute.xlu2 %3918  ;;  %558 = vrot.lane.b32.xlu0 %v4157_v34, %s3954_s18  ;;  %v795_v27 = vsel %vm784_vm1, %v773_v23, %v3820_v48  ;;  %v3786_v23 = vunpack.i.h.bf16 %v4324_v21 }
  0xbf   :  { %v4603_v17 = vpop.permute.xlu1 %3873  ;;  %v3921_v35 = vunpack.i.h.bf16 %v3919_v36  ;;  %v3920_v5 = vunpack.i.l.bf16 %v3919_v36 }
  0xc0   :  { %v3869_v6 = vpop.permute.xlu0 %3868 }
  0xc1   :  { %v3871_v15 = vunpack.i.h.bf16 %v3869_v6  ;;  %v3870_v1 = vunpack.i.l.bf16 %v3869_v6 }
  0xc3   :  { %v817_v34 = vsel %vm806_vm2, %v795_v27, %v3870_v1  ;;  %v818_v36 = vsel %vm806_vm2, %v796_v19, %v3871_v15  ;;  %v70_v27 = vld [vmem:[%s7614_s0 + $0x88] sm:$0xff]  ;;  %v3835_v1 = vunpack.i.l.bf16 %v4534_v18 }
  0xc4   :  { %568 = vrot.lane.b32.xlu2 %v4213_v46, %s3954_s18  ;;  %v4615_v37 = vsel %vm828_vm3, %v817_v34, %v3920_v5  ;;  %v4618_v6 = vsel %vm828_vm3, %v818_v36, %v3921_v35  ;;  %v3836_v5 = vunpack.i.h.bf16 %v4534_v18  ;;  %v53_v18 = vld [vmem:[%s7614_s0] sm:$0xff]  ;;  %v3795_v36 = vunpack.i.l.bf16 %v4340_v26 }
  0xc5   :  { %566 = vrot.lane.b32.xlu1 %v4208_v45, %s3954_s18  ;;  %v780_v45 = vsel %vm762_vm0, %v70_v27, %v3786_v23  ;;  %v801_v19 = vsel %vm784_vm1, %v779_v0, %v3835_v1  ;;  %v3761_v1 = vunpack.i.h.bf16 %v4369_v33  ;;  %v3760_v0 = vunpack.i.l.bf16 %v4369_v33 }
  0xc6   :  { %v3934_v46 = vpop.permute.xlu2 %3933  ;;  %564 = vrot.lane.b32.xlu0 %v4225_v49, %s3954_s18  ;;  %v802_v49 = vsel %vm784_vm1, %v780_v45, %v3836_v5  ;;  %v3765_v5 = vunpack.i.l.bf16 %v4308_v13 }
  0xc7   :  { %v4633_v21 = vpop.permute.xlu1 %3888  ;;  %v3936_v15 = vunpack.i.h.bf16 %v3934_v46  ;;  %v3935_v4 = vunpack.i.l.bf16 %v3934_v46  ;;  %v763_v46 = vsel %vm762_vm0, %v53_v18, %v3745_v40  ;;  %v3816_v40 = vunpack.i.h.bf16 %v4497_v20 }
  0xc8   :  { %v3884_v10 = vpop.permute.xlu0 %3883  ;;  %v785_v33 = vsel %vm784_vm1, %v763_v46, %v3795_v36  ;;  %v3811_v18 = vunpack.i.h.bf16 %v4365_v32 }
  0xc9   :  { %v3886_v48 = vunpack.i.h.bf16 %v3884_v10  ;;  %v3885_v35 = vunpack.i.l.bf16 %v3884_v10  ;;  %v59_v10 = vld [vmem:[%s7614_s0 + $0x30] sm:$0xff] }
  0xcb   :  { %v823_v60 = vsel %vm806_vm2, %v801_v19, %v3885_v35  ;;  %v824_v34 = vsel %vm806_vm2, %v802_v49, %v3886_v48  ;;  %v3815_v48 = vunpack.i.l.bf16 %v4497_v20  ;;  %v3810_v19 = vunpack.i.l.bf16 %v4365_v32 }
  0xcc   :  { %574 = vrot.lane.b32.xlu2 %v4259_v57, %s3954_s18  ;;  %v4649_v23 = vsel %vm828_vm3, %v823_v60, %v3935_v4  ;;  %v4652_v14 = vsel %vm828_vm3, %v824_v34, %v3936_v15  ;;  %v3845_v57 = vunpack.i.l.bf16 %v4565_v25  ;;  %v3766_v4 = vunpack.i.h.bf16 %v4308_v13  ;;  %v62_v13 = vld [vmem:[%s7614_s0 + $0x48] sm:$0xff] }
  0xcd   :  { %7674 = vst [vmem:[#allocation18_spill] sm:$0xff] %v4649_v23  ;;  %572 = vrot.lane.b32.xlu1 %v4201_v44, %s3954_s18  ;;  %v61_v44 = vld [vmem:[%s7614_s0 + $0x40] sm:$0xff]  ;;  %v769_v34 = vsel %vm762_vm0, %v59_v10, %v3760_v0  ;;  %v3865_v23 = vunpack.i.l.bf16 %v4488_v16  ;;  %v3860_v0 = vunpack.i.l.bf16 %v4583_v39  ;;  %v3776_v10 = vunpack.i.h.bf16 %v4398_v56 }
  0xce   :  { %7675 = vst [vmem:[#allocation19_spill] sm:$0xff] %v4652_v14  ;;  %v4657_v27 = vpop.permute.xlu2 %485  ;;  %570 = vrot.lane.b32.xlu0 %v4196_v43, %s3954_s18  ;;  %v60_v43 = vld [vmem:[%s7614_s0 + $0x38] sm:$0xff]  ;;  %v807_v49 = vsel %vm806_vm2, %v785_v33, %v3845_v57  ;;  %v771_v60 = vsel %vm762_vm0, %v61_v44, %v3765_v5  ;;  %v772_v20 = vsel %vm762_vm0, %v62_v13, %v3766_v4  ;;  %v3866_v14 = vunpack.i.h.bf16 %v4488_v16 }
  0xcf   :  { %v4665_v15 = vpop.permute.xlu1 %3898  ;;  %v770_v36 = vsel %vm762_vm0, %v60_v43, %v3761_v1  ;;  %v793_v5 = vsel %vm784_vm1, %v771_v60, %v3815_v48  ;;  %v794_v1 = vsel %vm784_vm1, %v772_v20, %v3816_v40  ;;  %v791_v16 = vsel %vm784_vm1, %v769_v34, %v3810_v19 }
  0xd0   :  { %v4677_v45 = vpop.permute.xlu0 %3893  ;;  %v792_v4 = vsel %vm784_vm1, %v770_v36, %v3811_v18  ;;  %v3781_v44 = vunpack.i.h.bf16 %v4396_v51  ;;  %v3775_v43 = vunpack.i.l.bf16 %v4398_v56  ;;  %v3831_v18 = vunpack.i.h.bf16 %v4536_v24 }
  0xd1   :  { %v3895_v35 = vunpack.i.l.bf16 %v4677_v45  ;;  %v3830_v56 = vunpack.i.l.bf16 %v4536_v24  ;;  %v813_v60 = vsel %vm806_vm2, %v791_v16, %v3860_v0  ;;  %v3826_v24 = vunpack.i.h.bf16 %v4392_v50 }
  0xd2   :  { %v3825_v20 = vunpack.i.l.bf16 %v4392_v50  ;;  %v3880_v50 = vunpack.i.l.bf16 %v4527_v11 }
  0xd3   :  { %v829_v46 = vsel %vm828_vm3, %v807_v49, %v3895_v35  ;;  %v65_v35 = vld [vmem:[%s7614_s0 + $0x60] sm:$0xff] }
  0xd4   :  { %580 = vrot.lane.b32.xlu2 %v4252_v55, %s3954_s18  ;;  %v851_v32 = vsel %vm850_vm4, %v829_v46, %v4657_v27  ;;  %v3861_v55 = vunpack.i.h.bf16 %v4583_v39  ;;  %v815_v39 = vsel %vm806_vm2, %v793_v5, %v3865_v23  ;;  %v67_v23 = vld [vmem:[%s7614_s0 + $0x70] sm:$0xff] }
  0xd5   :  { %1045 = vmatmul.f32.vlgmr.msra.gmra.mxu0 %v851_v32  ;;  %578 = vrot.lane.b32.xlu1 %v4247_v54, %s3954_s18  ;;  %v3780_v54 = vunpack.i.l.bf16 %v4396_v51  ;;  %v66_v51 = vld [vmem:[%s7614_s0 + $0x68] sm:$0xff] }
  0xd6   :  { %v4702_v57 = vpop.permute.xlu2 %491  ;;  %576 = vrot.lane.b32.xlu0 %v4264_v58, %s3954_s18  ;;  %v816_v58 = vsel %vm806_vm2, %v794_v1, %v3866_v14  ;;  %v68_v14 = vld [vmem:[%s7614_s0 + $0x78] sm:$0xff]  ;;  %v814_v34 = vsel %vm806_vm2, %v792_v4, %v3861_v55  ;;  %v775_v1 = vsel %vm762_vm0, %v65_v35, %v3775_v43  ;;  %v776_v55 = vsel %vm762_vm0, %v66_v51, %v3776_v10 }
  0xd7   :  { %v3914_v33 = vpop.permute.xlu1 %3913  ;;  %v777_v0 = vsel %vm762_vm0, %v67_v23, %v3780_v54  ;;  %v778_v16 = vsel %vm762_vm0, %v68_v14, %v3781_v44  ;;  %v3881_v4 = vunpack.i.h.bf16 %v4527_v11  ;;  %v797_v43 = vsel %vm784_vm1, %v775_v1, %v3825_v20 }
  0xd8   :  { %v3916_v13 = vunpack.i.h.bf16 %v3914_v33  ;;  %v3915_v40 = vunpack.i.l.bf16 %v3914_v33  ;;  %v3909_v48 = vpop.permute.xlu0 %3908  ;;  %v3876_v33 = vunpack.i.h.bf16 %v4603_v17  ;;  %v799_v54 = vsel %vm784_vm1, %v777_v0, %v3830_v56  ;;  %v142_v56 = vld [vmem:[%s7614_s0 + $0xb2] sm:$0x3] }
  0xd9   :  { %v3911_v19 = vunpack.i.h.bf16 %v3909_v48  ;;  %v3910_v49 = vunpack.i.l.bf16 %v3909_v48  ;;  %v800_v44 = vsel %vm784_vm1, %v778_v16, %v3831_v18  ;;  %v798_v11 = vsel %vm784_vm1, %v776_v55, %v3826_v24  ;;  %v141_v24 = vld [vmem:[%s7614_s0 + $0xaa] sm:$0xff] }
  0xda   :  { %v4735_v36 = vsel %vm828_vm3, %v815_v39, %v3915_v40  ;;  %v4738_v46 = vsel %vm828_vm3, %v816_v58, %v3916_v13  ;;  %v3875_v13 = vunpack.i.l.bf16 %v4603_v17  ;;  %v3791_v40 = vunpack.i.h.bf16 %v4425_v2 }
  0xdb   :  { %v4745_v32 = vsel %vm828_vm3, %v813_v60, %v3910_v49  ;;  %v4748_v5 = vsel %vm828_vm3, %v814_v34, %v3911_v19  ;;  %v3790_v17 = vunpack.i.l.bf16 %v4425_v2  ;;  %v821_v51 = vsel %vm806_vm2, %v799_v54, %v3880_v50  ;;  %v71_v60 = vld [vmem:[%s7614_s0 + $0x90] sm:$0xff]  ;;  %v72_v34 = vld [vmem:[%s7614_s0 + $0x98] sm:$0xff]  ;;  %v54_v54 = vld [vmem:[%s7614_s0 + $0x8] sm:$0xff] }
  0xdc   :  { %586 = vrot.lane.b32.xlu2 %v4329_v22, %s3954_s18  ;;  %v822_v18 = vsel %vm806_vm2, %v800_v44, %v3881_v4  ;;  %v819_v19 = vsel %vm806_vm2, %v797_v43, %v3875_v13  ;;  %v820_v49 = vsel %vm806_vm2, %v798_v11, %v3876_v33  ;;  %v3841_v55 = vunpack.i.h.bf16 %v4419_v62 }
  0xdd   :  { %584 = vrot.lane.b32.xlu1 %v4240_v53, %s3954_s18  ;;  %v73_v53 = vld [vmem:[%s7614_s0 + $0xa0] sm:$0x3]  ;;  %v3840_v0 = vunpack.i.l.bf16 %v4419_v62  ;;  %v781_v16 = vsel %vm762_vm0, %v71_v60, %v3790_v17  ;;  %v782_v4 = vsel %vm762_vm0, %v72_v34, %v3791_v40  ;;  %v3891_v50 = vunpack.i.h.bf16 %v4633_v21 }
  0xde   :  { %v4758_v22 = vpop.permute.xlu2 %497  ;;  %582 = vrot.lane.b32.xlu0 %v4235_v52, %s3954_s18  ;;  %v783_v14 = vsel %vm762_vm0, %v73_v53, %v4423_v63  ;;  %v3890_v33 = vunpack.i.l.bf16 %v4633_v21  ;;  %v804_v53 = vsel %vm784_vm1, %v782_v4, %v3841_v55 }
  0xdf   :  { %v3929_v10 = vpop.permute.xlu1 %3928  ;;  %v805_v1 = vsel %vm784_vm1, %v783_v14, %v4567_v8  ;;  %v3746_v8 = vunpack.i.h.bf16 %v4344_v28  ;;  %v803_v21 = vsel %vm784_vm1, %v781_v16, %v3840_v0  ;;  %v3796_v28 = vunpack.i.h.bf16 %v4340_v26 }
  0xe0   :  { %v3931_v48 = vunpack.i.h.bf16 %v3929_v10  ;;  %v3930_v39 = vunpack.i.l.bf16 %v3929_v10  ;;  %v3924_v52 = vpop.permute.xlu0 %3923  ;;  %v827_v62 = vsel %vm806_vm2, %v805_v1, %v4558_v12  ;;  %v825_v40 = vsel %vm806_vm2, %v803_v21, %v3890_v33 }
  0xe1   :  { %v3926_v58 = vunpack.i.h.bf16 %v3924_v52  ;;  %v3925_v35 = vunpack.i.l.bf16 %v3924_v52  ;;  %v826_v12 = vsel %vm806_vm2, %v804_v53, %v3891_v50  ;;  %v764_v17 = vsel %vm762_vm0, %v54_v54, %v3746_v8  ;;  %v7676_v8 = vld [vmem:[#allocation5_spill] sm:$0xff] }
  0xe2   :  { %v4781_v23 = vsel %vm828_vm3, %v821_v51, %v3930_v39  ;;  %v4784_v2 = vsel %vm828_vm3, %v822_v18, %v3931_v48  ;;  %v3846_v48 = vunpack.i.h.bf16 %v4565_v25  ;;  %v786_v25 = vsel %vm784_vm1, %v764_v17, %v3796_v28 }
  0xe3   :  { %v4800_v20 = vsel %vm828_vm3, %v819_v19, %v3925_v35  ;;  %v4803_v63 = vsel %vm828_vm3, %v820_v49, %v3926_v58  ;;  %v3896_v58 = vunpack.i.h.bf16 %v4677_v45  ;;  %v55_v45 = vld [vmem:[%s7614_s0 + $0x10] sm:$0xff]  ;;  %v3800_v18 = vunpack.i.l.bf16 %v4458_v3 }
  0xe4   :  { %615 = vrot.lane.b32.xlu2 %v4361_v31, %s3955_s28  ;;  %v808_v51 = vsel %vm806_vm2, %v786_v25, %v3846_v48  ;;  %v3850_v49 = vunpack.i.l.bf16 %v4449_v9  ;;  %v3900_v14 = vunpack.i.l.bf16 %v4665_v15  ;;  %v3801_v0 = vunpack.i.h.bf16 %v4458_v3 }
  0xe5   :  { %590 = vrot.lane.b32.xlu1 %v142_v56, %s3954_s18  ;;  %v830_v56 = vsel %vm828_vm3, %v808_v51, %v3896_v58  ;;  %v3901_v50 = vunpack.i.h.bf16 %v4665_v15  ;;  %v7678_v15 = vld [vmem:[#allocation8_spill] sm:$0xff]  ;;  %v7682_v58 = vld [vmem:[#allocation6_spill] sm:$0xff]  ;;  %v7683_v51 = vld [vmem:[#allocation7_spill] sm:$0xff] }
  0xe6   :  { %v4810_v31 = vpop.permute.xlu2 %503  ;;  %588 = vrot.lane.b32.xlu0 %v141_v24, %s3954_s18  ;;  %v3751_v24 = vunpack.i.h.bf16 %v4371_v38 }
  0xe7   :  { %v442_v13 = vpop.permute.xlu1 %441 }
  0xe8   :  { %v4824_v44 = vsel %vm828_vm3, %v827_v62, %v442_v13  ;;  %v3939_v10 = vpop.permute.xlu0 %3938  ;;  %v7677_v13 = vld [vmem:[#allocation4_spill] sm:$0xff] }
  0xe9   :  { %v3941_v43 = vunpack.i.h.bf16 %v3939_v10  ;;  %v3940_v11 = vunpack.i.l.bf16 %v3939_v10  ;;  %v3755_v62 = vunpack.i.l.bf16 %v7677_v13  ;;  %v3805_v10 = vunpack.i.l.bf16 %v7678_v15 }
  0xeb   :  { %v4836_v39 = vsel %vm828_vm3, %v825_v40, %v3940_v11  ;;  %v4839_v52 = vsel %vm828_vm3, %v826_v12, %v3941_v43  ;;  %v7679_v11 = vld [vmem:[#allocation17_spill] sm:$0xff]  ;;  %v7680_v40 = vld [vmem:[#allocation11_spill] sm:$0xff]  ;;  %v7681_v12 = vld [vmem:[#allocation16_spill] sm:$0xff] }
  0xec   :  { %621 = vrot.lane.b32.xlu2 %v4388_v47, %s3955_s28  ;;  %v3750_v47 = vunpack.i.l.bf16 %v4371_v38  ;;  %v3855_v21 = vunpack.i.l.bf16 %v7679_v11  ;;  %v3905_v17 = vunpack.i.l.bf16 %v7681_v12 }
  0xed   :  { %619 = vrot.lane.b32.xlu1 %v4349_v29, %s3955_s28 }
  0xee   :  { %v4844_v26 = vpop.permute.xlu2 %509  ;;  %617 = vrot.lane.b32.xlu0 %v4354_v30, %s3955_s28  ;;  %v765_v19 = vsel %vm762_vm0, %v55_v45, %v3750_v47  ;;  %v3756_v45 = vunpack.i.h.bf16 %v7677_v13 }
  0xef   :  { %v4850_v35 = vpop.permute.xlu1 %489  ;;  %v787_v60 = vsel %vm784_vm1, %v765_v19, %v3800_v18 }
  0xf0   :  { %v4857_v29 = vpop.permute.xlu0 %487  ;;  %v809_v55 = vsel %vm806_vm2, %v787_v60, %v3850_v49 }
  0xf1   :  { %v852_v30 = vsel %vm850_vm4, %v830_v56, %v4857_v29  ;;  %v58_v56 = vld [vmem:[%s7614_s0 + $0x28] sm:$0xff] }
  0xf2   :  { %1048 = vmatmul.f32.gmra.mxu0 %v852_v30  ;;  %v3806_v30 = vunpack.i.h.bf16 %v7678_v15  ;;  %v7689_v15 = vld [vmem:[#allocation13_spill] sm:$0xff] }
  0xf4   :  { %627 = vrot.lane.b32.xlu2 %v4415_v61, %s3955_s28  ;;  %v56_v61 = vld [vmem:[%s7614_s0 + $0x18] sm:$0xff] }
  0xf5   :  { %625 = vrot.lane.b32.xlu1 %v4376_v41, %s3955_s28  ;;  %v831_v41 = vsel %vm828_vm3, %v809_v55, %v3900_v14  ;;  %v766_v38 = vsel %vm762_vm0, %v56_v61, %v3751_v24  ;;  %v3856_v14 = vunpack.i.h.bf16 %v7679_v11  ;;  %v768_v24 = vsel %vm762_vm0, %v58_v56, %v3756_v45  ;;  %v7684_v55 = vld [vmem:[#allocation14_spill] sm:$0xff]  ;;  %v145_v11 = vld [vmem:[%s7614_s0 + $0x14] sm:$0xff] }
  0xf6   :  { %v4870_v34 = vpop.permute.xlu2 %515  ;;  %623 = vrot.lane.b32.xlu0 %v4381_v42, %s3955_s28  ;;  %v853_v4 = vsel %vm850_vm4, %v831_v41, %v4850_v35  ;;  %v3851_v42 = vunpack.i.h.bf16 %v4449_v9  ;;  %v788_v33 = vsel %vm784_vm1, %v766_v38, %v3801_v0  ;;  %v3906_v61 = vunpack.i.h.bf16 %v7681_v12  ;;  %v7685_v41 = vld [vmem:[#allocation9_spill] sm:$0xff]  ;;  %v151_v56 = vld [vmem:[%s7614_s0 + $0x44] sm:$0xff] }
  0xf7   :  { %v4875_v1 = vpop.permute.xlu1 %495  ;;  %v790_v0 = vsel %vm784_vm1, %v768_v24, %v3806_v30 }
  0xf8   :  { %v4882_v16 = vpop.permute.xlu0 %493  ;;  %v810_v9 = vsel %vm806_vm2, %v788_v33, %v3851_v42  ;;  %v812_v38 = vsel %vm806_vm2, %v790_v0, %v3856_v14  ;;  %v7686_v42 = vld [vmem:[#allocation10_spill] sm:$0xff]  ;;  %v149_v14 = vld [vmem:[%s7614_s0 + $0x34] sm:$0xff] }
  0xf9   :  { %v153_v0 = vld [vmem:[%s7614_s0 + $0x54] sm:$0xff] }
  0xfa   :  { %1051 = vmatmul.f32.gmra.mxu0 %v853_v4 }
  0xfc   :  { %633 = vrot.lane.b32.xlu2 %v4445_v7, %s3955_s28  ;;  %v57_v7 = vld [vmem:[%s7614_s0 + $0x20] sm:$0xff] }
  0xfd   :  { %631 = vrot.lane.b32.xlu1 %v4403_v59, %s3955_s28  ;;  %v832_v59 = vsel %vm828_vm3, %v810_v9, %v3901_v50  ;;  %v767_v28 = vsel %vm762_vm0, %v57_v7, %v3755_v62  ;;  %v7687_v62 = vld [vmem:[#allocation15_spill] sm:$0xff]  ;;  %v7688_v9 = vld [vmem:[#allocation12_spill] sm:$0xff] }
  0xfe   :  { %v4895_v3 = vpop.permute.xlu2 %521  ;;  %629 = vrot.lane.b32.xlu0 %v7676_v8, %s3955_s28  ;;  %v854_v53 = vsel %vm850_vm4, %v832_v59, %v4702_v57  ;;  %v789_v48 = vsel %vm784_vm1, %v767_v28, %v3805_v10  ;;  %v834_v8 = vsel %vm828_vm3, %v812_v38, %v3906_v61  ;;  %v143_v28 = vld [vmem:[%s7614_s0 + $0xab] sm:$0xff]  ;;  %v860_v61 = vsel %vm850_vm4, %v4738_v46, %v4810_v31 }
  0xff   :  { %v4900_v54 = vpop.permute.xlu1 %501  ;;  %v811_v47 = vsel %vm806_vm2, %v789_v48, %v3855_v21  ;;  %v856_v13 = vsel %vm850_vm4, %v834_v8, %v4875_v1  ;;  %v857_v21 = vsel %vm850_vm4, %v4745_v32, %v4758_v22  ;;  %v157_v8 = vld [vmem:[%s7614_s0 + $0x74] sm:$0xff]  ;;  %vm2294_vm2 = vcmask 343040  }
 0x100   :  { %v4907_v43 = vpop.permute.xlu0 %499  ;;  %v833_v49 = vsel %vm828_vm3, %v811_v47, %v3905_v17  ;;  %v148_v17 = vld [vmem:[%s7614_s0 + $0x2c] sm:$0xff]  ;;  %v146_v47 = vld [vmem:[%s7614_s0 + $0x1c] sm:$0xff]  ;;  %v859_v30 = vsel %vm850_vm4, %v4735_v36, %v4900_v54  ;;  %vm2344_vm3 = vcmask 441344  }
 0x101   :  { %v855_v60 = vsel %vm850_vm4, %v833_v49, %v4882_v16  ;;  %v858_v48 = vsel %vm850_vm4, %v4748_v5, %v4907_v43  ;;  %v150_v49 = vld [vmem:[%s7614_s0 + $0x3c] sm:$0xff] }
 0x102   :  { %1054 = vmatmul.f32.gmra.mxu0 %v854_v53  ;;  %v144_v53 = vld [vmem:[%s7614_s0 + $0xb3] sm:$0x3] }
 0x104   :  { %639 = vrot.lane.b32.xlu2 %v7680_v40, %s3955_s28 }
 0x105   :  { %637 = vrot.lane.b32.xlu1 %v7682_v58, %s3955_s28  ;;  %v147_v58 = vld [vmem:[%s7614_s0 + $0x24] sm:$0xff] }
 0x106   :  { %v4920_v25 = vpop.permute.xlu2 %550  ;;  %635 = vrot.lane.b32.xlu0 %v7683_v51, %s3955_s28 }
 0x107   :  { %v4926_v18 = vpop.permute.xlu1 %507 }
 0x108   :  { %v4932_v19 = vpop.permute.xlu0 %505 }
 0x10a   :  { %1057 = vmatmul.f32.gmra.mxu0 %v855_v60 }
 0x10c   :  { %645 = vrot.lane.b32.xlu2 %v7684_v55, %s3955_s28  ;;  %v154_v55 = vld [vmem:[%s7614_s0 + $0x5c] sm:$0xff] }
 0x10d   :  { %643 = vrot.lane.b32.xlu1 %v7685_v41, %s3955_s28  ;;  %v152_v41 = vld [vmem:[%s7614_s0 + $0x4c] sm:$0xff] }
 0x10e   :  { %v4945_v4 = vpop.permute.xlu2 %556  ;;  %641 = vrot.lane.b32.xlu0 %v7686_v42, %s3955_s28 }
 0x10f   :  { %v4950_v50 = vpop.permute.xlu1 %513 }
 0x110   :  { %v4952_v33 = vpop.permute.xlu0 %511 }
 0x112   :  { %1060 = vmatmul.f32.gmra.mxu0 %v856_v13  ;;  %v861_v13 = vsel %vm850_vm4, %v4615_v37, %v4932_v19 }
 0x114   :  { %651 = vrot.lane.b32.xlu2 %v7687_v62, %s3955_s28  ;;  %v156_v62 = vld [vmem:[%s7614_s0 + $0x6c] sm:$0xff] }
 0x115   :  { %649 = vrot.lane.b32.xlu1 %v7688_v9, %s3955_s28  ;;  %v155_v9 = vld [vmem:[%s7614_s0 + $0x64] sm:$0xff] }
 0x116   :  { %v4961_v7 = vpop.permute.xlu2 %562  ;;  %647 = vrot.lane.b32.xlu0 %v7689_v15, %s3955_s28 }
 0x117   :  { %v4965_v10 = vpop.permute.xlu1 %519 }
 0x118   :  { %v4967_v59 = vpop.permute.xlu0 %517 }
 0x11a   :  { %1063 = vmatmul.f32.gmra.mxu0 %v857_v21  ;;  %v160_v21 = vld [vmem:[%s7614_s0 + $0x8c] sm:$0xff] }
 0x11c   :  { %699 = vrot.lane.b32.xlu2 %v145_v11, %s3956_s26 }
 0x11d   :  { %655 = vrot.lane.b32.xlu1 %v144_v53, %s3955_s28  ;;  %v862_v53 = vsel %vm850_vm4, %v4618_v6, %v4926_v18 }
 0x11e   :  { %v4983_v40 = vpop.permute.xlu2 %568  ;;  %653 = vrot.lane.b32.xlu0 %v143_v28, %s3955_s28  ;;  %v159_v28 = vld [vmem:[%s7614_s0 + $0x84] sm:$0xff] }
 0x11f   :  { %v4986_v12 = vpop.permute.xlu1 %525 }
 0x120   :  { %7690 = vst [vmem:[#allocation5_spill] sm:$0xff] %v4986_v12  ;;  %v4988_v32 = vpop.permute.xlu0 %523 }
 0x122   :  { %1066 = vmatmul.f32.gmra.mxu0 %v858_v48  ;;  %v963_v48 = vld [vmem:[%s7615_s1 + $0xc8] sm:$0xff] }
 0x124   :  { %705 = vrot.lane.b32.xlu2 %v148_v17, %s3956_s26  ;;  %v964_v17 = vld [vmem:[%s7615_s1 + $0xd0] sm:$0xff] }
 0x125   :  { %703 = vrot.lane.b32.xlu1 %v147_v58, %s3956_s26  ;;  %v158_v58 = vld [vmem:[%s7614_s0 + $0x7c] sm:$0xff]  ;;  %1114 = vmatpush.msra.mxu1 %v964_v17  ;;  %v956_v17 = vld [vmem:[%s7615_s1 + $0x90] sm:$0xff] }
 0x126   :  { %v5004_v51 = vpop.permute.xlu2 %574  ;;  %701 = vrot.lane.b32.xlu0 %v146_v47, %s3956_s26 }
 0x127   :  { %v5007_v45 = vpop.permute.xlu1 %554  ;;  %1115 = vmatpush.msra.mxu1 %v963_v48  ;;  %v164_v48 = vld [vmem:[%s7614_s0 + $0xac] sm:$0xff] }
 0x128   :  { %v5009_v5 = vpop.permute.xlu0 %552 }
 0x12a   :  { %1069 = vmatmul.f32.gmra.mxu0 %v859_v30  ;;  %v163_v30 = vld [vmem:[%s7614_s0 + $0xa4] sm:$0xff] }
 0x12c   :  { %711 = vrot.lane.b32.xlu2 %v151_v56, %s3956_s26 }
 0x12d   :  { %709 = vrot.lane.b32.xlu1 %v150_v49, %s3956_s26  ;;  %v962_v49 = vld [vmem:[%s7615_s1 + $0xc0] sm:$0xff] }
 0x12e   :  { %v5025_v60 = vpop.permute.xlu2 %580  ;;  %707 = vrot.lane.b32.xlu0 %v149_v14, %s3956_s26  ;;  %v863_v14 = vsel %vm850_vm4, %v4800_v20, %v4844_v26  ;;  %1116 = vmatpush.msra.mxu1 %v962_v49  ;;  %v161_v20 = vld [vmem:[%s7614_s0 + $0x94] sm:$0xff] }
 0x12f   :  { %v5028_v24 = vpop.permute.xlu1 %560 }
 0x130   :  { %v5030_v36 = vpop.permute.xlu0 %558 }
 0x132   :  { %1072 = vmatmul.f32.gmra.mxu0 %v860_v61  ;;  %v961_v61 = vld [vmem:[%s7615_s1 + $0xb8] sm:$0xff] }
 0x133   :  { %1117 = vmatpush.msra.mxu1 %v961_v61 }
 0x134   :  { %717 = vrot.lane.b32.xlu2 %v154_v55, %s3956_s26  ;;  %v162_v55 = vld [vmem:[%s7614_s0 + $0x9c] sm:$0xff] }
 0x135   :  { %715 = vrot.lane.b32.xlu1 %v153_v0, %s3956_s26  ;;  %v960_v0 = vld [vmem:[%s7615_s1 + $0xb0] sm:$0xff] }
 0x136   :  { %v5046_v38 = vpop.permute.xlu2 %586  ;;  %713 = vrot.lane.b32.xlu0 %v152_v41, %s3956_s26  ;;  %1118 = vmatpush.msra.mxu1 %v960_v0 }
 0x137   :  { %v5049_v42 = vpop.permute.xlu1 %566 }
 0x138   :  { %v5051_v46 = vpop.permute.xlu0 %564 }
 0x13a   :  { %1075 = vmatmul.f32.gmra.mxu0 %v861_v13 }
 0x13c   :  { %723 = vrot.lane.b32.xlu2 %v157_v8, %s3956_s26  ;;  %v959_v8 = vld [vmem:[%s7615_s1 + $0xa8] sm:$0xff] }
 0x13d   :  { %721 = vrot.lane.b32.xlu1 %v156_v62, %s3956_s26  ;;  %1119 = vmatpush.msra.mxu1 %v959_v8  ;;  %v866_v8 = vsel %vm850_vm4, %v4784_v2, %v4870_v34  ;;  %v7694_v2 = vld [vmem:[#allocation19_spill] sm:$0xff] }
 0x13e   :  { %v5067_v15 = vpop.permute.xlu2 %615  ;;  %719 = vrot.lane.b32.xlu0 %v155_v9, %s3956_s26  ;;  %v958_v9 = vld [vmem:[%s7615_s1 + $0xa0] sm:$0xff] }
 0x13f   :  { %v5070_v11 = vpop.permute.xlu1 %572  ;;  %1120 = vmatpush.msra.mxu1 %v958_v9 }
 0x140   :  { %v5072_v37 = vpop.permute.xlu0 %570 }
 0x142   :  { %1078 = vmatmul.f32.gmra.mxu0 %v862_v53  ;;  %v165_v53 = vld [vmem:[%s7614_s0 + $0xb4] sm:$0x3] }
 0x144   :  { %729 = vrot.lane.b32.xlu2 %v160_v21, %s3956_s26  ;;  %v864_v21 = vsel %vm850_vm4, %v4803_v63, %v4952_v33 }
 0x145   :  { %727 = vrot.lane.b32.xlu1 %v159_v28, %s3956_s26  ;;  %v957_v28 = vld [vmem:[%s7615_s1 + $0x98] sm:$0xff] }
 0x146   :  { %v5094_v6 = vpop.permute.xlu2 %621  ;;  %725 = vrot.lane.b32.xlu0 %v158_v58, %s3956_s26  ;;  %1121 = vmatpush.msra.mxu1 %v957_v28  ;;  %v955_v58 = vld [vmem:[%s7615_s1 + $0x88] sm:$0xff]  ;;  %v7693_v28 = vld [vmem:[#allocation18_spill] sm:$0xff] }
 0x147   :  { %v5097_v47 = vpop.permute.xlu1 %578 }
 0x148   :  { %v5099_v56 = vpop.permute.xlu0 %576  ;;  %1122 = vmatpush.msra.mxu1 %v956_v17 }
 0x14a   :  { %1081 = vmatmul.f32.gmra.mxu0 %v863_v14  ;;  %1123 = vmatpush.msra.mxu1 %v955_v58  ;;  %v954_v14 = vld [vmem:[%s7615_s1 + $0x80] sm:$0xff] }
 0x14c   :  { %735 = vrot.lane.b32.xlu2 %v163_v30, %s3956_s26  ;;  %1124 = vmatpush.msra.mxu1 %v954_v14  ;;  %v868_v14 = vsel %vm850_vm4, %v7694_v2, %v4965_v10  ;;  %v869_v2 = vsel %vm850_vm4, %v4836_v39, %v4895_v3 }
 0x14d   :  { %733 = vrot.lane.b32.xlu1 %v162_v55, %s3956_s26  ;;  %v865_v55 = vsel %vm850_vm4, %v4781_v23, %v4950_v50  ;;  %v867_v23 = vsel %vm850_vm4, %v7693_v28, %v4967_v59 }
 0x14e   :  { %v5124_v41 = vpop.permute.xlu2 %627  ;;  %731 = vrot.lane.b32.xlu0 %v161_v20, %s3956_s26 }
 0x14f   :  { %v5130_v13 = vpop.permute.xlu1 %584 }
 0x150   :  { %v5132_v62 = vpop.permute.xlu0 %582 }
 0x152   :  { %1084 = vmatmul.f32.gmra.mxu0 %v864_v21 }
 0x155   :  { %739 = vrot.lane.b32.xlu1 %v165_v53, %s3956_s26 }
 0x156   :  { %v5153_v63 = vpop.permute.xlu2 %633  ;;  %737 = vrot.lane.b32.xlu0 %v164_v48, %s3956_s26 }
 0x157   :  { %v5159_v30 = vpop.permute.xlu1 %590 }
 0x158   :  { %7691 = vst [vmem:[#allocation4_spill] sm:$0xff] %v5159_v30  ;;  %v5161_v49 = vpop.permute.xlu0 %588 }
 0x159   :  { %7692 = vst [vmem:[#allocation8_spill] sm:$0xff] %v5161_v49 }
 0x15a   :  { %1087 = vmatmul.f32.gmra.mxu0 %v865_v55  ;;  %v873_v55 = vsel %vm872_vm5, %v4657_v27, %v4920_v25  ;;  %v870_v25 = vsel %vm850_vm4, %v4839_v52, %v4988_v32  ;;  %v33_v52 = vld [vmem:[%s7618_s8 + $0x8] sm:$0xff] }
 0x15e   :  { %v5169_v61 = vpop.permute.xlu2 %639 }
 0x15f   :  { %v620_v0 = vpop.permute.xlu1 %619 }
 0x160   :  { %v618_v20 = vpop.permute.xlu0 %617 }
 0x162   :  { %1090 = vmatmul.f32.gmra.mxu0 %v866_v8  ;;  %v895_v8 = vsel %vm894_vm6, %v873_v55, %v5067_v15  ;;  %v32_v15 = vld [vmem:[%s7618_s8] sm:$0xff]  ;;  %v3957_v55 = vmov 0  }
 0x163   :  { %3942 = vset.pattern.permute.xlu2 %v3957_v55  ;;  %3943 = vset.pattern.permute.xlu0 %v3957_v55 }
 0x164   :  { %1309 = vperm.xlu2 %3942, %v32_v15   ;;  %3944 = vset.pattern.permute.xlu1 %v3957_v55 }
 0x165   :  { %1314 = vperm.xlu0 %3943, %v33_v52  }
 0x166   :  { %v5174_v9 = vpop.permute.xlu2 %645 }
 0x167   :  { %v5176_v21 = vpop.permute.xlu1 %625 }
 0x168   :  { %v5178_v53 = vpop.permute.xlu0 %623 }
 0x16a   :  { %1093 = vmatmul.f32.gmra.mxu0 %v867_v23 }
 0x16e   :  { %v5183_v17 = vpop.permute.xlu2 %651 }
 0x16f   :  { %v5185_v48 = vpop.permute.xlu1 %631 }
 0x170   :  { %v5187_v58 = vpop.permute.xlu0 %629 }
 0x172   :  { %1096 = vmatmul.f32.gmra.mxu0 %v868_v14 }
 0x176   :  { %v700_v28 = vpop.permute.xlu2 %699 }
 0x177   :  { %v917_v23 = vsel %vm916_vm7, %v895_v8, %v700_v28  ;;  %v5198_v30 = vpop.permute.xlu1 %637  ;;  %v871_v8 = vsel %vm850_vm4, %v4824_v44, %v4986_v12  ;;  %v874_v44 = vsel %vm872_vm5, %v4857_v29, %v5009_v5  ;;  %v875_v12 = vsel %vm872_vm5, %v4850_v35, %v5007_v45  ;;  %v36_v29 = vld [vmem:[%s7618_s8 + $0x20] sm:$0xff] }
 0x178   :  { %3661 = vmatmul.msk.f32.vlgmr.msra.gmra.mxu1 %vm965_vm8, %v917_v23  ;;  %v5201_v49 = vpop.permute.xlu0 %635  ;;  %v896_v15 = vsel %vm894_vm6, %v874_v44, %v618_v20  ;;  %v876_v20 = vsel %vm872_vm5, %v4702_v57, %v4945_v4  ;;  %v877_v45 = vsel %vm872_vm5, %v4882_v16, %v5030_v36  ;;  %v35_v57 = vld [vmem:[%s7618_s8 + $0x18] sm:$0xff]  ;;  %v38_v4 = vld [vmem:[%s7618_s8 + $0x30] sm:$0xff]  ;;  %v878_v16 = vsel %vm872_vm5, %v4875_v1, %v5028_v24 }
 0x179   :  { %v898_v44 = vsel %vm894_vm6, %v876_v20, %v5094_v6  ;;  %1324 = vperm.xlu2 %3942, %v35_v57   ;;  %1339 = vperm.xlu0 %3943, %v38_v4   ;;  %v900_v36 = vsel %vm894_vm6, %v878_v16, %v5176_v21  ;;  %v37_v21 = vld [vmem:[%s7618_s8 + $0x28] sm:$0xff]  ;;  %v883_v57 = vsel %vm872_vm5, %v4932_v19, %v5072_v37  ;;  %v51_v16 = vld [vmem:[%s7618_s8 + $0x98] sm:$0xff]  ;;  %v46_v19 = vld [vmem:[%s7618_s8 + $0x70] sm:$0xff] }
 0x17a   :  { %1099 = vmatmul.f32.gmra.mxu0 %v869_v2  ;;  %v34_v2 = vld [vmem:[%s7618_s8 + $0x10] sm:$0xff]  ;;  %v905_v4 = vsel %vm894_vm6, %v883_v57, %v5201_v49 }
 0x17b   :  { %1319 = vperm.xlu1 %3944, %v34_v2   ;;  %v897_v2 = vsel %vm894_vm6, %v875_v12, %v620_v0  ;;  %v899_v0 = vsel %vm894_vm6, %v877_v45, %v5178_v53  ;;  %v48_v45 = vld [vmem:[%s7618_s8 + $0x80] sm:$0xff]  ;;  %v50_v37 = vld [vmem:[%s7618_s8 + $0x90] sm:$0xff] }
 0x17e   :  { %v706_v5 = vpop.permute.xlu2 %705 }
 0x17f   :  { %v5206_v14 = vpop.permute.xlu1 %643  ;;  %v920_v35 = vsel %vm916_vm7, %v898_v44, %v706_v5  ;;  %v40_v44 = vld [vmem:[%s7618_s8 + $0x40] sm:$0xff] }
 0x180   :  { %v5208_v27 = vpop.permute.xlu0 %641 }
 0x181   :  { %1334 = vperm.xlu2 %3942, %v37_v21  }
 0x182   :  { %1102 = vmatmul.f32.gmra.mxu0 %v870_v25 }
 0x183   :  { %1329 = vperm.xlu1 %3944, %v36_v29   ;;  %v41_v29 = vld [vmem:[%s7618_s8 + $0x48] sm:$0xff] }
 0x184   :  { %1354 = vperm.xlu0 %3943, %v41_v29  }
 0x187   :  { %v5221_v28 = vpop.permute.xlu1 %649 }
 0x188   :  { %v5216_v39 = vpop.permute.xlu0 %647 }
 0x189   :  { %1349 = vperm.xlu2 %3942, %v40_v44  }
 0x18a   :  { %1105 = vmatmul.f32.gmra.mxu0 %v871_v8 }
 0x18f   :  { %v5231_v25 = vpop.permute.xlu1 %655 }
 0x190   :  { %v5226_v23 = vpop.permute.xlu0 %653  ;;  %7695 = vst [vmem:[#allocation17_spill] sm:$0xff] %v5231_v25 }
 0x197   :  { %v704_v52 = vpop.permute.xlu1 %703 }
 0x198   :  { %v702_v55 = vpop.permute.xlu0 %701  ;;  %v919_v25 = vsel %vm916_vm7, %v897_v2, %v704_v52  ;;  %v880_v2 = vsel %vm872_vm5, %v4907_v43, %v5051_v46  ;;  %v881_v43 = vsel %vm872_vm5, %v4900_v54, %v5049_v42  ;;  %v45_v46 = vld [vmem:[%s7618_s8 + $0x68] sm:$0xff]  ;;  %v44_v54 = vld [vmem:[%s7618_s8 + $0x60] sm:$0xff] }
 0x199   :  { %v918_v8 = vsel %vm916_vm7, %v896_v15, %v702_v55  ;;  %v39_v15 = vld [vmem:[%s7618_s8 + $0x38] sm:$0xff]  ;;  %v712_v55 = vpop.permute.xlu2 %711  ;;  %1369 = vperm.xlu0 %3943, %v44_v54  }
 0x19a   :  { %3662 = vmatmul.msk.f32.gmra.mxu1 %vm965_vm8, %v918_v8  ;;  %1344 = vperm.xlu1 %3944, %v39_v15   ;;  %v879_v8 = vsel %vm872_vm5, %v4758_v22, %v4961_v7  ;;  %v42_v22 = vld [vmem:[%s7618_s8 + $0x50] sm:$0xff]  ;;  %v902_v7 = vsel %vm894_vm6, %v880_v2, %v5187_v58  ;;  %v903_v58 = vsel %vm894_vm6, %v881_v43, %v5185_v48  ;;  %v5433_v2 = vld [vmem:[%s7617_s3] ss:$0 sm:$0xff]  ;;  %s3960_s3 = smov 12  }
 0x19b   :  { %v901_v1 = vsel %vm894_vm6, %v879_v8, %v5124_v41  ;;  %v882_v48 = vsel %vm872_vm5, %v4810_v31, %v4983_v40  ;;  %v47_v31 = vld [vmem:[%s7618_s8 + $0x78] sm:$0xff]  ;;  %v3958_v40 = vmov 0.0  }
 0x19c   :  { %v923_v24 = vsel %vm916_vm7, %v901_v1, %v712_v55  ;;  %1191 = vst.msk [vmem:[#allocation2 + $0x8] sm:$0xff] %vm1189_vm9, %v3958_v40 }
 0x19d   :  { %1192 = vst.msk [vmem:[#allocation2 + $0x10] sm:$0xff] %vm1189_vm9, %v3958_v40 }
 0x19e   :  { %1190 = vst.msk [vmem:[#allocation2] sm:$0xff] %vm1189_vm9, %v3958_v40 }
 0x19f   :  { %v710_v6 = vpop.permute.xlu1 %709  ;;  %1193 = vst.msk [vmem:[#allocation2 + $0x18] sm:$0xff] %vm1189_vm9, %v3958_v40 }
 0x1a0   :  { %v708_v12 = vpop.permute.xlu0 %707  ;;  %v922_v53 = vsel %vm916_vm7, %v900_v36, %v710_v6  ;;  %1194 = vst.msk [vmem:[#allocation2 + $0x20] sm:$0xff] %vm1189_vm9, %v3958_v40  ;;  %v884_v36 = vsel %vm872_vm5, %v4926_v18, %v5070_v11  ;;  %v49_v18 = vld [vmem:[%s7618_s8 + $0x88] sm:$0xff]  ;;  %v885_v11 = vsel %vm872_vm5, %v4844_v26, %v5004_v51  ;;  %v52_v26 = vld [vmem:[%s7618_s8 + $0xa0] sm:$0x3] }
 0x1a1   :  { %v718_v42 = vpop.permute.xlu2 %717  ;;  %1384 = vperm.xlu0 %3943, %v47_v31   ;;  %1195 = vst.msk [vmem:[#allocation2 + $0x28] sm:$0xff] %vm1189_vm9, %v3958_v40  ;;  %v906_v15 = vsel %vm894_vm6, %v884_v36, %v5198_v30  ;;  %v907_v30 = vsel %vm894_vm6, %v885_v11, %v5169_v61  ;;  %v5424_v51 = vld [vmem:[%s7616_s2] ss:$0 sm:$0xff]  ;;  %s3959_s2 = smov 6  }
 0x1a2   :  { %3663 = vmatmul.msk.f32.gmra.mxu1 %vm965_vm8, %v919_v25  ;;  %v921_v25 = vsel %vm916_vm7, %v899_v0, %v708_v12  ;;  %1359 = vperm.xlu1 %3944, %v42_v22   ;;  %v43_v0 = vld [vmem:[%s7618_s8 + $0x58] sm:$0xff]  ;;  %1196 = vst.msk [vmem:[#allocation2 + $0x30] sm:$0xff] %vm1189_vm9, %v3958_v40  ;;  %s3961_s8 = smov 18  }
 0x1a3   :  { %1364 = vperm.xlu2 %3942, %v43_v0   ;;  %1197 = vst.msk [vmem:[#allocation2 + $0x38] sm:$0xff] %vm1189_vm9, %v3958_v40 }
 0x1a4   :  { %1198 = vst.msk [vmem:[#allocation2 + $0x40] sm:$0xff] %vm1189_vm9, %v3958_v40 }
 0x1a5   :  { %1199 = vst.msk [vmem:[#allocation2 + $0x48] sm:$0xff] %vm1189_vm9, %v3958_v40 }
 0x1a6   :  { %1200 = vst.msk [vmem:[#allocation2 + $0x50] sm:$0xff] %vm1189_vm9, %v3958_v40 }
 0x1a7   :  { %v716_v5 = vpop.permute.xlu1 %715  ;;  %1201 = vst.msk [vmem:[#allocation2 + $0x58] sm:$0xff] %vm1189_vm9, %v3958_v40 }
 0x1a8   :  { %v714_v52 = vpop.permute.xlu0 %713  ;;  %v925_v20 = vsel %vm916_vm7, %v903_v58, %v716_v5  ;;  %1202 = vst.msk [vmem:[#allocation2 + $0x60] sm:$0xff] %vm1189_vm9, %v3958_v40 }
 0x1a9   :  { %v924_v41 = vsel %vm916_vm7, %v902_v7, %v714_v52  ;;  %1399 = vperm.xlu0 %3943, %v50_v37   ;;  %1203 = vst.msk [vmem:[#allocation2 + $0x68] sm:$0xff] %vm1189_vm9, %v3958_v40  ;;  %v886_v7 = vsel %vm872_vm5, %v4952_v33, %v5099_v56 }
 0x1aa   :  { %3664 = vmatmul.msk.f32.gmra.mxu1 %vm965_vm8, %v920_v35  ;;  %1374 = vperm.xlu1 %3944, %v45_v46   ;;  %v904_v35 = vsel %vm894_vm6, %v882_v48, %v5153_v63  ;;  %v724_v63 = vpop.permute.xlu2 %723  ;;  %1204 = vst.msk [vmem:[#allocation2 + $0x70] sm:$0xff] %vm1189_vm9, %v3958_v40  ;;  %v908_v29 = vsel %vm894_vm6, %v886_v7, %v5208_v27  ;;  %v7702_v7 = vld [vmem:[#allocation5_spill] sm:$0xff] }
 0x1ab   :  { %v926_v12 = vsel %vm916_vm7, %v904_v35, %v718_v42  ;;  %1379 = vperm.xlu2 %3942, %v46_v19   ;;  %1205 = vst.msk [vmem:[#allocation2 + $0x78] sm:$0xff] %vm1189_vm9, %v3958_v40 }
 0x1ac   :  { %1206 = vst.msk [vmem:[#allocation2 + $0x80] sm:$0xff] %vm1189_vm9, %v3958_v40 }
 0x1ad   :  { %1207 = vst.msk [vmem:[#allocation2 + $0x88] sm:$0xff] %vm1189_vm9, %v3958_v40 }
 0x1ae   :  { %1208 = vst.msk [vmem:[#allocation2 + $0x90] sm:$0xff] %vm1189_vm9, %v3958_v40 }
 0x1af   :  { %v722_v49 = vpop.permute.xlu1 %721  ;;  %1209 = vst.msk [vmem:[#allocation2 + $0x98] sm:$0xff] %vm1189_vm9, %v3958_v40 }
 0x1b0   :  { %v928_v8 = vsel %vm916_vm7, %v906_v15, %v722_v49  ;;  %1210 = vst.msk [vmem:[#allocation2 + $0xa0] sm:$0xff] %vm1189_vm9, %v3958_v40 }
 0x1b1   :  { %1211 = vst.msk [vmem:[#allocation2 + $0xa8] sm:$0xff] %vm1189_vm9, %v3958_v40 }
 0x1b2   :  { %3665 = vmatmul.msk.f32.gmra.mxu1 %vm965_vm8, %v921_v25  ;;  %1389 = vperm.xlu1 %3944, %v48_v45   ;;  %v720_v25 = vpop.permute.xlu0 %719  ;;  %v5378_v55 = vpop.permute.xlu2 %729  ;;  %1212 = vst.msk [vmem:[#allocation2 + $0xb0] sm:$0xff] %vm1189_vm9, %v3958_v40 }
 0x1b3   :  { %v927_v6 = vsel %vm916_vm7, %v905_v4, %v720_v25  ;;  %1394 = vperm.xlu2 %3942, %v49_v18   ;;  %1213 = vst.msk [vmem:[#allocation3] sm:$0xff] %vm1189_vm9, %v3958_v40 }
 0x1b4   :  { %1214 = vst.msk [vmem:[#allocation3 + $0x8] sm:$0xff] %vm1189_vm9, %v3958_v40 }
 0x1b5   :  { %1215 = vst.msk [vmem:[#allocation3 + $0x10] sm:$0xff] %vm1189_vm9, %v3958_v40 }
 0x1b6   :  { %1216 = vst.msk [vmem:[#allocation3 + $0x18] sm:$0xff] %vm1189_vm9, %v3958_v40 }
 0x1b7   :  { %1217 = vst.msk [vmem:[#allocation3 + $0x20] sm:$0xff] %vm1189_vm9, %v3958_v40  ;;  %v728_v58 = vpop.permute.xlu1 %727 }
 0x1b8   :  { %1218 = vst.msk [vmem:[#allocation3 + $0x28] sm:$0xff] %vm1189_vm9, %v3958_v40 }
 0x1b9   :  { %1219 = vst.msk [vmem:[#allocation3 + $0x30] sm:$0xff] %vm1189_vm9, %v3958_v40 }
 0x1ba   :  { %3666 = vmatmul.msk.f32.gmra.mxu1 %vm965_vm8, %v922_v53  ;;  %1404 = vperm.xlu1 %3944, %v51_v16   ;;  %v1046_v53 = vpop.f32.mrf.mxu0  ;;  %v5413_v21 = vpop.permute.xlu2 %735  ;;  %1220 = vst.msk [vmem:[#allocation3 + $0x38] sm:$0xff] %vm1189_vm9, %v3958_v40 }
 0x1bb   :  { %1409 = vperm.xlu2 %3942, %v52_v26   ;;  %v726_v22 = vpop.permute.xlu0 %725  ;;  %1221 = vst.msk [vmem:[#allocation3 + $0x40] sm:$0xff] %vm1189_vm9, %v3958_v40 }
 0x1bc   :  { %v930_v43 = vsel %vm916_vm7, %v908_v29, %v726_v22  ;;  %1222 = vst.msk [vmem:[#allocation3 + $0x48] sm:$0xff] %vm1189_vm9, %v3958_v40  ;;  %v7701_v22 = vld [vmem:[#allocation4_spill] sm:$0xff] }
 0x1bd   :  { %1223 = vst.msk [vmem:[#allocation3 + $0x50] sm:$0xff] %vm1189_vm9, %v3958_v40 }
 0x1be   :  { %1224 = vst.msk [vmem:[#allocation3 + $0x58] sm:$0xff] %vm1189_vm9, %v3958_v40 }
 0x1bf   :  { %1225 = vst.msk [vmem:[#allocation3 + $0x60] sm:$0xff] %vm1189_vm9, %v3958_v40  ;;  %v734_v0 = vpop.permute.xlu1 %733 }
 0x1c0   :  { %1226 = vst.msk [vmem:[#allocation3 + $0x68] sm:$0xff] %vm1189_vm9, %v3958_v40 }
 0x1c1   :  { %1227 = vst.msk [vmem:[#allocation3 + $0x70] sm:$0xff] %vm1189_vm9, %v3958_v40 }
 0x1c2   :  { %3667 = vmatmul.msk.f32.gmra.mxu1 %vm965_vm8, %v923_v24  ;;  %v5406_v1 = vpop.f32.mrf.mxu0  ;;  %v929_v24 = vsel %vm916_vm7, %v907_v30, %v724_v63  ;;  %v5454_v33 = vpop.permute.xlu2 %1309  ;;  %1228 = vst.msk [vmem:[#allocation3 + $0x78] sm:$0xff] %vm1189_vm9, %v3958_v40 }
 0x1c3   :  { %7696 = vst [vmem:[#allocation11_spill] sm:$0xff] %v5454_v33 }
 0x1c4   :  { %1229 = vst.msk [vmem:[#allocation3 + $0x80] sm:$0xff] %vm1189_vm9, %v3958_v40 }
 0x1c5   :  { %1230 = vst.msk [vmem:[#allocation3 + $0x88] sm:$0xff] %vm1189_vm9, %v3958_v40 }
 0x1c6   :  { %1231 = vst.msk [vmem:[#allocation3 + $0x90] sm:$0xff] %vm1189_vm9, %v3958_v40 }
 0x1c7   :  { %1232 = vst.msk [vmem:[#allocation3 + $0x98] sm:$0xff] %vm1189_vm9, %v3958_v40 }
 0x1c8   :  { %1233 = vst.msk [vmem:[#allocation3 + $0xa0] sm:$0xff] %vm1189_vm9, %v3958_v40 }
 0x1c9   :  { %1234 = vst.msk [vmem:[#allocation3 + $0xa8] sm:$0xff] %vm1189_vm9, %v3958_v40 }
 0x1ca   :  { %3668 = vmatmul.msk.f32.gmra.mxu1 %vm965_vm8, %v924_v41  ;;  %v1052_v46 = vpop.f32.mrf.mxu0  ;;  %1235 = vst.msk [vmem:[#allocation3 + $0xb0] sm:$0xff] %vm1189_vm9, %v3958_v40  ;;  %v890_v40 = vsel %vm872_vm5, %v4965_v10, %v5130_v13  ;;  %v891_v10 = vsel %vm872_vm5, %v4895_v3, %v5046_v38 }
 0x1cb   :  { %v912_v25 = vsel %vm894_vm6, %v890_v40, %v5221_v28  ;;  %v913_v28 = vsel %vm894_vm6, %v891_v10, %v5183_v17 }
 0x1cc   :  { %v935_v36 = vsel %vm916_vm7, %v913_v28, %v5413_v21 }
 0x1d2   :  { %3669 = vmatmul.msk.f32.gmra.mxu1 %vm965_vm8, %v925_v20  ;;  %v887_v20 = vsel %vm872_vm5, %v4950_v50, %v5097_v47  ;;  %v1055_v50 = vpop.f32.mrf.mxu0 }
 0x1d3   :  { %v909_v44 = vsel %vm894_vm6, %v887_v20, %v5206_v14  ;;  %v888_v14 = vsel %vm872_vm5, %v4870_v34, %v5025_v60  ;;  %v1476_v34 = vld [vmem:[#allocation2 + $0x1] sm:$0xff]  ;;  %v732_v60 = vpop.permute.xlu0 %731 }
 0x1d4   :  { %v931_v54 = vsel %vm916_vm7, %v909_v44, %v728_v58  ;;  %v910_v42 = vsel %vm894_vm6, %v888_v14, %v5174_v9  ;;  %1589 = vrot.lane.b32.xlu0 %v1476_v34, %s3959_s2  ;;  %v889_v9 = vsel %vm872_vm5, %v4967_v59, %v5132_v62  ;;  %v934_v62 = vsel %vm916_vm7, %v912_v25, %v734_v0 }
 0x1d5   :  { %v932_v48 = vsel %vm916_vm7, %v910_v42, %v5378_v55 }
 0x1da   :  { %3670 = vmatmul.msk.f32.gmra.mxu1 %vm965_vm8, %v926_v12  ;;  %v1058_v35 = vpop.f32.mrf.mxu0  ;;  %v911_v12 = vsel %vm894_vm6, %v889_v9, %v5216_v39 }
 0x1db   :  { %v933_v45 = vsel %vm916_vm7, %v911_v12, %v732_v60  ;;  %v738_v31 = vpop.permute.xlu0 %737 }
 0x1e2   :  { %3671 = vmatmul.msk.f32.gmra.mxu1 %vm965_vm8, %v927_v6  ;;  %v1061_v57 = vpop.f32.mrf.mxu0  ;;  %v740_v6 = vpop.permute.xlu1 %739 }
 0x1e3   :  { %v5527_v16 = vpop.permute.xlu0 %1314 }
 0x1e4   :  { %7697 = vst [vmem:[#allocation16_spill] sm:$0xff] %v5527_v16 }
 0x1ea   :  { %3672 = vmatmul.msk.f32.gmra.mxu1 %vm965_vm8, %v928_v8  ;;  %v7699_v8 = vld [vmem:[#allocation8_spill] sm:$0xff] }
 0x1eb   :  { %v892_v17 = vsel %vm872_vm5, %v4988_v32, %v7699_v8 }
 0x1ec   :  { %v914_v11 = vsel %vm894_vm6, %v892_v17, %v5226_v23  ;;  %v5558_v23 = vpop.permute.xlu2 %1324 }
 0x1ed   :  { %v5541_v3 = vpop.permute.xlu1 %1319  ;;  %7700 = vst [vmem:[#allocation7_spill] sm:$0xff] %v5558_v23 }
 0x1ee   :  { %7698 = vst [vmem:[#allocation6_spill] sm:$0xff] %v5541_v3 }
 0x1f2   :  { %3673 = vmatmul.msk.f32.gmra.mxu1 %vm965_vm8, %v929_v24  ;;  %v936_v24 = vsel %vm916_vm7, %v914_v11, %v738_v31 }
 0x1f4   :  { %v5585_v12 = vpop.permute.xlu2 %1334 }
 0x1f5   :  { %v1126_v61 = vpop.f32.mrf.mxu1  ;;  %7705 = vst [vmem:[#allocation9_spill] sm:$0xff] %v5585_v12 }
 0x1f6   :  { %v1127_v52 = vadd.f32 %v1126_v61, %v1046_v53  ;;  %v1064_v53 = vpop.f32.mrf.mxu0 }
 0x1f8   :  { %v1240_v41 = vmul.f32 %v5424_v51, %v1127_v52 }
 0x1fa   :  { %v1265_v5 = vadd.f32 %v5433_v2, %v1240_v41  ;;  %3674 = vmatmul.msk.f32.gmra.mxu1 %vm965_vm8, %v930_v43  ;;  %v893_v41 = vsel %vm872_vm5, %v7702_v7, %v7701_v22 }
 0x1fc   :  { %v1286_v56 = vmax.f32 %v1265_v5, 0.0  ;;  %v7703_v5 = vld [vmem:[#allocation17_spill] sm:$0xff] }
 0x1fd   :  { %v915_v43 = vsel %vm894_vm6, %v893_v41, %v7703_v5 }
 0x1fe   :  { %v1412_v27 = vmul.f32 %v5454_v33, %v1286_v56  ;;  %v1067_v32 = vpop.f32.mrf.mxu0 }
 0x200   :  { %1433 = vst.msk [vmem:[#allocation2 + $0xa] sm:$0xff] %vm1189_vm9, %v1412_v27  ;;  %v937_v27 = vsel %vm916_vm7, %v915_v43, %v740_v6 }
 0x202   :  { %3675 = vmatmul.msk.f32.gmra.mxu1 %vm965_vm8, %v931_v54  ;;  %v5575_v54 = vpop.permute.xlu1 %1329 }
 0x203   :  { %7704 = vst [vmem:[#allocation14_spill] sm:$0xff] %v5575_v54 }
 0x207   :  { %v5489_v47 = vld [vmem:[#allocation2 + $0x9] sm:$0xff] }
 0x208   :  { %1591 = vrot.lane.b32.xlu1 %v5489_v47, %s3959_s2 }
 0x20a   :  { %3676 = vmatmul.msk.f32.gmra.mxu1 %vm965_vm8, %v932_v48 }
 0x212   :  { %3677 = vmatmul.msk.f32.gmra.mxu1 %vm965_vm8, %v933_v45 }
 0x217   :  { %v1129_v63 = vpop.f32.mrf.mxu1 }
 0x218   :  { %v1130_v59 = vadd.f32 %v1129_v63, %v5406_v1 }
 0x21a   :  { %v1241_v39 = vmul.f32 %v5424_v51, %v1130_v59  ;;  %3678 = vmatmul.msk.f32.gmra.mxu1 %vm965_vm8, %v934_v62  ;;  %v5595_v62 = vpop.permute.xlu0 %1339 }
 0x21b   :  { %7706 = vst [vmem:[#allocation10_spill] sm:$0xff] %v5595_v62 }
 0x21c   :  { %v1266_v4 = vadd.f32 %v5433_v2, %v1241_v39 }
 0x21e   :  { %v1287_v19 = vmax.f32 %v1266_v4, 0.0 }
 0x21f   :  { %v1132_v13 = vpop.f32.mrf.mxu1 }
 0x220   :  { %v1133_v37 = vadd.f32 %v1132_v13, %v1052_v46  ;;  %v1413_v49 = vmul.f32 %v5527_v16, %v1287_v19 }
 0x222   :  { %v1242_v15 = vmul.f32 %v5424_v51, %v1133_v37  ;;  %1434 = vst.msk [vmem:[#allocation2 + $0x12] sm:$0xff] %vm1189_vm9, %v1413_v49  ;;  %3679 = vmatmul.msk.f32.gmra.mxu1 %vm965_vm8, %v935_v36  ;;  %v5605_v49 = vpop.permute.xlu1 %1344  ;;  %v5625_v22 = vpop.permute.xlu0 %1354 }
 0x223   :  { %7707 = vst [vmem:[#allocation15_spill] sm:$0xff] %v5605_v49 }
 0x224   :  { %v1267_v55 = vadd.f32 %v5433_v2, %v1242_v15  ;;  %7709 = vst [vmem:[#allocation13_spill] sm:$0xff] %v5625_v22 }
 0x226   :  { %v1288_v38 = vmax.f32 %v1267_v55, 0.0 }
 0x227   :  { %v1135_v18 = vpop.f32.mrf.mxu1 }
 0x228   :  { %v1414_v30 = vmul.f32 %v5541_v3, %v1288_v38  ;;  %v1136_v1 = vadd.f32 %v1135_v18, %v1055_v50  ;;  %v1070_v50 = vpop.f32.mrf.mxu0 }
 0x229   :  { %v5550_v21 = vld [vmem:[#allocation2 + $0x11] sm:$0xff] }
 0x22a   :  { %1435 = vst.msk [vmem:[#allocation2 + $0x1a] sm:$0xff] %vm1189_vm9, %v1414_v30  ;;  %v1243_v26 = vmul.f32 %v5424_v51, %v1136_v1  ;;  %3680 = vmatmul.msk.f32.gmra.mxu1 %vm965_vm8, %v936_v24  ;;  %1593 = vrot.lane.b32.xlu2 %v5550_v21, %s3959_s2  ;;  %v5615_v30 = vpop.permute.xlu2 %1349 }
 0x22b   :  { %7708 = vst [vmem:[#allocation12_spill] sm:$0xff] %v5615_v30 }
 0x22c   :  { %v1268_v61 = vadd.f32 %v5433_v2, %v1243_v26 }
 0x22e   :  { %v1289_v52 = vmax.f32 %v1268_v61, 0.0 }
 0x22f   :  { %v1138_v29 = vpop.f32.mrf.mxu1 }
 0x230   :  { %v1415_v46 = vmul.f32 %v5558_v23, %v1289_v52  ;;  %v1139_v56 = vadd.f32 %v1138_v29, %v1058_v35  ;;  %v1073_v31 = vpop.f32.mrf.mxu0  ;;  %v1522_v23 = vld [vmem:[#allocation2 + $0xb] sm:$0xff] }
 0x231   :  { %v5567_v58 = vld [vmem:[#allocation2 + $0x19] sm:$0xff] }
 0x232   :  { %1436 = vst.msk [vmem:[#allocation2 + $0x22] sm:$0xff] %vm1189_vm9, %v1415_v46  ;;  %v1244_v20 = vmul.f32 %v5424_v51, %v1139_v56  ;;  %3681 = vmatmul.msk.f32.gmra.mxu1 %vm965_vm8, %v937_v27  ;;  %1595 = vrot.lane.b32.xlu0 %v5567_v58, %s3959_s2  ;;  %v5993_v33 = vld [vmem:[#allocation2 + $0x13] sm:$0xff] }
 0x234   :  { %v1269_v44 = vadd.f32 %v5433_v2, %v1244_v20 }
 0x236   :  { %v1290_v14 = vmax.f32 %v1269_v44, 0.0  ;;  %v5635_v44 = vpop.permute.xlu1 %1359 }
 0x237   :  { %v1141_v42 = vpop.f32.mrf.mxu1  ;;  %7710 = vst [vmem:[#allocation18_spill] sm:$0xff] %v5635_v44 }
 0x238   :  { %v1416_v48 = vmul.f32 %v5575_v54, %v1290_v14  ;;  %v1142_v34 = vadd.f32 %v1141_v42, %v1061_v57  ;;  %v1076_v13 = vpop.f32.mrf.mxu0 }
 0x239   :  { %v5578_v60 = vld [vmem:[#allocation2 + $0x21] sm:$0xff] }
 0x23a   :  { %1437 = vst.msk [vmem:[#allocation2 + $0x2a] sm:$0xff] %vm1189_vm9, %v1416_v48  ;;  %v1245_v35 = vmul.f32 %v5424_v51, %v1142_v34  ;;  %1597 = vrot.lane.b32.xlu1 %v5578_v60, %s3959_s2 }
 0x23c   :  { %v1270_v9 = vadd.f32 %v5433_v2, %v1245_v35 }
 0x23e   :  { %v1291_v45 = vmax.f32 %v1270_v9, 0.0 }
 0x23f   :  { %v1144_v0 = vpop.f32.mrf.mxu1 }
 0x240   :  { %v1417_v40 = vmul.f32 %v5585_v12, %v1291_v45  ;;  %v1145_v63 = vadd.f32 %v1144_v0, %v1064_v53  ;;  %v1079_v17 = vpop.f32.mrf.mxu0  ;;  %v5645_v0 = vpop.permute.xlu2 %1364 }
 0x241   :  { %v5588_v25 = vld [vmem:[#allocation2 + $0x29] sm:$0xff]  ;;  %7711 = vst [vmem:[#allocation19_spill] sm:$0xff] %v5645_v0 }
 0x242   :  { %1438 = vst.msk [vmem:[#allocation2 + $0x32] sm:$0xff] %vm1189_vm9, %v1417_v40  ;;  %v1246_v57 = vmul.f32 %v5424_v51, %v1145_v63  ;;  %1599 = vrot.lane.b32.xlu2 %v5588_v25, %s3959_s2 }
 0x244   :  { %v1271_v59 = vadd.f32 %v5433_v2, %v1246_v57 }
 0x246   :  { %v1292_v39 = vmax.f32 %v1271_v59, 0.0 }
 0x247   :  { %v1147_v4 = vpop.f32.mrf.mxu1 }
 0x248   :  { %v1148_v6 = vadd.f32 %v1147_v4, %v1067_v32  ;;  %v1418_v19 = vmul.f32 %v5595_v62, %v1292_v39  ;;  %v1082_v7 = vpop.f32.mrf.mxu0 }
 0x249   :  { %v5598_v10 = vld [vmem:[#allocation2 + $0x31] sm:$0xff] }
 0x24a   :  { %v1247_v28 = vmul.f32 %v5424_v51, %v1148_v6  ;;  %1439 = vst.msk [vmem:[#allocation2 + $0x3a] sm:$0xff] %vm1189_vm9, %v1418_v19  ;;  %1601 = vrot.lane.b32.xlu0 %v5598_v10, %s3959_s2  ;;  %v5655_v19 = vpop.permute.xlu0 %1369 }
 0x24b   :  { %7712 = vst [vmem:[#allocation8_spill] sm:$0xff] %v5655_v19 }
 0x24c   :  { %v1272_v37 = vadd.f32 %v5433_v2, %v1247_v28 }
 0x24e   :  { %v1293_v36 = vmax.f32 %v1272_v37, 0.0 }
 0x24f   :  { %v1150_v53 = vpop.f32.mrf.mxu1 }
 0x250   :  { %v1419_v15 = vmul.f32 %v5605_v49, %v1293_v36  ;;  %v1151_v55 = vadd.f32 %v1150_v53, %v1070_v50  ;;  %v1085_v14 = vpop.f32.mrf.mxu0 }
 0x251   :  { %v5608_v38 = vld [vmem:[#allocation2 + $0x39] sm:$0xff] }
 0x252   :  { %1440 = vst.msk [vmem:[#allocation2 + $0x42] sm:$0xff] %vm1189_vm9, %v1419_v15  ;;  %v1248_v8 = vmul.f32 %v5424_v51, %v1151_v55  ;;  %1603 = vrot.lane.b32.xlu1 %v5608_v38, %s3959_s2 }
 0x254   :  { %v1273_v18 = vadd.f32 %v5433_v2, %v1248_v8 }
 0x256   :  { %v1294_v11 = vmax.f32 %v1273_v18, 0.0 }
 0x257   :  { %v1153_v1 = vpop.f32.mrf.mxu1 }
 0x258   :  { %v1420_v24 = vmul.f32 %v5615_v30, %v1294_v11  ;;  %v1154_v26 = vadd.f32 %v1153_v1, %v1073_v31  ;;  %v1088_v59 = vpop.f32.mrf.mxu0 }
 0x259   :  { %v5618_v32 = vld [vmem:[#allocation2 + $0x41] sm:$0xff] }
 0x25a   :  { %1441 = vst.msk [vmem:[#allocation2 + $0x4a] sm:$0xff] %vm1189_vm9, %v1420_v24  ;;  %v1249_v61 = vmul.f32 %v5424_v51, %v1154_v26  ;;  %1605 = vrot.lane.b32.xlu2 %v5618_v32, %s3959_s2 }
 0x25c   :  { %v1274_v52 = vadd.f32 %v5433_v2, %v1249_v61 }
 0x25e   :  { %v1295_v41 = vmax.f32 %v1274_v52, 0.0 }
 0x25f   :  { %v1156_v29 = vpop.f32.mrf.mxu1 }
 0x260   :  { %v1157_v5 = vadd.f32 %v1156_v29, %v1076_v13  ;;  %v1421_v43 = vmul.f32 %v5625_v22, %v1295_v41  ;;  %v1091_v15 = vpop.f32.mrf.mxu0  ;;  %v5675_v41 = vpop.permute.xlu2 %1379 }
 0x261   :  { %v5628_v46 = vld [vmem:[#allocation2 + $0x49] sm:$0xff]  ;;  %7714 = vst [vmem:[#allocation5_spill] sm:$0xff] %v5675_v41 }
 0x262   :  { %v1250_v56 = vmul.f32 %v5424_v51, %v1157_v5  ;;  %1442 = vst.msk [vmem:[#allocation2 + $0x52] sm:$0xff] %vm1189_vm9, %v1421_v43  ;;  %1607 = vrot.lane.b32.xlu0 %v5628_v46, %s3959_s2 }
 0x264   :  { %v1275_v27 = vadd.f32 %v5433_v2, %v1250_v56 }
 0x266   :  { %v1296_v20 = vmax.f32 %v1275_v27, 0.0 }
 0x267   :  { %v1159_v50 = vpop.f32.mrf.mxu1 }
 0x268   :  { %v1422_v42 = vmul.f32 %v5635_v44, %v1296_v20  ;;  %v1160_v48 = vadd.f32 %v1159_v50, %v1079_v17  ;;  %v5665_v17 = vpop.permute.xlu1 %1374  ;;  %v1094_v52 = vpop.f32.mrf.mxu0 }
 0x269   :  { %v5638_v34 = vld [vmem:[#allocation2 + $0x51] sm:$0xff]  ;;  %7713 = vst [vmem:[#allocation4_spill] sm:$0xff] %v5665_v17 }
 0x26a   :  { %1443 = vst.msk [vmem:[#allocation2 + $0x5a] sm:$0xff] %vm1189_vm9, %v1422_v42  ;;  %v1251_v35 = vmul.f32 %v5424_v51, %v1160_v48  ;;  %1609 = vrot.lane.b32.xlu1 %v5638_v34, %s3959_s2 }
 0x26c   :  { %v1276_v9 = vadd.f32 %v5433_v2, %v1251_v35 }
 0x26e   :  { %v1297_v45 = vmax.f32 %v1276_v9, 0.0 }
 0x26f   :  { %v1162_v31 = vpop.f32.mrf.mxu1 }
 0x270   :  { %v1423_v40 = vmul.f32 %v5645_v0, %v1297_v45  ;;  %v1163_v63 = vadd.f32 %v1162_v31, %v1082_v7  ;;  %v1097_v48 = vpop.f32.mrf.mxu0 }
 0x271   :  { %v5648_v57 = vld [vmem:[#allocation2 + $0x59] sm:$0xff] }
 0x272   :  { %1444 = vst.msk [vmem:[#allocation2 + $0x62] sm:$0xff] %vm1189_vm9, %v1423_v40  ;;  %v1252_v39 = vmul.f32 %v5424_v51, %v1163_v63  ;;  %1611 = vrot.lane.b32.xlu2 %v5648_v57, %s3959_s2 }
 0x274   :  { %v1277_v4 = vadd.f32 %v5433_v2, %v1252_v39 }
 0x276   :  { %v1298_v6 = vmax.f32 %v1277_v4, 0.0 }
 0x277   :  { %v1165_v13 = vpop.f32.mrf.mxu1 }
 0x278   :  { %v1424_v28 = vmul.f32 %v5655_v19, %v1298_v6  ;;  %v1166_v37 = vadd.f32 %v1165_v13, %v1085_v14  ;;  %v5685_v14 = vpop.permute.xlu0 %1384 }
 0x279   :  { %v5658_v36 = vld [vmem:[#allocation2 + $0x61] sm:$0xff]  ;;  %7715 = vst [vmem:[#allocation17_spill] sm:$0xff] %v5685_v14 }
 0x27a   :  { %1445 = vst.msk [vmem:[#allocation2 + $0x6a] sm:$0xff] %vm1189_vm9, %v1424_v28  ;;  %v1253_v53 = vmul.f32 %v5424_v51, %v1166_v37  ;;  %1613 = vrot.lane.b32.xlu0 %v5658_v36, %s3959_s2  ;;  %v1100_v28 = vpop.f32.mrf.mxu0 }
 0x27c   :  { %v1278_v55 = vadd.f32 %v5433_v2, %v1253_v53 }
 0x27e   :  { %v1299_v8 = vmax.f32 %v1278_v55, 0.0  ;;  %v5705_v55 = vpop.permute.xlu2 %1394 }
 0x27f   :  { %v1168_v18 = vpop.f32.mrf.mxu1  ;;  %7717 = vst [vmem:[#allocation21_spill] sm:$0xff] %v5705_v55 }
 0x280   :  { %v1425_v11 = vmul.f32 %v5665_v17, %v1299_v8  ;;  %v1169_v1 = vadd.f32 %v1168_v18, %v1088_v59  ;;  %v5695_v59 = vpop.permute.xlu1 %1389 }
 0x281   :  { %v5668_v24 = vld [vmem:[#allocation2 + $0x69] sm:$0xff]  ;;  %7716 = vst [vmem:[#allocation20_spill] sm:$0xff] %v5695_v59 }
 0x282   :  { %1446 = vst.msk [vmem:[#allocation2 + $0x72] sm:$0xff] %vm1189_vm9, %v1425_v11  ;;  %v1254_v26 = vmul.f32 %v5424_v51, %v1169_v1  ;;  %1615 = vrot.lane.b32.xlu1 %v5668_v24, %s3959_s2 }
 0x284   :  { %v1279_v61 = vadd.f32 %v5433_v2, %v1254_v26 }
 0x286   :  { %v1300_v7 = vmax.f32 %v1279_v61, 0.0  ;;  %v1103_v61 = vpop.f32.mrf.mxu0 }
 0x287   :  { %v1171_v29 = vpop.f32.mrf.mxu1 }
 0x288   :  { %v1426_v5 = vmul.f32 %v5675_v41, %v1300_v7  ;;  %v1172_v43 = vadd.f32 %v1171_v29, %v1091_v15  ;;  %v5715_v29 = vpop.permute.xlu0 %1399 }
 0x289   :  { %v5678_v56 = vld [vmem:[#allocation2 + $0x71] sm:$0xff]  ;;  %7718 = vst [vmem:[#allocation22_spill] sm:$0xff] %v5715_v29 }
 0x28a   :  { %1447 = vst.msk [vmem:[#allocation2 + $0x7a] sm:$0xff] %vm1189_vm9, %v1426_v5  ;;  %v1255_v27 = vmul.f32 %v5424_v51, %v1172_v43  ;;  %1617 = vrot.lane.b32.xlu2 %v5678_v56, %s3959_s2 }
 0x28c   :  { %v1280_v20 = vadd.f32 %v5433_v2, %v1255_v27 }
 0x28e   :  { %v1301_v50 = vmax.f32 %v1280_v20, 0.0 }
 0x28f   :  { %v1174_v42 = vpop.f32.mrf.mxu1 }
 0x290   :  { %v1427_v35 = vmul.f32 %v5685_v14, %v1301_v50  ;;  %v1175_v9 = vadd.f32 %v1174_v42, %v1094_v52 }
 0x291   :  { %v5688_v45 = vld [vmem:[#allocation2 + $0x79] sm:$0xff] }
 0x292   :  { %1448 = vst.msk [vmem:[#allocation2 + $0x82] sm:$0xff] %vm1189_vm9, %v1427_v35  ;;  %v1256_v31 = vmul.f32 %v5424_v51, %v1175_v9  ;;  %1619 = vrot.lane.b32.xlu0 %v5688_v45, %s3959_s2  ;;  %v5725_v9 = vpop.permute.xlu1 %1404 }
 0x293   :  { %7719 = vst [vmem:[#allocation23_spill] sm:$0xff] %v5725_v9 }
 0x294   :  { %v1281_v40 = vadd.f32 %v5433_v2, %v1256_v31 }
 0x296   :  { %v1302_v63 = vmax.f32 %v1281_v40, 0.0  ;;  %v1497_v40 = vld [vmem:[#allocation2 + $0x2] sm:$0xff] }
 0x297   :  { %v1177_v39 = vpop.f32.mrf.mxu1 }
 0x298   :  { %v1428_v4 = vmul.f32 %v5695_v59, %v1302_v63  ;;  %v1178_v6 = vadd.f32 %v1177_v39, %v1097_v48  ;;  %v1106_v48 = vpop.f32.mrf.mxu0 }
 0x299   :  { %v5698_v13 = vld [vmem:[#allocation2 + $0x81] sm:$0xff] }
 0x29a   :  { %1449 = vst.msk [vmem:[#allocation2 + $0x8a] sm:$0xff] %vm1189_vm9, %v1428_v4  ;;  %v1257_v37 = vmul.f32 %v5424_v51, %v1178_v6  ;;  %1621 = vrot.lane.b32.xlu1 %v5698_v13, %s3959_s2 }
 0x29c   :  { %v1282_v53 = vadd.f32 %v5433_v2, %v1257_v37 }
 0x29e   :  { %v1303_v15 = vmax.f32 %v1282_v53, 0.0  ;;  %v5736_v53 = vpop.permute.xlu2 %1409 }
 0x29f   :  { %v1180_v8 = vpop.f32.mrf.mxu1  ;;  %7720 = vst [vmem:[#allocation24_spill] sm:$0xff] %v5736_v53 }
 0x2a0   :  { %v1429_v18 = vmul.f32 %v5705_v55, %v1303_v15  ;;  %v1181_v11 = vadd.f32 %v1180_v8, %v1100_v28  ;;  %v5739_v8 = vld [vmem:[#allocation2 + $0x1a] sm:$0xff] }
 0x2a1   :  { %v5708_v1 = vld [vmem:[#allocation2 + $0x89] sm:$0xff] }
 0x2a2   :  { %1450 = vst.msk [vmem:[#allocation2 + $0x92] sm:$0xff] %vm1189_vm9, %v1429_v18  ;;  %v1258_v26 = vmul.f32 %v5424_v51, %v1181_v11  ;;  %1623 = vrot.lane.b32.xlu2 %v5708_v1, %s3959_s2  ;;  %v5741_v18 = vld [vmem:[#allocation2 + $0xa] sm:$0xff] }
 0x2a4   :  { %v1283_v52 = vadd.f32 %v5433_v2, %v1258_v26  ;;  %v5757_v26 = vld [vmem:[#allocation2 + $0x12] sm:$0xff] }
 0x2a6   :  { %v1304_v7 = vmax.f32 %v1283_v52, 0.0  ;;  %v5763_v52 = vld [vmem:[#allocation2 + $0x3a] sm:$0xff] }
 0x2a7   :  { %v1183_v5 = vpop.f32.mrf.mxu1 }
 0x2a8   :  { %v1430_v43 = vmul.f32 %v5715_v29, %v1304_v7  ;;  %v1184_v27 = vadd.f32 %v1183_v5, %v1103_v61  ;;  %v5761_v61 = vld [vmem:[#allocation2 + $0x4a] sm:$0xff]  ;;  %v5773_v5 = vld [vmem:[#allocation2 + $0x62] sm:$0xff] }
 0x2a9   :  { %v5718_v20 = vld [vmem:[#allocation2 + $0x91] sm:$0xff] }
 0x2aa   :  { %1451 = vst.msk [vmem:[#allocation2 + $0x9a] sm:$0xff] %vm1189_vm9, %v1430_v43  ;;  %v1259_v50 = vmul.f32 %v5424_v51, %v1184_v27  ;;  %1625 = vrot.lane.b32.xlu0 %v5718_v20, %s3959_s2  ;;  %v5769_v7 = vld [vmem:[#allocation2 + $0x2a] sm:$0xff]  ;;  %v5775_v43 = vld [vmem:[#allocation2 + $0x52] sm:$0xff]  ;;  %v5781_v27 = vld [vmem:[#allocation2 + $0x42] sm:$0xff] }
 0x2ac   :  { %v1284_v42 = vadd.f32 %v5433_v2, %v1259_v50  ;;  %v5785_v50 = vld [vmem:[#allocation2 + $0x7a] sm:$0xff] }
 0x2ae   :  { %v1305_v35 = vmax.f32 %v1284_v42, 0.0  ;;  %v5787_v42 = vld [vmem:[#allocation2 + $0x6a] sm:$0xff] }
 0x2af   :  { %v1186_v31 = vpop.f32.mrf.mxu1 }
 0x2b0   :  { %v1431_v63 = vmul.f32 %v5725_v9, %v1305_v35  ;;  %v1187_v39 = vadd.f32 %v1186_v31, %v1106_v48  ;;  %v5793_v48 = vld [vmem:[#allocation2 + $0x5a] sm:$0xff]  ;;  %v5797_v35 = vld [vmem:[#allocation2 + $0x92] sm:$0xff]  ;;  %v5799_v31 = vld [vmem:[#allocation2 + $0x82] sm:$0xff] }
 0x2b1   :  { %v5728_v4 = vld [vmem:[#allocation2 + $0x99] sm:$0xff] }
 0x2b2   :  { %1452 = vst.msk [vmem:[#allocation2 + $0xa2] sm:$0xff] %vm1189_vm9, %v1431_v63  ;;  %v1260_v6 = vmul.f32 %v5424_v51, %v1187_v39  ;;  %1673 = vrot.lane.b32.xlu0 %v1497_v40, %s3960_s3  ;;  %1627 = vrot.lane.b32.xlu1 %v5728_v4, %s3959_s2  ;;  %v5749_v51 = vld [vmem:[#allocation2 + $0x32] sm:$0xff]  ;;  %v5809_v63 = vpop.permute.xlu2 %1593  ;;  %v5811_v39 = vld [vmem:[#allocation2 + $0x9a] sm:$0xff] }
 0x2b3   :  { %v5805_v40 = vld [vmem:[#allocation2 + $0x72] sm:$0xff] }
 0x2b4   :  { %v1285_v28 = vadd.f32 %v5433_v2, %v1260_v6  ;;  %v5751_v2 = vld [vmem:[#allocation2 + $0x22] sm:$0xff]  ;;  %v5813_v6 = vpop.permute.xlu0 %1589 }
 0x2b6   :  { %v1306_v37 = vmax.f32 %v1285_v28, 0.0  ;;  %v5819_v28 = vld [vmem:[#allocation2 + $0x8a] sm:$0xff] }
 0x2b8   :  { %v1432_v15 = vmul.f32 %v5736_v53, %v1306_v37 }
 0x2b9   :  { %v1496_v11 = vld [vmem:[#allocation2 + $0xa1] sm:$0x3] }
 0x2ba   :  { %1454 = vst.msk [vmem:[#allocation2 + $0xaa] sm:$0x3] %vm1453_vm10, %v1432_v15  ;;  %1679 = vrot.lane.b32.xlu0 %v5739_v8, %s3960_s3  ;;  %1675 = vrot.lane.b32.xlu1 %v5741_v18, %s3960_s3  ;;  %v5823_v37 = vpop.permute.xlu2 %1599  ;;  %v1517_v15 = vld [vmem:[#allocation2 + $0xa2] sm:$0x3] }
 0x2bb   :  { %1629 = vrot.lane.b32.xlu2 %v1496_v11, %s3959_s2  ;;  %v1518_v9 = vld [vmem:[#allocation2 + $0xa1] sm:$0xff] }
 0x2bc   :  { %v5832_v11 = vpop.permute.xlu0 %1595  ;;  %v5978_v3 = vld [vmem:[#allocation2 + $0xa2] sm:$0xff] }
 0x2c1   :  { %v1519_v29 = vld [vmem:[#allocation2 + $0xa9] sm:$0x3] }
 0x2c2   :  { %1685 = vrot.lane.b32.xlu0 %v5749_v51, %s3960_s3  ;;  %1681 = vrot.lane.b32.xlu1 %v5751_v2, %s3960_s3  ;;  %v5834_v53 = vpop.permute.xlu2 %1605 }
 0x2c3   :  { %1677 = vrot.lane.b32.xlu2 %v5757_v26, %s3960_s3  ;;  %7721 = vst [vmem:[#allocation25_spill] sm:$0xff] %v5834_v53  ;;  %v6096_v53 = vld [vmem:[#allocation2 + $0xa3] sm:$0xff] }
 0x2ca   :  { %1691 = vrot.lane.b32.xlu0 %v5761_v61, %s3960_s3  ;;  %1687 = vrot.lane.b32.xlu1 %v5763_v52, %s3960_s3 }
 0x2cb   :  { %1683 = vrot.lane.b32.xlu2 %v5769_v7, %s3960_s3 }
 0x2d2   :  { %1697 = vrot.lane.b32.xlu0 %v5773_v5, %s3960_s3  ;;  %1693 = vrot.lane.b32.xlu1 %v5775_v43, %s3960_s3 }
 0x2d3   :  { %1689 = vrot.lane.b32.xlu2 %v5781_v27, %s3960_s3 }
 0x2da   :  { %1703 = vrot.lane.b32.xlu0 %v5785_v50, %s3960_s3  ;;  %1699 = vrot.lane.b32.xlu1 %v5787_v42, %s3960_s3 }
 0x2db   :  { %1695 = vrot.lane.b32.xlu2 %v5793_v48, %s3960_s3 }
 0x2e2   :  { %1709 = vrot.lane.b32.xlu0 %v5797_v35, %s3960_s3  ;;  %1705 = vrot.lane.b32.xlu1 %v5799_v31, %s3960_s3 }
 0x2e3   :  { %1701 = vrot.lane.b32.xlu2 %v5805_v40, %s3960_s3 }
 0x2ea   :  { %1738 = vrot.lane.b32.xlu0 %v5489_v47, %s3961_s8  ;;  %1711 = vrot.lane.b32.xlu1 %v5811_v39, %s3960_s3  ;;  %v5830_v47 = vpop.permute.xlu1 %1591 }
 0x2eb   :  { %1707 = vrot.lane.b32.xlu2 %v5819_v28, %s3960_s3 }
 0x2f2   :  { %1744 = vrot.lane.b32.xlu0 %v5578_v60, %s3961_s8  ;;  %1740 = vrot.lane.b32.xlu1 %v5550_v21, %s3961_s8  ;;  %v5842_v60 = vpop.permute.xlu1 %1597  ;;  %v5844_v21 = vpop.permute.xlu0 %1601 }
 0x2f3   :  { %1713 = vrot.lane.b32.xlu2 %v1517_v15, %s3960_s3  ;;  %v5846_v15 = vpop.permute.xlu2 %1611 }
 0x2f4   :  { %7722 = vst [vmem:[#allocation26_spill] sm:$0xff] %v5846_v15 }
 0x2fa   :  { %1750 = vrot.lane.b32.xlu0 %v5608_v38, %s3961_s8  ;;  %1746 = vrot.lane.b32.xlu1 %v5588_v25, %s3961_s8  ;;  %v5854_v38 = vpop.permute.xlu1 %1603  ;;  %v5856_v25 = vpop.permute.xlu0 %1607 }
 0x2fb   :  { %1742 = vrot.lane.b32.xlu2 %v5567_v58, %s3961_s8  ;;  %7723 = vst [vmem:[#allocation27_spill] sm:$0xff] %v5854_v38  ;;  %v5858_v58 = vpop.permute.xlu2 %1617 }
 0x2fc   :  { %7724 = vst [vmem:[#allocation28_spill] sm:$0xff] %v5856_v25  ;;  %v6078_v25 = vld [vmem:[#allocation2 + $0x9b] sm:$0xff] }
 0x2fd   :  { %7725 = vst [vmem:[#allocation29_spill] sm:$0xff] %v5858_v58  ;;  %v6032_v58 = vld [vmem:[#allocation2 + $0x33] sm:$0xff] }
 0x302   :  { %1756 = vrot.lane.b32.xlu0 %v5638_v34, %s3961_s8  ;;  %1752 = vrot.lane.b32.xlu1 %v5618_v32, %s3961_s8  ;;  %v5866_v34 = vpop.permute.xlu1 %1609  ;;  %v5868_v32 = vpop.permute.xlu0 %1613 }
 0x303   :  { %1748 = vrot.lane.b32.xlu2 %v5598_v10, %s3961_s8  ;;  %7726 = vst [vmem:[#allocation30_spill] sm:$0xff] %v5866_v34  ;;  %v5870_v10 = vpop.permute.xlu2 %1623  ;;  %v6060_v34 = vld [vmem:[#allocation2 + $0x83] sm:$0xff] }
 0x304   :  { %7727 = vst [vmem:[#allocation31_spill] sm:$0xff] %v5868_v32  ;;  %v6042_v32 = vld [vmem:[#allocation2 + $0x6b] sm:$0xff] }
 0x305   :  { %7728 = vst [vmem:[#allocation32_spill] sm:$0xff] %v5870_v10  ;;  %v6008_v10 = vld [vmem:[#allocation2 + $0x2b] sm:$0xff] }
 0x30a   :  { %1762 = vrot.lane.b32.xlu0 %v5668_v24, %s3961_s8  ;;  %1758 = vrot.lane.b32.xlu1 %v5648_v57, %s3961_s8  ;;  %v5878_v24 = vpop.permute.xlu1 %1615  ;;  %v5880_v57 = vpop.permute.xlu0 %1619 }
 0x30b   :  { %1754 = vrot.lane.b32.xlu2 %v5628_v46, %s3961_s8  ;;  %7729 = vst [vmem:[#allocation33_spill] sm:$0xff] %v5878_v24 }
 0x30c   :  { %7730 = vst [vmem:[#allocation34_spill] sm:$0xff] %v5880_v57  ;;  %v6024_v57 = vld [vmem:[#allocation2 + $0x53] sm:$0xff] }
 0x312   :  { %1768 = vrot.lane.b32.xlu0 %v5698_v13, %s3961_s8  ;;  %1764 = vrot.lane.b32.xlu1 %v5678_v56, %s3961_s8  ;;  %v5890_v13 = vpop.permute.xlu1 %1621 }
 0x313   :  { %1760 = vrot.lane.b32.xlu2 %v5658_v36, %s3961_s8  ;;  %7732 = vst [vmem:[#allocation36_spill] sm:$0xff] %v5890_v13 }
 0x315   :  { %v5882_v46 = vpop.permute.xlu2 %1629 }
 0x316   :  { %7731 = vst [vmem:[#allocation35_spill] sm:$0xff] %v5882_v46 }
 0x31a   :  { %1774 = vrot.lane.b32.xlu0 %v5728_v4, %s3961_s8  ;;  %1770 = vrot.lane.b32.xlu1 %v5708_v1, %s3961_s8 }
 0x31b   :  { %1766 = vrot.lane.b32.xlu2 %v5688_v45, %s3961_s8 }
 0x31c   :  { %v5892_v56 = vpop.permute.xlu0 %1625 }
 0x31d   :  { %7733 = vst [vmem:[#allocation37_spill] sm:$0xff] %v5892_v56  ;;  %v5894_v36 = vpop.permute.xlu2 %1677 }
 0x322   :  { %1803 = vrot.lane.b32.xlu0 %v5741_v18, %s3949_s19  ;;  %1776 = vrot.lane.b32.xlu1 %v1518_v9, %s3961_s8 }
 0x323   :  { %1772 = vrot.lane.b32.xlu2 %v5718_v20, %s3961_s8 }
 0x324   :  { %v5901_v4 = vpop.permute.xlu0 %1673  ;;  %v5903_v1 = vpop.permute.xlu1 %1627 }
 0x325   :  { %7734 = vst [vmem:[#allocation38_spill] sm:$0xff] %v5903_v1  ;;  %v5905_v45 = vpop.permute.xlu2 %1683  ;;  %v5991_v1 = vld [vmem:[#allocation2 + $0x23] sm:$0xff] }
 0x32a   :  { %1809 = vrot.lane.b32.xlu0 %v5751_v2, %s3949_s19  ;;  %1805 = vrot.lane.b32.xlu1 %v5757_v26, %s3949_s19 }
 0x32b   :  { %1778 = vrot.lane.b32.xlu2 %v1519_v29, %s3961_s8 }
 0x32c   :  { %v5912_v18 = vpop.permute.xlu0 %1679  ;;  %v5914_v9 = vpop.permute.xlu1 %1675 }
 0x32d   :  { %v5916_v20 = vpop.permute.xlu2 %1689 }
 0x32e   :  { %7735 = vst [vmem:[#allocation39_spill] sm:$0xff] %v5916_v20  ;;  %v6086_v20 = vld [vmem:[#allocation2 + $0x7b] sm:$0xff] }
 0x332   :  { %1815 = vrot.lane.b32.xlu0 %v5763_v52, %s3949_s19  ;;  %1811 = vrot.lane.b32.xlu1 %v5769_v7, %s3949_s19 }
 0x333   :  { %1807 = vrot.lane.b32.xlu2 %v5739_v8, %s3949_s19 }
 0x334   :  { %v5924_v55 = vpop.permute.xlu0 %1685  ;;  %v5926_v59 = vpop.permute.xlu1 %1681 }
 0x335   :  { %7736 = vst [vmem:[#allocation40_spill] sm:$0xff] %v5924_v55  ;;  %v5928_v29 = vpop.permute.xlu2 %1695 }
 0x336   :  { %7737 = vst [vmem:[#allocation41_spill] sm:$0xff] %v5928_v29  ;;  %v6050_v29 = vld [vmem:[#allocation2 + $0x4b] sm:$0xff] }
 0x33a   :  { %1821 = vrot.lane.b32.xlu0 %v5775_v43, %s3949_s19  ;;  %1817 = vrot.lane.b32.xlu1 %v5781_v27, %s3949_s19 }
 0x33b   :  { %1813 = vrot.lane.b32.xlu2 %v5749_v51, %s3949_s19 }
 0x33c   :  { %v5936_v14 = vpop.permute.xlu0 %1691  ;;  %v5938_v41 = vpop.permute.xlu1 %1687 }
 0x33d   :  { %7738 = vst [vmem:[#allocation42_spill] sm:$0xff] %v5936_v14  ;;  %v5940_v17 = vpop.permute.xlu2 %1701  ;;  %v6068_v14 = vld [vmem:[#allocation2 + $0x63] sm:$0xff] }
 0x33e   :  { %7739 = vst [vmem:[#allocation43_spill] sm:$0xff] %v5938_v41 }
 0x33f   :  { %7740 = vst [vmem:[#allocation44_spill] sm:$0xff] %v5940_v17  ;;  %v6026_v17 = vld [vmem:[#allocation2 + $0x43] sm:$0xff] }
 0x342   :  { %1827 = vrot.lane.b32.xlu0 %v5787_v42, %s3949_s19  ;;  %1823 = vrot.lane.b32.xlu1 %v5793_v48, %s3949_s19 }
 0x343   :  { %1819 = vrot.lane.b32.xlu2 %v5761_v61, %s3949_s19 }
 0x344   :  { %v5948_v19 = vpop.permute.xlu0 %1697  ;;  %v5950_v0 = vpop.permute.xlu1 %1693 }
 0x345   :  { %7741 = vst [vmem:[#allocation45_spill] sm:$0xff] %v5948_v19  ;;  %v5952_v44 = vpop.permute.xlu2 %1707 }
 0x346   :  { %7742 = vst [vmem:[#allocation46_spill] sm:$0xff] %v5950_v0 }
 0x347   :  { %7743 = vst [vmem:[#allocation47_spill] sm:$0xff] %v5952_v44  ;;  %v6006_v44 = vld [vmem:[#allocation2 + $0x3b] sm:$0xff] }
 0x34a   :  { %1833 = vrot.lane.b32.xlu0 %v5799_v31, %s3949_s19  ;;  %1829 = vrot.lane.b32.xlu1 %v5805_v40, %s3949_s19 }
 0x34b   :  { %1825 = vrot.lane.b32.xlu2 %v5773_v5, %s3949_s19 }
 0x34c   :  { %v5960_v22 = vpop.permute.xlu0 %1703  ;;  %v5962_v30 = vpop.permute.xlu1 %1699 }
 0x34d   :  { %7744 = vst [vmem:[#allocation48_spill] sm:$0xff] %v5960_v22  ;;  %v5964_v49 = vpop.permute.xlu2 %1713 }
 0x34e   :  { %7745 = vst [vmem:[#allocation49_spill] sm:$0xff] %v5962_v30 }
 0x34f   :  { %7746 = vst [vmem:[#allocation50_spill] sm:$0xff] %v5964_v49 }
 0x352   :  { %1839 = vrot.lane.b32.xlu0 %v5811_v39, %s3949_s19  ;;  %1835 = vrot.lane.b32.xlu1 %v5819_v28, %s3949_s19 }
 0x353   :  { %1831 = vrot.lane.b32.xlu2 %v5785_v50, %s3949_s19 }
 0x354   :  { %v5972_v62 = vpop.permute.xlu0 %1709  ;;  %v5974_v12 = vpop.permute.xlu1 %1705 }
 0x355   :  { %7747 = vst [vmem:[#allocation51_spill] sm:$0xff] %v5972_v62  ;;  %v5976_v54 = vpop.permute.xlu2 %1742 }
 0x356   :  { %7748 = vst [vmem:[#allocation52_spill] sm:$0xff] %v5974_v12  ;;  %v6014_v12 = vld [vmem:[#allocation2 + $0x1b] sm:$0xff] }
 0x35a   :  { %1887 = vrot.lane.b32.xlu0 %v1522_v23, %s3962_s17  ;;  %1841 = vrot.lane.b32.xlu1 %v5978_v3, %s3949_s19  ;;  %v1521_v23 = vld [vmem:[#allocation2 + $0xaa] sm:$0x3] }
 0x35b   :  { %1837 = vrot.lane.b32.xlu2 %v5797_v35, %s3949_s19 }
 0x35c   :  { %v5985_v49 = vpop.permute.xlu0 %1738  ;;  %v5987_v46 = vpop.permute.xlu1 %1711 }
 0x35d   :  { %7749 = vst [vmem:[#allocation53_spill] sm:$0xff] %v5987_v46  ;;  %v5989_v16 = vpop.permute.xlu2 %1748 }
 0x362   :  { %1893 = vrot.lane.b32.xlu0 %v5991_v1, %s3962_s17  ;;  %1889 = vrot.lane.b32.xlu1 %v5993_v33, %s3962_s17 }
 0x363   :  { %1843 = vrot.lane.b32.xlu2 %v1521_v23, %s3949_s19 }
 0x364   :  { %v6000_v62 = vpop.permute.xlu0 %1744  ;;  %v6002_v56 = vpop.permute.xlu1 %1740 }
 0x365   :  { %v6004_v46 = vpop.permute.xlu2 %1754 }
 0x366   :  { %7750 = vst [vmem:[#allocation54_spill] sm:$0xff] %v6004_v46  ;;  %v6080_v46 = vld [vmem:[#allocation2 + $0x8b] sm:$0xff] }
 0x36a   :  { %1899 = vrot.lane.b32.xlu0 %v6006_v44, %s3962_s17  ;;  %1895 = vrot.lane.b32.xlu1 %v6008_v10, %s3962_s17 }
 0x36b   :  { %1891 = vrot.lane.b32.xlu2 %v6014_v12, %s3962_s17 }
 0x36c   :  { %v6018_v23 = vpop.permute.xlu0 %1750  ;;  %v6020_v13 = vpop.permute.xlu1 %1746 }
 0x36d   :  { %7751 = vst [vmem:[#allocation55_spill] sm:$0xff] %v6018_v23  ;;  %v6022_v22 = vpop.permute.xlu2 %1760 }
 0x36e   :  { %7752 = vst [vmem:[#allocation56_spill] sm:$0xff] %v6022_v22  ;;  %v6044_v22 = vld [vmem:[#allocation2 + $0x5b] sm:$0xff] }
 0x372   :  { %1905 = vrot.lane.b32.xlu0 %v6024_v57, %s3962_s17  ;;  %1901 = vrot.lane.b32.xlu1 %v6026_v17, %s3962_s17 }
 0x373   :  { %1897 = vrot.lane.b32.xlu2 %v6032_v58, %s3962_s17 }
 0x374   :  { %v6036_v30 = vpop.permute.xlu0 %1756  ;;  %v6038_v24 = vpop.permute.xlu1 %1752 }
 0x375   :  { %7753 = vst [vmem:[#allocation57_spill] sm:$0xff] %v6036_v30  ;;  %v6040_v19 = vpop.permute.xlu2 %1766  ;;  %v6062_v30 = vld [vmem:[#allocation2 + $0x73] sm:$0xff] }
 0x376   :  { %7754 = vst [vmem:[#allocation58_spill] sm:$0xff] %v6038_v24  ;;  %v6102_v24 = vld [vmem:[#allocation2 + $0x93] sm:$0xff] }
 0x377   :  { %7755 = vst [vmem:[#allocation59_spill] sm:$0xff] %v6040_v19 }
 0x37a   :  { %1911 = vrot.lane.b32.xlu0 %v6042_v32, %s3962_s17  ;;  %1907 = vrot.lane.b32.xlu1 %v6044_v22, %s3962_s17 }
 0x37b   :  { %1903 = vrot.lane.b32.xlu2 %v6050_v29, %s3962_s17 }
 0x37c   :  { %v6054_v15 = vpop.permute.xlu0 %1762  ;;  %v6056_v0 = vpop.permute.xlu1 %1758 }
 0x37d   :  { %7756 = vst [vmem:[#allocation60_spill] sm:$0xff] %v6054_v15  ;;  %v6058_v19 = vpop.permute.xlu2 %1772 }
 0x37e   :  { %7757 = vst [vmem:[#allocation61_spill] sm:$0xff] %v6056_v0 }
 0x37f   :  { %7758 = vst [vmem:[#allocation62_spill] sm:$0xff] %v6058_v19 }
 0x382   :  { %1917 = vrot.lane.b32.xlu0 %v6060_v34, %s3962_s17  ;;  %1913 = vrot.lane.b32.xlu1 %v6062_v30, %s3962_s17 }
 0x383   :  { %1909 = vrot.lane.b32.xlu2 %v6068_v14, %s3962_s17 }
 0x384   :  { %v6072_v15 = vpop.permute.xlu0 %1768  ;;  %v6074_v0 = vpop.permute.xlu1 %1764 }
 0x385   :  { %7759 = vst [vmem:[#allocation63_spill] sm:$0xff] %v6072_v15  ;;  %v6076_v19 = vpop.permute.xlu2 %1778 }
 0x386   :  { %7760 = vst [vmem:[#allocation64_spill] sm:$0xff] %v6074_v0 }
 0x387   :  { %7761 = vst [vmem:[#allocation65_spill] sm:$0xff] %v6076_v19 }
 0x38a   :  { %1923 = vrot.lane.b32.xlu0 %v6078_v25, %s3962_s17  ;;  %1919 = vrot.lane.b32.xlu1 %v6080_v46, %s3962_s17 }
 0x38b   :  { %1915 = vrot.lane.b32.xlu2 %v6086_v20, %s3962_s17 }
 0x38c   :  { %v6090_v15 = vpop.permute.xlu0 %1774  ;;  %v6092_v0 = vpop.permute.xlu1 %1770 }
 0x38d   :  { %7762 = vst [vmem:[#allocation66_spill] sm:$0xff] %v6090_v15  ;;  %v6094_v19 = vpop.permute.xlu2 %1807 }
 0x38e   :  { %7763 = vst [vmem:[#allocation67_spill] sm:$0xff] %v6092_v0 }
 0x392   :  { %1952 = vrot.lane.b32.xlu0 %v5757_v26, %s3963_s20  ;;  %1925 = vrot.lane.b32.xlu1 %v6096_v53, %s3962_s17  ;;  %v1542_v26 = vld [vmem:[#allocation2 + $0xab] sm:$0x3] }
 0x393   :  { %1921 = vrot.lane.b32.xlu2 %v6102_v24, %s3962_s17 }
 0x394   :  { %v6106_v41 = vpop.permute.xlu0 %1803  ;;  %v6108_v15 = vpop.permute.xlu1 %1776 }
 0x395   :  { %7764 = vst [vmem:[#allocation68_spill] sm:$0xff] %v6108_v15  ;;  %v6110_v0 = vpop.permute.xlu2 %1813  ;;  %v1543_v15 = vld [vmem:[#allocation2 + $0xaa] sm:$0xff] }
 0x39a   :  { %1958 = vrot.lane.b32.xlu0 %v5769_v7, %s3963_s20  ;;  %1954 = vrot.lane.b32.xlu1 %v5739_v8, %s3963_s20 }
 0x39b   :  { %1927 = vrot.lane.b32.xlu2 %v1542_v26, %s3962_s17 }
 0x39c   :  { %v6117_v38 = vpop.permute.xlu0 %1809  ;;  %v6119_v23 = vpop.permute.xlu1 %1805 }
 0x39d   :  { %v6121_v55 = vpop.permute.xlu2 %1819 }
 0x3a2   :  { %1964 = vrot.lane.b32.xlu0 %v5781_v27, %s3963_s20  ;;  %1960 = vrot.lane.b32.xlu1 %v5749_v51, %s3963_s20 }
 0x3a3   :  { %1956 = vrot.lane.b32.xlu2 %v5751_v2, %s3963_s20 }
 0x3a4   :  { %v6129_v7 = vpop.permute.xlu0 %1815  ;;  %v6131_v8 = vpop.permute.xlu1 %1811 }
 0x3a5   :  { %v6133_v26 = vpop.permute.xlu2 %1825 }
 0x3a6   :  { %7765 = vst [vmem:[#allocation69_spill] sm:$0xff] %v6133_v26 }
 0x3aa   :  { %1970 = vrot.lane.b32.xlu0 %v5793_v48, %s3963_s20  ;;  %1966 = vrot.lane.b32.xlu1 %v5761_v61, %s3963_s20 }
 0x3ab   :  { %1962 = vrot.lane.b32.xlu2 %v5763_v52, %s3963_s20 }
 0x3ac   :  { %v6141_v27 = vpop.permute.xlu0 %1821  ;;  %v6143_v51 = vpop.permute.xlu1 %1817 }
 0x3ad   :  { %7766 = vst [vmem:[#allocation70_spill] sm:$0xff] %v6141_v27  ;;  %v6145_v2 = vpop.permute.xlu2 %1831 }
 0x3ae   :  { %7767 = vst [vmem:[#allocation71_spill] sm:$0xff] %v6145_v2  ;;  %v1557_v2 = vld [vmem:[#allocation2 + $0x64] sm:$0xff] }
 0x3b2   :  { %1976 = vrot.lane.b32.xlu0 %v5805_v40, %s3963_s20  ;;  %1972 = vrot.lane.b32.xlu1 %v5773_v5, %s3963_s20 }
 0x3b3   :  { %1968 = vrot.lane.b32.xlu2 %v5775_v43, %s3963_s20 }
 0x3b4   :  { %v6153_v48 = vpop.permute.xlu0 %1827  ;;  %v6155_v61 = vpop.permute.xlu1 %1823 }
 0x3b5   :  { %7768 = vst [vmem:[#allocation72_spill] sm:$0xff] %v6153_v48  ;;  %v6157_v52 = vpop.permute.xlu2 %1837  ;;  %v1563_v48 = vld [vmem:[#allocation2 + $0x94] sm:$0xff] }
 0x3b6   :  { %7769 = vst [vmem:[#allocation73_spill] sm:$0xff] %v6155_v61 }
 0x3b7   :  { %7770 = vst [vmem:[#allocation74_spill] sm:$0xff] %v6157_v52  ;;  %v1553_v52 = vld [vmem:[#allocation2 + $0x44] sm:$0xff] }
 0x3ba   :  { %1982 = vrot.lane.b32.xlu0 %v5819_v28, %s3963_s20  ;;  %1978 = vrot.lane.b32.xlu1 %v5785_v50, %s3963_s20 }
 0x3bb   :  { %1974 = vrot.lane.b32.xlu2 %v5787_v42, %s3963_s20 }
 0x3bc   :  { %v6165_v40 = vpop.permute.xlu0 %1833  ;;  %v6167_v5 = vpop.permute.xlu1 %1829 }
 0x3bd   :  { %7771 = vst [vmem:[#allocation75_spill] sm:$0xff] %v6165_v40  ;;  %v6169_v43 = vpop.permute.xlu2 %1843  ;;  %v1552_v40 = vld [vmem:[#allocation2 + $0x3c] sm:$0xff] }
 0x3be   :  { %7772 = vst [vmem:[#allocation76_spill] sm:$0xff] %v6167_v5  ;;  %v1562_v5 = vld [vmem:[#allocation2 + $0x8c] sm:$0xff] }
 0x3bf   :  { %7773 = vst [vmem:[#allocation77_spill] sm:$0xff] %v6169_v43  ;;  %v1544_v43 = vld [vmem:[#allocation2 + $0xb2] sm:$0x3] }
 0x3c2   :  { %1988 = vrot.lane.b32.xlu0 %v5978_v3, %s3963_s20  ;;  %1984 = vrot.lane.b32.xlu1 %v5797_v35, %s3963_s20 }
 0x3c3   :  { %1980 = vrot.lane.b32.xlu2 %v5799_v31, %s3963_s20 }
 0x3c4   :  { %v6177_v28 = vpop.permute.xlu0 %1839  ;;  %v6179_v50 = vpop.permute.xlu1 %1835 }
 0x3c5   :  { %7774 = vst [vmem:[#allocation78_spill] sm:$0xff] %v6177_v28  ;;  %v6181_v42 = vpop.permute.xlu2 %1891  ;;  %v1545_v28 = vld [vmem:[#allocation2 + $0xab] sm:$0xff] }
 0x3c6   :  { %7775 = vst [vmem:[#allocation79_spill] sm:$0xff] %v6179_v50  ;;  %v1556_v50 = vld [vmem:[#allocation2 + $0x5c] sm:$0xff] }
 0x3ca   :  { %2017 = vrot.lane.b32.xlu0 %v5993_v33, %s3964_s21  ;;  %1990 = vrot.lane.b32.xlu1 %v1543_v15, %s3963_s20 }
 0x3cb   :  { %1986 = vrot.lane.b32.xlu2 %v5811_v39, %s3963_s20 }
 0x3cc   :  { %v6188_v3 = vpop.permute.xlu0 %1887  ;;  %v6190_v35 = vpop.permute.xlu1 %1841 }
 0x3cd   :  { %7776 = vst [vmem:[#allocation80_spill] sm:$0xff] %v6190_v35  ;;  %v6192_v31 = vpop.permute.xlu2 %1897  ;;  %v1547_v35 = vld [vmem:[#allocation2 + $0x14] sm:$0xff] }
 0x3d2   :  { %2023 = vrot.lane.b32.xlu0 %v6008_v10, %s3964_s21  ;;  %2019 = vrot.lane.b32.xlu1 %v6014_v12, %s3964_s21 }
 0x3d3   :  { %1992 = vrot.lane.b32.xlu2 %v1544_v43, %s3963_s20 }
 0x3d4   :  { %v6199_v33 = vpop.permute.xlu0 %1893  ;;  %v6201_v15 = vpop.permute.xlu1 %1889 }
 0x3d5   :  { %v6203_v39 = vpop.permute.xlu2 %1903 }
 0x3da   :  { %2029 = vrot.lane.b32.xlu0 %v6026_v17, %s3964_s21  ;;  %2025 = vrot.lane.b32.xlu1 %v6032_v58, %s3964_s21 }
 0x3db   :  { %2021 = vrot.lane.b32.xlu2 %v5991_v1, %s3964_s21 }
 0x3dc   :  { %v6211_v10 = vpop.permute.xlu0 %1899  ;;  %v6213_v12 = vpop.permute.xlu1 %1895 }
 0x3dd   :  { %v6215_v43 = vpop.permute.xlu2 %1909 }
 0x3de   :  { %7777 = vst [vmem:[#allocation81_spill] sm:$0xff] %v6215_v43  ;;  %v2340_v43 = vld [vmem:[%s7619_s4 + $0x18] sm:$0xff] }
 0x3e2   :  { %2035 = vrot.lane.b32.xlu0 %v6044_v22, %s3964_s21  ;;  %2031 = vrot.lane.b32.xlu1 %v6050_v29, %s3964_s21 }
 0x3e3   :  { %2027 = vrot.lane.b32.xlu2 %v6006_v44, %s3964_s21 }
 0x3e4   :  { %v6223_v17 = vpop.permute.xlu0 %1905  ;;  %v6225_v58 = vpop.permute.xlu1 %1901 }
 0x3e5   :  { %7778 = vst [vmem:[#allocation82_spill] sm:$0xff] %v6223_v17  ;;  %v6227_v1 = vpop.permute.xlu2 %1915 }
 0x3e6   :  { %7779 = vst [vmem:[#allocation83_spill] sm:$0xff] %v6227_v1  ;;  %v1559_v1 = vld [vmem:[#allocation2 + $0x74] sm:$0xff] }
 0x3ea   :  { %2041 = vrot.lane.b32.xlu0 %v6062_v30, %s3964_s21  ;;  %2037 = vrot.lane.b32.xlu1 %v6068_v14, %s3964_s21 }
 0x3eb   :  { %2033 = vrot.lane.b32.xlu2 %v6024_v57, %s3964_s21 }
 0x3ec   :  { %v6235_v22 = vpop.permute.xlu0 %1911  ;;  %v6237_v29 = vpop.permute.xlu1 %1907 }
 0x3ed   :  { %7780 = vst [vmem:[#allocation84_spill] sm:$0xff] %v6235_v22  ;;  %v6239_v44 = vpop.permute.xlu2 %1921  ;;  %v1560_v22 = vld [vmem:[#allocation2 + $0x7c] sm:$0xff] }
 0x3ee   :  { %7781 = vst [vmem:[#allocation85_spill] sm:$0xff] %v6237_v29 }
 0x3ef   :  { %7782 = vst [vmem:[#allocation86_spill] sm:$0xff] %v6239_v44  ;;  %v1548_v44 = vld [vmem:[#allocation2 + $0x1c] sm:$0xff] }
 0x3f2   :  { %2047 = vrot.lane.b32.xlu0 %v6080_v46, %s3964_s21  ;;  %2043 = vrot.lane.b32.xlu1 %v6086_v20, %s3964_s21 }
 0x3f3   :  { %2039 = vrot.lane.b32.xlu2 %v6042_v32, %s3964_s21 }
 0x3f4   :  { %v6247_v30 = vpop.permute.xlu0 %1917  ;;  %v6249_v14 = vpop.permute.xlu1 %1913 }
 0x3f5   :  { %7783 = vst [vmem:[#allocation87_spill] sm:$0xff] %v6247_v30  ;;  %v6251_v57 = vpop.permute.xlu2 %1927  ;;  %v1554_v30 = vld [vmem:[#allocation2 + $0x4c] sm:$0xff] }
 0x3f6   :  { %7784 = vst [vmem:[#allocation88_spill] sm:$0xff] %v6249_v14  ;;  %v1555_v14 = vld [vmem:[#allocation2 + $0x54] sm:$0xff] }
 0x3f7   :  { %7785 = vst [vmem:[#allocation89_spill] sm:$0xff] %v6251_v57  ;;  %v1546_v57 = vld [vmem:[#allocation2 + $0xb3] sm:$0x3] }
 0x3fa   :  { %2053 = vrot.lane.b32.xlu0 %v6096_v53, %s3964_s21  ;;  %2049 = vrot.lane.b32.xlu1 %v6102_v24, %s3964_s21 }
 0x3fb   :  { %2045 = vrot.lane.b32.xlu2 %v6060_v34, %s3964_s21 }
 0x3fc   :  { %v6259_v46 = vpop.permute.xlu0 %1923  ;;  %v6261_v20 = vpop.permute.xlu1 %1919 }
 0x3fd   :  { %7786 = vst [vmem:[#allocation90_spill] sm:$0xff] %v6259_v46  ;;  %v6263_v32 = vpop.permute.xlu2 %1956  ;;  %v1550_v46 = vld [vmem:[#allocation2 + $0x2c] sm:$0xff] }
 0x3fe   :  { %7787 = vst [vmem:[#allocation91_spill] sm:$0xff] %v6261_v20  ;;  %v1551_v20 = vld [vmem:[#allocation2 + $0x34] sm:$0xff] }
 0x402   :  { %2101 = vrot.lane.b32.xlu0 %v1547_v35, %s3950_s15  ;;  %2055 = vrot.lane.b32.xlu1 %v1545_v28, %s3964_s21 }
 0x403   :  { %2051 = vrot.lane.b32.xlu2 %v6078_v25, %s3964_s21 }
 0x404   :  { %v6269_v53 = vpop.permute.xlu0 %1952  ;;  %v6271_v24 = vpop.permute.xlu1 %1925 }
 0x405   :  { %7788 = vst [vmem:[#allocation92_spill] sm:$0xff] %v6271_v24  ;;  %v6273_v34 = vpop.permute.xlu2 %1962  ;;  %v1549_v24 = vld [vmem:[#allocation2 + $0x24] sm:$0xff] }
 0x40a   :  { %2107 = vrot.lane.b32.xlu0 %v1550_v46, %s3950_s15  ;;  %2103 = vrot.lane.b32.xlu1 %v1548_v44, %s3950_s15 }
 0x40b   :  { %2057 = vrot.lane.b32.xlu2 %v1546_v57, %s3964_s21 }
 0x40c   :  { %v6278_v35 = vpop.permute.xlu0 %1958  ;;  %v6280_v28 = vpop.permute.xlu1 %1954 }
 0x40d   :  { %v6282_v25 = vpop.permute.xlu2 %1968 }
 0x412   :  { %2113 = vrot.lane.b32.xlu0 %v1553_v52, %s3950_s15  ;;  %2109 = vrot.lane.b32.xlu1 %v1551_v20, %s3950_s15 }
 0x413   :  { %2105 = vrot.lane.b32.xlu2 %v1549_v24, %s3950_s15 }
 0x414   :  { %v6287_v46 = vpop.permute.xlu0 %1964  ;;  %v6289_v44 = vpop.permute.xlu1 %1960 }
 0x415   :  { %v6291_v57 = vpop.permute.xlu2 %1974 }
 0x416   :  { %7789 = vst [vmem:[#allocation93_spill] sm:$0xff] %v6291_v57 }
 0x41a   :  { %2119 = vrot.lane.b32.xlu0 %v1556_v50, %s3950_s15  ;;  %2115 = vrot.lane.b32.xlu1 %v1554_v30, %s3950_s15 }
 0x41b   :  { %2111 = vrot.lane.b32.xlu2 %v1552_v40, %s3950_s15 }
 0x41c   :  { %v6296_v52 = vpop.permute.xlu0 %1970  ;;  %v6298_v20 = vpop.permute.xlu1 %1966 }
 0x41d   :  { %7790 = vst [vmem:[#allocation94_spill] sm:$0xff] %v6296_v52  ;;  %v6300_v24 = vpop.permute.xlu2 %1980 }
 0x41e   :  { %7791 = vst [vmem:[#allocation95_spill] sm:$0xff] %v6300_v24  ;;  %v1558_v24 = vld [vmem:[#allocation2 + $0x6c] sm:$0xff] }
 0x422   :  { %2125 = vrot.lane.b32.xlu0 %v1559_v1, %s3950_s15  ;;  %2121 = vrot.lane.b32.xlu1 %v1557_v2, %s3950_s15 }
 0x423   :  { %2117 = vrot.lane.b32.xlu2 %v1555_v14, %s3950_s15 }
 0x424   :  { %v6305_v50 = vpop.permute.xlu0 %1976  ;;  %v6307_v30 = vpop.permute.xlu1 %1972 }
 0x425   :  { %7792 = vst [vmem:[#allocation96_spill] sm:$0xff] %v6305_v50  ;;  %v6309_v40 = vpop.permute.xlu2 %1986  ;;  %v1565_v50 = vld [vmem:[#allocation2 + $0xa4] sm:$0xff] }
 0x426   :  { %7793 = vst [vmem:[#allocation97_spill] sm:$0xff] %v6307_v30 }
 0x427   :  { %7794 = vst [vmem:[#allocation98_spill] sm:$0xff] %v6309_v40  ;;  %v1561_v40 = vld [vmem:[#allocation2 + $0x84] sm:$0xff] }
 0x42a   :  { %2131 = vrot.lane.b32.xlu0 %v1562_v5, %s3950_s15  ;;  %2127 = vrot.lane.b32.xlu1 %v1560_v22, %s3950_s15 }
 0x42b   :  { %2123 = vrot.lane.b32.xlu2 %v1558_v24, %s3950_s15  ;;  %v1566_v24 = vld [vmem:[#allocation2 + $0xac] sm:$0xff] }
 0x42c   :  { %v6314_v1 = vpop.permute.xlu0 %1982  ;;  %v6316_v2 = vpop.permute.xlu1 %1978 }
 0x42d   :  { %7795 = vst [vmem:[#allocation99_spill] sm:$0xff] %v6314_v1  ;;  %v6318_v14 = vpop.permute.xlu2 %1992  ;;  %v1564_v1 = vld [vmem:[#allocation2 + $0x9c] sm:$0xff] }
 0x42e   :  { %7796 = vst [vmem:[#allocation100_spill] sm:$0xff] %v6316_v2 }
 0x42f   :  { %7797 = vst [vmem:[#allocation101_spill] sm:$0xff] %v6318_v14 }
 0x432   :  { %2137 = vrot.lane.b32.xlu0 %v1565_v50, %s3950_s15  ;;  %2133 = vrot.lane.b32.xlu1 %v1563_v48, %s3950_s15  ;;  %v1567_v50 = vld [vmem:[#allocation2 + $0xb4] sm:$0x3] }
 0x433   :  { %2129 = vrot.lane.b32.xlu2 %v1561_v40, %s3950_s15 }
 0x434   :  { %v6323_v5 = vpop.permute.xlu0 %1988  ;;  %v6325_v22 = vpop.permute.xlu1 %1984 }
 0x435   :  { %7798 = vst [vmem:[#allocation102_spill] sm:$0xff] %v6323_v5  ;;  %v6328_v2 = vpop.permute.xlu2 %2021 }
 0x436   :  { %7799 = vst [vmem:[#allocation103_spill] sm:$0xff] %v6325_v22  ;;  %v2341_v22 = vld [vmem:[%s7619_s4 + $0x20] sm:$0xff] }
 0x43a   :  { %2139 = vrot.lane.b32.xlu1 %v1566_v24, %s3950_s15  ;;  %v2343_v24 = vld [vmem:[%s7619_s4 + $0x30] sm:$0x3f] }
 0x43b   :  { %2135 = vrot.lane.b32.xlu2 %v1564_v1, %s3950_s15  ;;  %v2342_v1 = vld [vmem:[%s7619_s4 + $0x28] sm:$0xff]  ;;  %3682 = vmatpush.msk.msra.mxu2 %vm2408_vm11, %v2343_v24  ;;  %v2339_v24 = vld [vmem:[%s7619_s4 + $0x10] sm:$0xff] }
 0x43c   :  { %v2018_v14 = vpop.permute.xlu0 %2017  ;;  %v6331_v57 = vpop.permute.xlu1 %1990 }
 0x43d   :  { %7800 = vst [vmem:[#allocation104_spill] sm:$0xff] %v6331_v57  ;;  %v6336_v5 = vpop.permute.xlu2 %2027  ;;  %2422 = vmatpush.msra.mxu2 %v2342_v1  ;;  %v2338_v1 = vld [vmem:[%s7619_s4 + $0x8] sm:$0xff] }
 0x43f   :  { %2423 = vmatpush.msra.mxu2 %v2341_v22  ;;  %v2337_v22 = vld [vmem:[%s7619_s4] sm:$0xff] }
 0x441   :  { %2424 = vmatpush.msra.mxu2 %v2340_v43 }
 0x443   :  { %2141 = vrot.lane.b32.xlu2 %v1567_v50, %s3950_s15  ;;  %2425 = vmatpush.msra.mxu2 %v2339_v24 }
 0x444   :  { %v6334_v48 = vpop.permute.xlu0 %2023  ;;  %v2020_v40 = vpop.permute.xlu1 %2019 }
 0x445   :  { %v6355_v26 = vpop.permute.xlu2 %2033  ;;  %2426 = vmatpush.msra.mxu2 %v2338_v1 }
 0x446   :  { %7801 = vst [vmem:[#allocation105_spill] sm:$0xff] %v6355_v26 }
 0x447   :  { %2427 = vmatpush.msra.mxu2 %v2337_v22 }
 0x44c   :  { %v6345_v57 = vpop.permute.xlu0 %2029  ;;  %v6347_v50 = vpop.permute.xlu1 %2025 }
 0x44d   :  { %v6370_v61 = vpop.permute.xlu2 %2039 }
 0x44e   :  { %7803 = vst [vmem:[#allocation107_spill] sm:$0xff] %v6370_v61 }
 0x454   :  { %v6363_v30 = vpop.permute.xlu0 %2035  ;;  %v6365_v29 = vpop.permute.xlu1 %2031 }
 0x455   :  { %7802 = vst [vmem:[#allocation106_spill] sm:$0xff] %v6363_v30  ;;  %v6376_v17 = vpop.permute.xlu2 %2045  ;;  %v1455_v30 = vld [vmem:[#allocation2] sm:$0xff] }
 0x456   :  { %7805 = vst [vmem:[#allocation109_spill] sm:$0xff] %v6376_v17  ;;  %v2164_v22 = vsel %vm1189_vm9, %v1455_v30, %v5813_v6 }
 0x45c   :  { %v6372_v52 = vpop.permute.xlu0 %2041  ;;  %v6374_v43 = vpop.permute.xlu1 %2037 }
 0x45d   :  { %7804 = vst [vmem:[#allocation108_spill] sm:$0xff] %v6372_v52  ;;  %v6388_v61 = vpop.permute.xlu2 %2051  ;;  %v2186_v52 = vsel %vm2185_vm12, %v2164_v22, %v5901_v4 }
 0x45e   :  { %7808 = vst [vmem:[#allocation112_spill] sm:$0xff] %v6388_v61  ;;  %v1456_v61 = vld [vmem:[#allocation2 + $0x8] sm:$0xff] }
 0x464   :  { %v6378_v27 = vpop.permute.xlu0 %2047  ;;  %v6380_v24 = vpop.permute.xlu1 %2043 }
 0x465   :  { %7806 = vst [vmem:[#allocation110_spill] sm:$0xff] %v6378_v27  ;;  %v2208_v27 = vsel %vm2207_vm13, %v2186_v52, %v5985_v49 }
 0x466   :  { %v2229_v17 = vsel %vm762_vm0, %v2208_v27, %v6106_v41  ;;  %v2165_v41 = vsel %vm1189_vm9, %v1456_v61, %v5830_v47 }
 0x467   :  { %v2187_v27 = vsel %vm2185_vm12, %v2165_v41, %v5914_v9 }
 0x46c   :  { %v6382_v26 = vpop.permute.xlu0 %2053  ;;  %v6384_v1 = vpop.permute.xlu1 %2049 }
 0x46d   :  { %7807 = vst [vmem:[#allocation111_spill] sm:$0xff] %v6382_v26  ;;  %v2251_v26 = vsel %vm2250_vm14, %v2229_v17, %v6188_v3  ;;  %v6411_v3 = vpop.permute.xlu2 %2057 }
 0x46e   :  { %v2273_v6 = vsel %vm2272_vm15, %v2251_v26, %v6269_v53  ;;  %v2209_v26 = vsel %vm2207_vm13, %v2187_v27, %v6002_v56  ;;  %v1459_v27 = vld [vmem:[#allocation2 + $0x20] sm:$0xff] }
 0x46f   :  { %v2295_v30 = vsel %vm2294_vm2, %v2273_v6, %v2018_v14  ;;  %v2230_v17 = vsel %vm762_vm0, %v2209_v26, %v6119_v23  ;;  %v1457_v14 = vld [vmem:[#allocation2 + $0x10] sm:$0xff] }
 0x470   :  { %v2252_v53 = vsel %vm2250_vm14, %v2230_v17, %v6201_v15  ;;  %v2166_v56 = vsel %vm1189_vm9, %v1457_v14, %v5809_v63 }
 0x471   :  { %v2274_v52 = vsel %vm2272_vm15, %v2252_v53, %v6280_v28  ;;  %v2188_v23 = vsel %vm2185_vm12, %v2166_v56, %v5894_v36  ;;  %v1460_v53 = vld [vmem:[#allocation2 + $0x28] sm:$0xff] }
 0x472   :  { %v2296_v47 = vsel %vm2294_vm2, %v2274_v52, %v2020_v40  ;;  %v2210_v15 = vsel %vm2207_vm13, %v2188_v23, %v5976_v54 }
 0x473   :  { %v2231_v28 = vsel %vm762_vm0, %v2210_v15, %v6094_v19  ;;  %v1462_v15 = vld [vmem:[#allocation2 + $0x38] sm:$0xff] }
 0x474   :  { %v2102_v4 = vpop.permute.xlu0 %2101  ;;  %v6401_v22 = vpop.permute.xlu1 %2055  ;;  %v2253_v40 = vsel %vm2250_vm14, %v2231_v28, %v6181_v42 }
 0x475   :  { %v2316_v49 = vsel %vm784_vm1, %v2295_v30, %v2102_v4  ;;  %v2106_v6 = vpop.permute.xlu2 %2105  ;;  %v2275_v30 = vsel %vm2272_vm15, %v2253_v40, %v6263_v32  ;;  %v1458_v4 = vld [vmem:[#allocation2 + $0x18] sm:$0xff]  ;;  %v7811_v40 = vld [vmem:[#allocation27_spill] sm:$0xff] }
 0x476   :  { %3683 = vmatmul.msk.f32.vlgmr.msra.gmra.mxu2 %vm2344_vm3, %v2316_v49  ;;  %v2297_v63 = vsel %vm2294_vm2, %v2275_v30, %v6328_v2  ;;  %v2167_v36 = vsel %vm1189_vm9, %v1458_v4, %v5832_v11  ;;  %v7812_v30 = vld [vmem:[#allocation43_spill] sm:$0xff] }
 0x477   :  { %v2318_v49 = vsel %vm784_vm1, %v2297_v63, %v2106_v6  ;;  %v2189_v54 = vsel %vm2185_vm12, %v2167_v36, %v5912_v18  ;;  %v2168_v18 = vsel %vm1189_vm9, %v1459_v27, %v5842_v60  ;;  %v2171_v6 = vsel %vm1189_vm9, %v1462_v15, %v7811_v40  ;;  %v7813_v63 = vld [vmem:[#allocation58_spill] sm:$0xff] }
 0x478   :  { %v2211_v19 = vsel %vm2207_vm13, %v2189_v54, %v6000_v62  ;;  %v2190_v62 = vsel %vm2185_vm12, %v2168_v18, %v5926_v59  ;;  %v2169_v59 = vsel %vm1189_vm9, %v1460_v53, %v5823_v37  ;;  %v1463_v54 = vld [vmem:[#allocation2 + $0x40] sm:$0xff] }
 0x479   :  { %v2232_v42 = vsel %vm762_vm0, %v2211_v19, %v6117_v38  ;;  %v2212_v38 = vsel %vm2207_vm13, %v2190_v62, %v6020_v13  ;;  %v2191_v13 = vsel %vm2185_vm12, %v2169_v59, %v5905_v45  ;;  %v1464_v62 = vld [vmem:[#allocation2 + $0x48] sm:$0xff]  ;;  %v7822_v53 = vld [vmem:[#allocation82_spill] sm:$0xff] }
 0x47a   :  { %v2254_v32 = vsel %vm2250_vm14, %v2232_v42, %v6199_v33  ;;  %v2233_v33 = vsel %vm762_vm0, %v2212_v38, %v6131_v8  ;;  %v2213_v8 = vsel %vm2207_vm13, %v2191_v13, %v5989_v16  ;;  %v7809_v16 = vld [vmem:[#allocation40_spill] sm:$0xff]  ;;  %v7814_v42 = vld [vmem:[#allocation25_spill] sm:$0xff]  ;;  %v7823_v13 = vld [vmem:[#allocation94_spill] sm:$0xff] }
 0x47b   :  { %v2276_v41 = vsel %vm2272_vm15, %v2254_v32, %v6278_v35  ;;  %v2255_v35 = vsel %vm2250_vm14, %v2233_v33, %v6213_v12  ;;  %v2234_v12 = vsel %vm762_vm0, %v2213_v8, %v6110_v0  ;;  %v2172_v32 = vsel %vm1189_vm9, %v1463_v54, %v7814_v42  ;;  %v7818_v33 = vld [vmem:[#allocation28_spill] sm:$0xff]  ;;  %v7836_v54 = vld [vmem:[#allocation93_spill] sm:$0xff]  ;;  %v7837_v42 = vld [vmem:[#allocation107_spill] sm:$0xff] }
 0x47c   :  { %v2104_v61 = vpop.permute.xlu1 %2103  ;;  %v2108_v2 = vpop.permute.xlu0 %2107  ;;  %v2298_v11 = vsel %vm2294_vm2, %v2276_v41, %v6334_v48  ;;  %v2277_v17 = vsel %vm2272_vm15, %v2255_v35, %v6289_v44  ;;  %v2256_v44 = vsel %vm2250_vm14, %v2234_v12, %v6192_v31  ;;  %v7816_v41 = vld [vmem:[#allocation54_spill] sm:$0xff]  ;;  %v2173_v35 = vsel %vm1189_vm9, %v1464_v62, %v7818_v33  ;;  %v7842_v62 = vld [vmem:[#allocation84_spill] sm:$0xff] }
 0x47d   :  { %v2317_v9 = vsel %vm784_vm1, %v2296_v47, %v2104_v61  ;;  %v2319_v26 = vsel %vm784_vm1, %v2298_v11, %v2108_v2  ;;  %v2299_v60 = vsel %vm2294_vm2, %v2277_v17, %v6347_v50  ;;  %v2112_v50 = vpop.permute.xlu2 %2111  ;;  %v2278_v47 = vsel %vm2272_vm15, %v2256_v44, %v6273_v34  ;;  %v1461_v61 = vld [vmem:[#allocation2 + $0x30] sm:$0xff]  ;;  %v7815_v2 = vld [vmem:[#allocation39_spill] sm:$0xff]  ;;  %v7820_v17 = vld [vmem:[#allocation57_spill] sm:$0xff] }
 0x47e   :  { %3684 = vmatmul.msk.f32.gmra.mxu2 %vm2344_vm3, %v2317_v9  ;;  %v2300_v37 = vsel %vm2294_vm2, %v2278_v47, %v6336_v5  ;;  %v2170_v45 = vsel %vm1189_vm9, %v1461_v61, %v5844_v21  ;;  %v7810_v9 = vld [vmem:[#allocation55_spill] sm:$0xff]  ;;  %v7824_v12 = vld [vmem:[#allocation106_spill] sm:$0xff] }
 0x47f   :  { %v2321_v14 = vsel %vm784_vm1, %v2300_v37, %v2112_v50  ;;  %v2192_v0 = vsel %vm2185_vm12, %v2170_v45, %v7809_v16  ;;  %v1465_v50 = vld [vmem:[#allocation2 + $0x50] sm:$0xff]  ;;  %v7825_v37 = vld [vmem:[#allocation30_spill] sm:$0xff]  ;;  %v7827_v16 = vld [vmem:[#allocation61_spill] sm:$0xff] }
 0x480   :  { %v2214_v31 = vsel %vm2207_vm13, %v2192_v0, %v7810_v9  ;;  %v2174_v61 = vsel %vm1189_vm9, %v1465_v50, %v7825_v37  ;;  %v7828_v9 = vld [vmem:[#allocation73_spill] sm:$0xff]  ;;  %v7849_v50 = vld [vmem:[#allocation88_spill] sm:$0xff] }
 0x481   :  { %v2235_v34 = vsel %vm762_vm0, %v2214_v31, %v6129_v7  ;;  %v2193_v7 = vsel %vm2185_vm12, %v2171_v6, %v7812_v30  ;;  %v7831_v6 = vld [vmem:[#allocation26_spill] sm:$0xff] }
 0x482   :  { %v2257_v5 = vsel %vm2250_vm14, %v2235_v34, %v6211_v10  ;;  %v2215_v10 = vsel %vm2207_vm13, %v2193_v7, %v7813_v63  ;;  %v7829_v34 = vld [vmem:[#allocation85_spill] sm:$0xff] }
 0x483   :  { %v2279_v23 = vsel %vm2272_vm15, %v2257_v5, %v6287_v46  ;;  %v2236_v46 = vsel %vm762_vm0, %v2215_v10, %v6143_v51  ;;  %v2194_v51 = vsel %vm2185_vm12, %v2172_v32, %v7815_v2  ;;  %v7832_v7 = vld [vmem:[#allocation41_spill] sm:$0xff]  ;;  %v7833_v10 = vld [vmem:[#allocation56_spill] sm:$0xff]  ;;  %v1467_v2 = vld [vmem:[#allocation2 + $0x60] sm:$0xff] }
 0x484   :  { %v2110_v48 = vpop.permute.xlu1 %2109  ;;  %v2114_v56 = vpop.permute.xlu0 %2113  ;;  %v2301_v21 = vsel %vm2294_vm2, %v2279_v23, %v6345_v57  ;;  %v2258_v57 = vsel %vm2250_vm14, %v2236_v46, %v6225_v58  ;;  %v2216_v58 = vsel %vm2207_vm13, %v2194_v51, %v7816_v41  ;;  %v7830_v23 = vld [vmem:[#allocation97_spill] sm:$0xff]  ;;  %v7838_v41 = vld [vmem:[#allocation31_spill] sm:$0xff] }
 0x485   :  { %v2320_v52 = vsel %vm784_vm1, %v2299_v60, %v2110_v48  ;;  %v2322_v28 = vsel %vm784_vm1, %v2301_v21, %v2114_v56  ;;  %v2118_v11 = vpop.permute.xlu2 %2117  ;;  %v7819_v48 = vld [vmem:[#allocation42_spill] sm:$0xff] }
 0x486   :  { %3685 = vmatmul.msk.f32.gmra.mxu2 %vm2344_vm3, %v2318_v49  ;;  %v2280_v49 = vsel %vm2272_vm15, %v2258_v57, %v6298_v20  ;;  %v2237_v20 = vsel %vm762_vm0, %v2216_v58, %v6121_v55  ;;  %v2195_v55 = vsel %vm2185_vm12, %v2173_v35, %v7819_v48  ;;  %v7821_v60 = vld [vmem:[#allocation70_spill] sm:$0xff]  ;;  %v7834_v57 = vld [vmem:[#allocation69_spill] sm:$0xff]  ;;  %v2176_v58 = vsel %vm1189_vm9, %v1467_v2, %v7838_v41  ;;  %v7843_v35 = vld [vmem:[#allocation96_spill] sm:$0xff] }
 0x487   :  { %v2302_v36 = vsel %vm2294_vm2, %v2280_v49, %v6365_v29  ;;  %v2259_v29 = vsel %vm2250_vm14, %v2237_v20, %v6203_v39  ;;  %v2217_v39 = vsel %vm2207_vm13, %v2195_v55, %v7820_v17  ;;  %v7835_v49 = vld [vmem:[#allocation81_spill] sm:$0xff]  ;;  %v7844_v55 = vld [vmem:[#allocation108_spill] sm:$0xff]  ;;  %v7863_v41 = vld [vmem:[#allocation99_spill] sm:$0xff] }
 0x488   :  { %v2281_v27 = vsel %vm2272_vm15, %v2259_v29, %v6282_v25  ;;  %v2238_v25 = vsel %vm762_vm0, %v2217_v39, %v7821_v60  ;;  %v7839_v20 = vld [vmem:[#allocation45_spill] sm:$0xff]  ;;  %v1468_v39 = vld [vmem:[#allocation2 + $0x68] sm:$0xff] }
 0x489   :  { %v2198_v29 = vsel %vm2185_vm12, %v2176_v58, %v7839_v20  ;;  %v7864_v20 = vld [vmem:[#allocation110_spill] sm:$0xff] }
 0x48c   :  { %v2116_v4 = vpop.permute.xlu1 %2115  ;;  %v2120_v59 = vpop.permute.xlu0 %2119 }
 0x48d   :  { %v2323_v19 = vsel %vm784_vm1, %v2302_v36, %v2116_v4  ;;  %v2124_v36 = vpop.permute.xlu2 %2123 }
 0x48e   :  { %3686 = vmatmul.msk.f32.gmra.mxu2 %vm2344_vm3, %v2319_v26  ;;  %v7817_v26 = vld [vmem:[#allocation105_spill] sm:$0xff] }
 0x48f   :  { %v2303_v18 = vsel %vm2294_vm2, %v2281_v27, %v7817_v26  ;;  %v7841_v26 = vld [vmem:[#allocation72_spill] sm:$0xff] }
 0x490   :  { %v2324_v38 = vsel %vm784_vm1, %v2303_v18, %v2118_v11  ;;  %v7840_v11 = vld [vmem:[#allocation60_spill] sm:$0xff] }
 0x491   :  { %v2220_v27 = vsel %vm2207_vm13, %v2198_v29, %v7840_v11  ;;  %v1471_v11 = vld [vmem:[#allocation2 + $0x80] sm:$0xff] }
 0x492   :  { %v2241_v18 = vsel %vm762_vm0, %v2220_v27, %v7841_v26  ;;  %v7865_v26 = vld [vmem:[#allocation36_spill] sm:$0xff] }
 0x494   :  { %v2122_v56 = vpop.permute.xlu1 %2121  ;;  %v2126_v33 = vpop.permute.xlu0 %2125 }
 0x496   :  { %3687 = vmatmul.msk.f32.gmra.mxu2 %vm2344_vm3, %v2320_v52  ;;  %v2260_v52 = vsel %vm2250_vm14, %v2238_v25, %v7822_v53  ;;  %v7845_v25 = vld [vmem:[#allocation33_spill] sm:$0xff] }
 0x497   :  { %v2282_v8 = vsel %vm2272_vm15, %v2260_v52, %v7823_v13  ;;  %v2177_v53 = vsel %vm1189_vm9, %v1468_v39, %v7845_v25  ;;  %v7846_v52 = vld [vmem:[#allocation49_spill] sm:$0xff]  ;;  %v7847_v13 = vld [vmem:[#allocation64_spill] sm:$0xff]  ;;  %v7870_v25 = vld [vmem:[#allocation103_spill] sm:$0xff] }
 0x498   :  { %v2304_v44 = vsel %vm2294_vm2, %v2282_v8, %v7824_v12  ;;  %v7848_v12 = vld [vmem:[#allocation76_spill] sm:$0xff] }
 0x499   :  { %v2325_v47 = vsel %vm784_vm1, %v2304_v44, %v2120_v59  ;;  %v2199_v59 = vsel %vm2185_vm12, %v2177_v53, %v7846_v52  ;;  %v2626_v52 = vld [vmem:[#allocation3 + $0x1] sm:$0xff] }
 0x49a   :  { %v2221_v8 = vsel %vm2207_vm13, %v2199_v59, %v7847_v13  ;;  %2739 = vrot.lane.b32.xlu0 %v2626_v52, %s3959_s2  ;;  %v1472_v13 = vld [vmem:[#allocation2 + $0x88] sm:$0xff]  ;;  %v7891_v52 = vld [vmem:[#allocation92_spill] sm:$0xff] }
 0x49b   :  { %v2242_v44 = vsel %vm762_vm0, %v2221_v8, %v7848_v12  ;;  %v7871_v12 = vld [vmem:[#allocation32_spill] sm:$0xff] }
 0x49c   :  { %v2128_v37 = vpop.permute.xlu1 %2127 }
 0x49e   :  { %3688 = vmatmul.msk.f32.gmra.mxu2 %vm2344_vm3, %v2321_v14  ;;  %v7826_v14 = vld [vmem:[#allocation46_spill] sm:$0xff] }
 0x49f   :  { %v2196_v45 = vsel %vm2185_vm12, %v2174_v61, %v7826_v14  ;;  %v7850_v61 = vld [vmem:[#allocation100_spill] sm:$0xff] }
 0x4a0   :  { %v2218_v0 = vsel %vm2207_vm13, %v2196_v45, %v7827_v16  ;;  %v1469_v16 = vld [vmem:[#allocation2 + $0x70] sm:$0xff] }
 0x4a1   :  { %v2239_v31 = vsel %vm762_vm0, %v2218_v0, %v7828_v9  ;;  %v7851_v9 = vld [vmem:[#allocation29_spill] sm:$0xff] }
 0x4a2   :  { %v2261_v5 = vsel %vm2250_vm14, %v2239_v31, %v7829_v34  ;;  %v2178_v31 = vsel %vm1189_vm9, %v1469_v16, %v7851_v9  ;;  %v7852_v34 = vld [vmem:[#allocation44_spill] sm:$0xff]  ;;  %v7875_v9 = vld [vmem:[#allocation86_spill] sm:$0xff] }
 0x4a3   :  { %v2283_v21 = vsel %vm2272_vm15, %v2261_v5, %v7830_v23  ;;  %v2200_v5 = vsel %vm2185_vm12, %v2178_v31, %v7852_v34 }
 0x4a4   :  { %v2305_v15 = vsel %vm2294_vm2, %v2283_v21, %v6374_v43  ;;  %v7854_v21 = vld [vmem:[#allocation71_spill] sm:$0xff] }
 0x4a5   :  { %v2326_v40 = vsel %vm784_vm1, %v2305_v15, %v2122_v56  ;;  %v7853_v56 = vld [vmem:[#allocation59_spill] sm:$0xff] }
 0x4a6   :  { %3689 = vmatmul.msk.f32.gmra.mxu2 %vm2344_vm3, %v2322_v28  ;;  %v1466_v28 = vld [vmem:[#allocation2 + $0x58] sm:$0xff]  ;;  %v2222_v23 = vsel %vm2207_vm13, %v2200_v5, %v7853_v56  ;;  %v7876_v56 = vld [vmem:[#allocation98_spill] sm:$0xff] }
 0x4a7   :  { %v2175_v30 = vsel %vm1189_vm9, %v1466_v28, %v7831_v6  ;;  %v2243_v15 = vsel %vm762_vm0, %v2222_v23, %v7854_v21  ;;  %v7855_v28 = vld [vmem:[#allocation83_spill] sm:$0xff]  ;;  %v7877_v21 = vld [vmem:[#allocation112_spill] sm:$0xff] }
 0x4a8   :  { %v2197_v63 = vsel %vm2185_vm12, %v2175_v30, %v7832_v7  ;;  %v7856_v6 = vld [vmem:[#allocation95_spill] sm:$0xff]  ;;  %v7857_v7 = vld [vmem:[#allocation109_spill] sm:$0xff] }
 0x4a9   :  { %v2219_v46 = vsel %vm2207_vm13, %v2197_v63, %v7833_v10  ;;  %v1470_v10 = vld [vmem:[#allocation2 + $0x78] sm:$0xff] }
 0x4aa   :  { %v2240_v4 = vsel %vm762_vm0, %v2219_v46, %v7834_v57  ;;  %v7858_v57 = vld [vmem:[#allocation34_spill] sm:$0xff] }
 0x4ab   :  { %v2262_v43 = vsel %vm2250_vm14, %v2240_v4, %v7835_v49  ;;  %v2179_v4 = vsel %vm1189_vm9, %v1470_v10, %v7858_v57  ;;  %v7859_v49 = vld [vmem:[#allocation48_spill] sm:$0xff] }
 0x4ae   :  { %3690 = vmatmul.msk.f32.gmra.mxu2 %vm2344_vm3, %v2323_v19  ;;  %v2284_v19 = vsel %vm2272_vm15, %v2262_v43, %v7836_v54  ;;  %v2201_v43 = vsel %vm2185_vm12, %v2179_v4, %v7859_v49  ;;  %v7881_v4 = vld [vmem:[#allocation11_spill] sm:$0xff] }
 0x4af   :  { %v2306_v32 = vsel %vm2294_vm2, %v2284_v19, %v7837_v42  ;;  %v7861_v19 = vld [vmem:[#allocation75_spill] sm:$0xff] }
 0x4b0   :  { %v2327_v51 = vsel %vm784_vm1, %v2306_v32, %v2124_v36  ;;  %v7860_v36 = vld [vmem:[#allocation63_spill] sm:$0xff] }
 0x4b1   :  { %v2223_v54 = vsel %vm2207_vm13, %v2201_v43, %v7860_v36  ;;  %v7862_v32 = vld [vmem:[#allocation87_spill] sm:$0xff]  ;;  %v7882_v43 = vld [vmem:[#allocation78_spill] sm:$0xff] }
 0x4b2   :  { %v2244_v42 = vsel %vm762_vm0, %v2223_v54, %v7861_v19  ;;  %v7883_v19 = vld [vmem:[#allocation90_spill] sm:$0xff] }
 0x4b3   :  { %v2266_v2 = vsel %vm2250_vm14, %v2244_v42, %v7862_v32 }
 0x4b4   :  { %v2288_v58 = vsel %vm2272_vm15, %v2266_v2, %v7863_v41 }
 0x4b5   :  { %v2310_v29 = vsel %vm2294_vm2, %v2288_v58, %v7864_v20  ;;  %v7885_v58 = vld [vmem:[#allocation111_spill] sm:$0xff] }
 0x4b6   :  { %3691 = vmatmul.msk.f32.gmra.mxu2 %vm2344_vm3, %v2324_v38  ;;  %v2263_v38 = vsel %vm2250_vm14, %v2241_v18, %v7842_v62  ;;  %v2180_v18 = vsel %vm1189_vm9, %v1471_v11, %v7865_v26  ;;  %v7866_v62 = vld [vmem:[#allocation52_spill] sm:$0xff]  ;;  %v1474_v11 = vld [vmem:[#allocation2 + $0x98] sm:$0xff]  ;;  %v7886_v26 = vld [vmem:[#allocation38_spill] sm:$0xff] }
 0x4b7   :  { %v2285_v48 = vsel %vm2272_vm15, %v2263_v38, %v7843_v35  ;;  %v2202_v38 = vsel %vm2185_vm12, %v2180_v18, %v7866_v62  ;;  %v2183_v18 = vsel %vm1189_vm9, %v1474_v11, %v7886_v26  ;;  %v7902_v11 = vld [vmem:[#allocation9_spill] sm:$0xff] }
 0x4b8   :  { %v2307_v17 = vsel %vm2294_vm2, %v2285_v48, %v7844_v55  ;;  %v7868_v48 = vld [vmem:[#allocation79_spill] sm:$0xff] }
 0x4b9   :  { %v2328_v60 = vsel %vm784_vm1, %v2307_v17, %v2126_v33  ;;  %v7867_v33 = vld [vmem:[#allocation67_spill] sm:$0xff] }
 0x4ba   :  { %v2224_v35 = vsel %vm2207_vm13, %v2202_v38, %v7867_v33  ;;  %v7869_v17 = vld [vmem:[#allocation91_spill] sm:$0xff]  ;;  %v7887_v38 = vld [vmem:[#allocation53_spill] sm:$0xff] }
 0x4bb   :  { %v2245_v55 = vsel %vm762_vm0, %v2224_v35, %v7868_v48  ;;  %v2205_v33 = vsel %vm2185_vm12, %v2183_v18, %v7887_v38  ;;  %v7888_v35 = vld [vmem:[#allocation68_spill] sm:$0xff] }
 0x4bc   :  { %v2267_v39 = vsel %vm2250_vm14, %v2245_v55, %v7869_v17  ;;  %v2227_v48 = vsel %vm2207_vm13, %v2205_v33, %v7888_v35  ;;  %v7889_v55 = vld [vmem:[#allocation16_spill] sm:$0xff]  ;;  %v7903_v35 = vld [vmem:[#allocation10_spill] sm:$0xff] }
 0x4bd   :  { %v2289_v53 = vsel %vm2272_vm15, %v2267_v39, %v7870_v25  ;;  %v7890_v39 = vld [vmem:[#allocation80_spill] sm:$0xff] }
 0x4be   :  { %3692 = vmatmul.msk.f32.gmra.mxu2 %vm2344_vm3, %v2325_v47  ;;  %v2264_v47 = vsel %vm2250_vm14, %v2242_v44, %v7849_v50  ;;  %v2311_v59 = vsel %vm2294_vm2, %v2289_v53, %v6384_v1  ;;  %v2181_v44 = vsel %vm1189_vm9, %v1472_v13, %v7871_v12  ;;  %v6668_v50 = vld [vmem:[%s7620_s5] ss:$0 sm:$0xff]  ;;  %v7892_v12 = vld [vmem:[#allocation104_spill] sm:$0xff] }
 0x4bf   :  { %v2286_v14 = vsel %vm2272_vm15, %v2264_v47, %v7850_v61  ;;  %v7872_v47 = vld [vmem:[#allocation47_spill] sm:$0xff]  ;;  %v7873_v61 = vld [vmem:[#allocation62_spill] sm:$0xff] }
 0x4c0   :  { %v2308_v45 = vsel %vm2294_vm2, %v2286_v14, %v6380_v24  ;;  %v2265_v24 = vsel %vm2250_vm14, %v2243_v15, %v7855_v28  ;;  %v6677_v14 = vld [vmem:[%s7621_s6] ss:$0 sm:$0xff] }
 0x4c1   :  { %v2329_v0 = vsel %vm784_vm1, %v2308_v45, %v2128_v37  ;;  %v2287_v30 = vsel %vm2272_vm15, %v2265_v24, %v7856_v6  ;;  %v2203_v37 = vsel %vm2185_vm12, %v2181_v44, %v7872_v47  ;;  %v7874_v45 = vld [vmem:[#allocation74_spill] sm:$0xff]  ;;  %v1473_v24 = vld [vmem:[#allocation2 + $0x90] sm:$0xff]  ;;  %v7878_v6 = vld [vmem:[#allocation37_spill] sm:$0xff] }
 0x4c2   :  { %v2309_v63 = vsel %vm2294_vm2, %v2287_v30, %v7857_v7  ;;  %v2225_v1 = vsel %vm2207_vm13, %v2203_v37, %v7873_v61  ;;  %v2182_v30 = vsel %vm1189_vm9, %v1473_v24, %v7878_v6  ;;  %v1475_v61 = vld [vmem:[#allocation2 + $0xa0] sm:$0x3]  ;;  %v7898_v24 = vld [vmem:[#allocation89_spill] sm:$0xff] }
 0x4c3   :  { %v2246_v16 = vsel %vm762_vm0, %v2225_v1, %v7874_v45  ;;  %v7893_v45 = vld [vmem:[#allocation35_spill] sm:$0xff] }
 0x4c4   :  { %v2268_v31 = vsel %vm2250_vm14, %v2246_v16, %v7875_v9  ;;  %v2184_v16 = vsel %vm1189_vm9, %v1475_v61, %v7893_v45  ;;  %v7894_v9 = vld [vmem:[#allocation50_spill] sm:$0xff] }
 0x4c5   :  { %v2290_v23 = vsel %vm2272_vm15, %v2268_v31, %v7876_v56  ;;  %v2206_v31 = vsel %vm2185_vm12, %v2184_v16, %v7894_v9  ;;  %v7896_v56 = vld [vmem:[#allocation6_spill] sm:$0xff] }
 0x4c6   :  { %3693 = vmatmul.msk.f32.gmra.mxu2 %vm2344_vm3, %v2326_v40  ;;  %v2130_v40 = vpop.permute.xlu2 %2129  ;;  %v2312_v15 = vsel %vm2294_vm2, %v2290_v23, %v7877_v21 }
 0x4c7   :  { %v2330_v46 = vsel %vm784_vm1, %v2309_v63, %v2130_v40  ;;  %v7879_v63 = vld [vmem:[#allocation51_spill] sm:$0xff] }
 0x4c8   :  { %v2204_v10 = vsel %vm2185_vm12, %v2182_v30, %v7879_v63 }
 0x4ce   :  { %3694 = vmatmul.msk.f32.gmra.mxu2 %vm2344_vm3, %v2327_v51  ;;  %v2132_v51 = vpop.permute.xlu0 %2131  ;;  %v2136_v34 = vpop.permute.xlu2 %2135 }
 0x4cf   :  { %v2331_v27 = vsel %vm784_vm1, %v2310_v29, %v2132_v51  ;;  %v2333_v40 = vsel %vm784_vm1, %v2312_v15, %v2136_v34  ;;  %v7884_v51 = vld [vmem:[#allocation102_spill] sm:$0xff]  ;;  %v7895_v34 = vld [vmem:[#allocation65_spill] sm:$0xff] }
 0x4d6   :  { %3695 = vmatmul.msk.f32.gmra.mxu2 %vm2344_vm3, %v2328_v60  ;;  %v2134_v60 = vpop.permute.xlu1 %2133  ;;  %v2138_v32 = vpop.permute.xlu0 %2137 }
 0x4d7   :  { %v2332_v8 = vsel %vm784_vm1, %v2311_v59, %v2134_v60  ;;  %v2248_v60 = vsel %vm762_vm0, %v2227_v48, %v7890_v39  ;;  %v2142_v6 = vpop.permute.xlu2 %2141 }
 0x4d8   :  { %v2270_v59 = vsel %vm2250_vm14, %v2248_v60, %v7891_v52  ;;  %v7904_v52 = vld [vmem:[#allocation15_spill] sm:$0xff] }
 0x4d9   :  { %v2292_v44 = vsel %vm2272_vm15, %v2270_v59, %v7892_v12 }
 0x4da   :  { %v2314_v47 = vsel %vm2294_vm2, %v2292_v44, %v6401_v22  ;;  %v7897_v22 = vld [vmem:[#allocation77_spill] sm:$0xff] }
 0x4de   :  { %3696 = vmatmul.msk.f32.gmra.mxu2 %vm2344_vm3, %v2329_v0  ;;  %v2140_v13 = vpop.permute.xlu1 %2139 }
 0x4df   :  { %v2335_v1 = vsel %vm784_vm1, %v2314_v47, %v2140_v13 }
 0x4e6   :  { %3697 = vmatmul.msk.f32.gmra.mxu2 %vm2344_vm3, %v2330_v46  ;;  %v7880_v46 = vld [vmem:[#allocation66_spill] sm:$0xff] }
 0x4e7   :  { %v2226_v57 = vsel %vm2207_vm13, %v2204_v10, %v7880_v46 }
 0x4e8   :  { %v2247_v36 = vsel %vm762_vm0, %v2226_v57, %v7882_v43 }
 0x4e9   :  { %v2269_v42 = vsel %vm2250_vm14, %v2247_v36, %v7883_v19 }
 0x4ea   :  { %v2291_v41 = vsel %vm2272_vm15, %v2269_v42, %v7884_v51 }
 0x4eb   :  { %v2313_v20 = vsel %vm2294_vm2, %v2291_v41, %v7885_v58 }
 0x4ee   :  { %3698 = vmatmul.msk.f32.gmra.mxu2 %vm2344_vm3, %v2331_v27  ;;  %v2334_v27 = vsel %vm784_vm1, %v2313_v20, %v2138_v32  ;;  %v7901_v32 = vld [vmem:[#allocation14_spill] sm:$0xff] }
 0x4f6   :  { %3699 = vmatmul.msk.f32.gmra.mxu2 %vm2344_vm3, %v2332_v8 }
 0x4f9   :  { %v2429_v0 = vpop.f32.mrf.mxu2 }
 0x4fa   :  { %v2496_v5 = vmul.f32 %v6668_v50, %v2429_v0 }
 0x4fc   :  { %v2521_v28 = vadd.f32 %v6677_v14, %v2496_v5  ;;  %v2228_v5 = vsel %vm2207_vm13, %v2206_v31, %v7895_v34  ;;  %v7906_v31 = vld [vmem:[#allocation13_spill] sm:$0xff] }
 0x4fd   :  { %v2249_v21 = vsel %vm762_vm0, %v2228_v5, %v7897_v22 }
 0x4fe   :  { %v2542_v7 = vmax.f32 %v2521_v28, 0.0  ;;  %3700 = vmatmul.msk.f32.gmra.mxu2 %vm2344_vm3, %v2333_v40  ;;  %v2271_v40 = vsel %vm2250_vm14, %v2249_v21, %v7898_v24 }
 0x500   :  { %v2563_v49 = vmul.f32 %v2542_v7, %v7881_v4  ;;  %v7899_v7 = vld [vmem:[#allocation101_spill] sm:$0xff] }
 0x501   :  { %v2432_v54 = vpop.f32.mrf.mxu2  ;;  %v2293_v63 = vsel %vm2272_vm15, %v2271_v40, %v7899_v7 }
 0x502   :  { %2584 = vst.msk [vmem:[#allocation3 + $0xa] sm:$0xff] %vm1189_vm9, %v2563_v49  ;;  %v2497_v2 = vmul.f32 %v6668_v50, %v2432_v54  ;;  %v2315_v10 = vsel %vm2294_vm2, %v2293_v63, %v6411_v3  ;;  %v7900_v49 = vld [vmem:[#allocation7_spill] sm:$0xff] }
 0x503   :  { %v2336_v57 = vsel %vm784_vm1, %v2315_v10, %v2142_v6  ;;  %v7908_v10 = vld [vmem:[#allocation19_spill] sm:$0xff] }
 0x504   :  { %v2522_v29 = vadd.f32 %v6677_v14, %v2497_v2 }
 0x506   :  { %v2543_v62 = vmax.f32 %v2522_v29, 0.0  ;;  %3701 = vmatmul.msk.f32.gmra.mxu2 %vm2344_vm3, %v2334_v27 }
 0x508   :  { %v2564_v17 = vmul.f32 %v2543_v62, %v7889_v55 }
 0x509   :  { %v2435_v25 = vpop.f32.mrf.mxu2  ;;  %v6720_v53 = vld [vmem:[#allocation3 + $0x9] sm:$0xff] }
 0x50a   :  { %2585 = vst.msk [vmem:[#allocation3 + $0x12] sm:$0xff] %vm1189_vm9, %v2564_v17  ;;  %v2498_v8 = vmul.f32 %v6668_v50, %v2435_v25  ;;  %2741 = vrot.lane.b32.xlu1 %v6720_v53, %s3959_s2 }
 0x50c   :  { %v2523_v37 = vadd.f32 %v6677_v14, %v2498_v8 }
 0x50e   :  { %v2544_v0 = vmax.f32 %v2523_v37, 0.0  ;;  %3702 = vmatmul.msk.f32.gmra.mxu2 %vm2344_vm3, %v2335_v1  ;;  %v7905_v37 = vld [vmem:[#allocation12_spill] sm:$0xff] }
 0x510   :  { %v2565_v23 = vmul.f32 %v2544_v0, %v7896_v56 }
 0x511   :  { %v2438_v15 = vpop.f32.mrf.mxu2  ;;  %v6744_v28 = vld [vmem:[#allocation3 + $0x11] sm:$0xff] }
 0x512   :  { %2586 = vst.msk [vmem:[#allocation3 + $0x1a] sm:$0xff] %vm1189_vm9, %v2565_v23  ;;  %v2499_v30 = vmul.f32 %v6668_v50, %v2438_v15  ;;  %2743 = vrot.lane.b32.xlu2 %v6744_v28, %s3959_s2  ;;  %v7907_v15 = vld [vmem:[#allocation18_spill] sm:$0xff] }
 0x514   :  { %v2524_v46 = vadd.f32 %v6677_v14, %v2499_v30 }
 0x516   :  { %v2545_v4 = vmax.f32 %v2524_v46, 0.0  ;;  %3703 = vmatmul.msk.f32.gmra.mxu2 %vm2344_vm3, %v2336_v57 }
 0x518   :  { %v2566_v43 = vmul.f32 %v2545_v4, %v7900_v49 }
 0x519   :  { %v2441_v36 = vpop.f32.mrf.mxu2  ;;  %v6760_v54 = vld [vmem:[#allocation3 + $0x19] sm:$0xff] }
 0x51a   :  { %2587 = vst.msk [vmem:[#allocation3 + $0x22] sm:$0xff] %vm1189_vm9, %v2566_v43  ;;  %v2500_v19 = vmul.f32 %v6668_v50, %v2441_v36  ;;  %2745 = vrot.lane.b32.xlu0 %v6760_v54, %s3959_s2 }
 0x51c   :  { %v2525_v3 = vadd.f32 %v6677_v14, %v2500_v19  ;;  %v7909_v19 = vld [vmem:[#allocation8_spill] sm:$0xff] }
 0x51e   :  { %v2546_v42 = vmax.f32 %v2525_v3, 0.0 }
 0x520   :  { %v2567_v2 = vmul.f32 %v2546_v42, %v7901_v32 }
 0x521   :  { %v2444_v51 = vpop.f32.mrf.mxu2  ;;  %v6768_v41 = vld [vmem:[#allocation3 + $0x21] sm:$0xff] }
 0x522   :  { %2588 = vst.msk [vmem:[#allocation3 + $0x2a] sm:$0xff] %vm1189_vm9, %v2567_v2  ;;  %v2501_v58 = vmul.f32 %v6668_v50, %v2444_v51  ;;  %2747 = vrot.lane.b32.xlu1 %v6768_v41, %s3959_s2 }
 0x524   :  { %v2526_v20 = vadd.f32 %v6677_v14, %v2501_v58 }
 0x526   :  { %v2547_v29 = vmax.f32 %v2526_v20, 0.0  ;;  %v7910_v20 = vld [vmem:[#allocation4_spill] sm:$0xff] }
 0x528   :  { %v2568_v27 = vmul.f32 %v2547_v29, %v7902_v11 }
 0x529   :  { %v2447_v26 = vpop.f32.mrf.mxu2  ;;  %v6776_v18 = vld [vmem:[#allocation3 + $0x29] sm:$0xff] }
 0x52a   :  { %2589 = vst.msk [vmem:[#allocation3 + $0x32] sm:$0xff] %vm1189_vm9, %v2568_v27  ;;  %v2502_v62 = vmul.f32 %v6668_v50, %v2447_v26  ;;  %2749 = vrot.lane.b32.xlu2 %v6776_v18, %s3959_s2 }
 0x52c   :  { %v2527_v38 = vadd.f32 %v6677_v14, %v2502_v62 }
 0x52e   :  { %v2548_v33 = vmax.f32 %v2527_v38, 0.0 }
 0x530   :  { %v2569_v48 = vmul.f32 %v2548_v33, %v7903_v35  ;;  %v7911_v33 = vld [vmem:[#allocation5_spill] sm:$0xff] }
 0x531   :  { %v2450_v55 = vpop.f32.mrf.mxu2  ;;  %v6784_v17 = vld [vmem:[#allocation3 + $0x31] sm:$0xff] }
 0x532   :  { %2590 = vst.msk [vmem:[#allocation3 + $0x3a] sm:$0xff] %vm1189_vm9, %v2569_v48  ;;  %v2503_v39 = vmul.f32 %v6668_v50, %v2450_v55  ;;  %2751 = vrot.lane.b32.xlu0 %v6784_v17, %s3959_s2 }
 0x534   :  { %v2528_v60 = vadd.f32 %v6677_v14, %v2503_v39 }
 0x536   :  { %v2549_v25 = vmax.f32 %v2528_v60, 0.0 }
 0x538   :  { %v2570_v59 = vmul.f32 %v2549_v25, %v7904_v52  ;;  %v7912_v52 = vld [vmem:[#allocation17_spill] sm:$0xff] }
 0x539   :  { %v2453_v13 = vpop.f32.mrf.mxu2  ;;  %v6792_v8 = vld [vmem:[#allocation3 + $0x39] sm:$0xff] }
 0x53a   :  { %2591 = vst.msk [vmem:[#allocation3 + $0x42] sm:$0xff] %vm1189_vm9, %v2570_v59  ;;  %v2504_v12 = vmul.f32 %v6668_v50, %v2453_v13  ;;  %2753 = vrot.lane.b32.xlu1 %v6792_v8, %s3959_s2 }
 0x53c   :  { %v2529_v44 = vadd.f32 %v6677_v14, %v2504_v12 }
 0x53e   :  { %v2550_v47 = vmax.f32 %v2529_v44, 0.0 }
 0x540   :  { %v2571_v61 = vmul.f32 %v2550_v47, %v7905_v37 }
 0x541   :  { %v2456_v1 = vpop.f32.mrf.mxu2  ;;  %v6800_v45 = vld [vmem:[#allocation3 + $0x41] sm:$0xff] }
 0x542   :  { %2592 = vst.msk [vmem:[#allocation3 + $0x4a] sm:$0xff] %vm1189_vm9, %v2571_v61  ;;  %v2505_v16 = vmul.f32 %v6668_v50, %v2456_v1  ;;  %2755 = vrot.lane.b32.xlu2 %v6800_v45, %s3959_s2  ;;  %v7913_v61 = vld [vmem:[#allocation20_spill] sm:$0xff] }
 0x544   :  { %v2530_v0 = vadd.f32 %v6677_v14, %v2505_v16 }
 0x546   :  { %v2551_v9 = vmax.f32 %v2530_v0, 0.0 }
 0x548   :  { %v2572_v34 = vmul.f32 %v2551_v9, %v7906_v31 }
 0x549   :  { %v2459_v5 = vpop.f32.mrf.mxu2  ;;  %v6808_v56 = vld [vmem:[#allocation3 + $0x49] sm:$0xff] }
 0x54a   :  { %2593 = vst.msk [vmem:[#allocation3 + $0x52] sm:$0xff] %vm1189_vm9, %v2572_v34  ;;  %v2506_v23 = vmul.f32 %v6668_v50, %v2459_v5  ;;  %2757 = vrot.lane.b32.xlu0 %v6808_v56, %s3959_s2  ;;  %v7914_v5 = vld [vmem:[#allocation21_spill] sm:$0xff] }
 0x54c   :  { %v2531_v22 = vadd.f32 %v6677_v14, %v2506_v23 }
 0x54e   :  { %v2552_v21 = vmax.f32 %v2531_v22, 0.0 }
 0x550   :  { %v2573_v24 = vmul.f32 %v2552_v21, %v7907_v15 }
 0x551   :  { %v2462_v40 = vpop.f32.mrf.mxu2  ;;  %v6816_v6 = vld [vmem:[#allocation3 + $0x51] sm:$0xff] }
 0x552   :  { %2594 = vst.msk [vmem:[#allocation3 + $0x5a] sm:$0xff] %vm1189_vm9, %v2573_v24  ;;  %v2507_v30 = vmul.f32 %v6668_v50, %v2462_v40  ;;  %2759 = vrot.lane.b32.xlu1 %v6816_v6, %s3959_s2 }
 0x554   :  { %v2532_v7 = vadd.f32 %v6677_v14, %v2507_v30  ;;  %v7915_v30 = vld [vmem:[#allocation22_spill] sm:$0xff] }
 0x556   :  { %v2553_v63 = vmax.f32 %v2532_v7, 0.0 }
 0x558   :  { %v2574_v46 = vmul.f32 %v2553_v63, %v7908_v10 }
 0x559   :  { %v2465_v57 = vpop.f32.mrf.mxu2  ;;  %v6824_v4 = vld [vmem:[#allocation3 + $0x59] sm:$0xff] }
 0x55a   :  { %2595 = vst.msk [vmem:[#allocation3 + $0x62] sm:$0xff] %vm1189_vm9, %v2574_v46  ;;  %v2508_v49 = vmul.f32 %v6668_v50, %v2465_v57  ;;  %2761 = vrot.lane.b32.xlu2 %v6824_v4, %s3959_s2 }
 0x55c   :  { %v2533_v43 = vadd.f32 %v6677_v14, %v2508_v49 }
 0x55e   :  { %v2554_v36 = vmax.f32 %v2533_v43, 0.0  ;;  %v2647_v43 = vld [vmem:[#allocation3 + $0x2] sm:$0xff] }
 0x560   :  { %v2575_v3 = vmul.f32 %v2554_v36, %v7909_v19  ;;  %v7916_v36 = vld [vmem:[#allocation23_spill] sm:$0xff] }
 0x561   :  { %v2468_v42 = vpop.f32.mrf.mxu2  ;;  %v6832_v32 = vld [vmem:[#allocation3 + $0x61] sm:$0xff] }
 0x562   :  { %2596 = vst.msk [vmem:[#allocation3 + $0x6a] sm:$0xff] %vm1189_vm9, %v2575_v3  ;;  %v2509_v2 = vmul.f32 %v6668_v50, %v2468_v42  ;;  %2763 = vrot.lane.b32.xlu0 %v6832_v32, %s3959_s2 }
 0x564   :  { %v2534_v51 = vadd.f32 %v6677_v14, %v2509_v2 }
 0x566   :  { %v2555_v58 = vmax.f32 %v2534_v51, 0.0 }
 0x568   :  { %v2576_v29 = vmul.f32 %v2555_v58, %v7910_v20  ;;  %v7917_v20 = vld [vmem:[#allocation24_spill] sm:$0xff] }
 0x569   :  { %v2471_v11 = vpop.f32.mrf.mxu2  ;;  %v6840_v27 = vld [vmem:[#allocation3 + $0x69] sm:$0xff] }
 0x56a   :  { %2597 = vst.msk [vmem:[#allocation3 + $0x72] sm:$0xff] %vm1189_vm9, %v2576_v29  ;;  %v2510_v26 = vmul.f32 %v6668_v50, %v2471_v11  ;;  %2765 = vrot.lane.b32.xlu1 %v6840_v27, %s3959_s2  ;;  %v6897_v11 = vld [vmem:[#allocation3 + $0x1a] sm:$0xff] }
 0x56c   :  { %v2535_v62 = vadd.f32 %v6677_v14, %v2510_v26  ;;  %v6899_v26 = vld [vmem:[#allocation3 + $0xa] sm:$0xff] }
 0x56e   :  { %v2556_v38 = vmax.f32 %v2535_v62, 0.0 }
 0x570   :  { %v2577_v35 = vmul.f32 %v2556_v38, %v7911_v33  ;;  %v6915_v38 = vld [vmem:[#allocation3 + $0x12] sm:$0xff]  ;;  %v6919_v33 = vld [vmem:[#allocation3 + $0x4a] sm:$0xff] }
 0x571   :  { %v2474_v48 = vpop.f32.mrf.mxu2  ;;  %v6848_v55 = vld [vmem:[#allocation3 + $0x71] sm:$0xff] }
 0x572   :  { %2598 = vst.msk [vmem:[#allocation3 + $0x7a] sm:$0xff] %vm1189_vm9, %v2577_v35  ;;  %v2511_v39 = vmul.f32 %v6668_v50, %v2474_v48  ;;  %2767 = vrot.lane.b32.xlu2 %v6848_v55, %s3959_s2  ;;  %v6921_v35 = vld [vmem:[#allocation3 + $0x3a] sm:$0xff]  ;;  %v6927_v48 = vld [vmem:[#allocation3 + $0x2a] sm:$0xff] }
 0x574   :  { %v2536_v60 = vadd.f32 %v6677_v14, %v2511_v39  ;;  %v6931_v39 = vld [vmem:[#allocation3 + $0x62] sm:$0xff] }
 0x576   :  { %v2557_v25 = vmax.f32 %v2536_v60, 0.0  ;;  %v6933_v60 = vld [vmem:[#allocation3 + $0x52] sm:$0xff] }
 0x578   :  { %v2578_v59 = vmul.f32 %v2557_v25, %v7912_v52  ;;  %v6939_v25 = vld [vmem:[#allocation3 + $0x42] sm:$0xff] }
 0x579   :  { %v2477_v13 = vpop.f32.mrf.mxu2  ;;  %v6856_v12 = vld [vmem:[#allocation3 + $0x79] sm:$0xff] }
 0x57a   :  { %2599 = vst.msk [vmem:[#allocation3 + $0x82] sm:$0xff] %vm1189_vm9, %v2578_v59  ;;  %v2512_v44 = vmul.f32 %v6668_v50, %v2477_v13  ;;  %2769 = vrot.lane.b32.xlu0 %v6856_v12, %s3959_s2  ;;  %v6943_v52 = vld [vmem:[#allocation3 + $0x7a] sm:$0xff]  ;;  %v6945_v59 = vld [vmem:[#allocation3 + $0x6a] sm:$0xff] }
 0x57b   :  { %v6951_v13 = vld [vmem:[#allocation3 + $0x5a] sm:$0xff] }
 0x57c   :  { %v2537_v47 = vadd.f32 %v6677_v14, %v2512_v44 }
 0x57e   :  { %v2558_v37 = vmax.f32 %v2537_v47, 0.0 }
 0x580   :  { %v2579_v1 = vmul.f32 %v2558_v37, %v7913_v61  ;;  %v6963_v37 = vld [vmem:[#allocation3 + $0x72] sm:$0xff]  ;;  %v6967_v61 = vpop.permute.xlu2 %2743 }
 0x581   :  { %v2480_v16 = vpop.f32.mrf.mxu2  ;;  %v6864_v0 = vld [vmem:[#allocation3 + $0x81] sm:$0xff] }
 0x582   :  { %2600 = vst.msk [vmem:[#allocation3 + $0x8a] sm:$0xff] %vm1189_vm9, %v2579_v1  ;;  %v2513_v9 = vmul.f32 %v6668_v50, %v2480_v16  ;;  %2771 = vrot.lane.b32.xlu1 %v6864_v0, %s3959_s2  ;;  %v6957_v47 = vld [vmem:[#allocation3 + $0x82] sm:$0xff]  ;;  %v6971_v16 = vpop.permute.xlu0 %2739 }
 0x584   :  { %v2538_v31 = vadd.f32 %v6677_v14, %v2513_v9 }
 0x586   :  { %v2559_v34 = vmax.f32 %v2538_v31, 0.0 }
 0x588   :  { %v2580_v23 = vmul.f32 %v2559_v34, %v7914_v5  ;;  %v6981_v31 = vpop.permute.xlu2 %2749 }
 0x589   :  { %v2483_v22 = vpop.f32.mrf.mxu2  ;;  %v6872_v21 = vld [vmem:[#allocation3 + $0x89] sm:$0xff] }
 0x58a   :  { %2601 = vst.msk [vmem:[#allocation3 + $0x92] sm:$0xff] %vm1189_vm9, %v2580_v23  ;;  %v2514_v15 = vmul.f32 %v6668_v50, %v2483_v22  ;;  %2773 = vrot.lane.b32.xlu2 %v6872_v21, %s3959_s2  ;;  %v6977_v9 = vld [vmem:[#allocation3 + $0x8a] sm:$0xff] }
 0x58c   :  { %v2539_v24 = vadd.f32 %v6677_v14, %v2514_v15  ;;  %v6990_v5 = vpop.permute.xlu0 %2745  ;;  %v2672_v15 = vld [vmem:[#allocation3 + $0xb] sm:$0xff] }
 0x58e   :  { %v2560_v40 = vmax.f32 %v2539_v24, 0.0  ;;  %v2697_v24 = vld [vmem:[#allocation3 + $0x14] sm:$0xff] }
 0x590   :  { %v2581_v7 = vmul.f32 %v2560_v40, %v7915_v30  ;;  %v2673_v30 = vld [vmem:[#allocation3 + $0x13] sm:$0xff] }
 0x591   :  { %v2486_v63 = vpop.f32.mrf.mxu2  ;;  %v6880_v10 = vld [vmem:[#allocation3 + $0x91] sm:$0xff] }
 0x592   :  { %2602 = vst.msk [vmem:[#allocation3 + $0x9a] sm:$0xff] %vm1189_vm9, %v2581_v7  ;;  %v2515_v46 = vmul.f32 %v6668_v50, %v2486_v63  ;;  %2775 = vrot.lane.b32.xlu0 %v6880_v10, %s3959_s2  ;;  %v6955_v44 = vld [vmem:[#allocation3 + $0x92] sm:$0xff] }
 0x594   :  { %v2540_v57 = vadd.f32 %v6677_v14, %v2515_v46 }
 0x596   :  { %v2561_v49 = vmax.f32 %v2540_v57, 0.0  ;;  %v2674_v57 = vld [vmem:[#allocation3 + $0x1b] sm:$0xff] }
 0x598   :  { %v2582_v19 = vmul.f32 %v2561_v49, %v7916_v36 }
 0x599   :  { %v2489_v3 = vpop.f32.mrf.mxu2  ;;  %v6888_v42 = vld [vmem:[#allocation3 + $0x99] sm:$0xff] }
 0x59a   :  { %2603 = vst.msk [vmem:[#allocation3 + $0xa2] sm:$0xff] %vm1189_vm9, %v2582_v19  ;;  %v2516_v2 = vmul.f32 %v6668_v50, %v2489_v3  ;;  %2823 = vrot.lane.b32.xlu0 %v2647_v43, %s3960_s3  ;;  %2777 = vrot.lane.b32.xlu1 %v6888_v42, %s3959_s2  ;;  %v6907_v50 = vld [vmem:[#allocation3 + $0x32] sm:$0xff]  ;;  %v6969_v1 = vld [vmem:[#allocation3 + $0x9a] sm:$0xff]  ;;  %v2675_v19 = vld [vmem:[#allocation3 + $0x23] sm:$0xff] }
 0x59b   :  { %v2698_v3 = vld [vmem:[#allocation3 + $0x1c] sm:$0xff] }
 0x59c   :  { %v2541_v51 = vadd.f32 %v6677_v14, %v2516_v2  ;;  %v6909_v14 = vld [vmem:[#allocation3 + $0x22] sm:$0xff]  ;;  %v6992_v23 = vpop.permute.xlu2 %2755 }
 0x59e   :  { %v2562_v58 = vmax.f32 %v2541_v51, 0.0 }
 0x5a0   :  { %v2583_v29 = vmul.f32 %v2562_v58, %v7917_v20  ;;  %v2699_v20 = vld [vmem:[#allocation3 + $0x24] sm:$0xff] }
 0x5a1   :  { %v2646_v62 = vld [vmem:[#allocation3 + $0xa1] sm:$0x3] }
 0x5a2   :  { %2604 = vst.msk [vmem:[#allocation3 + $0xaa] sm:$0x3] %vm1453_vm10, %v2583_v29  ;;  %2829 = vrot.lane.b32.xlu0 %v6897_v11, %s3960_s3  ;;  %2825 = vrot.lane.b32.xlu1 %v6899_v26, %s3960_s3  ;;  %v2667_v34 = vld [vmem:[#allocation3 + $0xa2] sm:$0x3] }
 0x5a3   :  { %2779 = vrot.lane.b32.xlu2 %v2646_v62, %s3959_s2  ;;  %v2700_v62 = vld [vmem:[#allocation3 + $0x2c] sm:$0xff] }
 0x5aa   :  { %2835 = vrot.lane.b32.xlu0 %v6907_v50, %s3960_s3  ;;  %2831 = vrot.lane.b32.xlu1 %v6909_v14, %s3960_s3 }
 0x5ab   :  { %2827 = vrot.lane.b32.xlu2 %v6915_v38, %s3960_s3 }
 0x5b2   :  { %2841 = vrot.lane.b32.xlu0 %v6919_v33, %s3960_s3  ;;  %2837 = vrot.lane.b32.xlu1 %v6921_v35, %s3960_s3 }
 0x5b3   :  { %2833 = vrot.lane.b32.xlu2 %v6927_v48, %s3960_s3 }
 0x5b4   :  { %v7004_v22 = vpop.permute.xlu2 %2761 }
 0x5ba   :  { %2847 = vrot.lane.b32.xlu0 %v6931_v39, %s3960_s3  ;;  %2843 = vrot.lane.b32.xlu1 %v6933_v60, %s3960_s3 }
 0x5bb   :  { %2839 = vrot.lane.b32.xlu2 %v6939_v25, %s3960_s3 }
 0x5c2   :  { %2853 = vrot.lane.b32.xlu0 %v6943_v52, %s3960_s3  ;;  %2849 = vrot.lane.b32.xlu1 %v6945_v59, %s3960_s3 }
 0x5c3   :  { %2845 = vrot.lane.b32.xlu2 %v6951_v13, %s3960_s3 }
 0x5ca   :  { %2859 = vrot.lane.b32.xlu0 %v6955_v44, %s3960_s3  ;;  %2855 = vrot.lane.b32.xlu1 %v6957_v47, %s3960_s3 }
 0x5cb   :  { %2851 = vrot.lane.b32.xlu2 %v6963_v37, %s3960_s3 }
 0x5d2   :  { %2888 = vrot.lane.b32.xlu0 %v6720_v53, %s3961_s8  ;;  %2861 = vrot.lane.b32.xlu1 %v6969_v1, %s3960_s3  ;;  %v6988_v53 = vpop.permute.xlu1 %2741 }
 0x5d3   :  { %2857 = vrot.lane.b32.xlu2 %v6977_v9, %s3960_s3 }
 0x5da   :  { %2894 = vrot.lane.b32.xlu0 %v6768_v41, %s3961_s8  ;;  %2890 = vrot.lane.b32.xlu1 %v6744_v28, %s3961_s8  ;;  %v7000_v41 = vpop.permute.xlu1 %2747  ;;  %v7002_v28 = vpop.permute.xlu0 %2751 }
 0x5db   :  { %2863 = vrot.lane.b32.xlu2 %v2667_v34, %s3960_s3 }
 0x5e2   :  { %2900 = vrot.lane.b32.xlu0 %v6792_v8, %s3961_s8  ;;  %2896 = vrot.lane.b32.xlu1 %v6776_v18, %s3961_s8  ;;  %v7012_v8 = vpop.permute.xlu1 %2753  ;;  %v7014_v18 = vpop.permute.xlu0 %2757 }
 0x5e3   :  { %2892 = vrot.lane.b32.xlu2 %v6760_v54, %s3961_s8  ;;  %v7016_v54 = vpop.permute.xlu2 %2767 }
 0x5ea   :  { %2906 = vrot.lane.b32.xlu0 %v6816_v6, %s3961_s8  ;;  %2902 = vrot.lane.b32.xlu1 %v6800_v45, %s3961_s8  ;;  %v7024_v6 = vpop.permute.xlu1 %2759  ;;  %v7026_v45 = vpop.permute.xlu0 %2763 }
 0x5eb   :  { %2898 = vrot.lane.b32.xlu2 %v6784_v17, %s3961_s8  ;;  %v7028_v17 = vpop.permute.xlu2 %2773 }
 0x5f2   :  { %2912 = vrot.lane.b32.xlu0 %v6840_v27, %s3961_s8  ;;  %2908 = vrot.lane.b32.xlu1 %v6824_v4, %s3961_s8  ;;  %v7035_v27 = vpop.permute.xlu1 %2765  ;;  %v7037_v4 = vpop.permute.xlu0 %2769 }
 0x5f3   :  { %2904 = vrot.lane.b32.xlu2 %v6808_v56, %s3961_s8 }
 0x5fa   :  { %3037 = vrot.lane.b32.xlu0 %v2672_v15, %s3962_s17  ;;  %2914 = vrot.lane.b32.xlu1 %v6848_v55, %s3961_s8  ;;  %v7046_v40 = vpop.permute.xlu1 %2771 }
 0x5fb   :  { %2910 = vrot.lane.b32.xlu2 %v6832_v32, %s3961_s8 }
 0x5fd   :  { %v7039_v56 = vpop.permute.xlu2 %2779 }
 0x5fe   :  { %7918 = vst [vmem:[#allocation40_spill] sm:$0xff] %v7039_v56 }
 0x602   :  { %3251 = vrot.lane.b32.xlu0 %v2697_v24, %s3950_s15  ;;  %3102 = vrot.lane.b32.xlu1 %v6915_v38, %s3963_s20  ;;  %v2676_v24 = vld [vmem:[#allocation3 + $0x2b] sm:$0xff] }
 0x603   :  { %2953 = vrot.lane.b32.xlu2 %v6899_v26, %s3949_s19 }
 0x604   :  { %v7048_v55 = vpop.permute.xlu0 %2775 }
 0x605   :  { %7919 = vst [vmem:[#allocation55_spill] sm:$0xff] %v7048_v55  ;;  %v2828_v32 = vpop.permute.xlu2 %2827  ;;  %v2678_v55 = vld [vmem:[#allocation3 + $0x3b] sm:$0xff] }
 0x60a   :  { %3104 = vrot.lane.b32.xlu0 %v6897_v11, %s3963_s20  ;;  %2955 = vrot.lane.b32.xlu1 %v6915_v38, %s3949_s19 }
 0x60b   :  { %3167 = vrot.lane.b32.xlu2 %v2673_v30, %s3964_s21 }
 0x60c   :  { %v7055_v7 = vpop.permute.xlu0 %2823  ;;  %v7057_v63 = vpop.permute.xlu1 %2777 }
 0x60d   :  { %7920 = vst [vmem:[#allocation27_spill] sm:$0xff] %v7057_v63  ;;  %v2834_v46 = vpop.permute.xlu2 %2833 }
 0x612   :  { %2957 = vrot.lane.b32.xlu0 %v6897_v11, %s3949_s19  ;;  %3169 = vrot.lane.b32.xlu1 %v2674_v57, %s3964_s21 }
 0x613   :  { %3039 = vrot.lane.b32.xlu2 %v2673_v30, %s3962_s17 }
 0x614   :  { %v7063_v49 = vpop.permute.xlu0 %2829  ;;  %v7065_v43 = vpop.permute.xlu1 %2825 }
 0x615   :  { %v7067_v36 = vpop.permute.xlu2 %2839 }
 0x61a   :  { %3171 = vrot.lane.b32.xlu0 %v2675_v19, %s3964_s21  ;;  %3041 = vrot.lane.b32.xlu1 %v2674_v57, %s3962_s17 }
 0x61b   :  { %3253 = vrot.lane.b32.xlu2 %v2698_v3, %s3950_s15  ;;  %v2607_v3 = vld [vmem:[#allocation3 + $0x10] sm:$0xff] }
 0x61c   :  { %v7072_v2 = vpop.permute.xlu0 %2835  ;;  %v7074_v51 = vpop.permute.xlu1 %2831 }
 0x61d   :  { %v7076_v58 = vpop.permute.xlu2 %2845 }
 0x622   :  { %3043 = vrot.lane.b32.xlu0 %v2675_v19, %s3962_s17  ;;  %3255 = vrot.lane.b32.xlu1 %v2699_v20, %s3950_s15  ;;  %v2677_v19 = vld [vmem:[#allocation3 + $0x33] sm:$0xff] }
 0x623   :  { %3106 = vrot.lane.b32.xlu2 %v6909_v14, %s3963_s20 }
 0x624   :  { %v7082_v29 = vpop.permute.xlu0 %2841  ;;  %v7084_v11 = vpop.permute.xlu1 %2837 }
 0x625   :  { %v7086_v26 = vpop.permute.xlu2 %2851 }
 0x62a   :  { %3257 = vrot.lane.b32.xlu0 %v2700_v62, %s3950_s15  ;;  %3108 = vrot.lane.b32.xlu1 %v6927_v48, %s3963_s20 }
 0x62b   :  { %2959 = vrot.lane.b32.xlu2 %v6909_v14, %s3949_s19 }
 0x62c   :  { %v7093_v38 = vpop.permute.xlu0 %2847  ;;  %v7095_v34 = vpop.permute.xlu1 %2843 }
 0x62d   :  { %v7097_v15 = vpop.permute.xlu2 %2857 }
 0x62e   :  { %7921 = vst [vmem:[#allocation43_spill] sm:$0xff] %v7097_v15  ;;  %v2608_v15 = vld [vmem:[#allocation3 + $0x18] sm:$0xff] }
 0x632   :  { %3110 = vrot.lane.b32.xlu0 %v6907_v50, %s3963_s20  ;;  %2961 = vrot.lane.b32.xlu1 %v6927_v48, %s3949_s19  ;;  %v3316_v48 = vsel %vm1189_vm9, %v2607_v3, %v6967_v61 }
 0x633   :  { %3173 = vrot.lane.b32.xlu2 %v2676_v24, %s3964_s21  ;;  %v3337_v56 = vsel %vm2185_vm12, %v3316_v48, %v2828_v32  ;;  %v2702_v48 = vld [vmem:[#allocation3 + $0x3c] sm:$0xff] }
 0x634   :  { %v7104_v30 = vpop.permute.xlu0 %2853  ;;  %v7106_v57 = vpop.permute.xlu1 %2849 }
 0x635   :  { %v7108_v14 = vpop.permute.xlu2 %2863 }
 0x636   :  { %7922 = vst [vmem:[#allocation58_spill] sm:$0xff] %v7108_v14 }
 0x63a   :  { %2963 = vrot.lane.b32.xlu0 %v6907_v50, %s3949_s19  ;;  %3175 = vrot.lane.b32.xlu1 %v2677_v19, %s3964_s21  ;;  %v2701_v50 = vld [vmem:[#allocation3 + $0x34] sm:$0xff] }
 0x63b   :  { %3045 = vrot.lane.b32.xlu2 %v2676_v24, %s3962_s17  ;;  %v2610_v24 = vld [vmem:[#allocation3 + $0x28] sm:$0xff] }
 0x63c   :  { %v7116_v20 = vpop.permute.xlu0 %2859  ;;  %v7118_v62 = vpop.permute.xlu1 %2855  ;;  %v3319_v61 = vsel %vm1189_vm9, %v2610_v24, %v6981_v31  ;;  %v2613_v31 = vld [vmem:[#allocation3 + $0x40] sm:$0xff] }
 0x63d   :  { %7923 = vst [vmem:[#allocation25_spill] sm:$0xff] %v7116_v20  ;;  %v2893_v63 = vpop.permute.xlu2 %2892  ;;  %v3340_v32 = vsel %vm2185_vm12, %v3319_v61, %v2834_v46  ;;  %v3488_v46 = vld [vmem:[%s7622_s7 + $0x30] sm:$0x3f] }
 0x63e   :  { %v7122_v14 = vsel %vm2207_vm13, %v3337_v56, %v2893_v63  ;;  %3704 = vmatpush.msk.msra.mxu3 %vm2408_vm11, %v3488_v46 }
 0x642   :  { %3177 = vrot.lane.b32.xlu0 %v2678_v55, %s3964_s21  ;;  %3047 = vrot.lane.b32.xlu1 %v2677_v19, %s3962_s17  ;;  %v3317_v19 = vsel %vm1189_vm9, %v2608_v15, %v6990_v5 }
 0x643   :  { %3259 = vrot.lane.b32.xlu2 %v2701_v50, %s3950_s15  ;;  %v3322_v50 = vsel %vm1189_vm9, %v2613_v31, %v6992_v23  ;;  %v3338_v24 = vsel %vm2185_vm12, %v3317_v19, %v7063_v49  ;;  %v3486_v23 = vld [vmem:[%s7622_s7 + $0x20] sm:$0xff]  ;;  %v2609_v19 = vld [vmem:[#allocation3 + $0x20] sm:$0xff]  ;;  %v2611_v31 = vld [vmem:[#allocation3 + $0x30] sm:$0xff] }
 0x644   :  { %v7129_v3 = vpop.permute.xlu0 %2888  ;;  %v7131_v20 = vpop.permute.xlu1 %2861  ;;  %v3343_v5 = vsel %vm2185_vm12, %v3322_v50, %v7067_v36  ;;  %v3485_v36 = vld [vmem:[%s7622_s7 + $0x18] sm:$0xff]  ;;  %v3318_v46 = vsel %vm1189_vm9, %v2609_v19, %v7000_v41  ;;  %v3320_v50 = vsel %vm1189_vm9, %v2611_v31, %v7002_v28  ;;  %v2614_v19 = vld [vmem:[#allocation3 + $0x48] sm:$0xff] }
 0x645   :  { %v2899_v56 = vpop.permute.xlu2 %2898  ;;  %v3339_v41 = vsel %vm2185_vm12, %v3318_v46, %v7074_v51  ;;  %v3482_v51 = vld [vmem:[%s7622_s7] sm:$0xff] }
 0x646   :  { %v7135_v63 = vsel %vm2207_vm13, %v3340_v32, %v2899_v56  ;;  %v3487_v56 = vld [vmem:[%s7622_s7 + $0x28] sm:$0xff]  ;;  %v2679_v31 = vld [vmem:[#allocation3 + $0x43] sm:$0xff] }
 0x647   :  { %3565 = vmatpush.msra.mxu3 %v3487_v56 }
 0x649   :  { %3566 = vmatpush.msra.mxu3 %v3486_v23 }
 0x64a   :  { %3049 = vrot.lane.b32.xlu0 %v2678_v55, %s3962_s17  ;;  %3261 = vrot.lane.b32.xlu1 %v2702_v48, %s3950_s15  ;;  %v2703_v48 = vld [vmem:[#allocation3 + $0x44] sm:$0xff] }
 0x64b   :  { %3112 = vrot.lane.b32.xlu2 %v6921_v35, %s3963_s20  ;;  %3567 = vmatpush.msra.mxu3 %v3485_v36 }
 0x64c   :  { %v2895_v55 = vpop.permute.xlu0 %2894  ;;  %v7150_v61 = vpop.permute.xlu1 %2890 }
 0x64d   :  { %v7156_v15 = vsel %vm2207_vm13, %v3338_v24, %v2895_v55  ;;  %v2905_v32 = vpop.permute.xlu2 %2904  ;;  %v2616_v24 = vld [vmem:[#allocation3 + $0x58] sm:$0xff] }
 0x64e   :  { %v7165_v49 = vsel %vm2207_vm13, %v3343_v5, %v2905_v32  ;;  %v3484_v55 = vld [vmem:[%s7622_s7 + $0x10] sm:$0xff]  ;;  %v3325_v5 = vsel %vm1189_vm9, %v2616_v24, %v7004_v22  ;;  %v3341_v32 = vsel %vm2185_vm12, %v3320_v50, %v7072_v2  ;;  %v3483_v22 = vld [vmem:[%s7622_s7 + $0x8] sm:$0xff]  ;;  %v3323_v50 = vsel %vm1189_vm9, %v2614_v19, %v7014_v18  ;;  %v2617_v18 = vld [vmem:[#allocation3 + $0x60] sm:$0xff] }
 0x64f   :  { %v3346_v23 = vsel %vm2185_vm12, %v3325_v5, %v7076_v58  ;;  %3568 = vmatpush.msra.mxu3 %v3484_v55  ;;  %v2612_v58 = vld [vmem:[#allocation3 + $0x38] sm:$0xff]  ;;  %v3344_v24 = vsel %vm2185_vm12, %v3323_v50, %v7082_v29 }
 0x650   :  { %v3321_v46 = vsel %vm1189_vm9, %v2612_v58, %v7012_v8  ;;  %v2681_v19 = vld [vmem:[#allocation3 + $0x53] sm:$0xff] }
 0x651   :  { %3569 = vmatpush.msra.mxu3 %v3483_v22  ;;  %v3342_v55 = vsel %vm2185_vm12, %v3321_v46, %v7084_v11  ;;  %v3326_v11 = vsel %vm1189_vm9, %v2617_v18, %v7026_v45  ;;  %v2618_v46 = vld [vmem:[#allocation3 + $0x68] sm:$0xff] }
 0x652   :  { %3263 = vrot.lane.b32.xlu0 %v2703_v48, %s3950_s15  ;;  %3114 = vrot.lane.b32.xlu1 %v6939_v25, %s3963_s20  ;;  %v2704_v45 = vld [vmem:[#allocation3 + $0x4c] sm:$0xff] }
 0x653   :  { %2965 = vrot.lane.b32.xlu2 %v6921_v35, %s3949_s19  ;;  %3570 = vmatpush.msra.mxu3 %v3482_v51 }
 0x654   :  { %v2901_v56 = vpop.permute.xlu0 %2900  ;;  %v2897_v28 = vpop.permute.xlu1 %2896 }
 0x655   :  { %v7191_v35 = vsel %vm2207_vm13, %v3341_v32, %v2901_v56  ;;  %v7194_v36 = vsel %vm2207_vm13, %v3339_v41, %v2897_v28  ;;  %v2911_v48 = vpop.permute.xlu2 %2910  ;;  %v2680_v56 = vld [vmem:[#allocation3 + $0x4b] sm:$0xff] }
 0x656   :  { %v7200_v2 = vsel %vm2207_vm13, %v3346_v23, %v2911_v48  ;;  %v2615_v28 = vld [vmem:[#allocation3 + $0x50] sm:$0xff]  ;;  %v3347_v23 = vsel %vm2185_vm12, %v3326_v11, %v7093_v38  ;;  %v3327_v38 = vsel %vm1189_vm9, %v2618_v46, %v7035_v27 }
 0x657   :  { %v3324_v29 = vsel %vm1189_vm9, %v2615_v28, %v7024_v6  ;;  %v2705_v28 = vld [vmem:[#allocation3 + $0x54] sm:$0xff] }
 0x658   :  { %v3345_v48 = vsel %vm2185_vm12, %v3324_v29, %v7095_v34  ;;  %v3348_v34 = vsel %vm2185_vm12, %v3327_v38, %v7106_v57 }
 0x65a   :  { %3116 = vrot.lane.b32.xlu0 %v6919_v33, %s3963_s20  ;;  %2967 = vrot.lane.b32.xlu1 %v6939_v25, %s3949_s19 }
 0x65b   :  { %3179 = vrot.lane.b32.xlu2 %v2679_v31, %s3964_s21 }
 0x65c   :  { %v2907_v5 = vpop.permute.xlu0 %2906  ;;  %v2903_v32 = vpop.permute.xlu1 %2902 }
 0x65d   :  { %v7219_v41 = vsel %vm2207_vm13, %v3344_v24, %v2907_v5  ;;  %v7222_v25 = vsel %vm2207_vm13, %v3342_v55, %v2903_v32  ;;  %v2954_v8 = vpop.permute.xlu2 %2953  ;;  %v2605_v24 = vld [vmem:[#allocation3] sm:$0xff] }
 0x65e   :  { %v3314_v32 = vsel %vm1189_vm9, %v2605_v24, %v6971_v16 }
 0x662   :  { %2969 = vrot.lane.b32.xlu0 %v6919_v33, %s3949_s19  ;;  %3181 = vrot.lane.b32.xlu1 %v2680_v56, %s3964_s21 }
 0x663   :  { %3051 = vrot.lane.b32.xlu2 %v2679_v31, %s3962_s17 }
 0x664   :  { %v2913_v22 = vpop.permute.xlu0 %2912  ;;  %v2909_v51 = vpop.permute.xlu1 %2908 }
 0x665   :  { %v7237_v33 = vsel %vm2207_vm13, %v3347_v23, %v2913_v22  ;;  %v7240_v58 = vsel %vm2207_vm13, %v3345_v48, %v2909_v51  ;;  %v3168_v6 = vpop.permute.xlu2 %3167  ;;  %v2706_v48 = vld [vmem:[#allocation3 + $0x5c] sm:$0xff]  ;;  %v2606_v22 = vld [vmem:[#allocation3 + $0x8] sm:$0xff] }
 0x66a   :  { %3183 = vrot.lane.b32.xlu0 %v2681_v19, %s3964_s21  ;;  %3053 = vrot.lane.b32.xlu1 %v2680_v56, %s3962_s17  ;;  %v3335_v56 = vsel %vm2185_vm12, %v3314_v32, %v7055_v7 }
 0x66b   :  { %3265 = vrot.lane.b32.xlu2 %v2704_v45, %s3950_s15  ;;  %v3356_v27 = vsel %vm2207_vm13, %v3335_v56, %v7129_v3 }
 0x66c   :  { %v3038_v31 = vpop.permute.xlu0 %3037  ;;  %v2915_v50 = vpop.permute.xlu1 %2914  ;;  %v3377_v57 = vsel %vm762_vm0, %v3356_v27, %v2954_v8  ;;  %v3315_v8 = vsel %vm1189_vm9, %v2606_v22, %v6988_v53 }
 0x66d   :  { %v7250_v55 = vsel %vm2207_vm13, %v3348_v34, %v2915_v50  ;;  %v3040_v5 = vpop.permute.xlu2 %3039  ;;  %v3398_v18 = vsel %vm2250_vm14, %v3377_v57, %v3038_v31  ;;  %v3336_v51 = vsel %vm2185_vm12, %v3315_v8, %v7065_v43 }
 0x66e   :  { %v3357_v46 = vsel %vm2207_vm13, %v3336_v51, %v7150_v61 }
 0x672   :  { %3055 = vrot.lane.b32.xlu0 %v2681_v19, %s3962_s17  ;;  %3267 = vrot.lane.b32.xlu1 %v2705_v28, %s3950_s15 }
 0x673   :  { %3118 = vrot.lane.b32.xlu2 %v6933_v60, %s3963_s20 }
 0x674   :  { %v3252_v29 = vpop.permute.xlu0 %3251  ;;  %v3103_v16 = vpop.permute.xlu1 %3102 }
 0x675   :  { %v3419_v11 = vsel %vm2272_vm15, %v3398_v18, %v3103_v16  ;;  %v3254_v7 = vpop.permute.xlu2 %3253  ;;  %v2684_v18 = vld [vmem:[#allocation3 + $0x6b] sm:$0xff] }
 0x676   :  { %v3440_v23 = vsel %vm2294_vm2, %v3419_v11, %v3168_v6 }
 0x677   :  { %v3461_v3 = vsel %vm784_vm1, %v3440_v23, %v3252_v29  ;;  %v2708_v23 = vld [vmem:[#allocation3 + $0x6c] sm:$0xff] }
 0x678   :  { %3705 = vmatmul.msk.f32.vlgmr.msra.gmra.mxu3 %vm2344_vm3, %v3461_v3 }
 0x67a   :  { %3269 = vrot.lane.b32.xlu0 %v2706_v48, %s3950_s15  ;;  %3120 = vrot.lane.b32.xlu1 %v6951_v13, %s3963_s20 }
 0x67b   :  { %2971 = vrot.lane.b32.xlu2 %v6933_v60, %s3949_s19  ;;  %v2682_v60 = vld [vmem:[#allocation3 + $0x5b] sm:$0xff] }
 0x67c   :  { %v3105_v6 = vpop.permute.xlu0 %3104  ;;  %v2956_v19 = vpop.permute.xlu1 %2955 }
 0x67d   :  { %v3107_v45 = vpop.permute.xlu2 %3106  ;;  %v3378_v38 = vsel %vm762_vm0, %v3357_v46, %v2956_v19 }
 0x67e   :  { %v3399_v34 = vsel %vm2250_vm14, %v3378_v38, %v3040_v5  ;;  %v2683_v5 = vld [vmem:[#allocation3 + $0x63] sm:$0xff] }
 0x67f   :  { %v3420_v31 = vsel %vm2272_vm15, %v3399_v34, %v3105_v6 }
 0x682   :  { %3122 = vrot.lane.b32.xlu0 %v6931_v39, %s3963_s20  ;;  %2973 = vrot.lane.b32.xlu1 %v6951_v13, %s3949_s19 }
 0x683   :  { %3185 = vrot.lane.b32.xlu2 %v2682_v60, %s3964_s21 }
 0x684   :  { %v2958_v53 = vpop.permute.xlu0 %2957  ;;  %v3170_v43 = vpop.permute.xlu1 %3169 }
 0x685   :  { %v3441_v61 = vsel %vm2294_vm2, %v3420_v31, %v3170_v43  ;;  %v2960_v50 = vpop.permute.xlu2 %2959  ;;  %v3379_v56 = vsel %vm762_vm0, %v7122_v14, %v2958_v53  ;;  %v2685_v43 = vld [vmem:[#allocation3 + $0x73] sm:$0xff] }
 0x686   :  { %v3462_v24 = vsel %vm784_vm1, %v3441_v61, %v3254_v7  ;;  %v3380_v3 = vsel %vm762_vm0, %v7156_v15, %v2960_v50 }
 0x687   :  { %3706 = vmatmul.msk.f32.gmra.mxu3 %vm2344_vm3, %v3462_v24 }
 0x68a   :  { %2975 = vrot.lane.b32.xlu0 %v6931_v39, %s3949_s19  ;;  %3187 = vrot.lane.b32.xlu1 %v2683_v5, %s3964_s21  ;;  %v2707_v39 = vld [vmem:[#allocation3 + $0x64] sm:$0xff] }
 0x68b   :  { %3057 = vrot.lane.b32.xlu2 %v2682_v60, %s3962_s17 }
 0x68c   :  { %v3172_v13 = vpop.permute.xlu0 %3171  ;;  %v3042_v32 = vpop.permute.xlu1 %3041 }
 0x68d   :  { %v3174_v28 = vpop.permute.xlu2 %3173  ;;  %v3400_v27 = vsel %vm2250_vm14, %v3379_v56, %v3042_v32 }
 0x68e   :  { %v3421_v57 = vsel %vm2272_vm15, %v3400_v27, %v3107_v45  ;;  %v2709_v45 = vld [vmem:[#allocation3 + $0x74] sm:$0xff] }
 0x68f   :  { %v3442_v11 = vsel %vm2294_vm2, %v3421_v57, %v3172_v13 }
 0x692   :  { %3189 = vrot.lane.b32.xlu0 %v2684_v18, %s3964_s21  ;;  %3059 = vrot.lane.b32.xlu1 %v2683_v5, %s3962_s17  ;;  %v2686_v5 = vld [vmem:[#allocation3 + $0x7b] sm:$0xff] }
 0x693   :  { %3271 = vrot.lane.b32.xlu2 %v2707_v39, %s3950_s15 }
 0x694   :  { %v3044_v29 = vpop.permute.xlu0 %3043  ;;  %v3256_v16 = vpop.permute.xlu1 %3255 }
 0x695   :  { %v3046_v7 = vpop.permute.xlu2 %3045  ;;  %v3463_v14 = vsel %vm784_vm1, %v3442_v11, %v3256_v16  ;;  %v3401_v48 = vsel %vm2250_vm14, %v3380_v3, %v3044_v29  ;;  %v2687_v16 = vld [vmem:[#allocation3 + $0x83] sm:$0xff] }
 0x696   :  { %3707 = vmatmul.msk.f32.gmra.mxu3 %vm2344_vm3, %v3463_v14 }
 0x69a   :  { %3061 = vrot.lane.b32.xlu0 %v2684_v18, %s3962_s17  ;;  %3273 = vrot.lane.b32.xlu1 %v2708_v23, %s3950_s15 }
 0x69b   :  { %3124 = vrot.lane.b32.xlu2 %v6945_v59, %s3963_s20 }
 0x69c   :  { %v3258_v22 = vpop.permute.xlu0 %3257  ;;  %v3109_v8 = vpop.permute.xlu1 %3108 }
 0x69d   :  { %v3422_v51 = vsel %vm2272_vm15, %v3401_v48, %v3109_v8  ;;  %v3260_v6 = vpop.permute.xlu2 %3259 }
 0x69e   :  { %v3443_v19 = vsel %vm2294_vm2, %v3422_v51, %v3174_v28 }
 0x69f   :  { %v3464_v46 = vsel %vm784_vm1, %v3443_v19, %v3258_v22 }
 0x6a0   :  { %3708 = vmatmul.msk.f32.gmra.mxu3 %vm2344_vm3, %v3464_v46  ;;  %v2688_v46 = vld [vmem:[#allocation3 + $0x8b] sm:$0xff] }
 0x6a2   :  { %3275 = vrot.lane.b32.xlu0 %v2709_v45, %s3950_s15  ;;  %3126 = vrot.lane.b32.xlu1 %v6963_v37, %s3963_s20 }
 0x6a3   :  { %2977 = vrot.lane.b32.xlu2 %v6945_v59, %s3949_s19 }
 0x6a4   :  { %v3111_v15 = vpop.permute.xlu0 %3110  ;;  %v2962_v38 = vpop.permute.xlu1 %2961 }
 0x6a5   :  { %v3113_v34 = vpop.permute.xlu2 %3112  ;;  %v3381_v60 = vsel %vm762_vm0, %v7194_v36, %v2962_v38 }
 0x6a6   :  { %v3402_v53 = vsel %vm2250_vm14, %v3381_v60, %v3046_v7 }
 0x6a7   :  { %v3423_v59 = vsel %vm2272_vm15, %v3402_v53, %v3111_v15 }
 0x6aa   :  { %3128 = vrot.lane.b32.xlu0 %v6943_v52, %s3963_s20  ;;  %2979 = vrot.lane.b32.xlu1 %v6963_v37, %s3949_s19 }
 0x6ab   :  { %3191 = vrot.lane.b32.xlu2 %v2685_v43, %s3964_s21 }
 0x6ac   :  { %v2964_v31 = vpop.permute.xlu0 %2963  ;;  %v3176_v61 = vpop.permute.xlu1 %3175 }
 0x6ad   :  { %v3444_v50 = vsel %vm2294_vm2, %v3423_v59, %v3176_v61  ;;  %v2966_v24 = vpop.permute.xlu2 %2965  ;;  %v3382_v32 = vsel %vm762_vm0, %v7135_v63, %v2964_v31 }
 0x6ae   :  { %v3465_v36 = vsel %vm784_vm1, %v3444_v50, %v3260_v6  ;;  %v2689_v50 = vld [vmem:[#allocation3 + $0x93] sm:$0xff] }
 0x6af   :  { %3709 = vmatmul.msk.f32.gmra.mxu3 %vm2344_vm3, %v3465_v36 }
 0x6b2   :  { %2916 = vrot.lane.b32.xlu0 %v6856_v12, %s3961_s8  ;;  %3193 = vrot.lane.b32.xlu1 %v2686_v5, %s3964_s21  ;;  %v2710_v12 = vld [vmem:[#allocation3 + $0x7c] sm:$0xff] }
 0x6b3   :  { %3063 = vrot.lane.b32.xlu2 %v2685_v43, %s3962_s17 }
 0x6b4   :  { %v3178_v37 = vpop.permute.xlu0 %3177  ;;  %v3048_v13 = vpop.permute.xlu1 %3047 }
 0x6b5   :  { %v3180_v56 = vpop.permute.xlu2 %3179  ;;  %v3403_v28 = vsel %vm2250_vm14, %v3382_v32, %v3048_v13 }
 0x6b6   :  { %v3424_v27 = vsel %vm2272_vm15, %v3403_v28, %v3113_v34 }
 0x6b7   :  { %v3445_v39 = vsel %vm2294_vm2, %v3424_v27, %v3178_v37 }
 0x6ba   :  { %3130 = vrot.lane.b32.xlu0 %v6957_v47, %s3963_s20  ;;  %2981 = vrot.lane.b32.xlu1 %v6943_v52, %s3949_s19  ;;  %v3383_v52 = vsel %vm762_vm0, %v7191_v35, %v2966_v24 }
 0x6bb   :  { %3277 = vrot.lane.b32.xlu2 %v2710_v12, %s3950_s15 }
 0x6bc   :  { %v3050_v57 = vpop.permute.xlu0 %3049  ;;  %v3262_v18 = vpop.permute.xlu1 %3261 }
 0x6bd   :  { %v3052_v29 = vpop.permute.xlu2 %3051  ;;  %v3466_v63 = vsel %vm784_vm1, %v3445_v39, %v3262_v18  ;;  %v3404_v11 = vsel %vm2250_vm14, %v3383_v52, %v3050_v57  ;;  %v2714_v52 = vld [vmem:[#allocation3 + $0x9c] sm:$0xff] }
 0x6be   :  { %3710 = vmatmul.msk.f32.gmra.mxu3 %vm2344_vm3, %v3466_v63 }
 0x6c2   :  { %2918 = vrot.lane.b32.xlu0 %v6864_v0, %s3961_s8  ;;  %3195 = vrot.lane.b32.xlu1 %v2687_v16, %s3964_s21  ;;  %v2711_v0 = vld [vmem:[#allocation3 + $0x84] sm:$0xff] }
 0x6c3   :  { %3065 = vrot.lane.b32.xlu2 %v2686_v5, %s3962_s17 }
 0x6c4   :  { %v3264_v7 = vpop.permute.xlu0 %3263  ;;  %v3115_v14 = vpop.permute.xlu1 %3114 }
 0x6c5   :  { %v3425_v23 = vsel %vm2272_vm15, %v3404_v11, %v3115_v14  ;;  %v3266_v3 = vpop.permute.xlu2 %3265 }
 0x6c6   :  { %v3446_v48 = vsel %vm2294_vm2, %v3425_v23, %v3180_v56 }
 0x6c7   :  { %v3467_v22 = vsel %vm784_vm1, %v3446_v48, %v3264_v7  ;;  %v2691_v48 = vld [vmem:[#allocation3 + $0xa3] sm:$0xff] }
 0x6c8   :  { %3711 = vmatmul.msk.f32.gmra.mxu3 %vm2344_vm3, %v3467_v22 }
 0x6ca   :  { %3132 = vrot.lane.b32.xlu0 %v6977_v9, %s3963_s20  ;;  %2983 = vrot.lane.b32.xlu1 %v6957_v47, %s3949_s19 }
 0x6cb   :  { %3279 = vrot.lane.b32.xlu2 %v2711_v0, %s3950_s15 }
 0x6cc   :  { %v3117_v35 = vpop.permute.xlu0 %3116  ;;  %v2968_v8 = vpop.permute.xlu1 %2967 }
 0x6cd   :  { %v3119_v51 = vpop.permute.xlu2 %3118  ;;  %v3384_v6 = vsel %vm762_vm0, %v7222_v25, %v2968_v8 }
 0x6ce   :  { %v3405_v19 = vsel %vm2250_vm14, %v3384_v6, %v3052_v29 }
 0x6cf   :  { %v3426_v15 = vsel %vm2272_vm15, %v3405_v19, %v3117_v35  ;;  %v2693_v19 = vld [vmem:[#allocation3 + $0xaa] sm:$0xff] }
 0x6d2   :  { %2920 = vrot.lane.b32.xlu0 %v6872_v21, %s3961_s8  ;;  %3197 = vrot.lane.b32.xlu1 %v2688_v46, %s3964_s21  ;;  %v2712_v21 = vld [vmem:[#allocation3 + $0x8c] sm:$0xff] }
 0x6d3   :  { %3067 = vrot.lane.b32.xlu2 %v2687_v16, %s3962_s17  ;;  %v2670_v16 = vld [vmem:[#allocation3 + $0xa2] sm:$0xff] }
 0x6d4   :  { %v2970_v47 = vpop.permute.xlu0 %2969  ;;  %v3182_v45 = vpop.permute.xlu1 %3181 }
 0x6d5   :  { %v3447_v38 = vsel %vm2294_vm2, %v3426_v15, %v3182_v45  ;;  %v2972_v34 = vpop.permute.xlu2 %2971  ;;  %v3385_v43 = vsel %vm762_vm0, %v7165_v49, %v2970_v47 }
 0x6d6   :  { %v3468_v60 = vsel %vm784_vm1, %v3447_v38, %v3266_v3  ;;  %v3386_v37 = vsel %vm762_vm0, %v7219_v41, %v2972_v34  ;;  %v2668_v3 = vld [vmem:[#allocation3 + $0xa1] sm:$0xff] }
 0x6d7   :  { %3712 = vmatmul.msk.f32.gmra.mxu3 %vm2344_vm3, %v3468_v60  ;;  %v2695_v60 = vld [vmem:[#allocation3 + $0xab] sm:$0xff] }
 0x6da   :  { %3134 = vrot.lane.b32.xlu0 %v6955_v44, %s3963_s20  ;;  %2985 = vrot.lane.b32.xlu1 %v6977_v9, %s3949_s19 }
 0x6db   :  { %3281 = vrot.lane.b32.xlu2 %v2712_v21, %s3950_s15  ;;  %v2669_v21 = vld [vmem:[#allocation3 + $0xa9] sm:$0x3] }
 0x6dc   :  { %v3184_v25 = vpop.permute.xlu0 %3183  ;;  %v3054_v53 = vpop.permute.xlu1 %3053 }
 0x6dd   :  { %v3186_v31 = vpop.permute.xlu2 %3185  ;;  %v3406_v61 = vsel %vm2250_vm14, %v3385_v43, %v3054_v53 }
 0x6de   :  { %v3427_v59 = vsel %vm2272_vm15, %v3406_v61, %v3119_v51 }
 0x6df   :  { %v3448_v36 = vsel %vm2294_vm2, %v3427_v59, %v3184_v25 }
 0x6e2   :  { %2922 = vrot.lane.b32.xlu0 %v6880_v10, %s3961_s8  ;;  %3199 = vrot.lane.b32.xlu1 %v2689_v50, %s3964_s21  ;;  %v2713_v10 = vld [vmem:[#allocation3 + $0x94] sm:$0xff] }
 0x6e3   :  { %3069 = vrot.lane.b32.xlu2 %v2688_v46, %s3962_s17  ;;  %v2715_v46 = vld [vmem:[#allocation3 + $0xa4] sm:$0xff] }
 0x6e4   :  { %v3056_v9 = vpop.permute.xlu0 %3055  ;;  %v3268_v24 = vpop.permute.xlu1 %3267 }
 0x6e5   :  { %v3058_v5 = vpop.permute.xlu2 %3057  ;;  %v3469_v49 = vsel %vm784_vm1, %v3448_v36, %v3268_v24  ;;  %v3407_v13 = vsel %vm2250_vm14, %v3386_v37, %v3056_v9  ;;  %v2694_v24 = vld [vmem:[#allocation3 + $0xb2] sm:$0x3] }
 0x6e6   :  { %3713 = vmatmul.msk.f32.gmra.mxu3 %vm2344_vm3, %v3469_v49  ;;  %v2716_v36 = vld [vmem:[#allocation3 + $0xac] sm:$0xff]  ;;  %v2671_v49 = vld [vmem:[#allocation3 + $0xaa] sm:$0x3] }
 0x6ea   :  { %3136 = vrot.lane.b32.xlu0 %v6969_v1, %s3963_s20  ;;  %2987 = vrot.lane.b32.xlu1 %v6955_v44, %s3949_s19  ;;  %v2690_v44 = vld [vmem:[#allocation3 + $0x9b] sm:$0xff] }
 0x6eb   :  { %3283 = vrot.lane.b32.xlu2 %v2713_v10, %s3950_s15 }
 0x6ec   :  { %v3270_v32 = vpop.permute.xlu0 %3269  ;;  %v3121_v56 = vpop.permute.xlu1 %3120 }
 0x6ed   :  { %v3428_v28 = vsel %vm2272_vm15, %v3407_v13, %v3121_v56  ;;  %v3272_v27 = vpop.permute.xlu2 %3271 }
 0x6ee   :  { %v3449_v12 = vsel %vm2294_vm2, %v3428_v28, %v3186_v31  ;;  %v2692_v28 = vld [vmem:[#allocation3 + $0xab] sm:$0x3] }
 0x6ef   :  { %v3470_v57 = vsel %vm784_vm1, %v3449_v12, %v3270_v32  ;;  %v2696_v32 = vld [vmem:[#allocation3 + $0xb3] sm:$0x3] }
 0x6f0   :  { %3714 = vmatmul.msk.f32.gmra.mxu3 %vm2344_vm3, %v3470_v57 }
 0x6f2   :  { %2924 = vrot.lane.b32.xlu0 %v6888_v42, %s3961_s8  ;;  %3201 = vrot.lane.b32.xlu1 %v2690_v44, %s3964_s21 }
 0x6f3   :  { %3071 = vrot.lane.b32.xlu2 %v2689_v50, %s3962_s17 }
 0x6f4   :  { %v3123_v41 = vpop.permute.xlu0 %3122  ;;  %v2974_v18 = vpop.permute.xlu1 %2973 }
 0x6f5   :  { %v3125_v39 = vpop.permute.xlu2 %3124  ;;  %v3387_v29 = vsel %vm762_vm0, %v7240_v58, %v2974_v18 }
 0x6f6   :  { %v3408_v63 = vsel %vm2250_vm14, %v3387_v29, %v3058_v5  ;;  %v2619_v29 = vld [vmem:[#allocation3 + $0x70] sm:$0xff] }
 0x6f7   :  { %v3429_v58 = vsel %vm2272_vm15, %v3408_v63, %v3123_v41  ;;  %v3328_v63 = vsel %vm1189_vm9, %v2619_v29, %v7016_v54 }
 0x6fa   :  { %2989 = vrot.lane.b32.xlu1 %v6969_v1, %s3949_s19  ;;  %3138 = vrot.lane.b32.xlu0 %v2670_v16, %s3963_s20 }
 0x6fb   :  { %3285 = vrot.lane.b32.xlu2 %v2714_v52, %s3950_s15  ;;  %v3572_v42 = vpop.f32.mrf.mxu3 }
 0x6fc   :  { %3635 = vst.msk [vmem:[%s7623_s9] sm:$0xff] %vm762_vm0, %v3572_v42  ;;  %v2976_v11 = vpop.permute.xlu0 %2975  ;;  %v3188_v7 = vpop.permute.xlu1 %3187 }
 0x6fd   :  { %v3450_v14 = vsel %vm2294_vm2, %v3429_v58, %v3188_v7  ;;  %v2978_v23 = vpop.permute.xlu2 %2977  ;;  %v3388_v35 = vsel %vm762_vm0, %v7200_v2, %v2976_v11 }
 0x6fe   :  { %v3471_v1 = vsel %vm784_vm1, %v3450_v14, %v3272_v27  ;;  %v3389_v25 = vsel %vm762_vm0, %v7237_v33, %v2978_v23 }
 0x6ff   :  { %3715 = vmatmul.msk.f32.gmra.mxu3 %vm2344_vm3, %v3471_v1 }
 0x702   :  { %2926 = vrot.lane.b32.xlu0 %v2668_v3, %s3961_s8  ;;  %3203 = vrot.lane.b32.xlu1 %v2691_v48, %s3964_s21 }
 0x703   :  { %3073 = vrot.lane.b32.xlu2 %v2690_v44, %s3962_s17 }
 0x704   :  { %v3190_v22 = vpop.permute.xlu0 %3189  ;;  %v3060_v0 = vpop.permute.xlu1 %3059 }
 0x705   :  { %v3192_v8 = vpop.permute.xlu2 %3191  ;;  %v3409_v51 = vsel %vm2250_vm14, %v3388_v35, %v3060_v0  ;;  %v2620_v0 = vld [vmem:[#allocation3 + $0x78] sm:$0xff] }
 0x706   :  { %v3430_v6 = vsel %vm2272_vm15, %v3409_v51, %v3125_v39  ;;  %v2717_v39 = vld [vmem:[#allocation3 + $0xb4] sm:$0x3]  ;;  %v3329_v35 = vsel %vm1189_vm9, %v2620_v0, %v7037_v4 }
 0x707   :  { %v3451_v15 = vsel %vm2294_vm2, %v3430_v6, %v3190_v22 }
 0x70a   :  { %3140 = vrot.lane.b32.xlu0 %v2693_v19, %s3963_s20  ;;  %2991 = vrot.lane.b32.xlu1 %v2670_v16, %s3949_s19  ;;  %v3575_v47 = vpop.f32.mrf.mxu3  ;;  %v3349_v16 = vsel %vm2185_vm12, %v3328_v63, %v7086_v26 }
 0x70b   :  { %3287 = vrot.lane.b32.xlu2 %v2715_v46, %s3950_s15  ;;  %3636 = vst.msk [vmem:[%s7623_s9 + $0x8] sm:$0xff] %vm762_vm0, %v3575_v47 }
 0x70c   :  { %v3062_v2 = vpop.permute.xlu0 %3061  ;;  %v3274_v45 = vpop.permute.xlu1 %3273 }
 0x70d   :  { %v3064_v38 = vpop.permute.xlu2 %3063  ;;  %v3472_v34 = vsel %vm784_vm1, %v3451_v15, %v3274_v45  ;;  %v3410_v53 = vsel %vm2250_vm14, %v3389_v25, %v3062_v2 }
 0x70e   :  { %3716 = vmatmul.msk.f32.gmra.mxu3 %vm2344_vm3, %v3472_v34 }
 0x712   :  { %3205 = vrot.lane.b32.xlu1 %v2695_v60, %s3964_s21  ;;  %2928 = vrot.lane.b32.xlu0 %v2669_v21, %s3961_s8  ;;  %v2621_v21 = vld [vmem:[#allocation3 + $0x80] sm:$0xff] }
 0x713   :  { %3075 = vrot.lane.b32.xlu2 %v2691_v48, %s3962_s17  ;;  %v3330_v25 = vsel %vm1189_vm9, %v2621_v21, %v7046_v40 }
 0x714   :  { %v3276_v43 = vpop.permute.xlu0 %3275  ;;  %v3127_v31 = vpop.permute.xlu1 %3126 }
 0x715   :  { %v3431_v61 = vsel %vm2272_vm15, %v3410_v53, %v3127_v31  ;;  %v3278_v59 = vpop.permute.xlu2 %3277 }
 0x716   :  { %v3452_v50 = vsel %vm2294_vm2, %v3431_v61, %v3192_v8  ;;  %v3350_v8 = vsel %vm2185_vm12, %v3329_v35, %v7104_v30 }
 0x717   :  { %v3473_v9 = vsel %vm784_vm1, %v3452_v50, %v3276_v43  ;;  %v3351_v43 = vsel %vm2185_vm12, %v3330_v25, %v7118_v62 }
 0x718   :  { %3717 = vmatmul.msk.f32.gmra.mxu3 %vm2344_vm3, %v3473_v9 }
 0x719   :  { %v3578_v5 = vpop.f32.mrf.mxu3 }
 0x71a   :  { %3637 = vst.msk [vmem:[%s7623_s9 + $0x10] sm:$0xff] %vm762_vm0, %v3578_v5  ;;  %2993 = vrot.lane.b32.xlu1 %v2671_v49, %s3949_s19  ;;  %3142 = vrot.lane.b32.xlu0 %v2694_v24, %s3963_s20 }
 0x71b   :  { %3289 = vrot.lane.b32.xlu2 %v2716_v36, %s3950_s15 }
 0x71c   :  { %v3129_v33 = vpop.permute.xlu0 %3128  ;;  %v2980_v10 = vpop.permute.xlu1 %2979 }
 0x71d   :  { %v3066_v37 = vpop.permute.xlu2 %3065  ;;  %v3390_v13 = vsel %vm762_vm0, %v7250_v55, %v2980_v10  ;;  %v2622_v10 = vld [vmem:[#allocation3 + $0x88] sm:$0xff] }
 0x71e   :  { %v3411_v56 = vsel %vm2250_vm14, %v3390_v13, %v3064_v38  ;;  %v3331_v13 = vsel %vm1189_vm9, %v2622_v10, %v7028_v17 }
 0x71f   :  { %v3432_v44 = vsel %vm2272_vm15, %v3411_v56, %v3129_v33 }
 0x722   :  { %3207 = vrot.lane.b32.xlu1 %v2696_v32, %s3964_s21  ;;  %v7924_v32 = vld [vmem:[#allocation43_spill] sm:$0xff] }
 0x723   :  { %3077 = vrot.lane.b32.xlu2 %v2692_v28, %s3962_s17  ;;  %v3581_v27 = vpop.f32.mrf.mxu3  ;;  %v3352_v56 = vsel %vm2185_vm12, %v3331_v13, %v7924_v32 }
 0x724   :  { %3638 = vst.msk [vmem:[%s7623_s9 + $0x18] sm:$0xff] %vm762_vm0, %v3581_v27  ;;  %v2917_v12 = vpop.permute.xlu0 %2916  ;;  %v3194_v57 = vpop.permute.xlu1 %3193 }
 0x725   :  { %v3453_v55 = vsel %vm2294_vm2, %v3432_v44, %v3194_v57  ;;  %v3280_v41 = vpop.permute.xlu2 %3279  ;;  %v3370_v11 = vsel %vm2207_vm13, %v3349_v16, %v2917_v12  ;;  %v2623_v16 = vld [vmem:[#allocation3 + $0x90] sm:$0xff] }
 0x726   :  { %v3474_v18 = vsel %vm784_vm1, %v3453_v55, %v3278_v59 }
 0x727   :  { %3718 = vmatmul.msk.f32.gmra.mxu3 %vm2344_vm3, %v3474_v18 }
 0x72b   :  { %3291 = vrot.lane.b32.xlu2 %v2717_v39, %s3950_s15 }
 0x72c   :  { %v3131_v52 = vpop.permute.xlu0 %3130  ;;  %v2982_v42 = vpop.permute.xlu1 %2981 }
 0x72d   :  { %v3068_v7 = vpop.permute.xlu2 %3067  ;;  %v3391_v58 = vsel %vm762_vm0, %v3370_v11, %v2982_v42  ;;  %v7926_v11 = vld [vmem:[#allocation25_spill] sm:$0xff] }
 0x72e   :  { %v3412_v14 = vsel %vm2250_vm14, %v3391_v58, %v3066_v37 }
 0x72f   :  { %v3433_v3 = vsel %vm2272_vm15, %v3412_v14, %v3131_v52  ;;  %v7925_v52 = vld [vmem:[#allocation55_spill] sm:$0xff] }
 0x730   :  { %v3332_v42 = vsel %vm1189_vm9, %v2623_v16, %v7925_v52 }
 0x732   :  { %v3584_v23 = vpop.f32.mrf.mxu3 }
 0x733   :  { %3639 = vst.msk [vmem:[%s7623_s9 + $0x20] sm:$0xff] %vm762_vm0, %v3584_v23 }
 0x734   :  { %v2919_v54 = vpop.permute.xlu0 %2918  ;;  %v3196_v1 = vpop.permute.xlu1 %3195 }
 0x735   :  { %v3454_v26 = vsel %vm2294_vm2, %v3433_v3, %v3196_v1  ;;  %v3282_v48 = vpop.permute.xlu2 %3281  ;;  %v3371_v19 = vsel %vm2207_vm13, %v3350_v8, %v2919_v54 }
 0x736   :  { %v3475_v22 = vsel %vm784_vm1, %v3454_v26, %v3280_v41 }
 0x737   :  { %3719 = vmatmul.msk.f32.gmra.mxu3 %vm2344_vm3, %v3475_v22 }
 0x73c   :  { %v3133_v51 = vpop.permute.xlu0 %3132  ;;  %v2984_v6 = vpop.permute.xlu1 %2983 }
 0x73d   :  { %v3070_v46 = vpop.permute.xlu2 %3069  ;;  %v3392_v47 = vsel %vm762_vm0, %v3371_v19, %v2984_v6  ;;  %v2624_v6 = vld [vmem:[#allocation3 + $0x98] sm:$0xff]  ;;  %v7927_v19 = vld [vmem:[#allocation27_spill] sm:$0xff] }
 0x73e   :  { %v3413_v2 = vsel %vm2250_vm14, %v3392_v47, %v3068_v7  ;;  %v3353_v7 = vsel %vm2185_vm12, %v3332_v42, %v7926_v11 }
 0x73f   :  { %v3434_v38 = vsel %vm2272_vm15, %v3413_v2, %v3133_v51 }
 0x741   :  { %v3587_v45 = vpop.f32.mrf.mxu3 }
 0x742   :  { %3640 = vst.msk [vmem:[%s7623_s9 + $0x28] sm:$0xff] %vm762_vm0, %v3587_v45 }
 0x744   :  { %v2921_v15 = vpop.permute.xlu0 %2920  ;;  %v3198_v4 = vpop.permute.xlu1 %3197 }
 0x745   :  { %v3455_v30 = vsel %vm2294_vm2, %v3434_v38, %v3198_v4  ;;  %v3284_v34 = vpop.permute.xlu2 %3283  ;;  %v3372_v59 = vsel %vm2207_vm13, %v3351_v43, %v2921_v15  ;;  %v2625_v43 = vld [vmem:[#allocation3 + $0xa0] sm:$0x3] }
 0x746   :  { %v3476_v60 = vsel %vm784_vm1, %v3455_v30, %v3282_v48 }
 0x747   :  { %3720 = vmatmul.msk.f32.gmra.mxu3 %vm2344_vm3, %v3476_v60 }
 0x74b   :  { %v3590_v53 = vpop.f32.mrf.mxu3 }
 0x74c   :  { %3641 = vst.msk [vmem:[%s7623_s9 + $0x30] sm:$0xff] %vm762_vm0, %v3590_v53  ;;  %v3135_v31 = vpop.permute.xlu0 %3134  ;;  %v2986_v61 = vpop.permute.xlu1 %2985 }
 0x74d   :  { %v3393_v50 = vsel %vm762_vm0, %v3372_v59, %v2986_v61  ;;  %v3072_v9 = vpop.permute.xlu2 %3071 }
 0x74e   :  { %v3414_v24 = vsel %vm2250_vm14, %v3393_v50, %v3070_v46  ;;  %v3333_v46 = vsel %vm1189_vm9, %v2624_v6, %v7927_v19  ;;  %v7929_v50 = vld [vmem:[#allocation58_spill] sm:$0xff] }
 0x74f   :  { %v3435_v5 = vsel %vm2272_vm15, %v3414_v24, %v3135_v31  ;;  %v3354_v47 = vsel %vm2185_vm12, %v3333_v46, %v7131_v20  ;;  %v7928_v31 = vld [vmem:[#allocation40_spill] sm:$0xff] }
 0x750   :  { %v3334_v61 = vsel %vm1189_vm9, %v2625_v43, %v7928_v31 }
 0x754   :  { %v2923_v36 = vpop.permute.xlu0 %2922  ;;  %v3200_v40 = vpop.permute.xlu1 %3199 }
 0x755   :  { %v3456_v62 = vsel %vm2294_vm2, %v3435_v5, %v3200_v40  ;;  %v3286_v33 = vpop.permute.xlu2 %3285  ;;  %v3373_v12 = vsel %vm2207_vm13, %v3352_v56, %v2923_v36 }
 0x756   :  { %v3477_v49 = vsel %vm784_vm1, %v3456_v62, %v3284_v34 }
 0x757   :  { %3721 = vmatmul.msk.f32.gmra.mxu3 %vm2344_vm3, %v3477_v49 }
 0x75a   :  { %v3593_v37 = vpop.f32.mrf.mxu3 }
 0x75b   :  { %3642 = vst.msk [vmem:[%s7623_s9 + $0x38] sm:$0xff] %vm762_vm0, %v3593_v37 }
 0x75c   :  { %v3137_v28 = vpop.permute.xlu0 %3136  ;;  %v2988_v27 = vpop.permute.xlu1 %2987 }
 0x75d   :  { %v3394_v57 = vsel %vm762_vm0, %v3373_v12, %v2988_v27  ;;  %v3074_v55 = vpop.permute.xlu2 %3073 }
 0x75e   :  { %v3415_v44 = vsel %vm2250_vm14, %v3394_v57, %v3072_v9  ;;  %v3355_v9 = vsel %vm2185_vm12, %v3334_v61, %v7929_v50 }
 0x75f   :  { %v3436_v17 = vsel %vm2272_vm15, %v3415_v44, %v3137_v28 }
 0x764   :  { %v2925_v41 = vpop.permute.xlu0 %2924  ;;  %v3202_v18 = vpop.permute.xlu1 %3201 }
 0x765   :  { %v3457_v39 = vsel %vm2294_vm2, %v3436_v17, %v3202_v18  ;;  %v3374_v23 = vsel %vm2207_vm13, %v3353_v7, %v2925_v41  ;;  %v3288_v54 = vpop.permute.xlu2 %3287 }
 0x766   :  { %v3478_v29 = vsel %vm784_vm1, %v3457_v39, %v3286_v33 }
 0x767   :  { %3722 = vmatmul.msk.f32.gmra.mxu3 %vm2344_vm3, %v3478_v29 }
 0x769   :  { %v3596_v63 = vpop.f32.mrf.mxu3 }
 0x76a   :  { %3643 = vst.msk [vmem:[%s7623_s9 + $0x40] sm:$0xff] %vm762_vm0, %v3596_v63 }
 0x76c   :  { %v2990_v58 = vpop.permute.xlu1 %2989  ;;  %v3139_v14 = vpop.permute.xlu0 %3138 }
 0x76d   :  { %v3395_v1 = vsel %vm762_vm0, %v3374_v23, %v2990_v58  ;;  %v3076_v51 = vpop.permute.xlu2 %3075 }
 0x76e   :  { %v3416_v3 = vsel %vm2250_vm14, %v3395_v1, %v3074_v55 }
 0x76f   :  { %v3437_v48 = vsel %vm2272_vm15, %v3416_v3, %v3139_v14 }
 0x773   :  { %v3599_v26 = vpop.f32.mrf.mxu3 }
 0x774   :  { %3644 = vst.msk [vmem:[%s7623_s9 + $0x48] sm:$0xff] %vm762_vm0, %v3599_v26  ;;  %v3204_v22 = vpop.permute.xlu1 %3203  ;;  %v2927_v0 = vpop.permute.xlu0 %2926 }
 0x775   :  { %v3458_v35 = vsel %vm2294_vm2, %v3437_v48, %v3204_v22  ;;  %v3375_v45 = vsel %vm2207_vm13, %v3354_v47, %v2927_v0  ;;  %v3290_v38 = vpop.permute.xlu2 %3289 }
 0x776   :  { %v3479_v8 = vsel %vm784_vm1, %v3458_v35, %v3288_v54 }
 0x777   :  { %3723 = vmatmul.msk.f32.gmra.mxu3 %vm2344_vm3, %v3479_v8 }
 0x77c   :  { %v2992_v2 = vpop.permute.xlu1 %2991  ;;  %v3141_v4 = vpop.permute.xlu0 %3140 }
 0x77d   :  { %v3396_v15 = vsel %vm762_vm0, %v3375_v45, %v2992_v2  ;;  %v3078_v59 = vpop.permute.xlu2 %3077 }
 0x77e   :  { %v3417_v30 = vsel %vm2250_vm14, %v3396_v15, %v3076_v51 }
 0x77f   :  { %v3438_v21 = vsel %vm2272_vm15, %v3417_v30, %v3141_v4 }
 0x782   :  { %v3602_v34 = vpop.f32.mrf.mxu3 }
 0x783   :  { %3645 = vst.msk [vmem:[%s7623_s9 + $0x50] sm:$0xff] %vm762_vm0, %v3602_v34 }
 0x784   :  { %v3206_v60 = vpop.permute.xlu1 %3205  ;;  %v2929_v53 = vpop.permute.xlu0 %2928 }
 0x785   :  { %v3459_v20 = vsel %vm2294_vm2, %v3438_v21, %v3206_v60  ;;  %v3376_v36 = vsel %vm2207_vm13, %v3355_v9, %v2929_v53  ;;  %v3292_v33 = vpop.permute.xlu2 %3291 }
 0x786   :  { %v3480_v25 = vsel %vm784_vm1, %v3459_v20, %v3290_v38 }
 0x787   :  { %3724 = vmatmul.msk.f32.gmra.mxu3 %vm2344_vm3, %v3480_v25 }
 0x78c   :  { %v2994_v24 = vpop.permute.xlu1 %2993  ;;  %v3143_v5 = vpop.permute.xlu0 %3142 }
 0x78d   :  { %v3397_v40 = vsel %vm762_vm0, %v3376_v36, %v2994_v24 }
 0x78e   :  { %v3418_v62 = vsel %vm2250_vm14, %v3397_v40, %v3078_v59 }
 0x78f   :  { %v3439_v10 = vsel %vm2272_vm15, %v3418_v62, %v3143_v5 }
 0x791   :  { %v3605_v49 = vpop.f32.mrf.mxu3 }
 0x792   :  { %3646 = vst.msk [vmem:[%s7623_s9 + $0x58] sm:$0xff] %vm762_vm0, %v3605_v49 }
 0x794   :  { %v3208_v37 = vpop.permute.xlu1 %3207 }
 0x795   :  { %v3460_v13 = vsel %vm2294_vm2, %v3439_v10, %v3208_v37 }
 0x796   :  { %v3481_v32 = vsel %vm784_vm1, %v3460_v13, %v3292_v33  ;;  %vm3655_vm1 = vcmask 189440  }
 0x797   :  { %3725 = vmatmul.msk.f32.gmra.mxu3 %vm2344_vm3, %v3481_v32 }
 0x79b   :  { %v3608_v56 = vpop.f32.mrf.mxu3 }
 0x79c   :  { %3647 = vst.msk [vmem:[%s7623_s9 + $0x60] sm:$0xff] %vm762_vm0, %v3608_v56 }
 0x7aa   :  { %v3611_v28 = vpop.f32.mrf.mxu3 }
 0x7ab   :  { %3648 = vst.msk [vmem:[%s7623_s9 + $0x68] sm:$0xff] %vm762_vm0, %v3611_v28 }
 0x7ba   :  { %v3614_v27 = vpop.f32.mrf.mxu3 }
 0x7bb   :  { %3649 = vst.msk [vmem:[%s7623_s9 + $0x70] sm:$0xff] %vm762_vm0, %v3614_v27 }
 0x7ca   :  { %v3617_v12 = vpop.f32.mrf.mxu3 }
 0x7cb   :  { %3650 = vst.msk [vmem:[%s7623_s9 + $0x78] sm:$0xff] %vm762_vm0, %v3617_v12 }
 0x7da   :  { %v3620_v57 = vpop.f32.mrf.mxu3 }
 0x7db   :  { %3651 = vst.msk [vmem:[%s7623_s9 + $0x80] sm:$0xff] %vm762_vm0, %v3620_v57 }
 0x7ea   :  { %v3623_v44 = vpop.f32.mrf.mxu3 }
 0x7eb   :  { %3652 = vst.msk [vmem:[%s7623_s9 + $0x88] sm:$0xff] %vm762_vm0, %v3623_v44 }
 0x7fa   :  { %v3626_v55 = vpop.f32.mrf.mxu3 }
 0x7fb   :  { %3653 = vst.msk [vmem:[%s7623_s9 + $0x90] sm:$0xff] %vm762_vm0, %v3626_v55 }
 0x80a   :  { %v3629_v41 = vpop.f32.mrf.mxu3 }
 0x80b   :  { %3654 = vst.msk [vmem:[%s7623_s9 + $0x98] sm:$0xff] %vm762_vm0, %v3629_v41 }
 0x81a   :  { %v3632_v18 = vpop.f32.mrf.mxu3 }
 0x81b   :  { %3656 = vst.msk [vmem:[%s7623_s9 + $0xa0] sm:$0x3] %vm3655_vm1, %v3632_v18 }

</bundles_post_ra>
